<compile_context>
chip_gen: v5e
topology: v5e:2x2
jax: 0.10.0
libtpu: 0.0.40
codegen_flags: <defaults>
</compile_context>

<pallas_src>
import math

import numpy as np
import jax
import jax.numpy as jnp
from jax.experimental import pallas as pl
from jax.experimental.pallas import tpu as pltpu

PARAM = {
    "con_layers": 2,
    "dense_layers": 1,
    "filter_size": [3, 3],
    "dense_output_list": [32],      # args.neurons_fc
    "filter_num": 8,
    "filter_org": "same",
    "activation": "ReLU",
    "input_channel": 3,
    "padding": 1,
    "stride": 1,
    "pool_padding": 0,
    "pool_stride": 2,
    "pool_filter_size": 2,
    "image_size": 16,
    "dropout": [0.0, 0.0, 0.0],
    "batch_norm": "No",
    "init": "Xavier",
    "num_classes": 10,
}

LANE = 128  # TPU lane width; the dense/head tail is padded to this many lanes


# -----------------------------------------------------------------------------
# Single fused Pallas kernel: conv1+pool, conv2+pool, dense, head+softmax
# -----------------------------------------------------------------------------
def cnn_forward_kernel(x_ref, w1_ref, w2_ref, wd_ref, bd_ref, wh_ref, bh_ref, o_ref):
    """Whole forward for a block of images.

    x_ref : (NB, 768)   f32   NCHW-flattened images (cast to bf16 in-kernel)
    w1_ref: (768, 2048) bf16  densified conv1 (cols = 4 pool offsets x 64 pos x 8 ch)
    w2_ref: (512, 512)  bf16  densified conv2 (cols = 4 pool offsets x 16 pos x 8 ch)
    wd_ref: (128, 128)  bf16  dense weight (NCHW-flatten perm folded in, lane-padded)
    bd_ref: (1, 128)    f32   lane-padded with zeros
    wh_ref: (128, 128)  bf16  head weight (pre-transposed, lane-padded with zeros)
    bh_ref: (1, 128)    f32   lane-padded with -1e9 (so padded softmax lanes are exact 0)
    o_ref : (NB, 128)   f32   softmax probabilities (cols >= 10 are exact zeros)
    """
    x = x_ref[...].astype(jnp.bfloat16)          # in-kernel cast rides on VPU slack

    # ---- conv1 + MaxPool2d(2,2) + ReLU: one MXU matmul, max over 4 lane chunks ----
    z1 = jnp.dot(x, w1_ref[...], preferred_element_type=jnp.float32).astype(jnp.bfloat16)
    c1 = z1.shape[-1] // 4                       # 512 = multiple of 128
    a1 = jnp.maximum(jnp.maximum(z1[:, 0 * c1:1 * c1], z1[:, 1 * c1:2 * c1]),
                     jnp.maximum(z1[:, 2 * c1:3 * c1], z1[:, 3 * c1:4 * c1]))
    a1 = jnp.maximum(a1, 0.0)                    # ReLU after pool (max/ReLU commute)

    # ---- conv2 + MaxPool2d(2,2) + ReLU ----
    z2 = jnp.dot(a1, w2_ref[...], preferred_element_type=jnp.float32).astype(jnp.bfloat16)
    c2 = z2.shape[-1] // 4                       # 128 = one lane tile
    a2 = jnp.maximum(jnp.maximum(z2[:, 0 * c2:1 * c2], z2[:, 1 * c2:2 * c2]),
                     jnp.maximum(z2[:, 2 * c2:3 * c2], z2[:, 3 * c2:4 * c2]))
    a2 = jnp.maximum(a2, 0.0)

    # ---- Flatten + Linear + ReLU (flatten permutation folded into wd rows) ----
    h = jnp.dot(a2, wd_ref[...], preferred_element_type=jnp.float32) + bd_ref[...]
    h = jnp.maximum(h, 0.0)                      # padded cols stay exactly 0

    # ---- Linear + Softmax(dim=1) over 128 lanes (padded logits are -1e9 -> exp==0) --
    logits = jnp.dot(h.astype(jnp.bfloat16), wh_ref[...],
                     preferred_element_type=jnp.float32) + bh_ref[...]
    logits = logits - jnp.max(logits, axis=-1, keepdims=True)
    e = jnp.exp(logits)
    o_ref[...] = e * pl.reciprocal(jnp.sum(e, axis=-1, keepdims=True))  # exact recip


def _pick_batch_block(N, max_nb=512):
    """Largest sublane-aligned (multiple-of-8) divisor of N that is <= max_nb and
    gives >= 2 grid steps (so v7x's two TensorCores both get work); otherwise the
    whole batch in one block."""
    for d in range(min(N // 2, max_nb), 7, -1):
        if N % d == 0 and d % 8 == 0:
            return d
    if N <= max(max_nb, 1024):
        return N                                  # single block (small / odd batches)
    # TODO(synk): pad ragged large batches instead of failing.
    raise ValueError(f"batch {N} cannot be tiled into aligned blocks <= {max_nb}")


def forward(kparams, x_nchw, *, max_block=512):
    """kparams: dict from prepare_kernel_params(); x_nchw: (N, 3, 16, 16) float32."""
    N = x_nchw.shape[0]
    x = x_nchw.reshape(N, -1)                     # NCHW-flat, stays f32 (cast in-kernel)
    NB = _pick_batch_block(N, max_block)
    grid = (N // NB,)

    def full(a):                                  # weight resident in VMEM, index fixed
        return pl.BlockSpec(a.shape, lambda i, _nd=a.ndim: (0,) * _nd)

    num_classes = kparams["num_classes"]
    npad = kparams["wh"].shape[1]                 # 128 lane-padded tail width

    flops = 2 * N * sum(int(kparams[k].shape[0]) * int(kparams[k].shape[1])
                        for k in ("w1", "w2", "wd", "wh"))
    bytes_accessed = (int(x.size) * x.dtype.itemsize
                      + sum(int(kparams[k].size) * kparams[k].dtype.itemsize
                            for k in ("w1", "w2", "wd", "bd", "wh", "bh"))
                      + N * npad * 4)
    cost = pl.CostEstimate(flops=flops, transcendentals=N * npad,
                           bytes_accessed=bytes_accessed)

    out = pl.pallas_call(
        cnn_forward_kernel,
        out_shape=jax.ShapeDtypeStruct((N, npad), jnp.float32),
        grid=grid,
        in_specs=[
            pl.BlockSpec((NB, x.shape[1]), lambda i: (i, 0)),
            full(kparams["w1"]), full(kparams["w2"]),
            full(kparams["wd"]), full(kparams["bd"]),
            full(kparams["wh"]), full(kparams["bh"]),
        ],
        out_specs=pl.BlockSpec((NB, npad), lambda i: (i, 0)),
        compiler_params=pltpu.CompilerParams(
            dimension_semantics=("parallel",),
            vmem_limit_bytes=48 * 1024 * 1024),
        cost_estimate=cost,
    )(x, kparams["w1"], kparams["w2"], kparams["wd"], kparams["bd"],
      kparams["wh"], kparams["bh"])
    return out[:, :num_classes]


# -----------------------------------------------------------------------------
# One-time parameter preparation (exact conv -> block-Toeplitz matmul lowering)
# -----------------------------------------------------------------------------
def conv_pool_as_matmul(w, H, pad, channels_last_in):
    """Exactly lower Conv2d(bias=False, stride=1, padding=pad) + MaxPool2d(2,2)
    to a dense matrix Wd of shape (Cin*H*H, 4 * P*P * Cout), P = Ho//2, so that
        z = x_flat @ Wd;  a = elementwise-max of the four P*P*Cout lane chunks
    equals the pooled conv output, flattened NHWC per image (columns = (Y, X, cout)).
    (The ReLU is applied after the pool max inside the kernel — they commute.)
    x_flat columns are NCHW-flat if channels_last_in=False, else NHWC-flat."""
    Cout, Cin, K, _ = w.shape
    Ho = H + 2 * pad - K + 1
    assert Ho % 2 == 0, "pool-window grouping needs even conv output size"
    P = Ho // 2
    j, Y, X, kh, kw, ci = np.meshgrid(np.arange(4), np.arange(P), np.arange(P),
                                      np.arange(K), np.arange(K), np.arange(Cin),
                                      indexing="ij")
    oy = 2 * Y + j // 2
    ox = 2 * X + j % 2
    iy = oy + kh - pad
    ix = ox + kw - pad
    valid = (iy >= 0) & (iy < H) & (ix >= 0) & (ix < H)
    if channels_last_in:
        p_in = (iy * H + ix) * Cin + ci
    else:
        p_in = ci * H * H + iy * H + ix
    q_out = j * (P * P) + Y * P + X
    p_in, q_out, khv, kwv, civ = (a[valid] for a in (p_in, q_out, kh, kw, ci))
    w_cols = jnp.transpose(w, (1, 2, 3, 0))                 # (Cin, K, K, Cout)
    vals = w_cols[civ, khv, kwv, :]                         # (nnz, Cout)
    wd = jnp.zeros((Cin * H * H, 4 * P * P, Cout), w.dtype)
    wd = wd.at[p_in, q_out, :].add(vals)
    return wd.reshape(Cin * H * H, 4 * P * P * Cout)


def prepare_kernel_params(params, param=PARAM):
    assert param["con_layers"] == 2 and len(params["dense"]) == 1
    H = param["image_size"]
    pad = param["padding"]
    w1d = conv_pool_as_matmul(params["conv_ws"][0], H, pad, channels_last_in=False)
    w2d = conv_pool_as_matmul(params["conv_ws"][1], H // 2, pad, channels_last_in=True)

    # Fold NHWC(activations) -> NCHW(nn.Flatten) permutation into the dense weight rows.
    c2 = params["conv_ws"][1].shape[0]                      # 8 channels
    p2 = H // 4                                             # 4x4 pooled spatial
    cols = np.arange(p2 * p2 * c2)                          # col = (Y*p2+X)*c2 + co
    perm = (cols % c2) * (p2 * p2) + cols // c2             # -> co*(p2*p2) + Y*p2 + X

    wd, bd = params["dense"][0]                             # (32, 128), (32,)
    wh, bh = params["head"]                                 # (10, 32),  (10,)
    d_in = wd.shape[1]
    n_fc = wd.shape[0]
    n_cls = wh.shape[0]
    assert d_in <= LANE and n_fc <= LANE and n_cls <= LANE

    # Lane-dense tail: pad everything to 128 lanes.  Padded bd/wd/wh entries are zero
    # (so h's padded cols are exactly 0); padded bh entries are -1e9 so the padded
    # logits underflow to exp==0 and softmax over 128 lanes equals softmax over 10.
    wd_k = jnp.zeros((d_in, LANE), jnp.float32).at[:, :n_fc].set(wd[:, perm].T)
    bd_k = jnp.zeros((1, LANE), jnp.float32).at[0, :n_fc].set(bd)
    wh_k = jnp.zeros((LANE, LANE), jnp.float32).at[:n_fc, :n_cls].set(wh.T)
    bh_k = jnp.full((1, LANE), -1e9, jnp.float32).at[0, :n_cls].set(bh)

    return {
        "w1": w1d.astype(jnp.bfloat16),
        "w2": w2d.astype(jnp.bfloat16),
        "wd": wd_k.astype(jnp.bfloat16),
        "bd": bd_k,
        "wh": wh_k.astype(jnp.bfloat16),
        "bh": bh_k,
        "num_classes": n_cls,
    }


# -----------------------------------------------------------------------------
# Deterministic parameter init (synthetic; shapes per __init__)
# -----------------------------------------------------------------------------
def organize_filters(param):
    assert param["filter_org"] == "same"
    return [param["filter_num"]] * param["con_layers"]


def init_params(key, param):
    filter_num_list = organize_filters(param)
    conv_ws = []
    c_in = param["input_channel"]
    for i in range(param["con_layers"]):
        c_out, k = filter_num_list[i], param["filter_size"][i]
        key, sub = jax.random.split(key)
        fan_in, fan_out = c_in * k * k, c_out * k * k
        bound = math.sqrt(6.0 / (fan_in + fan_out))         # Xavier uniform
        conv_ws.append(jax.random.uniform(sub, (c_out, c_in, k, k),
                                          jnp.float32, -bound, bound))
        c_in = c_out

    dense_in = c_in * (param["image_size"] // 2 ** param["con_layers"]) ** 2
    dense = []
    for d_out in param["dense_output_list"]:
        key, kw, kb = jax.random.split(key, 3)
        bound = 1.0 / math.sqrt(dense_in)
        w = jax.random.uniform(kw, (d_out, dense_in), jnp.float32, -bound, bound)
        b = jax.random.uniform(kb, (d_out,), jnp.float32, -bound, bound)
        dense.append((w, b))
        dense_in = d_out

    key, kw, kb = jax.random.split(key, 3)
    bound = 1.0 / math.sqrt(dense_in)
    head = (jax.random.uniform(kw, (param["num_classes"], dense_in), jnp.float32, -bound, bound),
            jax.random.uniform(kb, (param["num_classes"],), jnp.float32, -bound, bound))
    return {"conv_ws": conv_ws, "dense": dense, "head": head}


# -----------------------------------------------------------------------------
# Pure-JAX reference (f32) for correctness validation of the fused kernel
# -----------------------------------------------------------------------------
def reference_forward(params, x_nchw, param=PARAM):
    x = x_nchw.astype(jnp.float32)
    p = param["padding"]
    for w in params["conv_ws"]:
        x = jax.lax.conv_general_dilated(x, w.astype(jnp.float32), (1, 1),
                                         [(p, p), (p, p)],
                                         dimension_numbers=("NCHW", "OIHW", "NCHW"))
        x = jnp.maximum(x, 0.0)
        x = jax.lax.reduce_window(x, -jnp.inf, jax.lax.max,
                                  (1, 1, 2, 2), (1, 1, 2, 2), "VALID")
    x = x.reshape(x.shape[0], -1)                           # nn.Flatten (NCHW order)
    for (w, b) in params["dense"]:
        x = jnp.maximum(x @ w.T + b, 0.0)
    w, b = params["head"]
    return jax.nn.softmax(x @ w.T + b, axis=-1)


if __name__ == "__main__":
    key = jax.random.PRNGKey(0)
    key_x, key_p = jax.random.split(key)
    batch = 2
    x = jax.random.normal(
        key_x, (batch, PARAM["input_channel"], PARAM["image_size"], PARAM["image_size"]),
        dtype=jnp.float32)

    params = init_params(key_p, PARAM)
    kparams = prepare_kernel_params(params, PARAM)

    out = jax.block_until_ready(forward(kparams, x))
    ref = jax.block_until_ready(reference_forward(params, x, PARAM))

    assert out.shape == (batch, PARAM["num_classes"])
    assert bool(jnp.all(jnp.isfinite(out)))
    assert bool(jnp.allclose(jnp.sum(out, axis=1), 1.0, atol=1e-3))   # exact recip softmax
    assert bool(jnp.allclose(out, ref, atol=5e-2))                    # bf16 kernel vs f32 ref

    # Exercise the multi-block grid path (>= 2 parallel steps -> both v7x TCs get work).
    xb = jax.random.normal(jax.random.PRNGKey(1),
                           (32, PARAM["input_channel"], PARAM["image_size"], PARAM["image_size"]),
                           dtype=jnp.float32)
    outb = jax.block_until_ready(forward(kparams, xb))
    refb = jax.block_until_ready(reference_forward(params, xb, PARAM))
    assert outb.shape == (32, PARAM["num_classes"])
    assert bool(jnp.allclose(outb, refb, atol=5e-2))

    print("KERNEL_OK")
</pallas_src>

<mosaic_0001>
module attributes {stable_mosaic.version = 11 : i64} {
  func.func @cnn_forward_kernel(%arg0: i32, %arg1: memref<2x768xf32, #tpu.memory_space<vmem>>, %arg2: memref<768x2048xbf16, #tpu.memory_space<vmem>>, %arg3: memref<512x512xbf16, #tpu.memory_space<vmem>>, %arg4: memref<128x128xbf16, #tpu.memory_space<vmem>>, %arg5: memref<1x128xf32, #tpu.memory_space<vmem>>, %arg6: memref<128x128xbf16, #tpu.memory_space<vmem>>, %arg7: memref<1x128xf32, #tpu.memory_space<vmem>>, %arg8: memref<2x128xf32, #tpu.memory_space<vmem>>) attributes {dimension_semantics = [#tpu.dimension_semantics<parallel>], iteration_bounds = array<i64: 1>, scalar_prefetch = 0 : i64, scratch_operands = 0 : i64, tpu.core_type = #tpu.core_type<tc>, window_params = [{transform_indices = @transform_0, window_bounds = array<i64: 2, 768>}, {pipeline_mode = #tpu.pipeline_mode<synchronous>, transform_indices = @transform_1, window_bounds = array<i64: 768, 2048>}, {pipeline_mode = #tpu.pipeline_mode<synchronous>, transform_indices = @transform_2, window_bounds = array<i64: 512, 512>}, {pipeline_mode = #tpu.pipeline_mode<synchronous>, transform_indices = @transform_3, window_bounds = array<i64: 128, 128>}, {pipeline_mode = #tpu.pipeline_mode<synchronous>, transform_indices = @transform_4, window_bounds = array<i64: 1, 128>}, {pipeline_mode = #tpu.pipeline_mode<synchronous>, transform_indices = @transform_5, window_bounds = array<i64: 128, 128>}, {pipeline_mode = #tpu.pipeline_mode<synchronous>, transform_indices = @transform_6, window_bounds = array<i64: 1, 128>}, {transform_indices = @transform_7, window_bounds = array<i64: 2, 128>}]} {
    %c0 = arith.constant 0 : index
    %c0_0 = arith.constant 0 : index
    %0 = vector.load %arg1[%c0, %c0_0] : memref<2x768xf32, #tpu.memory_space<vmem>>, vector<2x768xf32>
    %1 = arith.truncf %0 : vector<2x768xf32> to vector<2x768xbf16>
    %c0_1 = arith.constant 0 : index
    %c0_2 = arith.constant 0 : index
    %2 = vector.load %arg2[%c0_1, %c0_2] : memref<768x2048xbf16, #tpu.memory_space<vmem>>, vector<768x2048xbf16>
    %cst = arith.constant dense<0.000000e+00> : vector<2x2048xf32>
    %3 = tpu.matmul %1, %2, %cst {dimension_numbers = #tpu.dot_dimension_numbers<[1], [0], [0], [1], [0, 0, 1, 1], [], []>} : vector<2x768xbf16>, vector<768x2048xbf16>, vector<2x2048xf32> -> vector<2x2048xf32>
    %4 = arith.truncf %3 : vector<2x2048xf32> to vector<2x2048xbf16>
    %5 = vector.extract_strided_slice %4 {offsets = [0, 0], sizes = [2, 512], strides = [1, 1]} : vector<2x2048xbf16> to vector<2x512xbf16>
    %6 = vector.extract_strided_slice %4 {offsets = [0, 512], sizes = [2, 512], strides = [1, 1]} : vector<2x2048xbf16> to vector<2x512xbf16>
    %7 = arith.maximumf %5, %6 : vector<2x512xbf16>
    %8 = vector.extract_strided_slice %4 {offsets = [0, 1024], sizes = [2, 512], strides = [1, 1]} : vector<2x2048xbf16> to vector<2x512xbf16>
    %9 = vector.extract_strided_slice %4 {offsets = [0, 1536], sizes = [2, 512], strides = [1, 1]} : vector<2x2048xbf16> to vector<2x512xbf16>
    %10 = arith.maximumf %8, %9 : vector<2x512xbf16>
    %11 = arith.maximumf %7, %10 : vector<2x512xbf16>
    %cst_3 = arith.constant 0.000000e+00 : bf16
    %12 = vector.broadcast %cst_3 : bf16 to vector<2x512xbf16>
    %13 = arith.maximumf %11, %12 : vector<2x512xbf16>
    %c0_4 = arith.constant 0 : index
    %c0_5 = arith.constant 0 : index
    %14 = vector.load %arg3[%c0_4, %c0_5] : memref<512x512xbf16, #tpu.memory_space<vmem>>, vector<512x512xbf16>
    %cst_6 = arith.constant dense<0.000000e+00> : vector<2x512xf32>
    %15 = tpu.matmul %13, %14, %cst_6 {dimension_numbers = #tpu.dot_dimension_numbers<[1], [0], [0], [1], [0, 0, 1, 1], [], []>} : vector<2x512xbf16>, vector<512x512xbf16>, vector<2x512xf32> -> vector<2x512xf32>
    %16 = arith.truncf %15 : vector<2x512xf32> to vector<2x512xbf16>
    %17 = vector.extract_strided_slice %16 {offsets = [0, 0], sizes = [2, 128], strides = [1, 1]} : vector<2x512xbf16> to vector<2x128xbf16>
    %18 = vector.extract_strided_slice %16 {offsets = [0, 128], sizes = [2, 128], strides = [1, 1]} : vector<2x512xbf16> to vector<2x128xbf16>
    %19 = arith.maximumf %17, %18 : vector<2x128xbf16>
    %20 = vector.extract_strided_slice %16 {offsets = [0, 256], sizes = [2, 128], strides = [1, 1]} : vector<2x512xbf16> to vector<2x128xbf16>
    %21 = vector.extract_strided_slice %16 {offsets = [0, 384], sizes = [2, 128], strides = [1, 1]} : vector<2x512xbf16> to vector<2x128xbf16>
    %22 = arith.maximumf %20, %21 : vector<2x128xbf16>
    %23 = arith.maximumf %19, %22 : vector<2x128xbf16>
    %cst_7 = arith.constant 0.000000e+00 : bf16
    %24 = vector.broadcast %cst_7 : bf16 to vector<2x128xbf16>
    %25 = arith.maximumf %23, %24 : vector<2x128xbf16>
    %c0_8 = arith.constant 0 : index
    %c0_9 = arith.constant 0 : index
    %26 = vector.load %arg4[%c0_8, %c0_9] : memref<128x128xbf16, #tpu.memory_space<vmem>>, vector<128x128xbf16>
    %cst_10 = arith.constant dense<0.000000e+00> : vector<2x128xf32>
    %27 = tpu.matmul %25, %26, %cst_10 {dimension_numbers = #tpu.dot_dimension_numbers<[1], [0], [0], [1], [0, 0, 1, 1], [], []>} : vector<2x128xbf16>, vector<128x128xbf16>, vector<2x128xf32> -> vector<2x128xf32>
    %c0_11 = arith.constant 0 : index
    %c0_12 = arith.constant 0 : index
    %28 = vector.load %arg5[%c0_11, %c0_12] : memref<1x128xf32, #tpu.memory_space<vmem>>, vector<1x128xf32>
    %29 = vector.broadcast %28 : vector<1x128xf32> to vector<2x128xf32>
    %30 = arith.addf %27, %29 : vector<2x128xf32>
    %cst_13 = arith.constant 0.000000e+00 : f32
    %31 = vector.broadcast %cst_13 : f32 to vector<2x128xf32>
    %32 = arith.maximumf %30, %31 : vector<2x128xf32>
    %33 = arith.truncf %32 : vector<2x128xf32> to vector<2x128xbf16>
    %c0_14 = arith.constant 0 : index
    %c0_15 = arith.constant 0 : index
    %34 = vector.load %arg6[%c0_14, %c0_15] : memref<128x128xbf16, #tpu.memory_space<vmem>>, vector<128x128xbf16>
    %cst_16 = arith.constant dense<0.000000e+00> : vector<2x128xf32>
    %35 = tpu.matmul %33, %34, %cst_16 {dimension_numbers = #tpu.dot_dimension_numbers<[1], [0], [0], [1], [0, 0, 1, 1], [], []>} : vector<2x128xbf16>, vector<128x128xbf16>, vector<2x128xf32> -> vector<2x128xf32>
    %c0_17 = arith.constant 0 : index
    %c0_18 = arith.constant 0 : index
    %36 = vector.load %arg7[%c0_17, %c0_18] : memref<1x128xf32, #tpu.memory_space<vmem>>, vector<1x128xf32>
    %37 = vector.broadcast %36 : vector<1x128xf32> to vector<2x128xf32>
    %38 = arith.addf %35, %37 : vector<2x128xf32>
    %cst_19 = arith.constant dense<0xFF800000> : vector<2xf32>
    %39 = vector.multi_reduction <maximumf>, %38, %cst_19 [1] : vector<2x128xf32> to vector<2xf32>
    %40 = vector.shape_cast %39 : vector<2xf32> to vector<2x1xf32>
    %41 = vector.broadcast %40 : vector<2x1xf32> to vector<2x128xf32>
    %42 = arith.subf %38, %41 : vector<2x128xf32>
    %43 = math.exp %42 : vector<2x128xf32>
    %cst_20 = arith.constant dense<0.000000e+00> : vector<2xf32>
    %44 = vector.multi_reduction <add>, %43, %cst_20 [1] : vector<2x128xf32> to vector<2xf32>
    %45 = vector.shape_cast %44 : vector<2xf32> to vector<2x1xf32>
    %46 = tpu.reciprocal %45 : vector<2x1xf32> -> vector<2x1xf32>
    %47 = vector.broadcast %46 : vector<2x1xf32> to vector<2x128xf32>
    %48 = arith.mulf %43, %47 : vector<2x128xf32>
    %c0_21 = arith.constant 0 : index
    %c0_22 = arith.constant 0 : index
    %49 = vector.load %arg8[%c0_21, %c0_22] : memref<2x128xf32, #tpu.memory_space<vmem>>, vector<2x128xf32>
    tpu.vector_store %arg8[%c0_21, %c0_22], %48 {strides = array<i32>} : memref<2x128xf32, #tpu.memory_space<vmem>>, vector<2x128xf32>,
    return
  }
  func.func @transform_0(%arg0: i32) -> (i32, i32) {
    %c0_i32 = arith.constant 0 : i32
    %c0_i32_0 = arith.constant 0 : i32
    return %arg0, %c0_i32 : i32, i32
  }
  func.func @transform_1(%arg0: i32) -> (i32, i32) {
    %c0_i32 = arith.constant 0 : i32
    %c0_i32_0 = arith.constant 0 : i32
    %c0_i32_1 = arith.constant 0 : i32
    return %c0_i32, %c0_i32_0 : i32, i32
  }
  func.func @transform_2(%arg0: i32) -> (i32, i32) {
    %c0_i32 = arith.constant 0 : i32
    %c0_i32_0 = arith.constant 0 : i32
    %c0_i32_1 = arith.constant 0 : i32
    return %c0_i32, %c0_i32_0 : i32, i32
  }
  func.func @transform_3(%arg0: i32) -> (i32, i32) {
    %c0_i32 = arith.constant 0 : i32
    %c0_i32_0 = arith.constant 0 : i32
    %c0_i32_1 = arith.constant 0 : i32
    return %c0_i32, %c0_i32_0 : i32, i32
  }
  func.func @transform_4(%arg0: i32) -> (i32, i32) {
    %c0_i32 = arith.constant 0 : i32
    %c0_i32_0 = arith.constant 0 : i32
    %c0_i32_1 = arith.constant 0 : i32
    return %c0_i32, %c0_i32_0 : i32, i32
  }
  func.func @transform_5(%arg0: i32) -> (i32, i32) {
    %c0_i32 = arith.constant 0 : i32
    %c0_i32_0 = arith.constant 0 : i32
    %c0_i32_1 = arith.constant 0 : i32
    return %c0_i32, %c0_i32_0 : i32, i32
  }
  func.func @transform_6(%arg0: i32) -> (i32, i32) {
    %c0_i32 = arith.constant 0 : i32
    %c0_i32_0 = arith.constant 0 : i32
    %c0_i32_1 = arith.constant 0 : i32
    return %c0_i32, %c0_i32_0 : i32, i32
  }
  func.func @transform_7(%arg0: i32) -> (i32, i32) {
    %c0_i32 = arith.constant 0 : i32
    %c0_i32_0 = arith.constant 0 : i32
    return %arg0, %c0_i32 : i32, i32
  }
}

</mosaic_0001>

<bundles_post_ra>
// kernel: tpu_custom_call.1
= control target key start
LH: loop header
LB: loop body
LE: loop exit
PB: predicated region body
PF: predicated region fallthrough
CT: control target
= control target key end

     0   :  { %12 = vsyncpa [#allocation3], 0  ;;  %s12383_s0 = inlined_call_operand.hbm [shape: f32[2,768], index: 0, kind: input, shape index: {}]   ;;  %s12384_s1 = inlined_call_operand.hbm [shape: bf16[768,2048], index: 1, kind: input, shape index: {}]   ;;  %s12385_s2 = inlined_call_operand.hbm [shape: bf16[512,512], index: 2, kind: input, shape index: {}]   ;;  %s12386_s3 = inlined_call_operand.hbm [shape: bf16[128,128], index: 3, kind: input, shape index: {}]   ;;  %s12387_s4 = inlined_call_operand.hbm [shape: f32[1,128], index: 4, kind: input, shape index: {}]   ;;  %s12388_s5 = inlined_call_operand.hbm [shape: bf16[128,128], index: 5, kind: input, shape index: {}]   ;;  %s12389_s6 = inlined_call_operand.hbm [shape: f32[1,128], index: 6, kind: input, shape index: {}]   ;;  %s12390_s7 = inlined_call_operand.hbm [shape: f32[2,128], index: 7, kind: output, shape index: {}]  }
   0x1   :  { %13 = vsyncpa [#allocation6], 0 }
   0x2   :  { %14 = vsyncpa [#allocation9], 0 }
   0x3   :  { %15 = vsyncpa [#allocation12], 0  ;;  %s32_s26 = sshll.u32 %s12384_s1, 4  ;;  %s33_s26 = int_to_ptr.hbm [resolvable:$true] %s32_s26 }
   0x4   :  { %16 = vsyncpa [#allocation4], 0  ;;  %s12063_s27 = smov [#allocation5]   ;;  %s58_s8 = sshll.u32 %s12386_s3, 4  ;;  %s59_s8 = int_to_ptr.hbm [resolvable:$true] %s58_s8 }
   0x5   :  { %s34_s28 = sshll.u32 %s12063_s27, 4  ;;  %s12064_s9 = smov 1024   ;;  %s35_s28 = int_to_ptr.vmem [resolvable:$true] %s34_s28 }
   0x6   :  { %s12065_s10 = smov 64   ;;  %s12066_s11 = smov [#allocation8]  }
   0x7   :  { %40 = dma.hbm_to_vmem [thread:$0]  %s33_s26, 98304, %s35_s28, [#allocation6], %s12064_s9, %s12064_s9, %s12065_s10  }
   0x8   :  { %s60_s12 = sshll.u32 %s12066_s11, 4  ;;  %s82_s1 = sshll.u32 %s12388_s5, 4  ;;  %s61_s12 = int_to_ptr.vmem [resolvable:$true] %s60_s12  ;;  %s83_s1 = int_to_ptr.hbm [resolvable:$true] %s82_s1 }
   0x9   :  { %s12067_s15 = smov 4   ;;  %s12068_s16 = smov [#allocation11]  }
   0xa   :  { %66 = dma.hbm_to_vmem [thread:$0]  %s59_s8, 1024, %s61_s12, [#allocation9], %s12065_s10, %s12065_s10, %s12067_s15  }
   0xb   :  { %s84_s17 = sshll.u32 %s12068_s16, 4  ;;  %s22_s3 = sshll.u32 %s12383_s0, 4  ;;  %s85_s17 = int_to_ptr.vmem [resolvable:$true] %s84_s17  ;;  %s23_s3 = int_to_ptr.hbm [resolvable:$true] %s22_s3 }
   0xc   :  { %90 = dma.hbm_to_vmem [thread:$0]  %s83_s1, 1024, %s85_s17, [#allocation12], %s12065_s10, %s12065_s10, %s12067_s15  }
   0xd   :  { %s45_s22 = sshll.u32 %s12385_s2, 4  ;;  %s12069_s23 = smov [#allocation2]   ;;  %s46_s22 = int_to_ptr.hbm [resolvable:$true] %s45_s22 }
   0xe   :  { %s24_s24 = sshll.u32 %s12069_s23, 4  ;;  %s12070_s5 = smov [#allocation7]   ;;  %s25_s24 = int_to_ptr.vmem [resolvable:$true] %s24_s24 }
   0xf   :  { %27 = dma.hbm_to_vmem [thread:$0]  %s23_s3, 192, %s25_s24, [#allocation3]  }
  0x10   :  { %s47_s25 = sshll.u32 %s12070_s5, 4  ;;  %s12071_s26 = smov 256   ;;  %s48_s25 = int_to_ptr.vmem [resolvable:$true] %s47_s25 }
  0x11   :  { %s12072_s27 = smov 16   ;;  %s72_s29 = sshll.u32 %s12387_s4, 4  ;;  %s73_s29 = int_to_ptr.hbm [resolvable:$true] %s72_s29 }
  0x12   :  { %53 = dma.hbm_to_vmem [thread:$0]  %s46_s22, 16384, %s48_s25, [#allocation6], %s12071_s26, %s12071_s26, %s12072_s27  }
  0x13   :  { %s12073_s30 = smov [#allocation10]   ;;  %s96_s10 = sshll.u32 %s12389_s6, 4  ;;  %s97_s10 = int_to_ptr.hbm [resolvable:$true] %s96_s10 }
  0x14   :  { %s74_s8 = sshll.u32 %s12073_s30, 4  ;;  %s12074_s11 = smov [#allocation13]   ;;  %s75_s8 = int_to_ptr.vmem [resolvable:$true] %s74_s8 }
  0x15   :  { %77 = dma.hbm_to_vmem [thread:$0]  %s73_s29, 16, %s75_s8, [#allocation9]  }
  0x16   :  { %s98_s12 = sshll.u32 %s12074_s11, 4  ;;  %s99_s12 = int_to_ptr.vmem [resolvable:$true] %s98_s12 }
  0x17   :  { %101 = dma.hbm_to_vmem [thread:$0]  %s97_s10, 16, %s99_s12, [#allocation12]  }
  0x18   :  { %12053 = dma.done.wait [#allocation3], 192  }
  0x19   :  { %12054 = vsyncadd [#allocation3], 4294967104 }
  0x1a   :  { %12055 = dma.done.wait [#allocation6], 114688  }
  0x1b   :  { %12056 = vsyncadd [#allocation6], 4294852608 }
  0x1c   :  { %12057 = dma.done.wait [#allocation9], 1040  }
  0x1d   :  { %12058 = vsyncadd [#allocation9], 4294966256 }
  0x1e   :  { %12059 = dma.done.wait [#allocation12], 1040  }
  0x1f   :  { %12060 = vsyncadd [#allocation12], 4294966256  ;;  %v7732_v0 = vld [vmem:[#allocation5 + $0x380] sm:$0xf]  ;;  %vm7236_vm0 = vcmask 1041408   ;;  %s12075_s4 = smov [#allocation14]  }
  0x20   :  { %v11050_v1 = vld [vmem:[#allocation5 + $0x3bc] sm:$0xf0]  ;;  %s7267_s6 = sshll.u32 %s12075_s4, 4  ;;  %s7269_s1 = sshll.u32 %s12390_s7, 4  ;;  %s7268_s6 = int_to_ptr.vmem [resolvable:$true] %s7267_s6  ;;  %s7270_s1 = int_to_ptr.hbm [resolvable:$true] %s7269_s1 }
  0x21   :  { %v8244_v2 = vld [vmem:[#allocation5 + $0x780] sm:$0xf]  ;;  %v7733_v3 = vor.u32 %v11050_v1, %v7732_v0 }
  0x22   :  { %v11178_v4 = vld [vmem:[#allocation5 + $0x7bc] sm:$0xf0] }
  0x23   :  { %v8756_v5 = vld [vmem:[#allocation5 + $0xb80] sm:$0xf]  ;;  %v8245_v7 = vor.u32 %v11178_v4, %v8244_v2  ;;  %4763 = vmatpush.bf16.msra.mxu0 %v7733_v3 }
  0x24   :  { %v11306_v6 = vld [vmem:[#allocation5 + $0xbbc] sm:$0xf0] }
  0x25   :  { %v8757_v8 = vor.u32 %v11306_v6, %v8756_v5  ;;  %v9268_v9 = vld [vmem:[#allocation5 + $0xf80] sm:$0xf]  ;;  %4776 = vmatpush.bf16.msra.mxu1 %v8245_v7 }
  0x26   :  { %v11434_v10 = vld [vmem:[#allocation5 + $0xfbc] sm:$0xf0] }
  0x27   :  { %v7668_v11 = vld [vmem:[#allocation5 + $0x300] sm:$0xf]  ;;  %v9269_v12 = vor.u32 %v11434_v10, %v9268_v9  ;;  %4789 = vmatpush.bf16.msra.mxu2 %v8757_v8 }
  0x28   :  { %v11034_v13 = vld [vmem:[#allocation5 + $0x33c] sm:$0xf0] }
  0x29   :  { %v8180_v14 = vld [vmem:[#allocation5 + $0x700] sm:$0xf]  ;;  %v7669_v16 = vor.u32 %v11034_v13, %v7668_v11  ;;  %4802 = vmatpush.bf16.msra.mxu3 %v9269_v12 }
  0x2a   :  { %v11162_v15 = vld [vmem:[#allocation5 + $0x73c] sm:$0xf0] }
  0x2b   :  { %v8181_v17 = vor.u32 %v11162_v15, %v8180_v14  ;;  %v8692_v18 = vld [vmem:[#allocation5 + $0xb00] sm:$0xf]  ;;  %4764 = vmatpush.bf16.msra.mxu0 %v7669_v16 }
  0x2c   :  { %v11290_v19 = vld [vmem:[#allocation5 + $0xb3c] sm:$0xf0] }
  0x2d   :  { %v9204_v20 = vld [vmem:[#allocation5 + $0xf00] sm:$0xf]  ;;  %v8693_v21 = vor.u32 %v11290_v19, %v8692_v18  ;;  %4777 = vmatpush.bf16.msra.mxu1 %v8181_v17 }
  0x2e   :  { %v11418_v22 = vld [vmem:[#allocation5 + $0xf3c] sm:$0xf0] }
  0x2f   :  { %v7604_v23 = vld [vmem:[#allocation5 + $0x280] sm:$0xf]  ;;  %v9205_v25 = vor.u32 %v11418_v22, %v9204_v20  ;;  %4790 = vmatpush.bf16.msra.mxu2 %v8693_v21 }
  0x30   :  { %v11018_v24 = vld [vmem:[#allocation5 + $0x2bc] sm:$0xf0] }
  0x31   :  { %v8116_v26 = vld [vmem:[#allocation5 + $0x680] sm:$0xf]  ;;  %v7605_v29 = vor.u32 %v11018_v24, %v7604_v23  ;;  %4803 = vmatpush.bf16.msra.mxu3 %v9205_v25 }
  0x32   :  { %v11146_v27 = vld [vmem:[#allocation5 + $0x6bc] sm:$0xf0] }
  0x33   :  { %v8628_v28 = vld [vmem:[#allocation5 + $0xa80] sm:$0xf]  ;;  %v8117_v33 = vor.u32 %v11146_v27, %v8116_v26  ;;  %4765 = vmatpush.bf16.msra.mxu0 %v7605_v29 }
  0x34   :  { %v11274_v30 = vld [vmem:[#allocation5 + $0xabc] sm:$0xf0] }
  0x35   :  { %v9140_v31 = vld [vmem:[#allocation5 + $0xe80] sm:$0xf]  ;;  %v8629_v34 = vor.u32 %v11274_v30, %v8628_v28  ;;  %4778 = vmatpush.bf16.msra.mxu1 %v8117_v33  ;;  %v11042_v33 = vld [vmem:[#allocation5 + $0x384] sm:$0xf] }
  0x36   :  { %v11402_v32 = vld [vmem:[#allocation5 + $0xebc] sm:$0xf0] }
  0x37   :  { %v7540_v35 = vld [vmem:[#allocation5 + $0x200] sm:$0xf]  ;;  %v9141_v38 = vor.u32 %v11402_v32, %v9140_v31  ;;  %4791 = vmatpush.bf16.msra.mxu2 %v8629_v34  ;;  %v7734_v34 = vld [vmem:[#allocation5 + $0x3c0] sm:$0xf0] }
  0x38   :  { %v11002_v36 = vld [vmem:[#allocation5 + $0x23c] sm:$0xf0] }
  0x39   :  { %v8052_v37 = vld [vmem:[#allocation5 + $0x600] sm:$0xf]  ;;  %v7541_v44 = vor.u32 %v11002_v36, %v7540_v35  ;;  %4804 = vmatpush.bf16.msra.mxu3 %v9141_v38  ;;  %v8246_v38 = vld [vmem:[#allocation5 + $0x7c0] sm:$0xf0] }
  0x3a   :  { %v11130_v39 = vld [vmem:[#allocation5 + $0x63c] sm:$0xf0] }
  0x3b   :  { %v8564_v40 = vld [vmem:[#allocation5 + $0xa00] sm:$0xf]  ;;  %v8053_v45 = vor.u32 %v11130_v39, %v8052_v37  ;;  %4766 = vmatpush.bf16.msra.mxu0 %v7541_v44  ;;  %v11170_v37 = vld [vmem:[#allocation5 + $0x784] sm:$0xf] }
  0x3c   :  { %v11258_v41 = vld [vmem:[#allocation5 + $0xa3c] sm:$0xf0] }
  0x3d   :  { %v9076_v42 = vld [vmem:[#allocation5 + $0xe00] sm:$0xf]  ;;  %v8565_v46 = vor.u32 %v11258_v41, %v8564_v40  ;;  %4779 = vmatpush.bf16.msra.mxu1 %v8053_v45 }
  0x3e   :  { %v11386_v43 = vld [vmem:[#allocation5 + $0xe3c] sm:$0xf0] }
  0x3f   :  { %v7476_v47 = vld [vmem:[#allocation5 + $0x180] sm:$0xf]  ;;  %v9077_v50 = vor.u32 %v11386_v43, %v9076_v42  ;;  %4792 = vmatpush.bf16.msra.mxu2 %v8565_v46  ;;  %v7737_v42 = vor.u32 %v11042_v33, %v7734_v34  ;;  %v8249_v46 = vor.u32 %v11170_v37, %v8246_v38 }
  0x40   :  { %v10986_v48 = vld [vmem:[#allocation5 + $0x1bc] sm:$0xf0] }
  0x41   :  { %v7988_v49 = vld [vmem:[#allocation5 + $0x580] sm:$0xf]  ;;  %v7477_v56 = vor.u32 %v10986_v48, %v7476_v47  ;;  %4805 = vmatpush.bf16.msra.mxu3 %v9077_v50  ;;  %v11026_v48 = vld [vmem:[#allocation5 + $0x304] sm:$0xf] }
  0x42   :  { %v11114_v51 = vld [vmem:[#allocation5 + $0x5bc] sm:$0xf0]  ;;  %v11154_v50 = vld [vmem:[#allocation5 + $0x704] sm:$0xf] }
  0x43   :  { %v8500_v52 = vld [vmem:[#allocation5 + $0x980] sm:$0xf]  ;;  %v7989_v57 = vor.u32 %v11114_v51, %v7988_v49  ;;  %4767 = vmatpush.bf16.msra.mxu0 %v7477_v56  ;;  %v7670_v49 = vld [vmem:[#allocation5 + $0x340] sm:$0xf0] }
  0x44   :  { %v11242_v53 = vld [vmem:[#allocation5 + $0x9bc] sm:$0xf0]  ;;  %v8182_v51 = vld [vmem:[#allocation5 + $0x740] sm:$0xf0] }
  0x45   :  { %v9012_v54 = vld [vmem:[#allocation5 + $0xd80] sm:$0xf]  ;;  %v8501_v58 = vor.u32 %v11242_v53, %v8500_v52  ;;  %4780 = vmatpush.bf16.msra.mxu1 %v7989_v57 }
  0x46   :  { %v11370_v55 = vld [vmem:[#allocation5 + $0xdbc] sm:$0xf0] }
  0x47   :  { %v7412_v59 = vld [vmem:[#allocation5 + $0x100] sm:$0xf]  ;;  %v9013_v62 = vor.u32 %v11370_v55, %v9012_v54  ;;  %4793 = vmatpush.bf16.msra.mxu2 %v8501_v58  ;;  %v7673_v54 = vor.u32 %v11026_v48, %v7670_v49  ;;  %v8185_v58 = vor.u32 %v11154_v50, %v8182_v51 }
  0x48   :  { %v10970_v60 = vld [vmem:[#allocation5 + $0x13c] sm:$0xf0] }
  0x49   :  { %v7924_v61 = vld [vmem:[#allocation5 + $0x500] sm:$0xf]  ;;  %v7413_v4 = vor.u32 %v10970_v60, %v7412_v59  ;;  %4806 = vmatpush.bf16.msra.mxu3 %v9013_v62  ;;  %v11010_v60 = vld [vmem:[#allocation5 + $0x284] sm:$0xf] }
  0x4a   :  { %v11098_v63 = vld [vmem:[#allocation5 + $0x53c] sm:$0xf0]  ;;  %v11138_v62 = vld [vmem:[#allocation5 + $0x684] sm:$0xf] }
  0x4b   :  { %v8436_v0 = vld [vmem:[#allocation5 + $0x900] sm:$0xf]  ;;  %v7925_v5 = vor.u32 %v11098_v63, %v7924_v61  ;;  %4768 = vmatpush.bf16.msra.mxu0 %v7413_v4  ;;  %v7606_v61 = vld [vmem:[#allocation5 + $0x2c0] sm:$0xf0] }
  0x4c   :  { %v11226_v1 = vld [vmem:[#allocation5 + $0x93c] sm:$0xf0]  ;;  %v8118_v63 = vld [vmem:[#allocation5 + $0x6c0] sm:$0xf0]  ;;  %v7609_v4 = vor.u32 %v11010_v60, %v7606_v61 }
  0x4d   :  { %v8948_v2 = vld [vmem:[#allocation5 + $0xd00] sm:$0xf]  ;;  %v8437_v6 = vor.u32 %v11226_v1, %v8436_v0  ;;  %4781 = vmatpush.bf16.msra.mxu1 %v7925_v5 }
  0x4e   :  { %v11354_v3 = vld [vmem:[#allocation5 + $0xd3c] sm:$0xf0] }
  0x4f   :  { %v7348_v7 = vld [vmem:[#allocation5 + $0x80] sm:$0xf]  ;;  %v8949_v10 = vor.u32 %v11354_v3, %v8948_v2  ;;  %4794 = vmatpush.bf16.msra.mxu2 %v8437_v6  ;;  %v130_v2 = vld [vmem:[#allocation2] sm:$0xff] }
  0x50   :  { %v10954_v8 = vld [vmem:[#allocation5 + $0xbc] sm:$0xf0]  ;;  %134 = vst [vmem:[#allocation1] ss:$4 sm:$0xff] %v130_v2  ;;  %v7286_v2 = vld [vmem:[#allocation5 + $0x40] sm:$0xf0] }
  0x51   :  { %v7860_v9 = vld [vmem:[#allocation5 + $0x480] sm:$0xf]  ;;  %v7349_v16 = vor.u32 %v10954_v8, %v7348_v7  ;;  %4807 = vmatpush.bf16.msra.mxu3 %v8949_v10  ;;  %v8121_v7 = vor.u32 %v11138_v62, %v8118_v63  ;;  %v7542_v10 = vld [vmem:[#allocation5 + $0x240] sm:$0xf0] }
  0x52   :  { %v11082_v11 = vld [vmem:[#allocation5 + $0x4bc] sm:$0xf0] }
  0x53   :  { %v8372_v12 = vld [vmem:[#allocation5 + $0x880] sm:$0xf]  ;;  %v7861_v19 = vor.u32 %v11082_v11, %v7860_v9  ;;  %4769 = vmatpush.bf16.msra.mxu0 %v7349_v16  ;;  %v10994_v9 = vld [vmem:[#allocation5 + $0x204] sm:$0xf] }
  0x54   :  { %v11210_v13 = vld [vmem:[#allocation5 + $0x8bc] sm:$0xf0]  ;;  %v11122_v11 = vld [vmem:[#allocation5 + $0x604] sm:$0xf]  ;;  %v7545_v16 = vor.u32 %v10994_v9, %v7542_v10 }
  0x55   :  { %v8884_v14 = vld [vmem:[#allocation5 + $0xc80] sm:$0xf]  ;;  %v8373_v20 = vor.u32 %v11210_v13, %v8372_v12  ;;  %4782 = vmatpush.bf16.msra.mxu1 %v7861_v19  ;;  %v8054_v12 = vld [vmem:[#allocation5 + $0x640] sm:$0xf0] }
  0x56   :  { %v11338_v15 = vld [vmem:[#allocation5 + $0xcbc] sm:$0xf0]  ;;  %v9270_v9 = vld [vmem:[#allocation5 + $0xfc0] sm:$0xf0] }
  0x57   :  { %v7284_v17 = vld [vmem:[#allocation5] sm:$0xf]  ;;  %v8885_v24 = vor.u32 %v11338_v15, %v8884_v14  ;;  %4795 = vmatpush.bf16.msra.mxu2 %v8373_v20  ;;  %v8057_v20 = vor.u32 %v11122_v11, %v8054_v12  ;;  %v11554_v11 = vld [vmem:[#allocation5 + $0x1384] sm:$0xf] }
  0x58   :  { %v10938_v18 = vld [vmem:[#allocation5 + $0x3c] sm:$0xf0]  ;;  %v9782_v12 = vld [vmem:[#allocation5 + $0x13c0] sm:$0xf0] }
  0x59   :  { %v7796_v21 = vld [vmem:[#allocation5 + $0x400] sm:$0xf]  ;;  %v7285_v31 = vor.u32 %v10938_v18, %v7284_v17  ;;  %4808 = vmatpush.bf16.msra.mxu3 %v8885_v24  ;;  %v7990_v24 = vld [vmem:[#allocation5 + $0x5c0] sm:$0xf0] }
  0x5a   :  { %v11066_v22 = vld [vmem:[#allocation5 + $0x43c] sm:$0xf0] }
  0x5b   :  { %v8308_v23 = vld [vmem:[#allocation5 + $0x800] sm:$0xf]  ;;  %v7797_v35 = vor.u32 %v11066_v22, %v7796_v21  ;;  %4770 = vmatpush.bf16.msra.mxu0 %v7285_v31  ;;  %v10978_v21 = vld [vmem:[#allocation5 + $0x184] sm:$0xf] }
  0x5c   :  { %v11194_v25 = vld [vmem:[#allocation5 + $0x83c] sm:$0xf0]  ;;  %v7478_v22 = vld [vmem:[#allocation5 + $0x1c0] sm:$0xf0] }
  0x5d   :  { %v8820_v26 = vld [vmem:[#allocation5 + $0xc00] sm:$0xf]  ;;  %v8309_v36 = vor.u32 %v11194_v25, %v8308_v23  ;;  %4783 = vmatpush.bf16.msra.mxu1 %v7797_v35  ;;  %v11106_v23 = vld [vmem:[#allocation5 + $0x584] sm:$0xf] }
  0x5e   :  { %v11322_v27 = vld [vmem:[#allocation5 + $0xc3c] sm:$0xf0]  ;;  %v138_v35 = vld.sshfl [vmem:[#allocation1 + $0x8] sm:$0xff pattern:$0x73625140]  ;;  %v7993_v37 = vor.u32 %v11106_v23, %v7990_v24 }
  0x5f   :  { %v9780_v28 = vld [vmem:[#allocation5 + $0x1380] sm:$0xf]  ;;  %v8821_v39 = vor.u32 %v11322_v27, %v8820_v26  ;;  %4796 = vmatpush.bf16.msra.mxu2 %v8309_v36  ;;  %v140_v36 = vld.sshfl [vmem:[#allocation1 + $0x18] sm:$0xff pattern:$0x73625140] }
  0x60   :  { %v11562_v29 = vld [vmem:[#allocation5 + $0x13bc] sm:$0xf0]  ;;  %v11282_v23 = vld [vmem:[#allocation5 + $0xb04] sm:$0xf] }
  0x61   :  { %v10292_v30 = vld [vmem:[#allocation5 + $0x1780] sm:$0xf]  ;;  %v9781_v40 = vor.u32 %v11562_v29, %v9780_v28  ;;  %4809 = vmatpush.bf16.msra.mxu3 %v8821_v39  ;;  %v10962_v39 = vld [vmem:[#allocation5 + $0x104] sm:$0xf] }
  0x62   :  { %v11690_v32 = vld [vmem:[#allocation5 + $0x17bc] sm:$0xf0]  ;;  %v8694_v24 = vld [vmem:[#allocation5 + $0xb40] sm:$0xf0] }
  0x63   :  { %v10293_v41 = vor.u32 %v11690_v32, %v10292_v30  ;;  %v9716_v43 = vld [vmem:[#allocation5 + $0x1300] sm:$0xf]  ;;  %4815 = vmatpush.bf16.msrb.mxu0 %v9781_v40  ;;  %4841 = vmatpush.bf16.msrb.mxu2 %v7737_v42  ;;  %v137_v30 = vld.sshfl [vmem:[#allocation1] sm:$0xff pattern:$0x73625140]  ;;  %v7481_v32 = vor.u32 %v10978_v21, %v7478_v22  ;;  %v9785_v22 = vor.u32 %v11554_v11, %v9782_v12 }
  0x64   :  { %v11546_v44 = vld [vmem:[#allocation5 + $0x133c] sm:$0xf0]  ;;  %v12137_v33 = vpack.c.bf16 %v137_v30, %v137_v30  ;;  %v7414_v40 = vld [vmem:[#allocation5 + $0x140] sm:$0xf0] }
  0x65   :  { %v10228_v45 = vld [vmem:[#allocation5 + $0x1700] sm:$0xf]  ;;  %v9717_v52 = vor.u32 %v11546_v44, %v9716_v43  ;;  %4828 = vmatpush.bf16.msrb.mxu1 %v10293_v41  ;;  %4854 = vmatpush.bf16.msrb.mxu3 %v8249_v46  ;;  %v12141_v41 = vpack.c.bf16 %v138_v35, %v138_v35  ;;  %v11090_v42 = vld [vmem:[#allocation5 + $0x504] sm:$0xf]  ;;  %v12145_v44 = vpack.c.bf16 %v140_v36, %v140_v36 }
  0x66   :  { %v11674_v47 = vld [vmem:[#allocation5 + $0x173c] sm:$0xf0]  ;;  %v7926_v43 = vld [vmem:[#allocation5 + $0x540] sm:$0xf0]  ;;  %4771 = vmatmul.bf16.vlgmr.msra.gmra.mxu0 %v12137_v33  ;;  %v7417_v49 = vor.u32 %v10962_v39, %v7414_v40  ;;  %v8697_v36 = vor.u32 %v11282_v23, %v8694_v24 }
  0x67   :  { %v10229_v53 = vor.u32 %v11674_v47, %v10228_v45  ;;  %v9652_v55 = vld [vmem:[#allocation5 + $0x1280] sm:$0xf]  ;;  %4816 = vmatpush.bf16.msrb.mxu0 %v9717_v52  ;;  %4842 = vmatpush.bf16.msrb.mxu2 %v7673_v54  ;;  %v131_v52 = vld [vmem:[#allocation2 + $0x8] sm:$0xf]  ;;  %v10946_v54 = vld [vmem:[#allocation5 + $0x84] sm:$0xf] }
  0x68   :  { %v11530_v56 = vld [vmem:[#allocation5 + $0x12bc] sm:$0xf0]  ;;  %4784 = vmatmul.bf16.vlgmr.msra.gmra.mxu1 %v12141_v41  ;;  %136 = vst [vmem:[#allocation1 + $0x20] ss:$4 sm:$0xff] %v131_v52  ;;  %4810 = vmatmul.bf16.vlgmr.msra.gmra.mxu3 %v12145_v44  ;;  %v11266_v39 = vld [vmem:[#allocation5 + $0xa84] sm:$0xf] }
  0x69   :  { %v10164_v57 = vld [vmem:[#allocation5 + $0x1680] sm:$0xf]  ;;  %v9653_v0 = vor.u32 %v11530_v56, %v9652_v55  ;;  %4829 = vmatpush.bf16.msrb.mxu1 %v10229_v53  ;;  %4855 = vmatpush.bf16.msrb.mxu3 %v8185_v58  ;;  %v7929_v53 = vor.u32 %v11090_v42, %v7926_v43  ;;  %v7350_v55 = vld [vmem:[#allocation5 + $0xc0] sm:$0xf0] }
  0x6a   :  { %v11658_v59 = vld [vmem:[#allocation5 + $0x16bc] sm:$0xf0]  ;;  %v11074_v56 = vld [vmem:[#allocation5 + $0x484] sm:$0xf]  ;;  %v7353_v63 = vor.u32 %v10946_v54, %v7350_v55 }
  0x6b   :  { %v9588_v1 = vld [vmem:[#allocation5 + $0x1200] sm:$0xf]  ;;  %v10165_v3 = vor.u32 %v11658_v59, %v10164_v57  ;;  %4817 = vmatpush.bf16.msrb.mxu0 %v9653_v0  ;;  %4843 = vmatpush.bf16.msrb.mxu2 %v7609_v4  ;;  %v7862_v57 = vld [vmem:[#allocation5 + $0x4c0] sm:$0xf0] }
  0x6c   :  { %v11514_v5 = vld [vmem:[#allocation5 + $0x123c] sm:$0xf0]  ;;  %v11058_v4 = vld [vmem:[#allocation5 + $0x404] sm:$0xf] }
  0x6d   :  { %v10100_v6 = vld [vmem:[#allocation5 + $0x1600] sm:$0xf]  ;;  %v9589_v13 = vor.u32 %v11514_v5, %v9588_v1  ;;  %4830 = vmatpush.bf16.msrb.mxu1 %v10165_v3  ;;  %4856 = vmatpush.bf16.msrb.mxu3 %v8121_v7  ;;  %v10930_v1 = vld [vmem:[#allocation5 + $0x4] sm:$0xf]  ;;  %v7865_v3 = vor.u32 %v11074_v56, %v7862_v57 }
  0x6e   :  { %v11642_v8 = vld [vmem:[#allocation5 + $0x163c] sm:$0xf0]  ;;  %v7798_v5 = vld [vmem:[#allocation5 + $0x440] sm:$0xf0] }
  0x6f   :  { %v9524_v14 = vld [vmem:[#allocation5 + $0x1180] sm:$0xf]  ;;  %v10101_v15 = vor.u32 %v11642_v8, %v10100_v6  ;;  %4818 = vmatpush.bf16.msrb.mxu0 %v9589_v13  ;;  %4844 = vmatpush.bf16.msrb.mxu2 %v7545_v16  ;;  %v11298_v6 = vld [vmem:[#allocation5 + $0xb84] sm:$0xf] }
  0x70   :  { %v11498_v17 = vld [vmem:[#allocation5 + $0x11bc] sm:$0xf0]  ;;  %v8758_v7 = vld [vmem:[#allocation5 + $0xbc0] sm:$0xf0] }
  0x71   :  { %v10036_v18 = vld [vmem:[#allocation5 + $0x1580] sm:$0xf]  ;;  %v9525_v27 = vor.u32 %v11498_v17, %v9524_v14  ;;  %4831 = vmatpush.bf16.msrb.mxu1 %v10101_v15  ;;  %4857 = vmatpush.bf16.msrb.mxu3 %v8057_v20  ;;  %v11426_v8 = vld [vmem:[#allocation5 + $0xf84] sm:$0xf]  ;;  %v7289_v15 = vor.u32 %v10930_v1, %v7286_v2 }
  0x72   :  { %v11626_v19 = vld [vmem:[#allocation5 + $0x15bc] sm:$0xf0]  ;;  %v11682_v13 = vld [vmem:[#allocation5 + $0x1784] sm:$0xf]  ;;  %v9273_v21 = vor.u32 %v11426_v8, %v9270_v9 }
  0x73   :  { %v9460_v25 = vld [vmem:[#allocation5 + $0x1100] sm:$0xf]  ;;  %v10037_v28 = vor.u32 %v11626_v19, %v10036_v18  ;;  %4819 = vmatpush.bf16.msrb.mxu0 %v9525_v27  ;;  %4845 = vmatpush.bf16.msrb.mxu2 %v7481_v32  ;;  %v10294_v16 = vld [vmem:[#allocation5 + $0x17c0] sm:$0xf0]  ;;  %v7801_v18 = vor.u32 %v11058_v4, %v7798_v5  ;;  %v8761_v19 = vor.u32 %v11298_v6, %v8758_v7 }
  0x74   :  { %v11482_v26 = vld [vmem:[#allocation5 + $0x113c] sm:$0xf0]  ;;  %v141_v17 = vld.sshfl [vmem:[#allocation1 + $0x20] sm:$0xff pattern:$0x73625140] }
  0x75   :  { %v9972_v29 = vld [vmem:[#allocation5 + $0x1500] sm:$0xf]  ;;  %v9461_v45 = vor.u32 %v11482_v26, %v9460_v25  ;;  %4832 = vmatpush.bf16.msrb.mxu1 %v10037_v28  ;;  %4858 = vmatpush.bf16.msrb.mxu3 %v7993_v37  ;;  %v142_v20 = vld.sshfl [vmem:[#allocation1 + $0x28] sm:$0xff pattern:$0x73625140]  ;;  %v10297_v26 = vor.u32 %v11682_v13, %v10294_v16  ;;  %v12149_v30 = vpack.c.bf16 %v141_v17, %v141_v17 }
  0x76   :  { %v139_v31 = vld.sshfl [vmem:[#allocation1 + $0x10] sm:$0xff pattern:$0x73625140]  ;;  %v11410_v25 = vld [vmem:[#allocation5 + $0xf04] sm:$0xf]  ;;  %v12151_v35 = vpack.c.bf16 %v142_v20, %v142_v20 }
  0x77   :  { %v12139_v34 = vpack.c.bf16 %v139_v31, %v139_v31  ;;  %v11610_v38 = vld [vmem:[#allocation5 + $0x153c] sm:$0xf0]  ;;  %4820 = vmatpush.bf16.msrb.mxu0 %v9461_v45  ;;  %4846 = vmatpush.bf16.msrb.mxu2 %v7417_v49  ;;  %v9206_v27 = vld [vmem:[#allocation5 + $0xf40] sm:$0xf0] }
  0x78   :  { %v9396_v46 = vld [vmem:[#allocation5 + $0x1080] sm:$0xf]  ;;  %v9973_v48 = vor.u32 %v11610_v38, %v9972_v29  ;;  %v11538_v28 = vld [vmem:[#allocation5 + $0x1304] sm:$0xf]  ;;  %v9209_v37 = vor.u32 %v11410_v25, %v9206_v27 }
  0x79   :  { %4797 = vmatmul.bf16.vlgmr.msra.gmra.mxu2 %v12139_v34  ;;  %v11466_v47 = vld [vmem:[#allocation5 + $0x10bc] sm:$0xf0]  ;;  %4859 = vmatpush.bf16.msrb.mxu3 %v7929_v53  ;;  %v9718_v29 = vld [vmem:[#allocation5 + $0x1340] sm:$0xf0] }
  0x7a   :  { %v9908_v50 = vld [vmem:[#allocation5 + $0x1480] sm:$0xf]  ;;  %v9397_v58 = vor.u32 %v11466_v47, %v9396_v46  ;;  %4833 = vmatpush.bf16.msrb.mxu1 %v9973_v48  ;;  %v11666_v31 = vld [vmem:[#allocation5 + $0x1704] sm:$0xf]  ;;  %v9721_v38 = vor.u32 %v11538_v28, %v9718_v29 }
  0x7b   :  { %v11594_v51 = vld [vmem:[#allocation5 + $0x14bc] sm:$0xf0]  ;;  %4847 = vmatpush.bf16.msrb.mxu2 %v7353_v63  ;;  %v10230_v32 = vld [vmem:[#allocation5 + $0x1740] sm:$0xf0] }
  0x7c   :  { %v9332_v59 = vld [vmem:[#allocation5 + $0x1000] sm:$0xf]  ;;  %v9909_v62 = vor.u32 %v11594_v51, %v9908_v50  ;;  %4821 = vmatpush.bf16.msrb.mxu0 %v9397_v58  ;;  %v8630_v40 = vld [vmem:[#allocation5 + $0xac0] sm:$0xf0]  ;;  %v10233_v43 = vor.u32 %v11666_v31, %v10230_v32 }
  0x7d   :  { %v11450_v60 = vld [vmem:[#allocation5 + $0x103c] sm:$0xf0]  ;;  %4860 = vmatpush.bf16.msrb.mxu3 %v7865_v3  ;;  %v11394_v42 = vld [vmem:[#allocation5 + $0xe84] sm:$0xf]  ;;  %v8633_v50 = vor.u32 %v11266_v39, %v8630_v40 }
  0x7e   :  { %v9844_v61 = vld [vmem:[#allocation5 + $0x1400] sm:$0xf]  ;;  %v9333_v10 = vor.u32 %v11450_v60, %v9332_v59  ;;  %4834 = vmatpush.bf16.msrb.mxu1 %v9909_v62  ;;  %v9142_v45 = vld [vmem:[#allocation5 + $0xec0] sm:$0xf0] }
  0x7f   :  { %v11578_v0 = vld [vmem:[#allocation5 + $0x143c] sm:$0xf0]  ;;  %4848 = vmatpush.bf16.msrb.mxu2 %v7289_v15  ;;  %v11522_v46 = vld [vmem:[#allocation5 + $0x1284] sm:$0xf]  ;;  %v9145_v51 = vor.u32 %v11394_v42, %v9142_v45 }
  0x80   :  { %v9845_v14 = vor.u32 %v11578_v0, %v9844_v61  ;;  %4822 = vmatpush.bf16.msrb.mxu0 %v9333_v10  ;;  %v9654_v47 = vld [vmem:[#allocation5 + $0x12c0] sm:$0xf0] }
  0x81   :  { %4861 = vmatpush.bf16.msrb.mxu3 %v7801_v18  ;;  %v11650_v48 = vld [vmem:[#allocation5 + $0x1684] sm:$0xf]  ;;  %v9657_v52 = vor.u32 %v11522_v46, %v9654_v47 }
  0x82   :  { %4835 = vmatpush.bf16.msrb.mxu1 %v9845_v14  ;;  %v10166_v49 = vld [vmem:[#allocation5 + $0x16c0] sm:$0xf0] }
  0x83   :  { %4893 = vmatpush.bf16.msra.mxu2 %v9785_v22  ;;  %4823 = vmatmul.bf16.vlgmr.msrb.gmra.mxu0 %v12149_v30  ;;  %v11250_v53 = vld [vmem:[#allocation5 + $0xa04] sm:$0xf]  ;;  %v10169_v56 = vor.u32 %v11650_v48, %v10166_v49 }
  0x84   :  { %4867 = vmatpush.bf16.msra.mxu0 %v8761_v19  ;;  %v8566_v54 = vld [vmem:[#allocation5 + $0xa40] sm:$0xf0]  ;;  %4862 = vmatmul.bf16.vlgmr.msrb.gmra.mxu3 %v12141_v41 }
  0x85   :  { %4906 = vmatpush.bf16.msra.mxu3 %v10297_v26  ;;  %4836 = vmatmul.bf16.vlgmr.msrb.gmra.mxu1 %v12151_v35  ;;  %v11378_v55 = vld [vmem:[#allocation5 + $0xe04] sm:$0xf]  ;;  %v8569_v62 = vor.u32 %v11250_v53, %v8566_v54  ;;  %v11051_v53 = vld [vmem:[#allocation5 + $0x3c4] sm:$0xf0] }
  0x86   :  { %4880 = vmatpush.bf16.msra.mxu1 %v9273_v21  ;;  %v9078_v57 = vld [vmem:[#allocation5 + $0xe40] sm:$0xf0]  ;;  %v8252_v54 = vld [vmem:[#allocation5 + $0x788] sm:$0xf] }
  0x87   :  { %4894 = vmatpush.bf16.msra.mxu2 %v9721_v38  ;;  %v11506_v58 = vld [vmem:[#allocation5 + $0x1204] sm:$0xf]  ;;  %v9081_v63 = vor.u32 %v11378_v55, %v9078_v57  ;;  %v11179_v55 = vld [vmem:[#allocation5 + $0x7c4] sm:$0xf0] }
  0x88   :  { %4868 = vmatpush.bf16.msra.mxu0 %v8697_v36  ;;  %v9590_v59 = vld [vmem:[#allocation5 + $0x1240] sm:$0xf0]  ;;  %v8764_v57 = vld [vmem:[#allocation5 + $0xb88] sm:$0xf] }
  0x89   :  { %4849 = vmatmul.bf16.vlgmr.msrb.gmra.mxu2 %v12137_v33  ;;  %4907 = vmatpush.bf16.msra.mxu3 %v10233_v43  ;;  %v11634_v60 = vld [vmem:[#allocation5 + $0x1604] sm:$0xf]  ;;  %v9593_v0 = vor.u32 %v11506_v58, %v9590_v59  ;;  %v11307_v58 = vld [vmem:[#allocation5 + $0xbc4] sm:$0xf0] }
  0x8a   :  { %4881 = vmatpush.bf16.msra.mxu1 %v9209_v37  ;;  %v10102_v61 = vld [vmem:[#allocation5 + $0x1640] sm:$0xf0] }
  0x8b   :  { %4895 = vmatpush.bf16.msra.mxu2 %v9657_v52  ;;  %v11234_v1 = vld [vmem:[#allocation5 + $0x984] sm:$0xf]  ;;  %v10105_v4 = vor.u32 %v11634_v60, %v10102_v61  ;;  %v7740_v52 = vld [vmem:[#allocation5 + $0x388] sm:$0xf] }
  0x8c   :  { %4869 = vmatpush.bf16.msra.mxu0 %v8633_v50  ;;  %v8502_v2 = vld [vmem:[#allocation5 + $0x9c0] sm:$0xf0]  ;;  %v9276_v61 = vld [vmem:[#allocation5 + $0xf88] sm:$0xf] }
  0x8d   :  { %v11362_v3 = vld [vmem:[#allocation5 + $0xd84] sm:$0xf]  ;;  %4908 = vmatpush.bf16.msra.mxu3 %v10169_v56  ;;  %v8505_v10 = vor.u32 %v11234_v1, %v8502_v2  ;;  %v8253_v1 = vor.u32 %v11179_v55, %v8252_v54  ;;  %v8765_v2 = vor.u32 %v11307_v58, %v8764_v57  ;;  %v7420_v57 = vld [vmem:[#allocation5 + $0x108] sm:$0xf] }
  0x8e   :  { %4882 = vmatpush.bf16.msra.mxu1 %v9145_v51  ;;  %v9014_v5 = vld [vmem:[#allocation5 + $0xdc0] sm:$0xf0]  ;;  %v10971_v58 = vld [vmem:[#allocation5 + $0x144] sm:$0xf0] }
  0x8f   :  { %v11490_v6 = vld [vmem:[#allocation5 + $0x1184] sm:$0xf]  ;;  %4896 = vmatpush.bf16.msra.mxu2 %v9593_v0  ;;  %v9017_v11 = vor.u32 %v11362_v3, %v9014_v5  ;;  %v7741_v0 = vor.u32 %v11051_v53, %v7740_v52  ;;  %v7676_v3 = vld [vmem:[#allocation5 + $0x308] sm:$0xf] }
  0x90   :  { %v9526_v7 = vld [vmem:[#allocation5 + $0x11c0] sm:$0xf0]  ;;  %4870 = vmatpush.bf16.msra.mxu0 %v8569_v62  ;;  %v11435_v62 = vld [vmem:[#allocation5 + $0xfc4] sm:$0xf0] }
  0x91   :  { %v11618_v8 = vld [vmem:[#allocation5 + $0x1584] sm:$0xf]  ;;  %v9529_v12 = vor.u32 %v11490_v6, %v9526_v7  ;;  %4909 = vmatpush.bf16.msra.mxu3 %v10105_v4  ;;  %v11035_v4 = vld [vmem:[#allocation5 + $0x344] sm:$0xf0]  ;;  %v9277_v6 = vor.u32 %v11435_v62, %v9276_v61 }
  0x92   :  { %v10038_v9 = vld [vmem:[#allocation5 + $0x15c0] sm:$0xf0]  ;;  %4883 = vmatpush.bf16.msra.mxu1 %v9081_v63  ;;  %v8188_v5 = vld [vmem:[#allocation5 + $0x708] sm:$0xf] }
  0x93   :  { %v11218_v13 = vld [vmem:[#allocation5 + $0x904] sm:$0xf]  ;;  %v10041_v16 = vor.u32 %v11618_v8, %v10038_v9  ;;  %4897 = vmatpush.bf16.msra.mxu2 %v9529_v12  ;;  %v11163_v7 = vld [vmem:[#allocation5 + $0x744] sm:$0xf0]  ;;  %v7677_v12 = vor.u32 %v11035_v4, %v7676_v3 }
  0x94   :  { %v8438_v14 = vld [vmem:[#allocation5 + $0x940] sm:$0xf0]  ;;  %4871 = vmatpush.bf16.msra.mxu0 %v8505_v10  ;;  %v8700_v8 = vld [vmem:[#allocation5 + $0xb08] sm:$0xf] }
  0x95   :  { %v11346_v15 = vld [vmem:[#allocation5 + $0xd04] sm:$0xf]  ;;  %v8441_v22 = vor.u32 %v11218_v13, %v8438_v14  ;;  %4910 = vmatpush.bf16.msra.mxu3 %v10041_v16  ;;  %v11291_v9 = vld [vmem:[#allocation5 + $0xb44] sm:$0xf0]  ;;  %v8189_v13 = vor.u32 %v11163_v7, %v8188_v5 }
  0x96   :  { %v8950_v17 = vld [vmem:[#allocation5 + $0xd40] sm:$0xf0]  ;;  %4884 = vmatpush.bf16.msra.mxu1 %v9017_v11  ;;  %v9212_v10 = vld [vmem:[#allocation5 + $0xf08] sm:$0xf]  ;;  %v8701_v14 = vor.u32 %v11291_v9, %v8700_v8 }
  0x97   :  { %v11474_v18 = vld [vmem:[#allocation5 + $0x1104] sm:$0xf]  ;;  %v8953_v23 = vor.u32 %v11346_v15, %v8950_v17  ;;  %v11419_v11 = vld [vmem:[#allocation5 + $0xf44] sm:$0xf0] }
  0x98   :  { %v9462_v19 = vld [vmem:[#allocation5 + $0x1140] sm:$0xf0]  ;;  %4872 = vmatpush.bf16.msra.mxu0 %v8441_v22  ;;  %v7612_v15 = vld [vmem:[#allocation5 + $0x288] sm:$0xf] }
  0x99   :  { %v11602_v20 = vld [vmem:[#allocation5 + $0x1504] sm:$0xf]  ;;  %v9465_v24 = vor.u32 %v11474_v18, %v9462_v19  ;;  %v11019_v16 = vld [vmem:[#allocation5 + $0x2c4] sm:$0xf0]  ;;  %v9213_v18 = vor.u32 %v11419_v11, %v9212_v10 }
  0x9a   :  { %v9974_v21 = vld [vmem:[#allocation5 + $0x1540] sm:$0xf0]  ;;  %4885 = vmatpush.bf16.msra.mxu1 %v8953_v23  ;;  %v8124_v17 = vld [vmem:[#allocation5 + $0x688] sm:$0xf] }
  0x9b   :  { %v11202_v25 = vld [vmem:[#allocation5 + $0x884] sm:$0xf]  ;;  %v9977_v28 = vor.u32 %v11602_v20, %v9974_v21  ;;  %4898 = vmatpush.bf16.msra.mxu2 %v9465_v24  ;;  %v11147_v19 = vld [vmem:[#allocation5 + $0x6c4] sm:$0xf0]  ;;  %v7613_v24 = vor.u32 %v11019_v16, %v7612_v15 }
  0x9c   :  { %v8374_v26 = vld [vmem:[#allocation5 + $0x8c0] sm:$0xf0]  ;;  %v8636_v20 = vld [vmem:[#allocation5 + $0xa88] sm:$0xf] }
  0x9d   :  { %v11330_v27 = vld [vmem:[#allocation5 + $0xc84] sm:$0xf]  ;;  %v8377_v38 = vor.u32 %v11202_v25, %v8374_v26  ;;  %4911 = vmatpush.bf16.msra.mxu3 %v9977_v28  ;;  %v11275_v21 = vld [vmem:[#allocation5 + $0xac4] sm:$0xf0]  ;;  %v8125_v25 = vor.u32 %v11147_v19, %v8124_v17 }
  0x9e   :  { %v8886_v29 = vld [vmem:[#allocation5 + $0xcc0] sm:$0xf0]  ;;  %v9148_v22 = vld [vmem:[#allocation5 + $0xe88] sm:$0xf]  ;;  %v8637_v26 = vor.u32 %v11275_v21, %v8636_v20 }
  0x9f   :  { %v11458_v31 = vld [vmem:[#allocation5 + $0x1084] sm:$0xf]  ;;  %v8889_v43 = vor.u32 %v11330_v27, %v8886_v29  ;;  %4873 = vmatpush.bf16.msra.mxu0 %v8377_v38  ;;  %v11403_v23 = vld [vmem:[#allocation5 + $0xec4] sm:$0xf0] }
  0xa0   :  { %v9398_v32 = vld [vmem:[#allocation5 + $0x10c0] sm:$0xf0]  ;;  %v7548_v27 = vld [vmem:[#allocation5 + $0x208] sm:$0xf] }
  0xa1   :  { %v11586_v36 = vld [vmem:[#allocation5 + $0x1484] sm:$0xf]  ;;  %v9401_v45 = vor.u32 %v11458_v31, %v9398_v32  ;;  %4886 = vmatpush.bf16.msra.mxu1 %v8889_v43  ;;  %v11003_v28 = vld [vmem:[#allocation5 + $0x244] sm:$0xf0]  ;;  %v9149_v31 = vor.u32 %v11403_v23, %v9148_v22 }
  0xa2   :  { %v9910_v37 = vld [vmem:[#allocation5 + $0x14c0] sm:$0xf0]  ;;  %v8060_v29 = vld [vmem:[#allocation5 + $0x608] sm:$0xf] }
  0xa3   :  { %v11186_v39 = vld [vmem:[#allocation5 + $0x804] sm:$0xf]  ;;  %v9913_v49 = vor.u32 %v11586_v36, %v9910_v37  ;;  %4899 = vmatpush.bf16.msra.mxu2 %v9401_v45  ;;  %v11131_v32 = vld [vmem:[#allocation5 + $0x644] sm:$0xf0] }
  0xa4   :  { %v8310_v40 = vld [vmem:[#allocation5 + $0x840] sm:$0xf0]  ;;  %v8572_v36 = vld [vmem:[#allocation5 + $0xa08] sm:$0xf] }
  0xa5   :  { %v11314_v42 = vld [vmem:[#allocation5 + $0xc04] sm:$0xf]  ;;  %v8313_v56 = vor.u32 %v11186_v39, %v8310_v40  ;;  %4912 = vmatpush.bf16.msra.mxu3 %v9913_v49  ;;  %v11259_v37 = vld [vmem:[#allocation5 + $0xa44] sm:$0xf0]  ;;  %v7549_v40 = vor.u32 %v11003_v28, %v7548_v27 }
  0xa6   :  { %v8822_v46 = vld [vmem:[#allocation5 + $0xc40] sm:$0xf0]  ;;  %v9084_v38 = vld [vmem:[#allocation5 + $0xe08] sm:$0xf]  ;;  %v8573_v43 = vor.u32 %v11259_v37, %v8572_v36  ;;  %v7742_v36 = vld [vmem:[#allocation5 + $0x3c8] sm:$0xf0] }
  0xa7   :  { %v11442_v47 = vld [vmem:[#allocation5 + $0x1004] sm:$0xf]  ;;  %v8825_v59 = vor.u32 %v11314_v42, %v8822_v46  ;;  %4874 = vmatpush.bf16.msra.mxu0 %v8313_v56  ;;  %v11387_v39 = vld [vmem:[#allocation5 + $0xe44] sm:$0xf0]  ;;  %v8061_v42 = vor.u32 %v11131_v32, %v8060_v29  ;;  %v11043_v32 = vld [vmem:[#allocation5 + $0x38c] sm:$0xf] }
  0xa8   :  { %v9334_v48 = vld [vmem:[#allocation5 + $0x1040] sm:$0xf0]  ;;  %v7484_v45 = vld [vmem:[#allocation5 + $0x188] sm:$0xf] }
  0xa9   :  { %v11570_v50 = vld [vmem:[#allocation5 + $0x1404] sm:$0xf]  ;;  %v9337_v60 = vor.u32 %v11442_v47, %v9334_v48  ;;  %4887 = vmatpush.bf16.msra.mxu1 %v8825_v59  ;;  %v10987_v46 = vld [vmem:[#allocation5 + $0x1c4] sm:$0xf0]  ;;  %v9085_v48 = vor.u32 %v11387_v39, %v9084_v38  ;;  %v11171_v39 = vld [vmem:[#allocation5 + $0x78c] sm:$0xf] }
  0xaa   :  { %v9846_v51 = vld [vmem:[#allocation5 + $0x1440] sm:$0xf0]  ;;  %4875 = vmatmul.bf16.vlgmr.msra.gmra.mxu0 %v12139_v34  ;;  %v7996_v47 = vld [vmem:[#allocation5 + $0x588] sm:$0xf]  ;;  %v7485_v54 = vor.u32 %v10987_v46, %v7484_v45  ;;  %v7745_v46 = vor.u32 %v11043_v32, %v7742_v36 }
  0xab   :  { %v9849_v63 = vor.u32 %v11570_v50, %v9846_v51  ;;  %4900 = vmatpush.bf16.msra.mxu2 %v9337_v60  ;;  %4919 = vmatpush.bf16.msrb.mxu0 %v7741_v0  ;;  %v11115_v49 = vld [vmem:[#allocation5 + $0x5c4] sm:$0xf0] }
  0xac   :  { %4888 = vmatmul.bf16.vlgmr.msra.gmra.mxu1 %v12145_v44  ;;  %v8508_v50 = vld [vmem:[#allocation5 + $0x988] sm:$0xf]  ;;  %v7997_v55 = vor.u32 %v11115_v49, %v7996_v47 }
  0xad   :  { %4913 = vmatpush.bf16.msra.mxu3 %v9849_v63  ;;  %4932 = vmatpush.bf16.msrb.mxu1 %v8253_v1  ;;  %v11243_v51 = vld [vmem:[#allocation5 + $0x9c4] sm:$0xf0] }
  0xae   :  { %4901 = vmatmul.bf16.vlgmr.msra.gmra.mxu2 %v12149_v30  ;;  %v9020_v52 = vld [vmem:[#allocation5 + $0xd88] sm:$0xf]  ;;  %v8509_v56 = vor.u32 %v11243_v51, %v8508_v50 }
  0xaf   :  { %4945 = vmatpush.bf16.msrb.mxu2 %v8765_v2  ;;  %4920 = vmatpush.bf16.msrb.mxu0 %v7677_v12  ;;  %v11371_v53 = vld [vmem:[#allocation5 + $0xdc4] sm:$0xf0]  ;;  %v7421_v2 = vor.u32 %v10971_v58, %v7420_v57 }
  0xb0   :  { %4914 = vmatmul.bf16.vlgmr.msra.gmra.mxu3 %v12151_v35  ;;  %v7932_v59 = vld [vmem:[#allocation5 + $0x508] sm:$0xf]  ;;  %v9021_v60 = vor.u32 %v11371_v53, %v9020_v52  ;;  %v11027_v52 = vld [vmem:[#allocation5 + $0x30c] sm:$0xf] }
  0xb1   :  { %4958 = vmatpush.bf16.msrb.mxu3 %v9277_v6  ;;  %4933 = vmatpush.bf16.msrb.mxu1 %v8189_v13  ;;  %v11099_v61 = vld [vmem:[#allocation5 + $0x544] sm:$0xf0]  ;;  %v7678_v53 = vld [vmem:[#allocation5 + $0x348] sm:$0xf0] }
  0xb2   :  { %v8444_v62 = vld [vmem:[#allocation5 + $0x908] sm:$0xf]  ;;  %v7933_v3 = vor.u32 %v11099_v61, %v7932_v59  ;;  %v7681_v58 = vor.u32 %v11027_v52, %v7678_v53 }
  0xb3   :  { %4946 = vmatpush.bf16.msrb.mxu2 %v8701_v14  ;;  %4921 = vmatpush.bf16.msrb.mxu0 %v7613_v24  ;;  %v11227_v63 = vld [vmem:[#allocation5 + $0x944] sm:$0xf0] }
  0xb4   :  { %v8956_v0 = vld [vmem:[#allocation5 + $0xd08] sm:$0xf]  ;;  %v8445_v4 = vor.u32 %v11227_v63, %v8444_v62 }
  0xb5   :  { %4959 = vmatpush.bf16.msrb.mxu3 %v9213_v18  ;;  %4934 = vmatpush.bf16.msrb.mxu1 %v8125_v25  ;;  %v11355_v1 = vld [vmem:[#allocation5 + $0xd44] sm:$0xf0] }
  0xb6   :  { %v7356_v5 = vld [vmem:[#allocation5 + $0x88] sm:$0xf]  ;;  %v8957_v8 = vor.u32 %v11355_v1, %v8956_v0  ;;  %v11011_v0 = vld [vmem:[#allocation5 + $0x28c] sm:$0xf] }
  0xb7   :  { %4947 = vmatpush.bf16.msrb.mxu2 %v8637_v26  ;;  %4922 = vmatpush.bf16.msrb.mxu0 %v7549_v40  ;;  %v10955_v6 = vld [vmem:[#allocation5 + $0xc4] sm:$0xf0]  ;;  %v8254_v40 = vld [vmem:[#allocation5 + $0x7c8] sm:$0xf0] }
  0xb8   :  { %v7868_v7 = vld [vmem:[#allocation5 + $0x488] sm:$0xf]  ;;  %v7357_v14 = vor.u32 %v10955_v6, %v7356_v5  ;;  %v8257_v50 = vor.u32 %v11171_v39, %v8254_v40  ;;  %v7614_v1 = vld [vmem:[#allocation5 + $0x2c8] sm:$0xf0] }
  0xb9   :  { %4960 = vmatpush.bf16.msrb.mxu3 %v9149_v31  ;;  %4935 = vmatpush.bf16.msrb.mxu1 %v8061_v42  ;;  %v11083_v9 = vld [vmem:[#allocation5 + $0x4c4] sm:$0xf0]  ;;  %v7617_v6 = vor.u32 %v11011_v0, %v7614_v1  ;;  %v10963_v40 = vld [vmem:[#allocation5 + $0x10c] sm:$0xf] }
  0xba   :  { %v8380_v10 = vld [vmem:[#allocation5 + $0x888] sm:$0xf]  ;;  %v7869_v17 = vor.u32 %v11083_v9, %v7868_v7  ;;  %v10931_v1 = vld [vmem:[#allocation5 + $0xc] sm:$0xf] }
  0xbb   :  { %4948 = vmatpush.bf16.msrb.mxu2 %v8573_v43  ;;  %4923 = vmatpush.bf16.msrb.mxu0 %v7485_v54  ;;  %v11211_v11 = vld [vmem:[#allocation5 + $0x8c4] sm:$0xf0]  ;;  %v11155_v54 = vld [vmem:[#allocation5 + $0x70c] sm:$0xf] }
  0xbc   :  { %v8892_v12 = vld [vmem:[#allocation5 + $0xc88] sm:$0xf]  ;;  %v8381_v18 = vor.u32 %v11211_v11, %v8380_v10 }
  0xbd   :  { %4961 = vmatpush.bf16.msrb.mxu3 %v9085_v48  ;;  %4936 = vmatpush.bf16.msrb.mxu1 %v7997_v55  ;;  %v11339_v13 = vld [vmem:[#allocation5 + $0xcc4] sm:$0xf0]  ;;  %v8190_v55 = vld [vmem:[#allocation5 + $0x748] sm:$0xf0] }
  0xbe   :  { %v7292_v15 = vld [vmem:[#allocation5 + $0x8] sm:$0xf]  ;;  %v8893_v22 = vor.u32 %v11339_v13, %v8892_v12  ;;  %v8193_v62 = vor.u32 %v11155_v54, %v8190_v55  ;;  %v10995_v12 = vld [vmem:[#allocation5 + $0x20c] sm:$0xf] }
  0xbf   :  { %4949 = vmatpush.bf16.msrb.mxu2 %v8509_v56  ;;  %4924 = vmatpush.bf16.msrb.mxu0 %v7421_v2  ;;  %v10939_v16 = vld [vmem:[#allocation5 + $0x44] sm:$0xf0]  ;;  %v11139_v2 = vld [vmem:[#allocation5 + $0x68c] sm:$0xf] }
  0xc0   :  { %v7804_v19 = vld [vmem:[#allocation5 + $0x408] sm:$0xf]  ;;  %v7293_v29 = vor.u32 %v10939_v16, %v7292_v15  ;;  %v7550_v13 = vld [vmem:[#allocation5 + $0x248] sm:$0xf0] }
  0xc1   :  { %4962 = vmatpush.bf16.msrb.mxu3 %v9021_v60  ;;  %4937 = vmatpush.bf16.msrb.mxu1 %v7933_v3  ;;  %v11067_v20 = vld [vmem:[#allocation5 + $0x444] sm:$0xf0]  ;;  %v8126_v3 = vld [vmem:[#allocation5 + $0x6c8] sm:$0xf0] }
  0xc2   :  { %v8316_v21 = vld [vmem:[#allocation5 + $0x808] sm:$0xf]  ;;  %v7805_v37 = vor.u32 %v11067_v20, %v7804_v19  ;;  %v8129_v10 = vor.u32 %v11139_v2, %v8126_v3  ;;  %v8062_v15 = vld [vmem:[#allocation5 + $0x648] sm:$0xf0] }
  0xc3   :  { %4950 = vmatpush.bf16.msrb.mxu2 %v8445_v4  ;;  %v11195_v23 = vld [vmem:[#allocation5 + $0x844] sm:$0xf0]  ;;  %4925 = vmatpush.bf16.msrb.mxu0 %v7357_v14  ;;  %v11123_v14 = vld [vmem:[#allocation5 + $0x60c] sm:$0xf] }
  0xc4   :  { %v8828_v24 = vld [vmem:[#allocation5 + $0xc08] sm:$0xf]  ;;  %v8317_v38 = vor.u32 %v11195_v23, %v8316_v21  ;;  %v10947_v54 = vld [vmem:[#allocation5 + $0x8c] sm:$0xf] }
  0xc5   :  { %4963 = vmatpush.bf16.msrb.mxu3 %v8957_v8  ;;  %v11323_v25 = vld [vmem:[#allocation5 + $0xc44] sm:$0xf0]  ;;  %4938 = vmatpush.bf16.msrb.mxu1 %v7869_v17  ;;  %v7358_v55 = vld [vmem:[#allocation5 + $0xc8] sm:$0xf0] }
  0xc6   :  { %v9788_v26 = vld [vmem:[#allocation5 + $0x1388] sm:$0xf]  ;;  %v8829_v42 = vor.u32 %v11323_v25, %v8828_v24  ;;  %v10979_v24 = vld [vmem:[#allocation5 + $0x18c] sm:$0xf] }
  0xc7   :  { %v11563_v27 = vld [vmem:[#allocation5 + $0x13c4] sm:$0xf0]  ;;  %4951 = vmatpush.bf16.msrb.mxu2 %v8381_v18  ;;  %4926 = vmatpush.bf16.msrb.mxu0 %v7293_v29  ;;  %v7553_v18 = vor.u32 %v10995_v12, %v7550_v13  ;;  %v7486_v25 = vld [vmem:[#allocation5 + $0x1c8] sm:$0xf0] }
  0xc8   :  { %v10300_v28 = vld [vmem:[#allocation5 + $0x1788] sm:$0xf]  ;;  %v9789_v43 = vor.u32 %v11563_v27, %v9788_v26  ;;  %v11107_v26 = vld [vmem:[#allocation5 + $0x58c] sm:$0xf] }
  0xc9   :  { %v11691_v31 = vld [vmem:[#allocation5 + $0x17c4] sm:$0xf0]  ;;  %4964 = vmatpush.bf16.msrb.mxu3 %v8893_v22  ;;  %4939 = vmatpush.bf16.msrb.mxu1 %v7805_v37  ;;  %v8065_v22 = vor.u32 %v11123_v14, %v8062_v15  ;;  %v7998_v27 = vld [vmem:[#allocation5 + $0x5c8] sm:$0xf0] }
  0xca   :  { %v10301_v45 = vor.u32 %v11691_v31, %v10300_v28  ;;  %v9724_v47 = vld [vmem:[#allocation5 + $0x1308] sm:$0xf]  ;;  %4927 = vmatmul.bf16.vlgmr.msrb.gmra.mxu0 %v12137_v33  ;;  %v7489_v31 = vor.u32 %v10979_v24, %v7486_v25  ;;  %v7294_v3 = vld [vmem:[#allocation5 + $0x48] sm:$0xf0] }
  0xcb   :  { %v11547_v48 = vld [vmem:[#allocation5 + $0x1344] sm:$0xf0]  ;;  %4952 = vmatpush.bf16.msrb.mxu2 %v8317_v38  ;;  %4971 = vmatpush.bf16.msra.mxu0 %v9789_v43  ;;  %v8001_v38 = vor.u32 %v11107_v26, %v7998_v27  ;;  %v11091_v43 = vld [vmem:[#allocation5 + $0x50c] sm:$0xf]  ;;  %v7297_v14 = vor.u32 %v10931_v1, %v7294_v3 }
  0xcc   :  { %v10236_v49 = vld [vmem:[#allocation5 + $0x1708] sm:$0xf]  ;;  %v9725_v56 = vor.u32 %v11547_v48, %v9724_v47  ;;  %4940 = vmatmul.bf16.vlgmr.msrb.gmra.mxu1 %v12141_v41  ;;  %v9790_v12 = vld [vmem:[#allocation5 + $0x13c8] sm:$0xf0] }
  0xcd   :  { %v11675_v51 = vld [vmem:[#allocation5 + $0x1744] sm:$0xf0]  ;;  %4965 = vmatpush.bf16.msrb.mxu3 %v8829_v42  ;;  %4984 = vmatpush.bf16.msra.mxu1 %v10301_v45  ;;  %v7422_v42 = vld [vmem:[#allocation5 + $0x148] sm:$0xf0] }
  0xce   :  { %v10237_v57 = vor.u32 %v11675_v51, %v10236_v49  ;;  %v9660_v59 = vld [vmem:[#allocation5 + $0x1288] sm:$0xf]  ;;  %4953 = vmatmul.bf16.vlgmr.msrb.gmra.mxu2 %v12139_v34  ;;  %v7934_v45 = vld [vmem:[#allocation5 + $0x548] sm:$0xf0]  ;;  %v7425_v48 = vor.u32 %v10963_v40, %v7422_v42 }
  0xcf   :  { %4997 = vmatpush.bf16.msra.mxu2 %v7745_v46  ;;  %v11531_v60 = vld [vmem:[#allocation5 + $0x12c4] sm:$0xf0]  ;;  %4972 = vmatpush.bf16.msra.mxu0 %v9725_v56  ;;  %v7937_v52 = vor.u32 %v11091_v43, %v7934_v45  ;;  %v11075_v56 = vld [vmem:[#allocation5 + $0x48c] sm:$0xf] }
  0xd0   :  { %v10172_v61 = vld [vmem:[#allocation5 + $0x1688] sm:$0xf]  ;;  %v9661_v4 = vor.u32 %v11531_v60, %v9660_v59  ;;  %4966 = vmatmul.bf16.vlgmr.msrb.gmra.mxu3 %v12145_v44  ;;  %v11683_v15 = vld [vmem:[#allocation5 + $0x178c] sm:$0xf] }
  0xd1   :  { %5010 = vmatpush.bf16.msra.mxu3 %v8257_v50  ;;  %v11659_v63 = vld [vmem:[#allocation5 + $0x16c4] sm:$0xf0]  ;;  %4985 = vmatpush.bf16.msra.mxu1 %v10237_v57  ;;  %v7870_v57 = vld [vmem:[#allocation5 + $0x4c8] sm:$0xf0] }
  0xd2   :  { %v10173_v5 = vor.u32 %v11659_v63, %v10172_v61  ;;  %v9596_v7 = vld [vmem:[#allocation5 + $0x1208] sm:$0xf]  ;;  %v7873_v2 = vor.u32 %v11075_v56, %v7870_v57  ;;  %v9214_v25 = vld [vmem:[#allocation5 + $0xf48] sm:$0xf0] }
  0xd3   :  { %4998 = vmatpush.bf16.msra.mxu2 %v7681_v58  ;;  %v11515_v8 = vld [vmem:[#allocation5 + $0x1244] sm:$0xf0]  ;;  %4973 = vmatpush.bf16.msra.mxu0 %v9661_v4  ;;  %v11059_v4 = vld [vmem:[#allocation5 + $0x40c] sm:$0xf] }
  0xd4   :  { %v10108_v9 = vld [vmem:[#allocation5 + $0x1608] sm:$0xf]  ;;  %v9597_v16 = vor.u32 %v11515_v8, %v9596_v7  ;;  %v8766_v7 = vld [vmem:[#allocation5 + $0xbc8] sm:$0xf0] }
  0xd5   :  { %5011 = vmatpush.bf16.msra.mxu3 %v8193_v62  ;;  %v11643_v11 = vld [vmem:[#allocation5 + $0x1644] sm:$0xf0]  ;;  %4986 = vmatpush.bf16.msra.mxu1 %v10173_v5  ;;  %v7361_v62 = vor.u32 %v10947_v54, %v7358_v55  ;;  %v7806_v5 = vld [vmem:[#allocation5 + $0x448] sm:$0xf0] }
  0xd6   :  { %v10109_v17 = vor.u32 %v11643_v11, %v10108_v9  ;;  %v9532_v19 = vld [vmem:[#allocation5 + $0x1188] sm:$0xf]  ;;  %v11427_v8 = vld [vmem:[#allocation5 + $0xf8c] sm:$0xf] }
  0xd7   :  { %4999 = vmatpush.bf16.msra.mxu2 %v7617_v6  ;;  %v11499_v20 = vld [vmem:[#allocation5 + $0x11c4] sm:$0xf0]  ;;  %4974 = vmatpush.bf16.msra.mxu0 %v9597_v16  ;;  %v11299_v6 = vld [vmem:[#allocation5 + $0xb8c] sm:$0xf] }
  0xd8   :  { %v10044_v21 = vld [vmem:[#allocation5 + $0x1588] sm:$0xf]  ;;  %v9533_v28 = vor.u32 %v11499_v20, %v9532_v19  ;;  %v11555_v11 = vld [vmem:[#allocation5 + $0x138c] sm:$0xf] }
  0xd9   :  { %5012 = vmatpush.bf16.msra.mxu3 %v8129_v10  ;;  %v11627_v23 = vld [vmem:[#allocation5 + $0x15c4] sm:$0xf0]  ;;  %4987 = vmatpush.bf16.msra.mxu1 %v10109_v17  ;;  %v9278_v10 = vld [vmem:[#allocation5 + $0xfc8] sm:$0xf0]  ;;  %v7809_v17 = vor.u32 %v11059_v4, %v7806_v5  ;;  %v9793_v20 = vor.u32 %v11555_v11, %v9790_v12 }
  0xda   :  { %v10045_v29 = vor.u32 %v11627_v23, %v10044_v21  ;;  %v9468_v32 = vld [vmem:[#allocation5 + $0x1108] sm:$0xf]  ;;  %v10302_v16 = vld [vmem:[#allocation5 + $0x17c8] sm:$0xf0]  ;;  %v9281_v19 = vor.u32 %v11427_v8, %v9278_v10 }
  0xdb   :  { %5000 = vmatpush.bf16.msra.mxu2 %v7553_v18  ;;  %v11483_v36 = vld [vmem:[#allocation5 + $0x1144] sm:$0xf0]  ;;  %4975 = vmatpush.bf16.msra.mxu0 %v9533_v28  ;;  %v8769_v18 = vor.u32 %v11299_v6, %v8766_v7  ;;  %v11283_v21 = vld [vmem:[#allocation5 + $0xb0c] sm:$0xf]  ;;  %v10305_v24 = vor.u32 %v11683_v15, %v10302_v16 }
  0xdc   :  { %v9980_v37 = vld [vmem:[#allocation5 + $0x1508] sm:$0xf]  ;;  %v9469_v46 = vor.u32 %v11483_v36, %v9468_v32  ;;  %v11411_v23 = vld [vmem:[#allocation5 + $0xf0c] sm:$0xf] }
  0xdd   :  { %5013 = vmatpush.bf16.msra.mxu3 %v8065_v22  ;;  %v11611_v39 = vld [vmem:[#allocation5 + $0x1544] sm:$0xf0]  ;;  %4988 = vmatpush.bf16.msra.mxu1 %v10045_v29  ;;  %v8702_v22 = vld [vmem:[#allocation5 + $0xb48] sm:$0xf0]  ;;  %v9217_v32 = vor.u32 %v11411_v23, %v9214_v25 }
  0xde   :  { %v9981_v47 = vor.u32 %v11611_v39, %v9980_v37  ;;  %v9404_v49 = vld [vmem:[#allocation5 + $0x1088] sm:$0xf]  ;;  %v11539_v26 = vld [vmem:[#allocation5 + $0x130c] sm:$0xf] }
  0xdf   :  { %5001 = vmatpush.bf16.msra.mxu2 %v7489_v31  ;;  %v11467_v50 = vld [vmem:[#allocation5 + $0x10c4] sm:$0xf0]  ;;  %4976 = vmatpush.bf16.msra.mxu0 %v9469_v46  ;;  %v9726_v27 = vld [vmem:[#allocation5 + $0x1348] sm:$0xf0]  ;;  %v8705_v31 = vor.u32 %v11283_v21, %v8702_v22 }
  0xe0   :  { %v9916_v51 = vld [vmem:[#allocation5 + $0x1488] sm:$0xf]  ;;  %v9405_v58 = vor.u32 %v11467_v50, %v9404_v49  ;;  %v11667_v28 = vld [vmem:[#allocation5 + $0x170c] sm:$0xf]  ;;  %v9729_v36 = vor.u32 %v11539_v26, %v9726_v27 }
  0xe1   :  { %5014 = vmatpush.bf16.msra.mxu3 %v8001_v38  ;;  %v11595_v53 = vld [vmem:[#allocation5 + $0x14c4] sm:$0xf0]  ;;  %4989 = vmatpush.bf16.msra.mxu1 %v9981_v47  ;;  %v10238_v29 = vld [vmem:[#allocation5 + $0x1748] sm:$0xf0] }
  0xe2   :  { %v9340_v59 = vld [vmem:[#allocation5 + $0x1008] sm:$0xf]  ;;  %v9917_v61 = vor.u32 %v11595_v53, %v9916_v51  ;;  %v11267_v37 = vld [vmem:[#allocation5 + $0xa8c] sm:$0xf]  ;;  %v10241_v40 = vor.u32 %v11667_v28, %v10238_v29 }
  0xe3   :  { %v11451_v60 = vld [vmem:[#allocation5 + $0x1044] sm:$0xf0]  ;;  %5002 = vmatpush.bf16.msra.mxu2 %v7425_v48  ;;  %4977 = vmatpush.bf16.msra.mxu0 %v9405_v58  ;;  %v8638_v38 = vld [vmem:[#allocation5 + $0xac8] sm:$0xf0] }
  0xe4   :  { %v9852_v63 = vld [vmem:[#allocation5 + $0x1408] sm:$0xf]  ;;  %v9341_v9 = vor.u32 %v11451_v60, %v9340_v59  ;;  %v11395_v39 = vld [vmem:[#allocation5 + $0xe8c] sm:$0xf]  ;;  %v8641_v48 = vor.u32 %v11267_v37, %v8638_v38 }
  0xe5   :  { %v11579_v0 = vld [vmem:[#allocation5 + $0x1444] sm:$0xf0]  ;;  %5015 = vmatpush.bf16.msra.mxu3 %v7937_v52  ;;  %4990 = vmatpush.bf16.msra.mxu1 %v9917_v61  ;;  %v9150_v42 = vld [vmem:[#allocation5 + $0xec8] sm:$0xf0] }
  0xe6   :  { %v9853_v13 = vor.u32 %v11579_v0, %v9852_v63  ;;  %v11523_v43 = vld [vmem:[#allocation5 + $0x128c] sm:$0xf]  ;;  %v9153_v49 = vor.u32 %v11395_v39, %v9150_v42  ;;  %v4772_v39 = vpop.f32.mrf.mxu0 }
  0xe7   :  { %5003 = vmatpush.bf16.msra.mxu2 %v7361_v62  ;;  %4978 = vmatpush.bf16.msra.mxu0 %v9341_v9  ;;  %v9662_v45 = vld [vmem:[#allocation5 + $0x12c8] sm:$0xf0] }
  0xe8   :  { %v11651_v46 = vld [vmem:[#allocation5 + $0x168c] sm:$0xf]  ;;  %v9665_v50 = vor.u32 %v11523_v43, %v9662_v45 }
  0xe9   :  { %5016 = vmatpush.bf16.msra.mxu3 %v7873_v2  ;;  %4991 = vmatpush.bf16.msra.mxu1 %v9853_v13  ;;  %v10174_v47 = vld [vmem:[#allocation5 + $0x16c8] sm:$0xf0] }
  0xea   :  { %4979 = vmatmul.bf16.vlgmr.msra.gmra.mxu0 %v12149_v30  ;;  %v11251_v51 = vld [vmem:[#allocation5 + $0xa0c] sm:$0xf]  ;;  %v10177_v54 = vor.u32 %v11651_v46, %v10174_v47  ;;  %v4785_v47 = vpop.f32.mrf.mxu1 }
  0xeb   :  { %5004 = vmatpush.bf16.msra.mxu2 %v7297_v14  ;;  %5023 = vmatpush.bf16.msrb.mxu0 %v8769_v18  ;;  %v8574_v52 = vld [vmem:[#allocation5 + $0xa48] sm:$0xf0] }
  0xec   :  { %4992 = vmatmul.bf16.vlgmr.msra.gmra.mxu1 %v12151_v35  ;;  %v11379_v53 = vld [vmem:[#allocation5 + $0xe0c] sm:$0xf]  ;;  %v8577_v60 = vor.u32 %v11251_v51, %v8574_v52  ;;  %v4786_v52 = vadd.f32 %v4785_v47, %v4772_v39  ;;  %v7556_v39 = vld [vmem:[#allocation5 + $0x210] sm:$0xf] }
  0xed   :  { %5017 = vmatpush.bf16.msra.mxu3 %v7809_v17  ;;  %5036 = vmatpush.bf16.msrb.mxu1 %v9281_v19  ;;  %v9086_v55 = vld [vmem:[#allocation5 + $0xe48] sm:$0xf0]  ;;  %v11260_v47 = vld [vmem:[#allocation5 + $0xa4c] sm:$0xf0] }
  0xee   :  { %5005 = vmatmul.bf16.vlgmr.msra.gmra.mxu2 %v12137_v33  ;;  %v11507_v56 = vld [vmem:[#allocation5 + $0x120c] sm:$0xf]  ;;  %v9089_v61 = vor.u32 %v11379_v53, %v9086_v55  ;;  %v7748_v53 = vld [vmem:[#allocation5 + $0x390] sm:$0xf] }
  0xef   :  { %5049 = vmatpush.bf16.msrb.mxu2 %v9793_v20  ;;  %5024 = vmatpush.bf16.msrb.mxu0 %v8705_v31  ;;  %v9598_v57 = vld [vmem:[#allocation5 + $0x1248] sm:$0xf0]  ;;  %v8260_v55 = vld [vmem:[#allocation5 + $0x790] sm:$0xf] }
  0xf0   :  { %5018 = vmatmul.bf16.vlgmr.msra.gmra.mxu3 %v12141_v41  ;;  %v11635_v58 = vld [vmem:[#allocation5 + $0x160c] sm:$0xf]  ;;  %v9601_v62 = vor.u32 %v11507_v56, %v9598_v57  ;;  %v11180_v57 = vld [vmem:[#allocation5 + $0x7cc] sm:$0xf0] }
  0xf1   :  { %5062 = vmatpush.bf16.msrb.mxu3 %v10305_v24  ;;  %5037 = vmatpush.bf16.msrb.mxu1 %v9217_v32  ;;  %v10110_v59 = vld [vmem:[#allocation5 + $0x1648] sm:$0xf0] }
  0xf2   :  { %v11235_v63 = vld [vmem:[#allocation5 + $0x98c] sm:$0xf]  ;;  %v10113_v2 = vor.u32 %v11635_v58, %v10110_v59  ;;  %v8772_v58 = vld [vmem:[#allocation5 + $0xb90] sm:$0xf] }
  0xf3   :  { %5050 = vmatpush.bf16.msrb.mxu2 %v9729_v36  ;;  %5025 = vmatpush.bf16.msrb.mxu0 %v8641_v48  ;;  %v8510_v0 = vld [vmem:[#allocation5 + $0x9c8] sm:$0xf0]  ;;  %v11308_v59 = vld [vmem:[#allocation5 + $0xbcc] sm:$0xf0] }
  0xf4   :  { %v11363_v1 = vld [vmem:[#allocation5 + $0xd8c] sm:$0xf]  ;;  %v8513_v8 = vor.u32 %v11235_v63, %v8510_v0  ;;  %v11436_v63 = vld [vmem:[#allocation5 + $0xfcc] sm:$0xf0] }
  0xf5   :  { %5063 = vmatpush.bf16.msrb.mxu3 %v10241_v40  ;;  %5038 = vmatpush.bf16.msrb.mxu1 %v9153_v49  ;;  %v9022_v3 = vld [vmem:[#allocation5 + $0xdc8] sm:$0xf0] }
  0xf6   :  { %v11491_v4 = vld [vmem:[#allocation5 + $0x118c] sm:$0xf]  ;;  %v9025_v9 = vor.u32 %v11363_v1, %v9022_v3  ;;  %v8261_v3 = vor.u32 %v11180_v57, %v8260_v55  ;;  %v7492_v57 = vld [vmem:[#allocation5 + $0x190] sm:$0xf] }
  0xf7   :  { %5051 = vmatpush.bf16.msrb.mxu2 %v9665_v50  ;;  %v9534_v5 = vld [vmem:[#allocation5 + $0x11c8] sm:$0xf0]  ;;  %5026 = vmatpush.bf16.msrb.mxu0 %v8577_v60 }
  0xf8   :  { %v11619_v6 = vld [vmem:[#allocation5 + $0x158c] sm:$0xf]  ;;  %v9537_v10 = vor.u32 %v11491_v4, %v9534_v5  ;;  %v8773_v4 = vor.u32 %v11308_v59, %v8772_v58  ;;  %v7684_v5 = vld [vmem:[#allocation5 + $0x310] sm:$0xf] }
  0xf9   :  { %5064 = vmatpush.bf16.msrb.mxu3 %v10177_v54  ;;  %v10046_v7 = vld [vmem:[#allocation5 + $0x15c8] sm:$0xf0]  ;;  %5039 = vmatpush.bf16.msrb.mxu1 %v9089_v61  ;;  %v11052_v54 = vld [vmem:[#allocation5 + $0x3cc] sm:$0xf0] }
  0xfa   :  { %v11219_v11 = vld [vmem:[#allocation5 + $0x90c] sm:$0xf]  ;;  %v10049_v14 = vor.u32 %v11619_v6, %v10046_v7  ;;  %v7749_v1 = vor.u32 %v11052_v54, %v7748_v53  ;;  %v11036_v6 = vld [vmem:[#allocation5 + $0x34c] sm:$0xf0] }
  0xfb   :  { %5052 = vmatpush.bf16.msrb.mxu2 %v9601_v62  ;;  %v8446_v12 = vld [vmem:[#allocation5 + $0x948] sm:$0xf0]  ;;  %5027 = vmatpush.bf16.msrb.mxu0 %v8513_v8  ;;  %v9284_v62 = vld [vmem:[#allocation5 + $0xf90] sm:$0xf] }
  0xfc   :  { %v11347_v13 = vld [vmem:[#allocation5 + $0xd0c] sm:$0xf]  ;;  %v8449_v20 = vor.u32 %v11219_v11, %v8446_v12  ;;  %v8196_v7 = vld [vmem:[#allocation5 + $0x710] sm:$0xf] }
  0xfd   :  { %5065 = vmatpush.bf16.msrb.mxu3 %v10113_v2  ;;  %v8958_v15 = vld [vmem:[#allocation5 + $0xd48] sm:$0xf0]  ;;  %5040 = vmatpush.bf16.msrb.mxu1 %v9025_v9  ;;  %v4798_v2 = vpop.f32.mrf.mxu2  ;;  %v9285_v9 = vor.u32 %v11436_v63, %v9284_v62  ;;  %v8708_v11 = vld [vmem:[#allocation5 + $0xb10] sm:$0xf] }
  0xfe   :  { %v11475_v16 = vld [vmem:[#allocation5 + $0x110c] sm:$0xf]  ;;  %v8961_v21 = vor.u32 %v11347_v13, %v8958_v15  ;;  %v4799_v8 = vadd.f32 %v4798_v2, %v4786_v52  ;;  %v11292_v12 = vld [vmem:[#allocation5 + $0xb4c] sm:$0xf0]  ;;  %v4774_v13 = vpop.f32.mrf.mxu0 }
  0xff   :  { %v9470_v17 = vld [vmem:[#allocation5 + $0x1148] sm:$0xf0]  ;;  %5053 = vmatpush.bf16.msrb.mxu2 %v9537_v10  ;;  %5028 = vmatpush.bf16.msrb.mxu0 %v8449_v20  ;;  %v11164_v10 = vld [vmem:[#allocation5 + $0x74c] sm:$0xf0]  ;;  %v8709_v20 = vor.u32 %v11292_v12, %v8708_v11 }
 0x100   :  { %v11603_v18 = vld [vmem:[#allocation5 + $0x150c] sm:$0xf]  ;;  %v9473_v22 = vor.u32 %v11475_v16, %v9470_v17  ;;  %v11420_v15 = vld [vmem:[#allocation5 + $0xf4c] sm:$0xf0]  ;;  %v4787_v16 = vpop.f32.mrf.mxu1  ;;  %v7685_v17 = vor.u32 %v11036_v6, %v7684_v5 }
 0x101   :  { %v9982_v19 = vld [vmem:[#allocation5 + $0x1548] sm:$0xf0]  ;;  %5066 = vmatpush.bf16.msrb.mxu3 %v10049_v14  ;;  %5041 = vmatpush.bf16.msrb.mxu1 %v8961_v21  ;;  %v9220_v14 = vld [vmem:[#allocation5 + $0xf10] sm:$0xf] }
 0x102   :  { %v11203_v23 = vld [vmem:[#allocation5 + $0x88c] sm:$0xf]  ;;  %v9985_v26 = vor.u32 %v11603_v18, %v9982_v19  ;;  %v4811_v18 = vpop.f32.mrf.mxu3  ;;  %v8197_v19 = vor.u32 %v11164_v10, %v8196_v7  ;;  %v7620_v21 = vld [vmem:[#allocation5 + $0x290] sm:$0xf] }
 0x103   :  { %v8382_v24 = vld [vmem:[#allocation5 + $0x8c8] sm:$0xf0]  ;;  %5054 = vmatpush.bf16.msrb.mxu2 %v9473_v22  ;;  %v11020_v22 = vld [vmem:[#allocation5 + $0x2cc] sm:$0xf0] }
 0x104   :  { %v11331_v25 = vld [vmem:[#allocation5 + $0xc8c] sm:$0xf]  ;;  %v8385_v36 = vor.u32 %v11203_v23, %v8382_v24  ;;  %v8132_v23 = vld [vmem:[#allocation5 + $0x690] sm:$0xf]  ;;  %v4812_v24 = vadd.f32 %v4811_v18, %v4799_v8 }
 0x105   :  { %v8894_v27 = vld [vmem:[#allocation5 + $0xcc8] sm:$0xf0]  ;;  %5067 = vmatpush.bf16.msrb.mxu3 %v9985_v26  ;;  %v11148_v26 = vld [vmem:[#allocation5 + $0x6cc] sm:$0xf0] }
 0x106   :  { %v11459_v28 = vld [vmem:[#allocation5 + $0x108c] sm:$0xf]  ;;  %v8897_v40 = vor.u32 %v11331_v25, %v8894_v27  ;;  %5029 = vmatpush.bf16.msrb.mxu0 %v8385_v36  ;;  %v9221_v25 = vor.u32 %v11420_v15, %v9220_v14  ;;  %v8644_v27 = vld [vmem:[#allocation5 + $0xa90] sm:$0xf]  ;;  %v4800_v36 = vpop.f32.mrf.mxu2 }
 0x107   :  { %v9406_v29 = vld [vmem:[#allocation5 + $0x10c8] sm:$0xf0]  ;;  %v10988_v58 = vld [vmem:[#allocation5 + $0x1cc] sm:$0xf0] }
 0x108   :  { %v11587_v31 = vld [vmem:[#allocation5 + $0x148c] sm:$0xf]  ;;  %v9409_v42 = vor.u32 %v11459_v28, %v9406_v29  ;;  %5042 = vmatpush.bf16.msrb.mxu1 %v8897_v40  ;;  %v11276_v28 = vld [vmem:[#allocation5 + $0xacc] sm:$0xf0]  ;;  %v4837_v54 = vpop.f32.mrf.mxu1 }
 0x109   :  { %v9918_v32 = vld [vmem:[#allocation5 + $0x14c8] sm:$0xf0]  ;;  %v9156_v29 = vld [vmem:[#allocation5 + $0xe90] sm:$0xf] }
 0x10a   :  { %v11187_v37 = vld [vmem:[#allocation5 + $0x80c] sm:$0xf]  ;;  %v9921_v48 = vor.u32 %v11587_v31, %v9918_v32  ;;  %5055 = vmatpush.bf16.msrb.mxu2 %v9409_v42  ;;  %v11404_v31 = vld [vmem:[#allocation5 + $0xecc] sm:$0xf0]  ;;  %v7621_v32 = vor.u32 %v11020_v22, %v7620_v21  ;;  %v4813_v52 = vpop.f32.mrf.mxu3 }
 0x10b   :  { %v8318_v38 = vld [vmem:[#allocation5 + $0x848] sm:$0xf0]  ;;  %v11004_v40 = vld [vmem:[#allocation5 + $0x24c] sm:$0xf0] }
 0x10c   :  { %v11315_v43 = vld [vmem:[#allocation5 + $0xc0c] sm:$0xf]  ;;  %v8321_v56 = vor.u32 %v11187_v37, %v8318_v38  ;;  %5068 = vmatpush.bf16.msrb.mxu3 %v9921_v48  ;;  %v8133_v37 = vor.u32 %v11148_v26, %v8132_v23  ;;  %v8645_v38 = vor.u32 %v11276_v28, %v8644_v27  ;;  %v8068_v42 = vld [vmem:[#allocation5 + $0x610] sm:$0xf] }
 0x10d   :  { %v8830_v45 = vld [vmem:[#allocation5 + $0xc48] sm:$0xf0]  ;;  %v9092_v48 = vld [vmem:[#allocation5 + $0xe10] sm:$0xf] }
 0x10e   :  { %v11443_v46 = vld [vmem:[#allocation5 + $0x100c] sm:$0xf]  ;;  %v8833_v60 = vor.u32 %v11315_v43, %v8830_v45  ;;  %5030 = vmatpush.bf16.msrb.mxu0 %v8321_v56  ;;  %v9157_v43 = vor.u32 %v11404_v31, %v9156_v29  ;;  %v11132_v45 = vld [vmem:[#allocation5 + $0x64c] sm:$0xf0]  ;;  %v4850_v13 = vpop.f32.mrf.mxu2 }
 0x10f   :  { %v9342_v49 = vld [vmem:[#allocation5 + $0x1048] sm:$0xf0]  ;;  %v8069_v55 = vor.u32 %v11132_v45, %v8068_v42  ;;  %v8004_v59 = vld [vmem:[#allocation5 + $0x590] sm:$0xf] }
 0x110   :  { %v11571_v50 = vld [vmem:[#allocation5 + $0x140c] sm:$0xf]  ;;  %v9345_v61 = vor.u32 %v11443_v46, %v9342_v49  ;;  %5043 = vmatpush.bf16.msrb.mxu1 %v8833_v60  ;;  %v8580_v46 = vld [vmem:[#allocation5 + $0xa10] sm:$0xf]  ;;  %v4839_v18 = vpop.f32.mrf.mxu1 }
 0x111   :  { %v9854_v51 = vld [vmem:[#allocation5 + $0x1448] sm:$0xf0]  ;;  %5031 = vmatmul.bf16.vlgmr.msrb.gmra.mxu0 %v12139_v34  ;;  %v11388_v49 = vld [vmem:[#allocation5 + $0xe4c] sm:$0xf0]  ;;  %v8581_v56 = vor.u32 %v11260_v47, %v8580_v46 }
 0x112   :  { %v9857_v0 = vor.u32 %v11571_v50, %v9854_v51  ;;  %5056 = vmatpush.bf16.msrb.mxu2 %v9345_v61  ;;  %5075 = vmatpush.bf16.msra.mxu0 %v7749_v1  ;;  %v4824_v50 = vpop.f32.mrf.mxu0  ;;  %v7557_v51 = vor.u32 %v11004_v40, %v7556_v39  ;;  %v9093_v60 = vor.u32 %v11388_v49, %v9092_v48  ;;  %v11116_v61 = vld [vmem:[#allocation5 + $0x5cc] sm:$0xf0]  ;;  %v4863_v28 = vpop.f32.mrf.mxu3 }
 0x113   :  { %5044 = vmatmul.bf16.vlgmr.msrb.gmra.mxu1 %v12145_v44  ;;  %v4825_v53 = vadd.f32 %v4824_v50, %v4812_v24  ;;  %v8516_v62 = vld [vmem:[#allocation5 + $0x990] sm:$0xf] }
 0x114   :  { %5069 = vmatpush.bf16.msrb.mxu3 %v9857_v0  ;;  %5088 = vmatpush.bf16.msra.mxu1 %v8261_v3  ;;  %v11244_v63 = vld [vmem:[#allocation5 + $0x9cc] sm:$0xf0]  ;;  %v7493_v3 = vor.u32 %v10988_v58, %v7492_v57  ;;  %v7750_v57 = vld [vmem:[#allocation5 + $0x3d0] sm:$0xf0] }
 0x115   :  { %5057 = vmatmul.bf16.vlgmr.msrb.gmra.mxu2 %v12149_v30  ;;  %v12173_v0 = vadd.f32 %v4837_v54, %v4825_v53  ;;  %v9028_v1 = vld [vmem:[#allocation5 + $0xd90] sm:$0xf]  ;;  %v8517_v5 = vor.u32 %v11244_v63, %v8516_v62 }
 0x116   :  { %5101 = vmatpush.bf16.msra.mxu2 %v8773_v4  ;;  %5076 = vmatpush.bf16.msra.mxu0 %v7685_v17  ;;  %v11372_v2 = vld [vmem:[#allocation5 + $0xdcc] sm:$0xf0]  ;;  %v8005_v4 = vor.u32 %v11116_v61, %v8004_v59  ;;  %v4852_v50 = vpop.f32.mrf.mxu2  ;;  %v8262_v61 = vld [vmem:[#allocation5 + $0x7d0] sm:$0xf0] }
 0x117   :  { %5070 = vmatmul.bf16.vlgmr.msrb.gmra.mxu3 %v12151_v35  ;;  %v7428_v6 = vld [vmem:[#allocation5 + $0x110] sm:$0xf] }
 0x118   :  { %5114 = vmatpush.bf16.msra.mxu3 %v9285_v9  ;;  %5089 = vmatpush.bf16.msra.mxu1 %v8197_v19  ;;  %v10972_v7 = vld [vmem:[#allocation5 + $0x14c] sm:$0xf0]  ;;  %v9029_v9 = vor.u32 %v11372_v2, %v9028_v1 }
 0x119   :  { %v7940_v8 = vld [vmem:[#allocation5 + $0x510] sm:$0xf]  ;;  %v7429_v17 = vor.u32 %v10972_v7, %v7428_v6 }
 0x11a   :  { %5102 = vmatpush.bf16.msra.mxu2 %v8709_v20  ;;  %5077 = vmatpush.bf16.msra.mxu0 %v7621_v32  ;;  %v11100_v10 = vld [vmem:[#allocation5 + $0x54c] sm:$0xf0]  ;;  %v4826_v16 = vpop.f32.mrf.mxu0  ;;  %v12175_v32 = vadd.f32 %v4863_v28, %v4850_v13  ;;  %v4865_v1 = vpop.f32.mrf.mxu3 }
 0x11b   :  { %v8452_v11 = vld [vmem:[#allocation5 + $0x910] sm:$0xf]  ;;  %v7941_v19 = vor.u32 %v11100_v10, %v7940_v8  ;;  %v7686_v10 = vld [vmem:[#allocation5 + $0x350] sm:$0xf0] }
 0x11c   :  { %5115 = vmatpush.bf16.msra.mxu3 %v9221_v25  ;;  %5090 = vmatpush.bf16.msra.mxu1 %v8133_v37  ;;  %v11228_v12 = vld [vmem:[#allocation5 + $0x94c] sm:$0xf0] }
 0x11d   :  { %v8964_v14 = vld [vmem:[#allocation5 + $0xd10] sm:$0xf]  ;;  %v8453_v20 = vor.u32 %v11228_v12, %v8452_v11  ;;  %v11156_v11 = vld [vmem:[#allocation5 + $0x714] sm:$0xf] }
 0x11e   :  { %5103 = vmatpush.bf16.msra.mxu2 %v8645_v38  ;;  %5078 = vmatpush.bf16.msra.mxu0 %v7557_v51  ;;  %v11356_v15 = vld [vmem:[#allocation5 + $0xd4c] sm:$0xf0]  ;;  %v8198_v12 = vld [vmem:[#allocation5 + $0x750] sm:$0xf0] }
 0x11f   :  { %v7364_v21 = vld [vmem:[#allocation5 + $0x90] sm:$0xf]  ;;  %v8965_v24 = vor.u32 %v11356_v15, %v8964_v14 }
 0x120   :  { %5116 = vmatpush.bf16.msra.mxu3 %v9157_v43  ;;  %5091 = vmatpush.bf16.msra.mxu1 %v8069_v55  ;;  %v10956_v22 = vld [vmem:[#allocation5 + $0xcc] sm:$0xf0] }
 0x121   :  { %v7876_v23 = vld [vmem:[#allocation5 + $0x490] sm:$0xf]  ;;  %v7365_v36 = vor.u32 %v10956_v22, %v7364_v21  ;;  %v11012_v21 = vld [vmem:[#allocation5 + $0x294] sm:$0xf] }
 0x122   :  { %5104 = vmatpush.bf16.msra.mxu2 %v8581_v56  ;;  %5079 = vmatpush.bf16.msra.mxu0 %v7493_v3  ;;  %v11084_v25 = vld [vmem:[#allocation5 + $0x4cc] sm:$0xf0]  ;;  %v11044_v56 = vld [vmem:[#allocation5 + $0x394] sm:$0xf] }
 0x123   :  { %v8388_v26 = vld [vmem:[#allocation5 + $0x890] sm:$0xf]  ;;  %v7877_v39 = vor.u32 %v11084_v25, %v7876_v23  ;;  %v7753_v3 = vor.u32 %v11044_v56, %v7750_v57  ;;  %v7622_v22 = vld [vmem:[#allocation5 + $0x2d0] sm:$0xf0] }
 0x124   :  { %5117 = vmatpush.bf16.msra.mxu3 %v9093_v60  ;;  %5092 = vmatpush.bf16.msra.mxu1 %v8005_v4  ;;  %v11212_v27 = vld [vmem:[#allocation5 + $0x8cc] sm:$0xf0]  ;;  %v11172_v60 = vld [vmem:[#allocation5 + $0x794] sm:$0xf] }
 0x125   :  { %v8900_v29 = vld [vmem:[#allocation5 + $0xc90] sm:$0xf]  ;;  %v8389_v40 = vor.u32 %v11212_v27, %v8388_v26  ;;  %v8265_v7 = vor.u32 %v11172_v60, %v8262_v61  ;;  %v11140_v23 = vld [vmem:[#allocation5 + $0x694] sm:$0xf]  ;;  %v7625_v27 = vor.u32 %v11012_v21, %v7622_v22 }
 0x126   :  { %5105 = vmatpush.bf16.msra.mxu2 %v8517_v5  ;;  %v11340_v31 = vld [vmem:[#allocation5 + $0xccc] sm:$0xf0]  ;;  %5080 = vmatpush.bf16.msra.mxu0 %v7429_v17  ;;  %v7494_v56 = vld [vmem:[#allocation5 + $0x1d0] sm:$0xf0] }
 0x127   :  { %v7300_v37 = vld [vmem:[#allocation5 + $0x10] sm:$0xf]  ;;  %v8901_v46 = vor.u32 %v11340_v31, %v8900_v29  ;;  %v11108_v57 = vld [vmem:[#allocation5 + $0x594] sm:$0xf] }
 0x128   :  { %5118 = vmatpush.bf16.msra.mxu3 %v9029_v9  ;;  %v10940_v38 = vld [vmem:[#allocation5 + $0x4c] sm:$0xf0]  ;;  %5093 = vmatpush.bf16.msra.mxu1 %v7941_v19  ;;  %v11028_v9 = vld [vmem:[#allocation5 + $0x314] sm:$0xf]  ;;  %v8201_v19 = vor.u32 %v11156_v11, %v8198_v12 }
 0x129   :  { %v7812_v42 = vld [vmem:[#allocation5 + $0x410] sm:$0xf]  ;;  %v7301_v54 = vor.u32 %v10940_v38, %v7300_v37  ;;  %v7689_v15 = vor.u32 %v11028_v9, %v7686_v10  ;;  %v10996_v38 = vld [vmem:[#allocation5 + $0x214] sm:$0xf] }
 0x12a   :  { %5106 = vmatpush.bf16.msra.mxu2 %v8453_v20  ;;  %v11068_v43 = vld [vmem:[#allocation5 + $0x44c] sm:$0xf0]  ;;  %5081 = vmatpush.bf16.msra.mxu0 %v7365_v36  ;;  %v11092_v9 = vld [vmem:[#allocation5 + $0x514] sm:$0xf] }
 0x12b   :  { %v8324_v45 = vld [vmem:[#allocation5 + $0x810] sm:$0xf]  ;;  %v7813_v58 = vor.u32 %v11068_v43, %v7812_v42  ;;  %v8070_v42 = vld [vmem:[#allocation5 + $0x650] sm:$0xf0] }
 0x12c   :  { %5119 = vmatpush.bf16.msra.mxu3 %v8965_v24  ;;  %v11196_v47 = vld [vmem:[#allocation5 + $0x84c] sm:$0xf0]  ;;  %5094 = vmatpush.bf16.msra.mxu1 %v7877_v39  ;;  %v8134_v24 = vld [vmem:[#allocation5 + $0x6d0] sm:$0xf0] }
 0x12d   :  { %v8836_v48 = vld [vmem:[#allocation5 + $0xc10] sm:$0xf]  ;;  %v8325_v59 = vor.u32 %v11196_v47, %v8324_v45  ;;  %v8137_v36 = vor.u32 %v11140_v23, %v8134_v24  ;;  %v7558_v39 = vld [vmem:[#allocation5 + $0x250] sm:$0xf0]  ;;  %v4876_v45 = vpop.f32.mrf.mxu0 }
 0x12e   :  { %v11324_v49 = vld [vmem:[#allocation5 + $0xc4c] sm:$0xf0]  ;;  %5107 = vmatpush.bf16.msra.mxu2 %v8389_v40  ;;  %5082 = vmatpush.bf16.msra.mxu0 %v7301_v54  ;;  %v11124_v40 = vld [vmem:[#allocation5 + $0x614] sm:$0xf]  ;;  %v7561_v47 = vor.u32 %v10996_v38, %v7558_v39 }
 0x12f   :  { %v9796_v51 = vld [vmem:[#allocation5 + $0x1390] sm:$0xf]  ;;  %v8837_v62 = vor.u32 %v11324_v49, %v8836_v48  ;;  %v7942_v10 = vld [vmem:[#allocation5 + $0x550] sm:$0xf0] }
 0x130   :  { %v11564_v52 = vld [vmem:[#allocation5 + $0x13cc] sm:$0xf0]  ;;  %5120 = vmatpush.bf16.msra.mxu3 %v8901_v46  ;;  %5095 = vmatpush.bf16.msra.mxu1 %v7813_v58  ;;  %v8006_v58 = vld [vmem:[#allocation5 + $0x5d0] sm:$0xf0] }
 0x131   :  { %v10308_v53 = vld [vmem:[#allocation5 + $0x1790] sm:$0xf]  ;;  %v9797_v63 = vor.u32 %v11564_v52, %v9796_v51  ;;  %5083 = vmatmul.bf16.vlgmr.msra.gmra.mxu0 %v12137_v33  ;;  %v4877_v51 = vadd.f32 %v4876_v45, %v12175_v32  ;;  %v4889_v52 = vpop.f32.mrf.mxu1  ;;  %v8009_v32 = vor.u32 %v11108_v57, %v8006_v58  ;;  %v10948_v22 = vld [vmem:[#allocation5 + $0x94] sm:$0xf] }
 0x132   :  { %v11692_v55 = vld [vmem:[#allocation5 + $0x17cc] sm:$0xf0]  ;;  %5108 = vmatpush.bf16.msra.mxu2 %v8325_v59  ;;  %v7366_v23 = vld [vmem:[#allocation5 + $0xd0] sm:$0xf0] }
 0x133   :  { %v10309_v2 = vor.u32 %v11692_v55, %v10308_v53  ;;  %v9732_v4 = vld [vmem:[#allocation5 + $0x1310] sm:$0xf]  ;;  %5127 = vmatpush.bf16.msrb.mxu0 %v9797_v63  ;;  %5096 = vmatmul.bf16.vlgmr.msra.gmra.mxu1 %v12141_v41  ;;  %v8073_v53 = vor.u32 %v11124_v40, %v8070_v42  ;;  %v10980_v55 = vld [vmem:[#allocation5 + $0x194] sm:$0xf]  ;;  %v4890_v59 = vadd.f32 %v4889_v52, %v4877_v51 }
 0x134   :  { %v11548_v5 = vld [vmem:[#allocation5 + $0x134c] sm:$0xf0]  ;;  %5121 = vmatpush.bf16.msra.mxu3 %v8837_v62  ;;  %v7497_v62 = vor.u32 %v10980_v55, %v7494_v56  ;;  %v11076_v24 = vld [vmem:[#allocation5 + $0x494] sm:$0xf] }
 0x135   :  { %v10244_v6 = vld [vmem:[#allocation5 + $0x1710] sm:$0xf]  ;;  %v9733_v13 = vor.u32 %v11548_v5, %v9732_v4  ;;  %5140 = vmatpush.bf16.msrb.mxu1 %v10309_v2  ;;  %5109 = vmatmul.bf16.vlgmr.msra.gmra.mxu2 %v12139_v34  ;;  %v10964_v5 = vld [vmem:[#allocation5 + $0x114] sm:$0xf] }
 0x136   :  { %v11676_v8 = vld [vmem:[#allocation5 + $0x174c] sm:$0xf0]  ;;  %5153 = vmatpush.bf16.msrb.mxu2 %v7753_v3  ;;  %v4902_v3 = vpop.f32.mrf.mxu2  ;;  %v10932_v38 = vld [vmem:[#allocation5 + $0x14] sm:$0xf] }
 0x137   :  { %v10245_v14 = vor.u32 %v11676_v8, %v10244_v6  ;;  %v9668_v16 = vld [vmem:[#allocation5 + $0x1290] sm:$0xf]  ;;  %5128 = vmatpush.bf16.msrb.mxu0 %v9733_v13  ;;  %5122 = vmatmul.bf16.vlgmr.msra.gmra.mxu3 %v12145_v44  ;;  %v7430_v6 = vld [vmem:[#allocation5 + $0x150] sm:$0xf0]  ;;  %v4915_v8 = vpop.f32.mrf.mxu3  ;;  %v4878_v13 = vpop.f32.mrf.mxu0 }
 0x138   :  { %v11532_v17 = vld [vmem:[#allocation5 + $0x12cc] sm:$0xf0]  ;;  %5166 = vmatpush.bf16.msrb.mxu3 %v8265_v7  ;;  %v4903_v7 = vadd.f32 %v4902_v3, %v4890_v59  ;;  %v7302_v42 = vld [vmem:[#allocation5 + $0x50] sm:$0xf0] }
 0x139   :  { %v10180_v18 = vld [vmem:[#allocation5 + $0x1690] sm:$0xf]  ;;  %v9669_v25 = vor.u32 %v11532_v17, %v9668_v16  ;;  %5141 = vmatpush.bf16.msrb.mxu1 %v10245_v14  ;;  %v7814_v45 = vld [vmem:[#allocation5 + $0x450] sm:$0xf0]  ;;  %v7305_v55 = vor.u32 %v10932_v38, %v7302_v42 }
 0x13a   :  { %v11660_v20 = vld [vmem:[#allocation5 + $0x16cc] sm:$0xf0]  ;;  %5154 = vmatpush.bf16.msrb.mxu2 %v7689_v15  ;;  %v12182_v12 = vadd.f32 %v4915_v8, %v4903_v7  ;;  %v7433_v15 = vor.u32 %v10964_v5, %v7430_v6  ;;  %v9286_v51 = vld [vmem:[#allocation5 + $0xfd0] sm:$0xf0] }
 0x13b   :  { %v10181_v26 = vor.u32 %v11660_v20, %v10180_v18  ;;  %v9604_v28 = vld [vmem:[#allocation5 + $0x1210] sm:$0xf]  ;;  %5129 = vmatpush.bf16.msrb.mxu0 %v9669_v25  ;;  %v7945_v20 = vor.u32 %v11092_v9, %v7942_v10  ;;  %v7878_v25 = vld [vmem:[#allocation5 + $0x4d0] sm:$0xf0] }
 0x13c   :  { %v11516_v29 = vld [vmem:[#allocation5 + $0x124c] sm:$0xf0]  ;;  %5167 = vmatpush.bf16.msrb.mxu3 %v8201_v19  ;;  %v4891_v19 = vpop.f32.mrf.mxu1  ;;  %v7881_v40 = vor.u32 %v11076_v24, %v7878_v25  ;;  %v11556_v52 = vld [vmem:[#allocation5 + $0x1394] sm:$0xf] }
 0x13d   :  { %v10116_v31 = vld [vmem:[#allocation5 + $0x1610] sm:$0xf]  ;;  %v9605_v43 = vor.u32 %v11516_v29, %v9604_v28  ;;  %5142 = vmatpush.bf16.msrb.mxu1 %v10181_v26  ;;  %v11684_v56 = vld [vmem:[#allocation5 + $0x1794] sm:$0xf] }
 0x13e   :  { %v11644_v37 = vld [vmem:[#allocation5 + $0x164c] sm:$0xf0]  ;;  %5155 = vmatpush.bf16.msrb.mxu2 %v7625_v27  ;;  %v4904_v39 = vpop.f32.mrf.mxu2  ;;  %v10310_v57 = vld [vmem:[#allocation5 + $0x17d0] sm:$0xf0] }
 0x13f   :  { %v10117_v46 = vor.u32 %v11644_v37, %v10116_v31  ;;  %v9540_v48 = vld [vmem:[#allocation5 + $0x1190] sm:$0xf]  ;;  %5130 = vmatpush.bf16.msrb.mxu0 %v9605_v43  ;;  %v7369_v31 = vor.u32 %v10948_v22, %v7366_v23  ;;  %v11060_v43 = vld [vmem:[#allocation5 + $0x414] sm:$0xf] }
 0x140   :  { %v11500_v49 = vld [vmem:[#allocation5 + $0x11cc] sm:$0xf0]  ;;  %5168 = vmatpush.bf16.msrb.mxu3 %v8137_v36  ;;  %v7817_v58 = vor.u32 %v11060_v43, %v7814_v45  ;;  %v9222_v3 = vld [vmem:[#allocation5 + $0xf50] sm:$0xf0] }
 0x141   :  { %v10052_v50 = vld [vmem:[#allocation5 + $0x1590] sm:$0xf]  ;;  %v9541_v60 = vor.u32 %v11500_v49, %v9540_v48  ;;  %5143 = vmatpush.bf16.msrb.mxu1 %v10117_v46  ;;  %v4917_v46 = vpop.f32.mrf.mxu3  ;;  %v8774_v48 = vld [vmem:[#allocation5 + $0xbd0] sm:$0xf0] }
 0x142   :  { %v11628_v54 = vld [vmem:[#allocation5 + $0x15cc] sm:$0xf0]  ;;  %5156 = vmatpush.bf16.msrb.mxu2 %v7561_v47  ;;  %v11300_v47 = vld [vmem:[#allocation5 + $0xb94] sm:$0xf] }
 0x143   :  { %v10053_v61 = vor.u32 %v11628_v54, %v10052_v50  ;;  %v9476_v63 = vld [vmem:[#allocation5 + $0x1110] sm:$0xf]  ;;  %5131 = vmatpush.bf16.msrb.mxu0 %v9541_v60  ;;  %v11428_v49 = vld [vmem:[#allocation5 + $0xf94] sm:$0xf]  ;;  %v8777_v59 = vor.u32 %v11300_v47, %v8774_v48 }
 0x144   :  { %v11484_v1 = vld [vmem:[#allocation5 + $0x114c] sm:$0xf0]  ;;  %5169 = vmatpush.bf16.msrb.mxu3 %v8073_v53  ;;  %v9798_v53 = vld [vmem:[#allocation5 + $0x13d0] sm:$0xf0]  ;;  %v9289_v60 = vor.u32 %v11428_v49, %v9286_v51 }
 0x145   :  { %v9988_v2 = vld [vmem:[#allocation5 + $0x1510] sm:$0xf]  ;;  %v9477_v11 = vor.u32 %v11484_v1, %v9476_v63  ;;  %5144 = vmatpush.bf16.msrb.mxu1 %v10053_v61  ;;  %v9801_v61 = vor.u32 %v11556_v52, %v9798_v53  ;;  %v8710_v63 = vld [vmem:[#allocation5 + $0xb50] sm:$0xf0] }
 0x146   :  { %v11612_v4 = vld [vmem:[#allocation5 + $0x154c] sm:$0xf0]  ;;  %5157 = vmatpush.bf16.msrb.mxu2 %v7497_v62  ;;  %v11284_v62 = vld [vmem:[#allocation5 + $0xb14] sm:$0xf] }
 0x147   :  { %v9989_v14 = vor.u32 %v11612_v4, %v9988_v2  ;;  %v9412_v16 = vld [vmem:[#allocation5 + $0x1090] sm:$0xf]  ;;  %5132 = vmatpush.bf16.msrb.mxu0 %v9477_v11  ;;  %v11412_v1 = vld [vmem:[#allocation5 + $0xf14] sm:$0xf]  ;;  %v10313_v2 = vor.u32 %v11684_v56, %v10310_v57  ;;  %v8713_v7 = vor.u32 %v11284_v62, %v8710_v63 }
 0x148   :  { %v11468_v17 = vld [vmem:[#allocation5 + $0x10cc] sm:$0xf0]  ;;  %5170 = vmatpush.bf16.msrb.mxu3 %v8009_v32  ;;  %v11540_v32 = vld [vmem:[#allocation5 + $0x1314] sm:$0xf]  ;;  %v9225_v8 = vor.u32 %v11412_v1, %v9222_v3 }
 0x149   :  { %v9924_v18 = vld [vmem:[#allocation5 + $0x1490] sm:$0xf]  ;;  %v9413_v26 = vor.u32 %v11468_v17, %v9412_v16  ;;  %5145 = vmatpush.bf16.msrb.mxu1 %v9989_v14  ;;  %v9734_v4 = vld [vmem:[#allocation5 + $0x1350] sm:$0xf0]  ;;  %v4941_v39 = vpop.f32.mrf.mxu1 }
 0x14a   :  { %v11596_v21 = vld [vmem:[#allocation5 + $0x14cc] sm:$0xf0]  ;;  %5158 = vmatpush.bf16.msrb.mxu2 %v7433_v15  ;;  %v11668_v5 = vld [vmem:[#allocation5 + $0x1714] sm:$0xf]  ;;  %v9737_v9 = vor.u32 %v11540_v32, %v9734_v4 }
 0x14b   :  { %v9348_v27 = vld [vmem:[#allocation5 + $0x1010] sm:$0xf]  ;;  %v9925_v29 = vor.u32 %v11596_v21, %v9924_v18  ;;  %5133 = vmatpush.bf16.msrb.mxu0 %v9413_v26  ;;  %v10246_v6 = vld [vmem:[#allocation5 + $0x1750] sm:$0xf0] }
 0x14c   :  { %v11452_v28 = vld [vmem:[#allocation5 + $0x104c] sm:$0xf0]  ;;  %5171 = vmatpush.bf16.msrb.mxu3 %v7945_v20  ;;  %v11268_v10 = vld [vmem:[#allocation5 + $0xa94] sm:$0xf]  ;;  %v10249_v14 = vor.u32 %v11668_v5, %v10246_v6 }
 0x14d   :  { %v9860_v36 = vld [vmem:[#allocation5 + $0x1410] sm:$0xf]  ;;  %v9349_v50 = vor.u32 %v11452_v28, %v9348_v27  ;;  %5146 = vmatpush.bf16.msrb.mxu1 %v9925_v29  ;;  %v8646_v11 = vld [vmem:[#allocation5 + $0xad0] sm:$0xf0] }
 0x14e   :  { %v11580_v37 = vld [vmem:[#allocation5 + $0x144c] sm:$0xf0]  ;;  %5159 = vmatpush.bf16.msrb.mxu2 %v7369_v31  ;;  %v11396_v13 = vld [vmem:[#allocation5 + $0xe94] sm:$0xf]  ;;  %v8649_v20 = vor.u32 %v11268_v10, %v8646_v11 }
 0x14f   :  { %v9861_v54 = vor.u32 %v11580_v37, %v9860_v36  ;;  %5134 = vmatpush.bf16.msrb.mxu0 %v9349_v50  ;;  %v9158_v15 = vld [vmem:[#allocation5 + $0xed0] sm:$0xf0]  ;;  %v4928_v37 = vpop.f32.mrf.mxu0 }
 0x150   :  { %5172 = vmatpush.bf16.msrb.mxu3 %v7881_v40  ;;  %v11524_v16 = vld [vmem:[#allocation5 + $0x1294] sm:$0xf]  ;;  %v9161_v21 = vor.u32 %v11396_v13, %v9158_v15  ;;  %v4942_v47 = vadd.f32 %v4941_v39, %v4928_v37  ;;  %v7756_v39 = vld [vmem:[#allocation5 + $0x398] sm:$0xf] }
 0x151   :  { %5147 = vmatpush.bf16.msrb.mxu1 %v9861_v54  ;;  %v9670_v17 = vld [vmem:[#allocation5 + $0x12d0] sm:$0xf0]  ;;  %v4954_v1 = vpop.f32.mrf.mxu2 }
 0x152   :  { %5160 = vmatpush.bf16.msrb.mxu2 %v7305_v55  ;;  %5135 = vmatmul.bf16.vlgmr.msrb.gmra.mxu0 %v12149_v30  ;;  %v11652_v18 = vld [vmem:[#allocation5 + $0x1694] sm:$0xf]  ;;  %v9673_v22 = vor.u32 %v11524_v16, %v9670_v17  ;;  %v4955_v32 = vadd.f32 %v4954_v1, %v4942_v47  ;;  %v8780_v47 = vld [vmem:[#allocation5 + $0xb98] sm:$0xf] }
 0x153   :  { %5179 = vmatpush.bf16.msra.mxu0 %v8777_v59  ;;  %v10182_v19 = vld [vmem:[#allocation5 + $0x16d0] sm:$0xf0]  ;;  %v4967_v5 = vpop.f32.mrf.mxu3  ;;  %v9228_v1 = vld [vmem:[#allocation5 + $0xf18] sm:$0xf] }
 0x154   :  { %5173 = vmatpush.bf16.msrb.mxu3 %v7817_v58  ;;  %5148 = vmatmul.bf16.vlgmr.msrb.gmra.mxu1 %v12151_v35  ;;  %v11252_v23 = vld [vmem:[#allocation5 + $0xa14] sm:$0xf]  ;;  %v10185_v26 = vor.u32 %v11652_v18, %v10182_v19 }
 0x155   :  { %5192 = vmatpush.bf16.msra.mxu1 %v9289_v60  ;;  %5161 = vmatmul.bf16.vlgmr.msrb.gmra.mxu2 %v12137_v33  ;;  %v8582_v24 = vld [vmem:[#allocation5 + $0xa50] sm:$0xf0] }
 0x156   :  { %5205 = vmatpush.bf16.msra.mxu2 %v9801_v61  ;;  %v11380_v25 = vld [vmem:[#allocation5 + $0xe14] sm:$0xf]  ;;  %v8585_v38 = vor.u32 %v11252_v23, %v8582_v24 }
 0x157   :  { %5180 = vmatpush.bf16.msra.mxu0 %v8713_v7  ;;  %5174 = vmatmul.bf16.vlgmr.msrb.gmra.mxu3 %v12141_v41  ;;  %v9094_v27 = vld [vmem:[#allocation5 + $0xe50] sm:$0xf0]  ;;  %v4930_v4 = vpop.f32.mrf.mxu0  ;;  %v4943_v7 = vpop.f32.mrf.mxu1 }
 0x158   :  { %5218 = vmatpush.bf16.msra.mxu3 %v10313_v2  ;;  %v11508_v28 = vld [vmem:[#allocation5 + $0x1214] sm:$0xf]  ;;  %v9097_v40 = vor.u32 %v11380_v25, %v9094_v27  ;;  %v8140_v7 = vld [vmem:[#allocation5 + $0x698] sm:$0xf] }
 0x159   :  { %5193 = vmatpush.bf16.msra.mxu1 %v9225_v8  ;;  %v9606_v29 = vld [vmem:[#allocation5 + $0x1250] sm:$0xf0] }
 0x15a   :  { %5206 = vmatpush.bf16.msra.mxu2 %v9737_v9  ;;  %v11636_v31 = vld [vmem:[#allocation5 + $0x1614] sm:$0xf]  ;;  %v9609_v42 = vor.u32 %v11508_v28, %v9606_v29 }
 0x15b   :  { %v10118_v36 = vld [vmem:[#allocation5 + $0x1650] sm:$0xf0]  ;;  %5181 = vmatpush.bf16.msra.mxu0 %v8649_v20 }
 0x15c   :  { %5219 = vmatpush.bf16.msra.mxu3 %v10249_v14  ;;  %v11236_v43 = vld [vmem:[#allocation5 + $0x994] sm:$0xf]  ;;  %v10121_v48 = vor.u32 %v11636_v31, %v10118_v36  ;;  %v12188_v14 = vadd.f32 %v4967_v5, %v4955_v32  ;;  %v7628_v5 = vld [vmem:[#allocation5 + $0x298] sm:$0xf] }
 0x15d   :  { %5194 = vmatpush.bf16.msra.mxu1 %v9161_v21  ;;  %v8518_v45 = vld [vmem:[#allocation5 + $0x9d0] sm:$0xf0] }
 0x15e   :  { %5207 = vmatpush.bf16.msra.mxu2 %v9673_v22  ;;  %v11364_v46 = vld [vmem:[#allocation5 + $0xd94] sm:$0xf]  ;;  %v8521_v54 = vor.u32 %v11236_v43, %v8518_v45  ;;  %v4969_v43 = vpop.f32.mrf.mxu3 }
 0x15f   :  { %v9030_v49 = vld [vmem:[#allocation5 + $0xdd0] sm:$0xf0]  ;;  %5182 = vmatpush.bf16.msra.mxu0 %v8585_v38  ;;  %v4956_v38 = vpop.f32.mrf.mxu2 }
 0x160   :  { %5220 = vmatpush.bf16.msra.mxu3 %v10185_v26  ;;  %v11492_v50 = vld [vmem:[#allocation5 + $0x1194] sm:$0xf]  ;;  %v9033_v55 = vor.u32 %v11364_v46, %v9030_v49  ;;  %v11181_v46 = vld [vmem:[#allocation5 + $0x7d4] sm:$0xf0] }
 0x161   :  { %v9542_v51 = vld [vmem:[#allocation5 + $0x11d0] sm:$0xf0]  ;;  %5195 = vmatpush.bf16.msra.mxu1 %v9097_v40  ;;  %v11053_v40 = vld [vmem:[#allocation5 + $0x3d4] sm:$0xf0] }
 0x162   :  { %v11620_v52 = vld [vmem:[#allocation5 + $0x1594] sm:$0xf]  ;;  %5208 = vmatpush.bf16.msra.mxu2 %v9609_v42  ;;  %v9545_v56 = vor.u32 %v11492_v50, %v9542_v51  ;;  %v8268_v42 = vld [vmem:[#allocation5 + $0x798] sm:$0xf] }
 0x163   :  { %v10054_v53 = vld [vmem:[#allocation5 + $0x15d0] sm:$0xf0]  ;;  %5183 = vmatpush.bf16.msra.mxu0 %v8521_v54  ;;  %v9292_v51 = vld [vmem:[#allocation5 + $0xf98] sm:$0xf]  ;;  %v7757_v54 = vor.u32 %v11053_v40, %v7756_v39 }
 0x164   :  { %v11220_v57 = vld [vmem:[#allocation5 + $0x914] sm:$0xf]  ;;  %5221 = vmatpush.bf16.msra.mxu3 %v10121_v48  ;;  %v10057_v60 = vor.u32 %v11620_v52, %v10054_v53  ;;  %v11309_v48 = vld [vmem:[#allocation5 + $0xbd4] sm:$0xf0] }
 0x165   :  { %v8454_v58 = vld [vmem:[#allocation5 + $0x950] sm:$0xf0]  ;;  %5196 = vmatpush.bf16.msra.mxu1 %v9033_v55  ;;  %v11437_v52 = vld [vmem:[#allocation5 + $0xfd4] sm:$0xf0]  ;;  %v8269_v55 = vor.u32 %v11181_v46, %v8268_v42 }
 0x166   :  { %v11348_v59 = vld [vmem:[#allocation5 + $0xd14] sm:$0xf]  ;;  %v8457_v6 = vor.u32 %v11220_v57, %v8454_v58  ;;  %5209 = vmatpush.bf16.msra.mxu2 %v9545_v56  ;;  %v8781_v56 = vor.u32 %v11309_v48, %v8780_v47  ;;  %v7692_v57 = vld [vmem:[#allocation5 + $0x318] sm:$0xf] }
 0x167   :  { %v8966_v61 = vld [vmem:[#allocation5 + $0xd50] sm:$0xf0]  ;;  %v11037_v58 = vld [vmem:[#allocation5 + $0x354] sm:$0xf0] }
 0x168   :  { %v11476_v62 = vld [vmem:[#allocation5 + $0x1114] sm:$0xf]  ;;  %v8969_v8 = vor.u32 %v11348_v59, %v8966_v61  ;;  %5222 = vmatpush.bf16.msra.mxu3 %v10057_v60  ;;  %5184 = vmatpush.bf16.msra.mxu0 %v8457_v6  ;;  %v8204_v59 = vld [vmem:[#allocation5 + $0x718] sm:$0xf]  ;;  %v9293_v60 = vor.u32 %v11437_v52, %v9292_v51 }
 0x169   :  { %v9478_v63 = vld [vmem:[#allocation5 + $0x1150] sm:$0xf0]  ;;  %v11165_v61 = vld [vmem:[#allocation5 + $0x754] sm:$0xf0] }
 0x16a   :  { %v11604_v2 = vld [vmem:[#allocation5 + $0x1514] sm:$0xf]  ;;  %v9481_v9 = vor.u32 %v11476_v62, %v9478_v63  ;;  %5197 = vmatpush.bf16.msra.mxu1 %v8969_v8  ;;  %v8716_v62 = vld [vmem:[#allocation5 + $0xb18] sm:$0xf]  ;;  %v8205_v32 = vor.u32 %v11165_v61, %v8204_v59 }
 0x16b   :  { %v9990_v3 = vld [vmem:[#allocation5 + $0x1550] sm:$0xf0]  ;;  %v11293_v63 = vld [vmem:[#allocation5 + $0xb54] sm:$0xf0] }
 0x16c   :  { %v11204_v10 = vld [vmem:[#allocation5 + $0x894] sm:$0xf]  ;;  %v9993_v15 = vor.u32 %v11604_v2, %v9990_v3  ;;  %5210 = vmatpush.bf16.msra.mxu2 %v9481_v9  ;;  %v11421_v2 = vld [vmem:[#allocation5 + $0xf54] sm:$0xf0]  ;;  %v7693_v3 = vor.u32 %v11037_v58, %v7692_v57  ;;  %v8717_v4 = vor.u32 %v11293_v63, %v8716_v62 }
 0x16d   :  { %v8390_v11 = vld [vmem:[#allocation5 + $0x8d0] sm:$0xf0]  ;;  %v11021_v6 = vld [vmem:[#allocation5 + $0x2d4] sm:$0xf0]  ;;  %v9229_v8 = vor.u32 %v11421_v2, %v9228_v1 }
 0x16e   :  { %v11332_v13 = vld [vmem:[#allocation5 + $0xc94] sm:$0xf]  ;;  %v8393_v21 = vor.u32 %v11204_v10, %v8390_v11  ;;  %5223 = vmatpush.bf16.msra.mxu3 %v9993_v15  ;;  %v11149_v9 = vld [vmem:[#allocation5 + $0x6d4] sm:$0xf0] }
 0x16f   :  { %v8902_v16 = vld [vmem:[#allocation5 + $0xcd0] sm:$0xf0]  ;;  %v8652_v10 = vld [vmem:[#allocation5 + $0xa98] sm:$0xf] }
 0x170   :  { %v11460_v17 = vld [vmem:[#allocation5 + $0x1094] sm:$0xf]  ;;  %v8905_v24 = vor.u32 %v11332_v13, %v8902_v16  ;;  %5185 = vmatpush.bf16.msra.mxu0 %v8393_v21  ;;  %v11277_v11 = vld [vmem:[#allocation5 + $0xad4] sm:$0xf0]  ;;  %v7629_v16 = vor.u32 %v11021_v6, %v7628_v5 }
 0x171   :  { %v9414_v18 = vld [vmem:[#allocation5 + $0x10d0] sm:$0xf0]  ;;  %v9164_v13 = vld [vmem:[#allocation5 + $0xe98] sm:$0xf] }
 0x172   :  { %v11588_v19 = vld [vmem:[#allocation5 + $0x1494] sm:$0xf]  ;;  %v9417_v25 = vor.u32 %v11460_v17, %v9414_v18  ;;  %5198 = vmatpush.bf16.msra.mxu1 %v8905_v24  ;;  %v11405_v15 = vld [vmem:[#allocation5 + $0xed4] sm:$0xf0]  ;;  %v8141_v17 = vor.u32 %v11149_v9, %v8140_v7  ;;  %v8653_v18 = vor.u32 %v11277_v11, %v8652_v10 }
 0x173   :  { %v9926_v20 = vld [vmem:[#allocation5 + $0x14d0] sm:$0xf0]  ;;  %v8076_v21 = vld [vmem:[#allocation5 + $0x618] sm:$0xf]  ;;  %v5019_v63 = vpop.f32.mrf.mxu3 }
 0x174   :  { %v11188_v22 = vld [vmem:[#allocation5 + $0x814] sm:$0xf]  ;;  %v9929_v29 = vor.u32 %v11588_v19, %v9926_v20  ;;  %5211 = vmatpush.bf16.msra.mxu2 %v9417_v25  ;;  %v7564_v19 = vld [vmem:[#allocation5 + $0x218] sm:$0xf] }
 0x175   :  { %v8326_v23 = vld [vmem:[#allocation5 + $0x850] sm:$0xf0]  ;;  %v11005_v20 = vld [vmem:[#allocation5 + $0x254] sm:$0xf0] }
 0x176   :  { %v11316_v26 = vld [vmem:[#allocation5 + $0xc14] sm:$0xf]  ;;  %v8329_v45 = vor.u32 %v11188_v22, %v8326_v23  ;;  %5224 = vmatpush.bf16.msra.mxu3 %v9929_v29  ;;  %v9165_v22 = vor.u32 %v11405_v15, %v9164_v13  ;;  %v11133_v23 = vld [vmem:[#allocation5 + $0x654] sm:$0xf0]  ;;  %v7565_v29 = vor.u32 %v11005_v20, %v7564_v19 }
 0x177   :  { %v8838_v27 = vld [vmem:[#allocation5 + $0xc50] sm:$0xf0]  ;;  %v8588_v24 = vld [vmem:[#allocation5 + $0xa18] sm:$0xf] }
 0x178   :  { %v11444_v28 = vld [vmem:[#allocation5 + $0x1014] sm:$0xf]  ;;  %v8841_v49 = vor.u32 %v11316_v26, %v8838_v27  ;;  %5186 = vmatpush.bf16.msra.mxu0 %v8329_v45  ;;  %v11261_v25 = vld [vmem:[#allocation5 + $0xa54] sm:$0xf0] }
 0x179   :  { %v9350_v31 = vld [vmem:[#allocation5 + $0x1050] sm:$0xf0]  ;;  %v9100_v26 = vld [vmem:[#allocation5 + $0xe18] sm:$0xf]  ;;  %v8589_v38 = vor.u32 %v11261_v25, %v8588_v24 }
 0x17a   :  { %v11572_v36 = vld [vmem:[#allocation5 + $0x1414] sm:$0xf]  ;;  %v9353_v50 = vor.u32 %v11444_v28, %v9350_v31  ;;  %5199 = vmatpush.bf16.msra.mxu1 %v8841_v49  ;;  %v11389_v27 = vld [vmem:[#allocation5 + $0xe54] sm:$0xf0]  ;;  %v4980_v28 = vpop.f32.mrf.mxu0 }
 0x17b   :  { %v9862_v37 = vld [vmem:[#allocation5 + $0x1450] sm:$0xf0]  ;;  %5187 = vmatmul.bf16.vlgmr.msra.gmra.mxu0 %v12139_v34  ;;  %v4981_v31 = vadd.f32 %v4980_v28, %v12188_v14  ;;  %v7500_v39 = vld [vmem:[#allocation5 + $0x198] sm:$0xf]  ;;  %v9101_v43 = vor.u32 %v11389_v27, %v9100_v26 }
 0x17c   :  { %v9865_v53 = vor.u32 %v11572_v36, %v9862_v37  ;;  %5212 = vmatpush.bf16.msra.mxu2 %v9353_v50  ;;  %5231 = vmatpush.bf16.msrb.mxu0 %v7757_v54  ;;  %v4993_v36 = vpop.f32.mrf.mxu1  ;;  %v8077_v37 = vor.u32 %v11133_v23, %v8076_v21  ;;  %v10989_v40 = vld [vmem:[#allocation5 + $0x1d4] sm:$0xf0] }
 0x17d   :  { %5200 = vmatmul.bf16.vlgmr.msra.gmra.mxu1 %v12145_v44  ;;  %v8012_v42 = vld [vmem:[#allocation5 + $0x598] sm:$0xf]  ;;  %v12195_v48 = vadd.f32 %v4993_v36, %v4981_v31  ;;  %v7501_v51 = vor.u32 %v10989_v40, %v7500_v39 }
 0x17e   :  { %5225 = vmatpush.bf16.msra.mxu3 %v9865_v53  ;;  %5244 = vmatpush.bf16.msrb.mxu1 %v8269_v55  ;;  %v11117_v45 = vld [vmem:[#allocation5 + $0x5d4] sm:$0xf0] }
 0x17f   :  { %5213 = vmatmul.bf16.vlgmr.msra.gmra.mxu2 %v12149_v30  ;;  %v8524_v46 = vld [vmem:[#allocation5 + $0x998] sm:$0xf]  ;;  %v8013_v14 = vor.u32 %v11117_v45, %v8012_v42  ;;  %v11045_v42 = vld [vmem:[#allocation5 + $0x39c] sm:$0xf] }
 0x180   :  { %5257 = vmatpush.bf16.msrb.mxu2 %v8781_v56  ;;  %5232 = vmatpush.bf16.msrb.mxu0 %v7693_v3  ;;  %v11245_v47 = vld [vmem:[#allocation5 + $0x9d4] sm:$0xf0] }
 0x181   :  { %5226 = vmatmul.bf16.vlgmr.msra.gmra.mxu3 %v12151_v35  ;;  %v9036_v49 = vld [vmem:[#allocation5 + $0xd98] sm:$0xf]  ;;  %v8525_v52 = vor.u32 %v11245_v47, %v8524_v46  ;;  %v11173_v47 = vld [vmem:[#allocation5 + $0x79c] sm:$0xf] }
 0x182   :  { %5270 = vmatpush.bf16.msrb.mxu3 %v9293_v60  ;;  %5245 = vmatpush.bf16.msrb.mxu1 %v8205_v32  ;;  %v11373_v50 = vld [vmem:[#allocation5 + $0xdd4] sm:$0xf0]  ;;  %v5006_v60 = vpop.f32.mrf.mxu2  ;;  %v4982_v1 = vpop.f32.mrf.mxu0 }
 0x183   :  { %v7436_v53 = vld [vmem:[#allocation5 + $0x118] sm:$0xf]  ;;  %v9037_v56 = vor.u32 %v11373_v50, %v9036_v49  ;;  %v12197_v3 = vadd.f32 %v5019_v63, %v5006_v60  ;;  %v8270_v49 = vld [vmem:[#allocation5 + $0x7d8] sm:$0xf0] }
 0x184   :  { %5258 = vmatpush.bf16.msrb.mxu2 %v8717_v4  ;;  %5233 = vmatpush.bf16.msrb.mxu0 %v7629_v16  ;;  %v10973_v54 = vld [vmem:[#allocation5 + $0x154] sm:$0xf0]  ;;  %v4995_v32 = vpop.f32.mrf.mxu1  ;;  %v11157_v60 = vld [vmem:[#allocation5 + $0x71c] sm:$0xf] }
 0x185   :  { %v7948_v55 = vld [vmem:[#allocation5 + $0x518] sm:$0xf]  ;;  %v7437_v2 = vor.u32 %v10973_v54, %v7436_v53 }
 0x186   :  { %5271 = vmatpush.bf16.msrb.mxu3 %v9229_v8  ;;  %5246 = vmatpush.bf16.msrb.mxu1 %v8141_v17  ;;  %v11101_v57 = vld [vmem:[#allocation5 + $0x554] sm:$0xf0] }
 0x187   :  { %v8460_v58 = vld [vmem:[#allocation5 + $0x918] sm:$0xf]  ;;  %v7949_v4 = vor.u32 %v11101_v57, %v7948_v55 }
 0x188   :  { %5259 = vmatpush.bf16.msrb.mxu2 %v8653_v18  ;;  %5234 = vmatpush.bf16.msrb.mxu0 %v7565_v29  ;;  %v11229_v59 = vld [vmem:[#allocation5 + $0x954] sm:$0xf0] }
 0x189   :  { %v8972_v61 = vld [vmem:[#allocation5 + $0xd18] sm:$0xf]  ;;  %v8461_v5 = vor.u32 %v11229_v59, %v8460_v58  ;;  %v11029_v58 = vld [vmem:[#allocation5 + $0x31c] sm:$0xf] }
 0x18a   :  { %5272 = vmatpush.bf16.msrb.mxu3 %v9165_v22  ;;  %5247 = vmatpush.bf16.msrb.mxu1 %v8077_v37  ;;  %v11357_v62 = vld [vmem:[#allocation5 + $0xd54] sm:$0xf0]  ;;  %v5008_v29 = vpop.f32.mrf.mxu2  ;;  %v7694_v59 = vld [vmem:[#allocation5 + $0x358] sm:$0xf0] }
 0x18b   :  { %v7372_v6 = vld [vmem:[#allocation5 + $0x98] sm:$0xf]  ;;  %v8973_v9 = vor.u32 %v11357_v62, %v8972_v61  ;;  %v8206_v61 = vld [vmem:[#allocation5 + $0x758] sm:$0xf0]  ;;  %v7697_v1 = vor.u32 %v11029_v58, %v7694_v59 }
 0x18c   :  { %5260 = vmatpush.bf16.msrb.mxu2 %v8589_v38  ;;  %5235 = vmatpush.bf16.msrb.mxu0 %v7501_v51  ;;  %v10957_v7 = vld [vmem:[#allocation5 + $0xd4] sm:$0xf0]  ;;  %v5021_v38 = vpop.f32.mrf.mxu3 }
 0x18d   :  { %v7884_v8 = vld [vmem:[#allocation5 + $0x498] sm:$0xf]  ;;  %v7373_v17 = vor.u32 %v10957_v7, %v7372_v6  ;;  %v11013_v7 = vld [vmem:[#allocation5 + $0x29c] sm:$0xf] }
 0x18e   :  { %5273 = vmatpush.bf16.msrb.mxu3 %v9101_v43  ;;  %5248 = vmatpush.bf16.msrb.mxu1 %v8013_v14  ;;  %v11085_v10 = vld [vmem:[#allocation5 + $0x4d4] sm:$0xf0]  ;;  %v7758_v43 = vld [vmem:[#allocation5 + $0x3d8] sm:$0xf0] }
 0x18f   :  { %v8396_v11 = vld [vmem:[#allocation5 + $0x898] sm:$0xf]  ;;  %v7885_v20 = vor.u32 %v11085_v10, %v7884_v8  ;;  %v7630_v8 = vld [vmem:[#allocation5 + $0x2d8] sm:$0xf0] }
 0x190   :  { %5261 = vmatpush.bf16.msrb.mxu2 %v8525_v52  ;;  %v11213_v13 = vld [vmem:[#allocation5 + $0x8d4] sm:$0xf0]  ;;  %5236 = vmatpush.bf16.msrb.mxu0 %v7437_v2  ;;  %v7761_v52 = vor.u32 %v11045_v42, %v7758_v43  ;;  %v8142_v10 = vld [vmem:[#allocation5 + $0x6d8] sm:$0xf0]  ;;  %v5045_v38 = vpop.f32.mrf.mxu1 }
 0x191   :  { %v8908_v15 = vld [vmem:[#allocation5 + $0xc98] sm:$0xf]  ;;  %v8397_v21 = vor.u32 %v11213_v13, %v8396_v11  ;;  %v10981_v42 = vld [vmem:[#allocation5 + $0x19c] sm:$0xf] }
 0x192   :  { %5274 = vmatpush.bf16.msrb.mxu3 %v9037_v56  ;;  %v11341_v16 = vld [vmem:[#allocation5 + $0xcd4] sm:$0xf0]  ;;  %5249 = vmatpush.bf16.msrb.mxu1 %v7949_v4  ;;  %v8273_v56 = vor.u32 %v11173_v47, %v8270_v49  ;;  %v7502_v43 = vld [vmem:[#allocation5 + $0x1d8] sm:$0xf0] }
 0x193   :  { %v7308_v18 = vld [vmem:[#allocation5 + $0x18] sm:$0xf]  ;;  %v8909_v25 = vor.u32 %v11341_v16, %v8908_v15  ;;  %v7633_v15 = vor.u32 %v11013_v7, %v7630_v8 }
 0x194   :  { %v10941_v19 = vld [vmem:[#allocation5 + $0x54] sm:$0xf0]  ;;  %5262 = vmatpush.bf16.msrb.mxu2 %v8461_v5  ;;  %5237 = vmatpush.bf16.msrb.mxu0 %v7373_v17  ;;  %v8209_v5 = vor.u32 %v11157_v60, %v8206_v61  ;;  %v11093_v60 = vld [vmem:[#allocation5 + $0x51c] sm:$0xf] }
 0x195   :  { %v7820_v22 = vld [vmem:[#allocation5 + $0x418] sm:$0xf]  ;;  %v7309_v39 = vor.u32 %v10941_v19, %v7308_v18  ;;  %v7950_v61 = vld [vmem:[#allocation5 + $0x558] sm:$0xf0] }
 0x196   :  { %v11069_v23 = vld [vmem:[#allocation5 + $0x454] sm:$0xf0]  ;;  %5275 = vmatpush.bf16.msrb.mxu3 %v8973_v9  ;;  %5250 = vmatpush.bf16.msrb.mxu1 %v7885_v20  ;;  %v11141_v9 = vld [vmem:[#allocation5 + $0x69c] sm:$0xf]  ;;  %v7953_v8 = vor.u32 %v11093_v60, %v7950_v61 }
 0x197   :  { %v8332_v24 = vld [vmem:[#allocation5 + $0x818] sm:$0xf]  ;;  %v7821_v45 = vor.u32 %v11069_v23, %v7820_v22  ;;  %v8145_v19 = vor.u32 %v11141_v9, %v8142_v10  ;;  %v7566_v22 = vld [vmem:[#allocation5 + $0x258] sm:$0xf0] }
 0x198   :  { %v11197_v26 = vld [vmem:[#allocation5 + $0x854] sm:$0xf0]  ;;  %5263 = vmatpush.bf16.msrb.mxu2 %v8397_v21  ;;  %5238 = vmatpush.bf16.msrb.mxu0 %v7309_v39  ;;  %v10997_v21 = vld [vmem:[#allocation5 + $0x21c] sm:$0xf]  ;;  %v5047_v7 = vpop.f32.mrf.mxu1 }
 0x199   :  { %v8844_v27 = vld [vmem:[#allocation5 + $0xc18] sm:$0xf]  ;;  %v8333_v46 = vor.u32 %v11197_v26, %v8332_v24  ;;  %v11125_v23 = vld [vmem:[#allocation5 + $0x61c] sm:$0xf]  ;;  %v5032_v26 = vpop.f32.mrf.mxu0 }
 0x19a   :  { %v11325_v28 = vld [vmem:[#allocation5 + $0xc54] sm:$0xf0]  ;;  %5276 = vmatpush.bf16.msrb.mxu3 %v8909_v25  ;;  %5251 = vmatpush.bf16.msrb.mxu1 %v7821_v45  ;;  %v8078_v24 = vld [vmem:[#allocation5 + $0x658] sm:$0xf0]  ;;  %v5071_v59 = vpop.f32.mrf.mxu3 }
 0x19b   :  { %v9804_v31 = vld [vmem:[#allocation5 + $0x1398] sm:$0xf]  ;;  %v8845_v50 = vor.u32 %v11325_v28, %v8844_v27  ;;  %5239 = vmatmul.bf16.vlgmr.msrb.gmra.mxu0 %v12137_v33  ;;  %v7569_v28 = vor.u32 %v10997_v21, %v7566_v22  ;;  %v8081_v39 = vor.u32 %v11125_v23, %v8078_v24  ;;  %v11109_v45 = vld [vmem:[#allocation5 + $0x59c] sm:$0xf] }
 0x19c   :  { %v11565_v36 = vld [vmem:[#allocation5 + $0x13d4] sm:$0xf0]  ;;  %5264 = vmatpush.bf16.msrb.mxu2 %v8333_v46  ;;  %v8014_v46 = vld [vmem:[#allocation5 + $0x5d8] sm:$0xf0] }
 0x19d   :  { %v10316_v37 = vld [vmem:[#allocation5 + $0x1798] sm:$0xf]  ;;  %v9805_v51 = vor.u32 %v11565_v36, %v9804_v31  ;;  %5252 = vmatmul.bf16.vlgmr.msrb.gmra.mxu1 %v12141_v41  ;;  %v10949_v10 = vld [vmem:[#allocation5 + $0x9c] sm:$0xf] }
 0x19e   :  { %v11693_v40 = vld [vmem:[#allocation5 + $0x17d4] sm:$0xf0]  ;;  %5277 = vmatpush.bf16.msrb.mxu3 %v8845_v50  ;;  %v10933_v23 = vld [vmem:[#allocation5 + $0x1c] sm:$0xf] }
 0x19f   :  { %v10317_v14 = vor.u32 %v11693_v40, %v10316_v37  ;;  %v9740_v53 = vld [vmem:[#allocation5 + $0x1318] sm:$0xf]  ;;  %5283 = vmatpush.bf16.msra.mxu0 %v9805_v51  ;;  %5265 = vmatmul.bf16.vlgmr.msrb.gmra.mxu2 %v12139_v34  ;;  %v5033_v37 = vadd.f32 %v5032_v26, %v12197_v3  ;;  %v7505_v51 = vor.u32 %v10981_v42, %v7502_v43  ;;  %v7310_v26 = vld [vmem:[#allocation5 + $0x58] sm:$0xf0] }
 0x1a0   :  { %v11549_v54 = vld [vmem:[#allocation5 + $0x1354] sm:$0xf0]  ;;  %5309 = vmatpush.bf16.msra.mxu2 %v7761_v52  ;;  %v8017_v3 = vor.u32 %v11109_v45, %v8014_v46  ;;  %v9806_v42 = vld [vmem:[#allocation5 + $0x13d8] sm:$0xf0]  ;;  %v7313_v45 = vor.u32 %v10933_v23, %v7310_v26 }
 0x1a1   :  { %v10252_v55 = vld [vmem:[#allocation5 + $0x1718] sm:$0xf]  ;;  %v9741_v62 = vor.u32 %v11549_v54, %v9740_v53  ;;  %5296 = vmatpush.bf16.msra.mxu1 %v10317_v14  ;;  %5278 = vmatmul.bf16.vlgmr.msrb.gmra.mxu3 %v12145_v44  ;;  %v5046_v47 = vadd.f32 %v5045_v38, %v5033_v37  ;;  %v5058_v54 = vpop.f32.mrf.mxu2  ;;  %v11429_v37 = vld [vmem:[#allocation5 + $0xf9c] sm:$0xf] }
 0x1a2   :  { %v11677_v57 = vld [vmem:[#allocation5 + $0x1754] sm:$0xf0]  ;;  %5322 = vmatpush.bf16.msra.mxu3 %v8273_v56  ;;  %v10965_v56 = vld [vmem:[#allocation5 + $0x11c] sm:$0xf] }
 0x1a3   :  { %v10253_v63 = vor.u32 %v11677_v57, %v10252_v55  ;;  %v9676_v2 = vld [vmem:[#allocation5 + $0x1298] sm:$0xf]  ;;  %5284 = vmatpush.bf16.msra.mxu0 %v9741_v62  ;;  %v7438_v57 = vld [vmem:[#allocation5 + $0x158] sm:$0xf0]  ;;  %v5059_v58 = vadd.f32 %v5058_v54, %v5046_v47 }
 0x1a4   :  { %v11533_v32 = vld [vmem:[#allocation5 + $0x12d4] sm:$0xf0]  ;;  %5310 = vmatpush.bf16.msra.mxu2 %v7697_v1  ;;  %v5034_v1 = vpop.f32.mrf.mxu0  ;;  %v11685_v46 = vld [vmem:[#allocation5 + $0x179c] sm:$0xf] }
 0x1a5   :  { %v10188_v4 = vld [vmem:[#allocation5 + $0x1698] sm:$0xf]  ;;  %v9677_v11 = vor.u32 %v11533_v32, %v9676_v2  ;;  %5297 = vmatpush.bf16.msra.mxu1 %v10253_v63  ;;  %v12204_v63 = vadd.f32 %v5071_v59, %v5059_v58  ;;  %v7441_v32 = vor.u32 %v10965_v56, %v7438_v57  ;;  %v10318_v47 = vld [vmem:[#allocation5 + $0x17d8] sm:$0xf0] }
 0x1a6   :  { %v11661_v6 = vld [vmem:[#allocation5 + $0x16d4] sm:$0xf0]  ;;  %5323 = vmatpush.bf16.msra.mxu3 %v8209_v5  ;;  %v11413_v54 = vld [vmem:[#allocation5 + $0xf1c] sm:$0xf] }
 0x1a7   :  { %v10189_v13 = vor.u32 %v11661_v6, %v10188_v4  ;;  %v9612_v16 = vld [vmem:[#allocation5 + $0x1218] sm:$0xf]  ;;  %5285 = vmatpush.bf16.msra.mxu0 %v9677_v11  ;;  %v7374_v11 = vld [vmem:[#allocation5 + $0xd8] sm:$0xf0] }
 0x1a8   :  { %v11517_v17 = vld [vmem:[#allocation5 + $0x1254] sm:$0xf0]  ;;  %5311 = vmatpush.bf16.msra.mxu2 %v7633_v15  ;;  %v7886_v15 = vld [vmem:[#allocation5 + $0x4d8] sm:$0xf0] }
 0x1a9   :  { %v10124_v18 = vld [vmem:[#allocation5 + $0x1618] sm:$0xf]  ;;  %v9613_v25 = vor.u32 %v11517_v17, %v9612_v16  ;;  %5298 = vmatpush.bf16.msra.mxu1 %v10189_v13  ;;  %v11077_v13 = vld [vmem:[#allocation5 + $0x49c] sm:$0xf]  ;;  %v5060_v24 = vpop.f32.mrf.mxu2 }
 0x1aa   :  { %v11645_v20 = vld [vmem:[#allocation5 + $0x1654] sm:$0xf0]  ;;  %5324 = vmatpush.bf16.msra.mxu3 %v8145_v19  ;;  %v11541_v56 = vld [vmem:[#allocation5 + $0x131c] sm:$0xf] }
 0x1ab   :  { %v10125_v27 = vor.u32 %v11645_v20, %v10124_v18  ;;  %v9548_v29 = vld [vmem:[#allocation5 + $0x1198] sm:$0xf]  ;;  %5286 = vmatpush.bf16.msra.mxu0 %v9613_v25  ;;  %v7377_v20 = vor.u32 %v10949_v10, %v7374_v11  ;;  %v7889_v25 = vor.u32 %v11077_v13, %v7886_v15  ;;  %v9742_v57 = vld [vmem:[#allocation5 + $0x1358] sm:$0xf0] }
 0x1ac   :  { %v11501_v31 = vld [vmem:[#allocation5 + $0x11d4] sm:$0xf0]  ;;  %5312 = vmatpush.bf16.msra.mxu2 %v7569_v28  ;;  %v7822_v28 = vld [vmem:[#allocation5 + $0x458] sm:$0xf0] }
 0x1ad   :  { %v10060_v36 = vld [vmem:[#allocation5 + $0x1598] sm:$0xf]  ;;  %v9549_v49 = vor.u32 %v11501_v31, %v9548_v29  ;;  %5299 = vmatpush.bf16.msra.mxu1 %v10125_v27  ;;  %v11061_v27 = vld [vmem:[#allocation5 + $0x41c] sm:$0xf]  ;;  %v5073_v29 = vpop.f32.mrf.mxu3 }
 0x1ae   :  { %v11629_v40 = vld [vmem:[#allocation5 + $0x15d4] sm:$0xf0]  ;;  %5325 = vmatpush.bf16.msra.mxu3 %v8081_v39  ;;  %v11301_v31 = vld [vmem:[#allocation5 + $0xb9c] sm:$0xf]  ;;  %v5084_v24 = vpop.f32.mrf.mxu0 }
 0x1af   :  { %v10061_v50 = vor.u32 %v11629_v40, %v10060_v36  ;;  %v9484_v14 = vld [vmem:[#allocation5 + $0x1118] sm:$0xf]  ;;  %5287 = vmatpush.bf16.msra.mxu0 %v9549_v49  ;;  %v8782_v36 = vld [vmem:[#allocation5 + $0xbd8] sm:$0xf0]  ;;  %v7825_v49 = vor.u32 %v11061_v27, %v7822_v28 }
 0x1b0   :  { %v11485_v52 = vld [vmem:[#allocation5 + $0x1154] sm:$0xf0]  ;;  %5313 = vmatpush.bf16.msra.mxu2 %v7505_v51  ;;  %v9294_v39 = vld [vmem:[#allocation5 + $0xfd8] sm:$0xf0]  ;;  %v5097_v26 = vpop.f32.mrf.mxu1 }
 0x1b1   :  { %v9996_v53 = vld [vmem:[#allocation5 + $0x1518] sm:$0xf]  ;;  %v9485_v62 = vor.u32 %v11485_v52, %v9484_v14  ;;  %5300 = vmatpush.bf16.msra.mxu1 %v10061_v50  ;;  %v11557_v40 = vld [vmem:[#allocation5 + $0x139c] sm:$0xf]  ;;  %v8785_v50 = vor.u32 %v11301_v31, %v8782_v36  ;;  %v9297_v51 = vor.u32 %v11429_v37, %v9294_v39  ;;  %v5098_v37 = vadd.f32 %v5097_v26, %v5084_v24 }
 0x1b2   :  { %v11613_v55 = vld [vmem:[#allocation5 + $0x1554] sm:$0xf0]  ;;  %5326 = vmatpush.bf16.msra.mxu3 %v8017_v3  ;;  %v9809_v14 = vor.u32 %v11557_v40, %v9806_v42  ;;  %v11285_v52 = vld [vmem:[#allocation5 + $0xb1c] sm:$0xf]  ;;  %v10321_v3 = vor.u32 %v11685_v46, %v10318_v47 }
 0x1b3   :  { %v9997_v2 = vor.u32 %v11613_v55, %v9996_v53  ;;  %v9420_v4 = vld [vmem:[#allocation5 + $0x1098] sm:$0xf]  ;;  %5288 = vmatpush.bf16.msra.mxu0 %v9485_v62  ;;  %v8718_v53 = vld [vmem:[#allocation5 + $0xb58] sm:$0xf0]  ;;  %v9745_v62 = vor.u32 %v11541_v56, %v9742_v57 }
 0x1b4   :  { %v11469_v5 = vld [vmem:[#allocation5 + $0x10d4] sm:$0xf0]  ;;  %5314 = vmatpush.bf16.msra.mxu2 %v7441_v32  ;;  %v9230_v55 = vld [vmem:[#allocation5 + $0xf58] sm:$0xf0]  ;;  %v8721_v60 = vor.u32 %v11285_v52, %v8718_v53 }
 0x1b5   :  { %v9932_v6 = vld [vmem:[#allocation5 + $0x1498] sm:$0xf]  ;;  %v9421_v16 = vor.u32 %v11469_v5, %v9420_v4  ;;  %5301 = vmatpush.bf16.msra.mxu1 %v9997_v2  ;;  %v11669_v58 = vld [vmem:[#allocation5 + $0x171c] sm:$0xf]  ;;  %v9233_v61 = vor.u32 %v11413_v54, %v9230_v55 }
 0x1b6   :  { %v11597_v9 = vld [vmem:[#allocation5 + $0x14d4] sm:$0xf0]  ;;  %5327 = vmatpush.bf16.msra.mxu3 %v7953_v8  ;;  %v10254_v59 = vld [vmem:[#allocation5 + $0x1758] sm:$0xf0] }
 0x1b7   :  { %v9356_v17 = vld [vmem:[#allocation5 + $0x1018] sm:$0xf]  ;;  %v9933_v19 = vor.u32 %v11597_v9, %v9932_v6  ;;  %5289 = vmatpush.bf16.msra.mxu0 %v9421_v16  ;;  %v11269_v1 = vld [vmem:[#allocation5 + $0xa9c] sm:$0xf]  ;;  %v10257_v4 = vor.u32 %v11669_v58, %v10254_v59  ;;  %v5086_v58 = vpop.f32.mrf.mxu0 }
 0x1b8   :  { %v11453_v18 = vld [vmem:[#allocation5 + $0x1054] sm:$0xf0]  ;;  %5315 = vmatpush.bf16.msra.mxu2 %v7377_v20  ;;  %v8654_v2 = vld [vmem:[#allocation5 + $0xad8] sm:$0xf0]  ;;  %v5110_v55 = vpop.f32.mrf.mxu2  ;;  %v11422_v58 = vld [vmem:[#allocation5 + $0xf5c] sm:$0xf0] }
 0x1b9   :  { %v9868_v21 = vld [vmem:[#allocation5 + $0x1418] sm:$0xf]  ;;  %v9357_v38 = vor.u32 %v11453_v18, %v9356_v17  ;;  %5302 = vmatpush.bf16.msra.mxu1 %v9933_v19  ;;  %v11397_v32 = vld [vmem:[#allocation5 + $0xe9c] sm:$0xf]  ;;  %v8657_v10 = vor.u32 %v11269_v1, %v8654_v2  ;;  %v5111_v59 = vadd.f32 %v5110_v55, %v5098_v37  ;;  %v8724_v55 = vld [vmem:[#allocation5 + $0xb20] sm:$0xf] }
 0x1ba   :  { %v11581_v22 = vld [vmem:[#allocation5 + $0x1454] sm:$0xf0]  ;;  %5328 = vmatpush.bf16.msra.mxu3 %v7889_v25  ;;  %v9166_v5 = vld [vmem:[#allocation5 + $0xed8] sm:$0xf0] }
 0x1bb   :  { %v9869_v43 = vor.u32 %v11581_v22, %v9868_v21  ;;  %5290 = vmatpush.bf16.msra.mxu0 %v9357_v38  ;;  %v11525_v6 = vld [vmem:[#allocation5 + $0x129c] sm:$0xf]  ;;  %v9169_v11 = vor.u32 %v11397_v32, %v9166_v5 }
 0x1bc   :  { %5316 = vmatpush.bf16.msra.mxu2 %v7313_v45  ;;  %v9678_v7 = vld [vmem:[#allocation5 + $0x12d8] sm:$0xf0] }
 0x1bd   :  { %5303 = vmatpush.bf16.msra.mxu1 %v9869_v43  ;;  %v11653_v8 = vld [vmem:[#allocation5 + $0x169c] sm:$0xf]  ;;  %v9681_v13 = vor.u32 %v11525_v6, %v9678_v7 }
 0x1be   :  { %5329 = vmatpush.bf16.msra.mxu3 %v7825_v49  ;;  %5291 = vmatmul.bf16.vlgmr.msra.gmra.mxu0 %v12149_v30  ;;  %v10190_v9 = vld [vmem:[#allocation5 + $0x16d8] sm:$0xf0] }
 0x1bf   :  { %5335 = vmatpush.bf16.msrb.mxu0 %v8785_v50  ;;  %5317 = vmatmul.bf16.vlgmr.msra.gmra.mxu2 %v12137_v33  ;;  %v11253_v15 = vld [vmem:[#allocation5 + $0xa1c] sm:$0xf]  ;;  %v10193_v18 = vor.u32 %v11653_v8, %v10190_v9 }
 0x1c0   :  { %5361 = vmatpush.bf16.msrb.mxu2 %v9809_v14  ;;  %5304 = vmatmul.bf16.vlgmr.msra.gmra.mxu1 %v12151_v35  ;;  %v8590_v16 = vld [vmem:[#allocation5 + $0xa58] sm:$0xf0] }
 0x1c1   :  { %5348 = vmatpush.bf16.msrb.mxu1 %v9297_v51  ;;  %5330 = vmatmul.bf16.vlgmr.msra.gmra.mxu3 %v12141_v41  ;;  %v11381_v17 = vld [vmem:[#allocation5 + $0xe1c] sm:$0xf]  ;;  %v8593_v25 = vor.u32 %v11253_v15, %v8590_v16 }
 0x1c2   :  { %5374 = vmatpush.bf16.msrb.mxu3 %v10321_v3  ;;  %v9102_v19 = vld [vmem:[#allocation5 + $0xe58] sm:$0xf0] }
 0x1c3   :  { %5336 = vmatpush.bf16.msrb.mxu0 %v8721_v60  ;;  %v11509_v20 = vld [vmem:[#allocation5 + $0x121c] sm:$0xf]  ;;  %v9105_v27 = vor.u32 %v11381_v17, %v9102_v19  ;;  %v5123_v60 = vpop.f32.mrf.mxu3 }
 0x1c4   :  { %5362 = vmatpush.bf16.msrb.mxu2 %v9745_v62  ;;  %v9614_v21 = vld [vmem:[#allocation5 + $0x1258] sm:$0xf0]  ;;  %v5099_v62 = vpop.f32.mrf.mxu1  ;;  %v12210_v6 = vadd.f32 %v5123_v60, %v5111_v59 }
 0x1c5   :  { %5349 = vmatpush.bf16.msrb.mxu1 %v9233_v61  ;;  %v11637_v22 = vld [vmem:[#allocation5 + $0x161c] sm:$0xf]  ;;  %v9617_v28 = vor.u32 %v11509_v20, %v9614_v21  ;;  %v7636_v62 = vld [vmem:[#allocation5 + $0x2a0] sm:$0xf] }
 0x1c6   :  { %5375 = vmatpush.bf16.msrb.mxu3 %v10257_v4  ;;  %v10126_v23 = vld [vmem:[#allocation5 + $0x1658] sm:$0xf0] }
 0x1c7   :  { %5337 = vmatpush.bf16.msrb.mxu0 %v8657_v10  ;;  %v11237_v29 = vld [vmem:[#allocation5 + $0x99c] sm:$0xf]  ;;  %v10129_v38 = vor.u32 %v11637_v22, %v10126_v23 }
 0x1c8   :  { %5363 = vmatpush.bf16.msrb.mxu2 %v9681_v13  ;;  %v8526_v31 = vld [vmem:[#allocation5 + $0x9d8] sm:$0xf0] }
 0x1c9   :  { %5350 = vmatpush.bf16.msrb.mxu1 %v9169_v11  ;;  %v11365_v36 = vld [vmem:[#allocation5 + $0xd9c] sm:$0xf]  ;;  %v8529_v46 = vor.u32 %v11237_v29, %v8526_v31  ;;  %v11054_v29 = vld [vmem:[#allocation5 + $0x3dc] sm:$0xf0] }
 0x1ca   :  { %5376 = vmatpush.bf16.msrb.mxu3 %v10193_v18  ;;  %v9038_v39 = vld [vmem:[#allocation5 + $0xdd8] sm:$0xf0]  ;;  %v8276_v31 = vld [vmem:[#allocation5 + $0x7a0] sm:$0xf] }
 0x1cb   :  { %v11493_v40 = vld [vmem:[#allocation5 + $0x119c] sm:$0xf]  ;;  %5338 = vmatpush.bf16.msrb.mxu0 %v8593_v25  ;;  %v9041_v47 = vor.u32 %v11365_v36, %v9038_v39  ;;  %v5125_v36 = vpop.f32.mrf.mxu3  ;;  %v8788_v39 = vld [vmem:[#allocation5 + $0xba0] sm:$0xf] }
 0x1cc   :  { %v9550_v42 = vld [vmem:[#allocation5 + $0x11d8] sm:$0xf0]  ;;  %5364 = vmatpush.bf16.msrb.mxu2 %v9617_v28  ;;  %v7764_v28 = vld [vmem:[#allocation5 + $0x3a0] sm:$0xf] }
 0x1cd   :  { %v11621_v43 = vld [vmem:[#allocation5 + $0x159c] sm:$0xf]  ;;  %5351 = vmatpush.bf16.msrb.mxu1 %v9105_v27  ;;  %v9553_v49 = vor.u32 %v11493_v40, %v9550_v42  ;;  %v5112_v27 = vpop.f32.mrf.mxu2  ;;  %v11310_v40 = vld [vmem:[#allocation5 + $0xbdc] sm:$0xf0] }
 0x1ce   :  { %v10062_v45 = vld [vmem:[#allocation5 + $0x15d8] sm:$0xf0]  ;;  %5377 = vmatpush.bf16.msrb.mxu3 %v10129_v38  ;;  %v11182_v38 = vld [vmem:[#allocation5 + $0x7dc] sm:$0xf0] }
 0x1cf   :  { %v11221_v50 = vld [vmem:[#allocation5 + $0x91c] sm:$0xf]  ;;  %v10065_v52 = vor.u32 %v11621_v43, %v10062_v45  ;;  %5339 = vmatpush.bf16.msrb.mxu0 %v8529_v46  ;;  %v9300_v45 = vld [vmem:[#allocation5 + $0xfa0] sm:$0xf] }
 0x1d0   :  { %v8462_v51 = vld [vmem:[#allocation5 + $0x958] sm:$0xf0]  ;;  %5365 = vmatpush.bf16.msrb.mxu2 %v9553_v49  ;;  %v11438_v46 = vld [vmem:[#allocation5 + $0xfdc] sm:$0xf0]  ;;  %v7765_v49 = vor.u32 %v11054_v29, %v7764_v28 }
 0x1d1   :  { %v11349_v14 = vld [vmem:[#allocation5 + $0xd1c] sm:$0xf]  ;;  %v8465_v61 = vor.u32 %v11221_v50, %v8462_v51  ;;  %5352 = vmatpush.bf16.msrb.mxu1 %v9041_v47  ;;  %v8277_v50 = vor.u32 %v11182_v38, %v8276_v31  ;;  %v8789_v51 = vor.u32 %v11310_v40, %v8788_v39  ;;  %v5149_v27 = vpop.f32.mrf.mxu1  ;;  %v7508_v31 = vld [vmem:[#allocation5 + $0x1a0] sm:$0xf] }
 0x1d2   :  { %v8974_v53 = vld [vmem:[#allocation5 + $0xd58] sm:$0xf0]  ;;  %5378 = vmatpush.bf16.msrb.mxu3 %v10065_v52  ;;  %v11038_v52 = vld [vmem:[#allocation5 + $0x35c] sm:$0xf0] }
 0x1d3   :  { %v11477_v54 = vld [vmem:[#allocation5 + $0x111c] sm:$0xf]  ;;  %v8977_v1 = vor.u32 %v11349_v14, %v8974_v53  ;;  %5340 = vmatpush.bf16.msrb.mxu0 %v8465_v61  ;;  %v7700_v14 = vld [vmem:[#allocation5 + $0x320] sm:$0xf] }
 0x1d4   :  { %v9486_v3 = vld [vmem:[#allocation5 + $0x1158] sm:$0xf0]  ;;  %v8212_v53 = vld [vmem:[#allocation5 + $0x720] sm:$0xf]  ;;  %v7701_v59 = vor.u32 %v11038_v52, %v7700_v14 }
 0x1d5   :  { %v11605_v56 = vld [vmem:[#allocation5 + $0x151c] sm:$0xf]  ;;  %v9489_v2 = vor.u32 %v11477_v54, %v9486_v3  ;;  %5353 = vmatpush.bf16.msrb.mxu1 %v8977_v1  ;;  %v9301_v54 = vor.u32 %v11438_v46, %v9300_v45  ;;  %v11166_v3 = vld [vmem:[#allocation5 + $0x75c] sm:$0xf0] }
 0x1d6   :  { %v9998_v57 = vld [vmem:[#allocation5 + $0x1558] sm:$0xf0]  ;;  %v8213_v60 = vor.u32 %v11166_v3, %v8212_v53  ;;  %v11022_v1 = vld [vmem:[#allocation5 + $0x2dc] sm:$0xf0] }
 0x1d7   :  { %v11205_v32 = vld [vmem:[#allocation5 + $0x89c] sm:$0xf]  ;;  %v10001_v7 = vor.u32 %v11605_v56, %v9998_v57  ;;  %5366 = vmatpush.bf16.msrb.mxu2 %v9489_v2  ;;  %v11294_v56 = vld [vmem:[#allocation5 + $0xb5c] sm:$0xf0] }
 0x1d8   :  { %v8398_v4 = vld [vmem:[#allocation5 + $0x8d8] sm:$0xf0]  ;;  %v9236_v57 = vld [vmem:[#allocation5 + $0xf20] sm:$0xf]  ;;  %v8725_v61 = vor.u32 %v11294_v56, %v8724_v55  ;;  %v5162_v56 = vpop.f32.mrf.mxu2 }
 0x1d9   :  { %v11333_v5 = vld [vmem:[#allocation5 + $0xc9c] sm:$0xf]  ;;  %v8401_v15 = vor.u32 %v11205_v32, %v8398_v4  ;;  %5379 = vmatpush.bf16.msrb.mxu3 %v10001_v7  ;;  %v8148_v2 = vld [vmem:[#allocation5 + $0x6a0] sm:$0xf]  ;;  %v9237_v32 = vor.u32 %v11422_v58, %v9236_v57 }
 0x1da   :  { %v8910_v8 = vld [vmem:[#allocation5 + $0xcd8] sm:$0xf0]  ;;  %v11150_v4 = vld [vmem:[#allocation5 + $0x6dc] sm:$0xf0] }
 0x1db   :  { %v11461_v9 = vld [vmem:[#allocation5 + $0x109c] sm:$0xf]  ;;  %v8913_v18 = vor.u32 %v11333_v5, %v8910_v8  ;;  %5341 = vmatpush.bf16.msrb.mxu0 %v8401_v15  ;;  %v8660_v5 = vld [vmem:[#allocation5 + $0xaa0] sm:$0xf] }
 0x1dc   :  { %v9422_v10 = vld [vmem:[#allocation5 + $0x10d8] sm:$0xf0]  ;;  %v11278_v7 = vld [vmem:[#allocation5 + $0xadc] sm:$0xf0] }
 0x1dd   :  { %v11589_v11 = vld [vmem:[#allocation5 + $0x149c] sm:$0xf]  ;;  %v9425_v19 = vor.u32 %v11461_v9, %v9422_v10  ;;  %5354 = vmatpush.bf16.msrb.mxu1 %v8913_v18  ;;  %v9172_v8 = vld [vmem:[#allocation5 + $0xea0] sm:$0xf]  ;;  %v7637_v10 = vor.u32 %v11022_v1, %v7636_v62  ;;  %v5151_v1 = vpop.f32.mrf.mxu1 }
 0x1de   :  { %v9934_v13 = vld [vmem:[#allocation5 + $0x14d8] sm:$0xf0]  ;;  %v11406_v9 = vld [vmem:[#allocation5 + $0xedc] sm:$0xf0] }
 0x1df   :  { %v11189_v16 = vld [vmem:[#allocation5 + $0x81c] sm:$0xf]  ;;  %v9937_v23 = vor.u32 %v11589_v11, %v9934_v13  ;;  %5367 = vmatpush.bf16.msrb.mxu2 %v9425_v19  ;;  %v8149_v11 = vor.u32 %v11150_v4, %v8148_v2  ;;  %v8661_v13 = vor.u32 %v11278_v7, %v8660_v5  ;;  %v7572_v15 = vld [vmem:[#allocation5 + $0x220] sm:$0xf]  ;;  %v9173_v18 = vor.u32 %v11406_v9, %v9172_v8 }
 0x1e0   :  { %v8334_v17 = vld [vmem:[#allocation5 + $0x858] sm:$0xf0]  ;;  %v11134_v19 = vld [vmem:[#allocation5 + $0x65c] sm:$0xf0] }
 0x1e1   :  { %v11317_v20 = vld [vmem:[#allocation5 + $0xc1c] sm:$0xf]  ;;  %v8337_v37 = vor.u32 %v11189_v16, %v8334_v17  ;;  %5380 = vmatpush.bf16.msrb.mxu3 %v9937_v23  ;;  %v11006_v16 = vld [vmem:[#allocation5 + $0x25c] sm:$0xf0] }
 0x1e2   :  { %v8846_v21 = vld [vmem:[#allocation5 + $0xc58] sm:$0xf0]  ;;  %v8084_v17 = vld [vmem:[#allocation5 + $0x620] sm:$0xf] }
 0x1e3   :  { %v11445_v22 = vld [vmem:[#allocation5 + $0x101c] sm:$0xf]  ;;  %v8849_v42 = vor.u32 %v11317_v20, %v8846_v21  ;;  %5342 = vmatpush.bf16.msrb.mxu0 %v8337_v37  ;;  %v8596_v20 = vld [vmem:[#allocation5 + $0xa20] sm:$0xf]  ;;  %v8085_v28 = vor.u32 %v11134_v19, %v8084_v17 }
 0x1e4   :  { %v9358_v24 = vld [vmem:[#allocation5 + $0x1058] sm:$0xf0]  ;;  %v11262_v21 = vld [vmem:[#allocation5 + $0xa5c] sm:$0xf0] }
 0x1e5   :  { %v11573_v25 = vld [vmem:[#allocation5 + $0x141c] sm:$0xf]  ;;  %v9361_v43 = vor.u32 %v11445_v22, %v9358_v24  ;;  %5355 = vmatpush.bf16.msrb.mxu1 %v8849_v42  ;;  %v5136_v22 = vpop.f32.mrf.mxu0  ;;  %v9108_v23 = vld [vmem:[#allocation5 + $0xe20] sm:$0xf]  ;;  %v8597_v29 = vor.u32 %v11262_v21, %v8596_v20 }
 0x1e6   :  { %v9870_v26 = vld [vmem:[#allocation5 + $0x1458] sm:$0xf0]  ;;  %5343 = vmatmul.bf16.vlgmr.msrb.gmra.mxu0 %v12139_v34  ;;  %v11390_v24 = vld [vmem:[#allocation5 + $0xe5c] sm:$0xf0] }
 0x1e7   :  { %v9873_v47 = vor.u32 %v11573_v25, %v9870_v26  ;;  %5368 = vmatpush.bf16.msrb.mxu2 %v9361_v43  ;;  %5387 = vmatpush.bf16.msra.mxu0 %v7765_v49  ;;  %v5137_v25 = vadd.f32 %v5136_v22, %v12210_v6  ;;  %v7573_v26 = vor.u32 %v11006_v16, %v7572_v15  ;;  %v10990_v36 = vld [vmem:[#allocation5 + $0x1dc] sm:$0xf0] }
 0x1e8   :  { %5356 = vmatmul.bf16.vlgmr.msrb.gmra.mxu1 %v12145_v44  ;;  %v8020_v37 = vld [vmem:[#allocation5 + $0x5a0] sm:$0xf]  ;;  %v9109_v38 = vor.u32 %v11390_v24, %v9108_v23 }
 0x1e9   :  { %5381 = vmatpush.bf16.msrb.mxu3 %v9873_v47  ;;  %5400 = vmatpush.bf16.msra.mxu1 %v8277_v50  ;;  %v12217_v39 = vadd.f32 %v5149_v27, %v5137_v25  ;;  %v11118_v40 = vld [vmem:[#allocation5 + $0x5dc] sm:$0xf0]  ;;  %v7509_v47 = vor.u32 %v10990_v36, %v7508_v31 }
 0x1ea   :  { %5369 = vmatmul.bf16.vlgmr.msrb.gmra.mxu2 %v12149_v30  ;;  %v8532_v42 = vld [vmem:[#allocation5 + $0x9a0] sm:$0xf]  ;;  %v8021_v49 = vor.u32 %v11118_v40, %v8020_v37 }
 0x1eb   :  { %5413 = vmatpush.bf16.msra.mxu2 %v8789_v51  ;;  %5388 = vmatpush.bf16.msra.mxu0 %v7701_v59  ;;  %v11246_v43 = vld [vmem:[#allocation5 + $0x9dc] sm:$0xf0]  ;;  %v6027_v6 = vmax.f32 %v12173_v0, %v12217_v39  ;;  %v5175_v59 = vpop.f32.mrf.mxu3 }
 0x1ec   :  { %5382 = vmatmul.bf16.vlgmr.msrb.gmra.mxu3 %v12151_v35  ;;  %v9044_v45 = vld [vmem:[#allocation5 + $0xda0] sm:$0xf]  ;;  %v8533_v50 = vor.u32 %v11246_v43, %v8532_v42  ;;  %v12221_v62 = vadd.f32 %v5175_v59, %v5162_v56  ;;  %v11046_v42 = vld [vmem:[#allocation5 + $0x3a4] sm:$0xf] }
 0x1ed   :  { %5426 = vmatpush.bf16.msra.mxu3 %v9301_v54  ;;  %5401 = vmatpush.bf16.msra.mxu1 %v8213_v60  ;;  %v11374_v46 = vld [vmem:[#allocation5 + $0xddc] sm:$0xf0]  ;;  %v5138_v60 = vpop.f32.mrf.mxu0  ;;  %v7766_v43 = vld [vmem:[#allocation5 + $0x3e0] sm:$0xf0] }
 0x1ee   :  { %v7444_v51 = vld [vmem:[#allocation5 + $0x120] sm:$0xf]  ;;  %v9045_v53 = vor.u32 %v11374_v46, %v9044_v45  ;;  %v11158_v59 = vld [vmem:[#allocation5 + $0x724] sm:$0xf] }
 0x1ef   :  { %5414 = vmatpush.bf16.msra.mxu2 %v8725_v61  ;;  %5389 = vmatpush.bf16.msra.mxu0 %v7637_v10  ;;  %v10974_v14 = vld [vmem:[#allocation5 + $0x15c] sm:$0xf0]  ;;  %v8214_v60 = vld [vmem:[#allocation5 + $0x760] sm:$0xf0] }
 0x1f0   :  { %v7956_v52 = vld [vmem:[#allocation5 + $0x520] sm:$0xf]  ;;  %v7445_v61 = vor.u32 %v10974_v14, %v7444_v51 }
 0x1f1   :  { %5427 = vmatpush.bf16.msra.mxu3 %v9237_v32  ;;  %5402 = vmatpush.bf16.msra.mxu1 %v8149_v11  ;;  %v11102_v54 = vld [vmem:[#allocation5 + $0x55c] sm:$0xf0] }
 0x1f2   :  { %v8468_v3 = vld [vmem:[#allocation5 + $0x920] sm:$0xf]  ;;  %v7957_v2 = vor.u32 %v11102_v54, %v7956_v52  ;;  %v7769_v52 = vor.u32 %v11046_v42, %v7766_v43 }
 0x1f3   :  { %5415 = vmatpush.bf16.msra.mxu2 %v8661_v13  ;;  %5390 = vmatpush.bf16.msra.mxu0 %v7573_v26  ;;  %v11230_v55 = vld [vmem:[#allocation5 + $0x95c] sm:$0xf0]  ;;  %v5177_v37 = vpop.f32.mrf.mxu3 }
 0x1f4   :  { %v8980_v57 = vld [vmem:[#allocation5 + $0xd20] sm:$0xf]  ;;  %v8469_v32 = vor.u32 %v11230_v55, %v8468_v3 }
 0x1f5   :  { %5428 = vmatpush.bf16.msra.mxu3 %v9173_v18  ;;  %5403 = vmatpush.bf16.msra.mxu1 %v8085_v28  ;;  %v11358_v58 = vld [vmem:[#allocation5 + $0xd5c] sm:$0xf0]  ;;  %v5164_v28 = vpop.f32.mrf.mxu2 }
 0x1f6   :  { %v7380_v4 = vld [vmem:[#allocation5 + $0xa0] sm:$0xf]  ;;  %v8981_v8 = vor.u32 %v11358_v58, %v8980_v57  ;;  %v11030_v57 = vld [vmem:[#allocation5 + $0x324] sm:$0xf] }
 0x1f7   :  { %5416 = vmatpush.bf16.msra.mxu2 %v8597_v29  ;;  %5391 = vmatpush.bf16.msra.mxu0 %v7509_v47  ;;  %v10958_v5 = vld [vmem:[#allocation5 + $0xdc] sm:$0xf0]  ;;  %v11174_v47 = vld [vmem:[#allocation5 + $0x7a4] sm:$0xf] }
 0x1f8   :  { %v7892_v7 = vld [vmem:[#allocation5 + $0x4a0] sm:$0xf]  ;;  %v7381_v16 = vor.u32 %v10958_v5, %v7380_v4  ;;  %v7702_v58 = vld [vmem:[#allocation5 + $0x360] sm:$0xf0]  ;;  %v5188_v28 = vpop.f32.mrf.mxu0 }
 0x1f9   :  { %5429 = vmatpush.bf16.msra.mxu3 %v9109_v38  ;;  %5404 = vmatpush.bf16.msra.mxu1 %v8021_v49  ;;  %v11086_v9 = vld [vmem:[#allocation5 + $0x4dc] sm:$0xf0]  ;;  %v8278_v49 = vld [vmem:[#allocation5 + $0x7e0] sm:$0xf0] }
 0x1fa   :  { %v8404_v10 = vld [vmem:[#allocation5 + $0x8a0] sm:$0xf]  ;;  %v7893_v19 = vor.u32 %v11086_v9, %v7892_v7  ;;  %v8281_v55 = vor.u32 %v11174_v47, %v8278_v49  ;;  %v8217_v7 = vor.u32 %v11158_v59, %v8214_v60  ;;  %v11014_v9 = vld [vmem:[#allocation5 + $0x2a4] sm:$0xf]  ;;  %v5201_v37 = vpop.f32.mrf.mxu1 }
 0x1fb   :  { %5417 = vmatpush.bf16.msra.mxu2 %v8533_v50  ;;  %v11214_v11 = vld [vmem:[#allocation5 + $0x8dc] sm:$0xf0]  ;;  %5392 = vmatpush.bf16.msra.mxu0 %v7445_v61  ;;  %v7510_v47 = vld [vmem:[#allocation5 + $0x1e0] sm:$0xf0] }
 0x1fc   :  { %v8916_v13 = vld [vmem:[#allocation5 + $0xca0] sm:$0xf]  ;;  %v8405_v20 = vor.u32 %v11214_v11, %v8404_v10  ;;  %v7638_v10 = vld [vmem:[#allocation5 + $0x2e0] sm:$0xf0] }
 0x1fd   :  { %5430 = vmatpush.bf16.msra.mxu3 %v9045_v53  ;;  %v11342_v15 = vld [vmem:[#allocation5 + $0xcdc] sm:$0xf0]  ;;  %5405 = vmatpush.bf16.msra.mxu1 %v7957_v2  ;;  %v7705_v2 = vor.u32 %v11030_v57, %v7702_v58  ;;  %v11142_v11 = vld [vmem:[#allocation5 + $0x6a4] sm:$0xf] }
 0x1fe   :  { %v7316_v17 = vld [vmem:[#allocation5 + $0x20] sm:$0xf]  ;;  %v8917_v24 = vor.u32 %v11342_v15, %v8916_v13  ;;  %v8150_v13 = vld [vmem:[#allocation5 + $0x6e0] sm:$0xf0] }
 0x1ff   :  { %v10942_v18 = vld [vmem:[#allocation5 + $0x5c] sm:$0xf0]  ;;  %5418 = vmatpush.bf16.msra.mxu2 %v8469_v32  ;;  %5393 = vmatpush.bf16.msra.mxu0 %v7381_v16  ;;  %v10966_v60 = vld [vmem:[#allocation5 + $0x124] sm:$0xf] }
 0x200   :  { %v7828_v21 = vld [vmem:[#allocation5 + $0x420] sm:$0xf]  ;;  %v7317_v38 = vor.u32 %v10942_v18, %v7316_v17  ;;  %v7641_v17 = vor.u32 %v11014_v9, %v7638_v10 }
 0x201   :  { %v11070_v22 = vld [vmem:[#allocation5 + $0x45c] sm:$0xf0]  ;;  %5431 = vmatpush.bf16.msra.mxu3 %v8981_v8  ;;  %5406 = vmatpush.bf16.msra.mxu1 %v7893_v19 }
 0x202   :  { %v8340_v23 = vld [vmem:[#allocation5 + $0x820] sm:$0xf]  ;;  %v7829_v45 = vor.u32 %v11070_v22, %v7828_v21  ;;  %v8153_v21 = vor.u32 %v11142_v11, %v8150_v13  ;;  %v5203_v13 = vpop.f32.mrf.mxu1 }
 0x203   :  { %v11198_v25 = vld [vmem:[#allocation5 + $0x85c] sm:$0xf0]  ;;  %5419 = vmatpush.bf16.msra.mxu2 %v8405_v20  ;;  %5394 = vmatpush.bf16.msra.mxu0 %v7317_v38  ;;  %v11398_v13 = vld [vmem:[#allocation5 + $0xea4] sm:$0xf] }
 0x204   :  { %v8852_v26 = vld [vmem:[#allocation5 + $0xc20] sm:$0xf]  ;;  %v8341_v46 = vor.u32 %v11198_v25, %v8340_v23  ;;  %v10998_v23 = vld [vmem:[#allocation5 + $0x224] sm:$0xf]  ;;  %v5227_v58 = vpop.f32.mrf.mxu3 }
 0x205   :  { %v11326_v27 = vld [vmem:[#allocation5 + $0xc5c] sm:$0xf0]  ;;  %5432 = vmatpush.bf16.msra.mxu3 %v8917_v24  ;;  %5407 = vmatpush.bf16.msra.mxu1 %v7829_v45  ;;  %v7574_v24 = vld [vmem:[#allocation5 + $0x260] sm:$0xf0] }
 0x206   :  { %v9812_v29 = vld [vmem:[#allocation5 + $0x13a0] sm:$0xf]  ;;  %v8853_v50 = vor.u32 %v11326_v27, %v8852_v26  ;;  %5395 = vmatmul.bf16.vlgmr.msra.gmra.mxu0 %v12137_v33  ;;  %v11126_v25 = vld [vmem:[#allocation5 + $0x624] sm:$0xf] }
 0x207   :  { %v11566_v31 = vld [vmem:[#allocation5 + $0x13dc] sm:$0xf0]  ;;  %5420 = vmatpush.bf16.msra.mxu2 %v8341_v46  ;;  %v8086_v26 = vld [vmem:[#allocation5 + $0x660] sm:$0xf0] }
 0x208   :  { %v10324_v36 = vld [vmem:[#allocation5 + $0x17a0] sm:$0xf]  ;;  %v9813_v51 = vor.u32 %v11566_v31, %v9812_v29  ;;  %5408 = vmatmul.bf16.vlgmr.msra.gmra.mxu1 %v12141_v41  ;;  %v7577_v31 = vor.u32 %v10998_v23, %v7574_v24  ;;  %v8089_v43 = vor.u32 %v11126_v25, %v8086_v26  ;;  %v10982_v46 = vld [vmem:[#allocation5 + $0x1a4] sm:$0xf] }
 0x209   :  { %v11694_v40 = vld [vmem:[#allocation5 + $0x17dc] sm:$0xf0]  ;;  %5433 = vmatpush.bf16.msra.mxu3 %v8853_v50  ;;  %v11110_v50 = vld [vmem:[#allocation5 + $0x5a4] sm:$0xf] }
 0x20a   :  { %v10325_v14 = vor.u32 %v11694_v40, %v10324_v36  ;;  %v9748_v53 = vld [vmem:[#allocation5 + $0x1320] sm:$0xf]  ;;  %5439 = vmatpush.bf16.msrb.mxu0 %v9813_v51  ;;  %5421 = vmatmul.bf16.vlgmr.msra.gmra.mxu2 %v12139_v34  ;;  %v5189_v36 = vadd.f32 %v5188_v28, %v12221_v62  ;;  %v8022_v51 = vld [vmem:[#allocation5 + $0x5e0] sm:$0xf0] }
 0x20b   :  { %v11550_v54 = vld [vmem:[#allocation5 + $0x135c] sm:$0xf0]  ;;  %5465 = vmatpush.bf16.msrb.mxu2 %v7769_v52 }
 0x20c   :  { %v10260_v3 = vld [vmem:[#allocation5 + $0x1720] sm:$0xf]  ;;  %v9749_v61 = vor.u32 %v11550_v54, %v9748_v53  ;;  %5452 = vmatpush.bf16.msrb.mxu1 %v10325_v14  ;;  %5434 = vmatmul.bf16.vlgmr.msra.gmra.mxu3 %v12145_v44  ;;  %v5202_v49 = vadd.f32 %v5201_v37, %v5189_v36  ;;  %v7513_v53 = vor.u32 %v10982_v46, %v7510_v47  ;;  %v5214_v54 = vpop.f32.mrf.mxu2  ;;  %v7318_v37 = vld [vmem:[#allocation5 + $0x60] sm:$0xf0] }
 0x20d   :  { %v11678_v56 = vld [vmem:[#allocation5 + $0x175c] sm:$0xf0]  ;;  %5478 = vmatpush.bf16.msrb.mxu3 %v8281_v55  ;;  %v11430_v46 = vld [vmem:[#allocation5 + $0xfa4] sm:$0xf] }
 0x20e   :  { %v10261_v1 = vor.u32 %v11678_v56, %v10260_v3  ;;  %v9684_v32 = vld [vmem:[#allocation5 + $0x12a0] sm:$0xf]  ;;  %5440 = vmatpush.bf16.msrb.mxu0 %v9749_v61  ;;  %v8025_v56 = vor.u32 %v11110_v50, %v8022_v51  ;;  %v5215_v57 = vadd.f32 %v5214_v54, %v5202_v49  ;;  %v7446_v61 = vld [vmem:[#allocation5 + $0x160] sm:$0xf0] }
 0x20f   :  { %v11534_v4 = vld [vmem:[#allocation5 + $0x12dc] sm:$0xf0]  ;;  %5466 = vmatpush.bf16.msrb.mxu2 %v7705_v2  ;;  %v7958_v2 = vld [vmem:[#allocation5 + $0x560] sm:$0xf0] }
 0x210   :  { %v10196_v5 = vld [vmem:[#allocation5 + $0x16a0] sm:$0xf]  ;;  %v9685_v15 = vor.u32 %v11534_v4, %v9684_v32  ;;  %5453 = vmatpush.bf16.msrb.mxu1 %v10261_v1  ;;  %v11094_v1 = vld [vmem:[#allocation5 + $0x524] sm:$0xf]  ;;  %v12228_v32 = vadd.f32 %v5227_v58, %v5215_v57 }
 0x211   :  { %v11662_v8 = vld [vmem:[#allocation5 + $0x16dc] sm:$0xf0]  ;;  %5479 = vmatpush.bf16.msrb.mxu3 %v8217_v7  ;;  %v9302_v49 = vld [vmem:[#allocation5 + $0xfe0] sm:$0xf0] }
 0x212   :  { %v10197_v16 = vor.u32 %v11662_v8, %v10196_v5  ;;  %v9620_v18 = vld [vmem:[#allocation5 + $0x1220] sm:$0xf]  ;;  %5441 = vmatpush.bf16.msrb.mxu0 %v9685_v15  ;;  %v5190_v5 = vpop.f32.mrf.mxu0  ;;  %v7449_v8 = vor.u32 %v10966_v60, %v7446_v61  ;;  %v6028_v15 = vmax.f32 %v12182_v12, %v12228_v32  ;;  %v11558_v50 = vld [vmem:[#allocation5 + $0x13a4] sm:$0xf] }
 0x213   :  { %v11518_v19 = vld [vmem:[#allocation5 + $0x125c] sm:$0xf0]  ;;  %5467 = vmatpush.bf16.msrb.mxu2 %v7641_v17  ;;  %v9814_v51 = vld [vmem:[#allocation5 + $0x13e0] sm:$0xf0] }
 0x214   :  { %v10132_v20 = vld [vmem:[#allocation5 + $0x1620] sm:$0xf]  ;;  %v9621_v27 = vor.u32 %v11518_v19, %v9620_v18  ;;  %5454 = vmatpush.bf16.msrb.mxu1 %v10197_v16  ;;  %v7961_v16 = vor.u32 %v11094_v1, %v7958_v2  ;;  %v10950_v18 = vld [vmem:[#allocation5 + $0xa4] sm:$0xf] }
 0x215   :  { %v11646_v22 = vld [vmem:[#allocation5 + $0x165c] sm:$0xf0]  ;;  %5480 = vmatpush.bf16.msrb.mxu3 %v8153_v21  ;;  %v7382_v19 = vld [vmem:[#allocation5 + $0xe0] sm:$0xf0] }
 0x216   :  { %v10133_v29 = vor.u32 %v11646_v22, %v10132_v20  ;;  %v9556_v38 = vld [vmem:[#allocation5 + $0x11a0] sm:$0xf]  ;;  %5442 = vmatpush.bf16.msrb.mxu0 %v9621_v27  ;;  %v11078_v20 = vld [vmem:[#allocation5 + $0x4a4] sm:$0xf]  ;;  %v7385_v26 = vor.u32 %v10950_v18, %v7382_v19 }
 0x217   :  { %v11502_v40 = vld [vmem:[#allocation5 + $0x11dc] sm:$0xf0]  ;;  %5468 = vmatpush.bf16.msrb.mxu2 %v7577_v31  ;;  %v7894_v21 = vld [vmem:[#allocation5 + $0x4e0] sm:$0xf0]  ;;  %v5216_v31 = vpop.f32.mrf.mxu2 }
 0x218   :  { %v10068_v42 = vld [vmem:[#allocation5 + $0x15a0] sm:$0xf]  ;;  %v9557_v14 = vor.u32 %v11502_v40, %v9556_v38  ;;  %5455 = vmatpush.bf16.msrb.mxu1 %v10133_v29  ;;  %v10934_v29 = vld [vmem:[#allocation5 + $0x24] sm:$0xf]  ;;  %v7897_v36 = vor.u32 %v11078_v20, %v7894_v21 }
 0x219   :  { %v11630_v45 = vld [vmem:[#allocation5 + $0x15dc] sm:$0xf0]  ;;  %5481 = vmatpush.bf16.msrb.mxu3 %v8089_v43  ;;  %v11062_v38 = vld [vmem:[#allocation5 + $0x424] sm:$0xf] }
 0x21a   :  { %v10069_v52 = vor.u32 %v11630_v45, %v10068_v42  ;;  %v9492_v62 = vld [vmem:[#allocation5 + $0x1120] sm:$0xf]  ;;  %5443 = vmatpush.bf16.msrb.mxu0 %v9557_v14  ;;  %v7830_v40 = vld [vmem:[#allocation5 + $0x460] sm:$0xf0]  ;;  %v5229_v42 = vpop.f32.mrf.mxu3 }
 0x21b   :  { %v11486_v3 = vld [vmem:[#allocation5 + $0x115c] sm:$0xf0]  ;;  %5469 = vmatpush.bf16.msrb.mxu2 %v7513_v53  ;;  %v11302_v43 = vld [vmem:[#allocation5 + $0xba4] sm:$0xf] }
 0x21c   :  { %v10004_v55 = vld [vmem:[#allocation5 + $0x1520] sm:$0xf]  ;;  %v9493_v4 = vor.u32 %v11486_v3, %v9492_v62  ;;  %5456 = vmatpush.bf16.msrb.mxu1 %v10069_v52  ;;  %v8790_v45 = vld [vmem:[#allocation5 + $0xbe0] sm:$0xf0]  ;;  %v7321_v52 = vor.u32 %v10934_v29, %v7318_v37  ;;  %v7833_v62 = vor.u32 %v11062_v38, %v7830_v40  ;;  %v5240_v40 = vpop.f32.mrf.mxu0 }
 0x21d   :  { %v11614_v59 = vld [vmem:[#allocation5 + $0x155c] sm:$0xf0]  ;;  %5482 = vmatpush.bf16.msrb.mxu3 %v8025_v56  ;;  %v11686_v53 = vld [vmem:[#allocation5 + $0x17a4] sm:$0xf]  ;;  %v8793_v3 = vor.u32 %v11302_v43, %v8790_v45  ;;  %v9817_v56 = vor.u32 %v11558_v50, %v9814_v51  ;;  %v5253_v43 = vpop.f32.mrf.mxu1 }
 0x21e   :  { %v10005_v7 = vor.u32 %v11614_v59, %v10004_v55  ;;  %v9428_v9 = vld [vmem:[#allocation5 + $0x10a0] sm:$0xf]  ;;  %5444 = vmatpush.bf16.msrb.mxu0 %v9493_v4  ;;  %v10326_v54 = vld [vmem:[#allocation5 + $0x17e0] sm:$0xf0]  ;;  %v9305_v55 = vor.u32 %v11430_v46, %v9302_v49  ;;  %v5254_v51 = vadd.f32 %v5253_v43, %v5240_v40 }
 0x21f   :  { %v11470_v10 = vld [vmem:[#allocation5 + $0x10dc] sm:$0xf0]  ;;  %5470 = vmatpush.bf16.msrb.mxu2 %v7449_v8  ;;  %v11286_v57 = vld [vmem:[#allocation5 + $0xb24] sm:$0xf]  ;;  %v10329_v60 = vor.u32 %v11686_v53, %v10326_v54 }
 0x220   :  { %v9940_v11 = vld [vmem:[#allocation5 + $0x14a0] sm:$0xf]  ;;  %v9429_v22 = vor.u32 %v11470_v10, %v9428_v9  ;;  %5457 = vmatpush.bf16.msrb.mxu1 %v10005_v7  ;;  %v8726_v58 = vld [vmem:[#allocation5 + $0xb60] sm:$0xf0] }
 0x221   :  { %v11598_v17 = vld [vmem:[#allocation5 + $0x14dc] sm:$0xf0]  ;;  %5483 = vmatpush.bf16.msrb.mxu3 %v7961_v16  ;;  %v11414_v59 = vld [vmem:[#allocation5 + $0xf24] sm:$0xf]  ;;  %v8729_v7 = vor.u32 %v11286_v57, %v8726_v58 }
 0x222   :  { %v9364_v23 = vld [vmem:[#allocation5 + $0x1020] sm:$0xf]  ;;  %v9941_v25 = vor.u32 %v11598_v17, %v9940_v11  ;;  %5445 = vmatpush.bf16.msrb.mxu0 %v9429_v22  ;;  %v9238_v61 = vld [vmem:[#allocation5 + $0xf60] sm:$0xf0] }
 0x223   :  { %v11454_v24 = vld [vmem:[#allocation5 + $0x105c] sm:$0xf0]  ;;  %5471 = vmatpush.bf16.msrb.mxu2 %v7385_v26  ;;  %v11542_v1 = vld [vmem:[#allocation5 + $0x1324] sm:$0xf]  ;;  %v9241_v8 = vor.u32 %v11414_v59, %v9238_v61 }
 0x224   :  { %v9876_v27 = vld [vmem:[#allocation5 + $0x1420] sm:$0xf]  ;;  %v9365_v47 = vor.u32 %v11454_v24, %v9364_v23  ;;  %5458 = vmatpush.bf16.msrb.mxu1 %v9941_v25  ;;  %v9750_v2 = vld [vmem:[#allocation5 + $0x1360] sm:$0xf0] }
 0x225   :  { %v11582_v28 = vld [vmem:[#allocation5 + $0x145c] sm:$0xf0]  ;;  %5484 = vmatpush.bf16.msrb.mxu3 %v7897_v36  ;;  %v11670_v4 = vld [vmem:[#allocation5 + $0x1724] sm:$0xf]  ;;  %v9753_v9 = vor.u32 %v11542_v1, %v9750_v2 }
 0x226   :  { %v9877_v14 = vor.u32 %v11582_v28, %v9876_v27  ;;  %5446 = vmatpush.bf16.msrb.mxu0 %v9365_v47  ;;  %v10262_v5 = vld [vmem:[#allocation5 + $0x1760] sm:$0xf0]  ;;  %v10356_v39 = vld [vmem:[#allocation7] sm:$0xf] }
 0x227   :  { %5472 = vmatpush.bf16.msrb.mxu2 %v7321_v52  ;;  %v11270_v10 = vld [vmem:[#allocation5 + $0xaa4] sm:$0xf]  ;;  %v10265_v16 = vor.u32 %v11670_v4, %v10262_v5  ;;  %v5266_v5 = vpop.f32.mrf.mxu2 }
 0x228   :  { %5459 = vmatpush.bf16.msrb.mxu1 %v9877_v14  ;;  %v8662_v11 = vld [vmem:[#allocation5 + $0xae0] sm:$0xf0] }
 0x229   :  { %5485 = vmatpush.bf16.msrb.mxu3 %v7833_v62  ;;  %5447 = vmatmul.bf16.vlgmr.msrb.gmra.mxu0 %v12149_v30  ;;  %v9174_v17 = vld [vmem:[#allocation5 + $0xee0] sm:$0xf0]  ;;  %v8665_v22 = vor.u32 %v11270_v10, %v8662_v11  ;;  %v5267_v10 = vadd.f32 %v5266_v5, %v5254_v51  ;;  %v5279_v11 = vpop.f32.mrf.mxu3  ;;  %v7772_v51 = vld [vmem:[#allocation5 + $0x3a8] sm:$0xf] }
 0x22a   :  { %5491 = vmatpush.bf16.msra.mxu0 %v8793_v3  ;;  %v11526_v18 = vld [vmem:[#allocation5 + $0x12a4] sm:$0xf]  ;;  %5473 = vmatmul.bf16.vlgmr.msrb.gmra.mxu2 %v12137_v33  ;;  %v9177_v23 = vor.u32 %v11398_v13, %v9174_v17  ;;  %v11039_v5 = vld [vmem:[#allocation5 + $0x364] sm:$0xf0] }
 0x22b   :  { %5517 = vmatpush.bf16.msra.mxu2 %v9817_v56  ;;  %v9686_v19 = vld [vmem:[#allocation5 + $0x12e0] sm:$0xf0]  ;;  %5460 = vmatmul.bf16.vlgmr.msrb.gmra.mxu1 %v12151_v35 }
 0x22c   :  { %5504 = vmatpush.bf16.msra.mxu1 %v9305_v55  ;;  %v11654_v20 = vld [vmem:[#allocation5 + $0x16a4] sm:$0xf]  ;;  %5486 = vmatmul.bf16.vlgmr.msrb.gmra.mxu3 %v12141_v41  ;;  %v9689_v24 = vor.u32 %v11526_v18, %v9686_v19 }
 0x22d   :  { %5530 = vmatpush.bf16.msra.mxu3 %v10329_v60  ;;  %v10198_v21 = vld [vmem:[#allocation5 + $0x16e0] sm:$0xf0] }
 0x22e   :  { %5492 = vmatpush.bf16.msra.mxu0 %v8729_v7  ;;  %v11254_v25 = vld [vmem:[#allocation5 + $0xa24] sm:$0xf]  ;;  %v10201_v28 = vor.u32 %v11654_v20, %v10198_v21 }
 0x22f   :  { %5518 = vmatpush.bf16.msra.mxu2 %v9753_v9  ;;  %v8598_v26 = vld [vmem:[#allocation5 + $0xa60] sm:$0xf0]  ;;  %v5242_v9 = vpop.f32.mrf.mxu0 }
 0x230   :  { %5505 = vmatpush.bf16.msra.mxu1 %v9241_v8  ;;  %v11382_v27 = vld [vmem:[#allocation5 + $0xe24] sm:$0xf]  ;;  %v8601_v42 = vor.u32 %v11254_v25, %v8598_v26  ;;  %v11167_v9 = vld [vmem:[#allocation5 + $0x764] sm:$0xf0] }
 0x231   :  { %5531 = vmatpush.bf16.msra.mxu3 %v10265_v16  ;;  %v9110_v29 = vld [vmem:[#allocation5 + $0xe60] sm:$0xf0]  ;;  %v5255_v16 = vpop.f32.mrf.mxu1 }
 0x232   :  { %v11510_v31 = vld [vmem:[#allocation5 + $0x1224] sm:$0xf]  ;;  %5493 = vmatpush.bf16.msra.mxu0 %v8665_v22  ;;  %v9113_v45 = vor.u32 %v11382_v27, %v9110_v29  ;;  %v12236_v22 = vadd.f32 %v5279_v11, %v5267_v10  ;;  %v8732_v10 = vld [vmem:[#allocation5 + $0xb28] sm:$0xf] }
 0x233   :  { %v9622_v36 = vld [vmem:[#allocation5 + $0x1260] sm:$0xf0]  ;;  %5519 = vmatpush.bf16.msra.mxu2 %v9689_v24  ;;  %v11295_v11 = vld [vmem:[#allocation5 + $0xb64] sm:$0xf0] }
 0x234   :  { %v11638_v37 = vld [vmem:[#allocation5 + $0x1624] sm:$0xf]  ;;  %5506 = vmatpush.bf16.msra.mxu1 %v9177_v23  ;;  %v9625_v46 = vor.u32 %v11510_v31, %v9622_v36  ;;  %v11423_v16 = vld [vmem:[#allocation5 + $0xf64] sm:$0xf0] }
 0x235   :  { %v10134_v38 = vld [vmem:[#allocation5 + $0x1660] sm:$0xf0]  ;;  %5532 = vmatpush.bf16.msra.mxu3 %v10201_v28 }
 0x236   :  { %v11238_v47 = vld [vmem:[#allocation5 + $0x9a4] sm:$0xf]  ;;  %v10137_v14 = vor.u32 %v11638_v37, %v10134_v38  ;;  %5494 = vmatpush.bf16.msra.mxu0 %v8601_v42 }
 0x237   :  { %v8534_v49 = vld [vmem:[#allocation5 + $0x9e0] sm:$0xf0]  ;;  %5520 = vmatpush.bf16.msra.mxu2 %v9625_v46 }
 0x238   :  { %v11366_v50 = vld [vmem:[#allocation5 + $0xda4] sm:$0xf]  ;;  %v8537_v55 = vor.u32 %v11238_v47, %v8534_v49  ;;  %5507 = vmatpush.bf16.msra.mxu1 %v9113_v45 }
 0x239   :  { %v9046_v52 = vld [vmem:[#allocation5 + $0xde0] sm:$0xf0]  ;;  %5533 = vmatpush.bf16.msra.mxu3 %v10137_v14  ;;  %v11055_v14 = vld [vmem:[#allocation5 + $0x3e4] sm:$0xf0] }
 0x23a   :  { %v11494_v53 = vld [vmem:[#allocation5 + $0x11a4] sm:$0xf]  ;;  %v9049_v56 = vor.u32 %v11366_v50, %v9046_v52  ;;  %5495 = vmatpush.bf16.msra.mxu0 %v8537_v55  ;;  %v5268_v50 = vpop.f32.mrf.mxu2  ;;  %v8284_v52 = vld [vmem:[#allocation5 + $0x7a8] sm:$0xf] }
 0x23b   :  { %v9558_v54 = vld [vmem:[#allocation5 + $0x11e0] sm:$0xf0]  ;;  %v11311_v55 = vld [vmem:[#allocation5 + $0xbe4] sm:$0xf0] }
 0x23c   :  { %v11622_v62 = vld [vmem:[#allocation5 + $0x15a4] sm:$0xf]  ;;  %v9561_v57 = vor.u32 %v11494_v53, %v9558_v54  ;;  %5508 = vmatpush.bf16.msra.mxu1 %v9049_v56  ;;  %v5281_v53 = vpop.f32.mrf.mxu3  ;;  %v9116_v50 = vld [vmem:[#allocation5 + $0xe28] sm:$0xf] }
 0x23d   :  { %v10070_v3 = vld [vmem:[#allocation5 + $0x15e0] sm:$0xf0]  ;;  %v5305_v53 = vpop.f32.mrf.mxu1 }
 0x23e   :  { %v11222_v58 = vld [vmem:[#allocation5 + $0x924] sm:$0xf]  ;;  %v10073_v61 = vor.u32 %v11622_v62, %v10070_v3  ;;  %5521 = vmatpush.bf16.msra.mxu2 %v9561_v57  ;;  %v11183_v62 = vld [vmem:[#allocation5 + $0x7e4] sm:$0xf0] }
 0x23f   :  { %v8470_v59 = vld [vmem:[#allocation5 + $0x960] sm:$0xf0]  ;;  %v8796_v3 = vld [vmem:[#allocation5 + $0xba8] sm:$0xf] }
 0x240   :  { %v11350_v60 = vld [vmem:[#allocation5 + $0xd24] sm:$0xf]  ;;  %v8473_v13 = vor.u32 %v11222_v58, %v8470_v59  ;;  %5534 = vmatpush.bf16.msra.mxu3 %v10073_v61  ;;  %v9308_v58 = vld [vmem:[#allocation5 + $0xfa8] sm:$0xf]  ;;  %v7773_v61 = vor.u32 %v11055_v14, %v7772_v51 }
 0x241   :  { %v8982_v1 = vld [vmem:[#allocation5 + $0xd60] sm:$0xf0]  ;;  %v11439_v59 = vld [vmem:[#allocation5 + $0xfe4] sm:$0xf0] }
 0x242   :  { %v11478_v2 = vld [vmem:[#allocation5 + $0x1124] sm:$0xf]  ;;  %v8985_v17 = vor.u32 %v11350_v60, %v8982_v1  ;;  %5496 = vmatpush.bf16.msra.mxu0 %v8473_v13  ;;  %v8285_v1 = vor.u32 %v11183_v62, %v8284_v52  ;;  %v9244_v13 = vld [vmem:[#allocation5 + $0xf28] sm:$0xf] }
 0x243   :  { %v9494_v4 = vld [vmem:[#allocation5 + $0x1160] sm:$0xf0]  ;;  %v11391_v51 = vld [vmem:[#allocation5 + $0xe64] sm:$0xf0] }
 0x244   :  { %v11606_v7 = vld [vmem:[#allocation5 + $0x1524] sm:$0xf]  ;;  %v9497_v18 = vor.u32 %v11478_v2, %v9494_v4  ;;  %5509 = vmatpush.bf16.msra.mxu1 %v8985_v17  ;;  %v8797_v2 = vor.u32 %v11311_v55, %v8796_v3  ;;  %v7708_v4 = vld [vmem:[#allocation5 + $0x328] sm:$0xf] }
 0x245   :  { %v10006_v8 = vld [vmem:[#allocation5 + $0x1560] sm:$0xf0]  ;;  %v7709_v17 = vor.u32 %v11039_v5, %v7708_v4  ;;  %v7516_v3 = vld [vmem:[#allocation5 + $0x1a8] sm:$0xf] }
 0x246   :  { %v11206_v19 = vld [vmem:[#allocation5 + $0x8a4] sm:$0xf]  ;;  %v10009_v23 = vor.u32 %v11606_v7, %v10006_v8  ;;  %5522 = vmatpush.bf16.msra.mxu2 %v9497_v18  ;;  %v8220_v7 = vld [vmem:[#allocation5 + $0x728] sm:$0xf]  ;;  %v9309_v8 = vor.u32 %v11439_v59, %v9308_v58 }
 0x247   :  { %v8406_v20 = vld [vmem:[#allocation5 + $0x8e0] sm:$0xf0]  ;;  %v8221_v18 = vor.u32 %v11167_v9, %v8220_v7  ;;  %v10991_v55 = vld [vmem:[#allocation5 + $0x1e4] sm:$0xf0] }
 0x248   :  { %v11334_v21 = vld [vmem:[#allocation5 + $0xca4] sm:$0xf]  ;;  %v8409_v29 = vor.u32 %v11206_v19, %v8406_v20  ;;  %5535 = vmatpush.bf16.msra.mxu3 %v10009_v23  ;;  %v8733_v19 = vor.u32 %v11295_v11, %v8732_v10  ;;  %v7644_v20 = vld [vmem:[#allocation5 + $0x2a8] sm:$0xf]  ;;  %v7517_v4 = vor.u32 %v10991_v55, %v7516_v3 }
 0x249   :  { %v8918_v24 = vld [vmem:[#allocation5 + $0xce0] sm:$0xf0]  ;;  %v8156_v23 = vld [vmem:[#allocation5 + $0x6a8] sm:$0xf] }
 0x24a   :  { %v11462_v25 = vld [vmem:[#allocation5 + $0x10a4] sm:$0xf]  ;;  %v8921_v37 = vor.u32 %v11334_v21, %v8918_v24  ;;  %5497 = vmatpush.bf16.msra.mxu0 %v8409_v29  ;;  %v11023_v21 = vld [vmem:[#allocation5 + $0x2e4] sm:$0xf0]  ;;  %v9245_v24 = vor.u32 %v11423_v16, %v9244_v13 }
 0x24b   :  { %v9430_v26 = vld [vmem:[#allocation5 + $0x10e0] sm:$0xf0]  ;;  %v11407_v29 = vld [vmem:[#allocation5 + $0xee4] sm:$0xf0] }
 0x24c   :  { %v11590_v27 = vld [vmem:[#allocation5 + $0x14a4] sm:$0xf]  ;;  %v9433_v38 = vor.u32 %v11462_v25, %v9430_v26  ;;  %5510 = vmatpush.bf16.msra.mxu1 %v8921_v37  ;;  %v11151_v25 = vld [vmem:[#allocation5 + $0x6e4] sm:$0xf0] }
 0x24d   :  { %v9942_v28 = vld [vmem:[#allocation5 + $0x14e0] sm:$0xf0]  ;;  %v8668_v26 = vld [vmem:[#allocation5 + $0xaa8] sm:$0xf] }
 0x24e   :  { %v11190_v31 = vld [vmem:[#allocation5 + $0x824] sm:$0xf]  ;;  %v9945_v45 = vor.u32 %v11590_v27, %v9942_v28  ;;  %5523 = vmatpush.bf16.msra.mxu2 %v9433_v38  ;;  %v11279_v27 = vld [vmem:[#allocation5 + $0xae4] sm:$0xf0] }
 0x24f   :  { %v8342_v36 = vld [vmem:[#allocation5 + $0x860] sm:$0xf0]  ;;  %v9180_v28 = vld [vmem:[#allocation5 + $0xea8] sm:$0xf]  ;;  %v8669_v37 = vor.u32 %v11279_v27, %v8668_v26  ;;  %v5307_v26 = vpop.f32.mrf.mxu1 }
 0x250   :  { %v11318_v40 = vld [vmem:[#allocation5 + $0xc24] sm:$0xf]  ;;  %v8345_v54 = vor.u32 %v11190_v31, %v8342_v36  ;;  %5536 = vmatpush.bf16.msra.mxu3 %v9945_v45  ;;  %v7645_v31 = vor.u32 %v11023_v21, %v7644_v20  ;;  %v8157_v36 = vor.u32 %v11151_v25, %v8156_v23  ;;  %v7580_v38 = vld [vmem:[#allocation5 + $0x228] sm:$0xf]  ;;  %v5331_v21 = vpop.f32.mrf.mxu3  ;;  %v7710_v26 = vld [vmem:[#allocation5 + $0x368] sm:$0xf0] }
 0x251   :  { %v8854_v42 = vld [vmem:[#allocation5 + $0xc60] sm:$0xf0]  ;;  %v11135_v45 = vld [vmem:[#allocation5 + $0x664] sm:$0xf0] }
 0x252   :  { %v11446_v43 = vld [vmem:[#allocation5 + $0x1024] sm:$0xf]  ;;  %v8857_v56 = vor.u32 %v11318_v40, %v8854_v42  ;;  %5498 = vmatpush.bf16.msra.mxu0 %v8345_v54  ;;  %v11007_v40 = vld [vmem:[#allocation5 + $0x264] sm:$0xf0] }
 0x253   :  { %v9366_v46 = vld [vmem:[#allocation5 + $0x1060] sm:$0xf0]  ;;  %v8092_v42 = vld [vmem:[#allocation5 + $0x628] sm:$0xf]  ;;  %v7581_v52 = vor.u32 %v11007_v40, %v7580_v38 }
 0x254   :  { %v11574_v47 = vld [vmem:[#allocation5 + $0x1424] sm:$0xf]  ;;  %v9369_v57 = vor.u32 %v11446_v43, %v9366_v46  ;;  %5511 = vmatpush.bf16.msra.mxu1 %v8857_v56  ;;  %v9181_v43 = vor.u32 %v11407_v29, %v9180_v28  ;;  %v8604_v46 = vld [vmem:[#allocation5 + $0xa28] sm:$0xf]  ;;  %v8093_v54 = vor.u32 %v11135_v45, %v8092_v42 }
 0x255   :  { %v9878_v49 = vld [vmem:[#allocation5 + $0x1460] sm:$0xf0]  ;;  %5499 = vmatmul.bf16.vlgmr.msra.gmra.mxu0 %v12139_v34  ;;  %v8028_v56 = vld [vmem:[#allocation5 + $0x5a8] sm:$0xf] }
 0x256   :  { %v9881_v60 = vor.u32 %v11574_v47, %v9878_v49  ;;  %5524 = vmatpush.bf16.msra.mxu2 %v9369_v57  ;;  %5543 = vmatpush.bf16.msrb.mxu0 %v7773_v61  ;;  %v11263_v47 = vld [vmem:[#allocation5 + $0xa64] sm:$0xf0]  ;;  %v5292_v49 = vpop.f32.mrf.mxu0  ;;  %v9117_v57 = vor.u32 %v11391_v51, %v9116_v50 }
 0x257   :  { %5512 = vmatmul.bf16.vlgmr.msra.gmra.mxu1 %v12145_v44  ;;  %v5293_v14 = vadd.f32 %v5292_v49, %v12236_v22  ;;  %v8605_v62 = vor.u32 %v11263_v47, %v8604_v46  ;;  %v11119_v59 = vld [vmem:[#allocation5 + $0x5e4] sm:$0xf0] }
 0x258   :  { %5537 = vmatpush.bf16.msra.mxu3 %v9881_v60  ;;  %5556 = vmatpush.bf16.msrb.mxu1 %v8285_v1  ;;  %v8540_v60 = vld [vmem:[#allocation5 + $0x9a8] sm:$0xf]  ;;  %v8029_v5 = vor.u32 %v11119_v59, %v8028_v56 }
 0x259   :  { %5525 = vmatmul.bf16.vlgmr.msra.gmra.mxu2 %v12149_v30  ;;  %v12243_v58 = vadd.f32 %v5305_v53, %v5293_v14  ;;  %v11247_v61 = vld [vmem:[#allocation5 + $0x9e4] sm:$0xf0] }
 0x25a   :  { %5569 = vmatpush.bf16.msrb.mxu2 %v8797_v2  ;;  %5544 = vmatpush.bf16.msrb.mxu0 %v7709_v17  ;;  %v9052_v1 = vld [vmem:[#allocation5 + $0xda8] sm:$0xf]  ;;  %v8541_v7 = vor.u32 %v11247_v61, %v8540_v60  ;;  %v5333_v61 = vpop.f32.mrf.mxu3 }
 0x25b   :  { %5538 = vmatmul.bf16.vlgmr.msra.gmra.mxu3 %v12151_v35  ;;  %v11375_v2 = vld [vmem:[#allocation5 + $0xde4] sm:$0xf0]  ;;  %v6029_v22 = vmax.f32 %v12195_v48, %v12243_v58  ;;  %v11798_v48 = vld [vmem:[#allocation7 + $0x324] sm:$0xf]  ;;  %v10758_v58 = vld [vmem:[#allocation7 + $0x330] sm:$0xf0] }
 0x25c   :  { %5582 = vmatpush.bf16.msrb.mxu3 %v9309_v8  ;;  %5557 = vmatpush.bf16.msrb.mxu1 %v8221_v18  ;;  %v7452_v8 = vld [vmem:[#allocation5 + $0x128] sm:$0xf]  ;;  %v9053_v11 = vor.u32 %v11375_v2, %v9052_v1  ;;  %v5318_v18 = vpop.f32.mrf.mxu2 }
 0x25d   :  { %v10975_v9 = vld [vmem:[#allocation5 + $0x164] sm:$0xf0]  ;;  %v12247_v25 = vadd.f32 %v5331_v21, %v5318_v18 }
 0x25e   :  { %5570 = vmatpush.bf16.msrb.mxu2 %v8733_v19  ;;  %5545 = vmatpush.bf16.msrb.mxu0 %v7645_v31  ;;  %v7964_v10 = vld [vmem:[#allocation5 + $0x528] sm:$0xf]  ;;  %v5294_v23 = vpop.f32.mrf.mxu0 }
 0x25f   :  { %v11103_v13 = vld [vmem:[#allocation5 + $0x564] sm:$0xf0] }
 0x260   :  { %5583 = vmatpush.bf16.msrb.mxu3 %v9245_v24  ;;  %5558 = vmatpush.bf16.msrb.mxu1 %v8157_v36  ;;  %v8476_v16 = vld [vmem:[#allocation5 + $0x928] sm:$0xf]  ;;  %v7453_v24 = vor.u32 %v10975_v9, %v7452_v8  ;;  %v7965_v27 = vor.u32 %v11103_v13, %v7964_v10  ;;  %v11175_v9 = vld [vmem:[#allocation5 + $0x7ac] sm:$0xf] }
 0x261   :  { %v11231_v17 = vld [vmem:[#allocation5 + $0x964] sm:$0xf0]  ;;  %v8286_v10 = vld [vmem:[#allocation5 + $0x7e8] sm:$0xf0] }
 0x262   :  { %5571 = vmatpush.bf16.msrb.mxu2 %v8669_v37  ;;  %5546 = vmatpush.bf16.msrb.mxu0 %v7581_v52  ;;  %v8988_v19 = vld [vmem:[#allocation5 + $0xd28] sm:$0xf]  ;;  %v8477_v28 = vor.u32 %v11231_v17, %v8476_v16  ;;  %v8289_v21 = vor.u32 %v11175_v9, %v8286_v10 }
 0x263   :  { %v11359_v20 = vld [vmem:[#allocation5 + $0xd64] sm:$0xf0] }
 0x264   :  { %5584 = vmatpush.bf16.msrb.mxu3 %v9181_v43  ;;  %5559 = vmatpush.bf16.msrb.mxu1 %v8093_v54  ;;  %v7388_v29 = vld [vmem:[#allocation5 + $0xa8] sm:$0xf]  ;;  %v8989_v37 = vor.u32 %v11359_v20, %v8988_v19  ;;  %v5320_v56 = vpop.f32.mrf.mxu2 }
 0x265   :  { %v10959_v31 = vld [vmem:[#allocation5 + $0xe4] sm:$0xf0]  ;;  %v7582_v56 = vld [vmem:[#allocation5 + $0x268] sm:$0xf0] }
 0x266   :  { %5572 = vmatpush.bf16.msrb.mxu2 %v8605_v62  ;;  %5547 = vmatpush.bf16.msrb.mxu0 %v7517_v4  ;;  %v7900_v36 = vld [vmem:[#allocation5 + $0x4a8] sm:$0xf]  ;;  %v7389_v46 = vor.u32 %v10959_v31, %v7388_v29  ;;  %v11047_v4 = vld [vmem:[#allocation5 + $0x3ac] sm:$0xf]  ;;  %v5344_v61 = vpop.f32.mrf.mxu0 }
 0x267   :  { %v11087_v38 = vld [vmem:[#allocation5 + $0x4e4] sm:$0xf0] }
 0x268   :  { %5585 = vmatpush.bf16.msrb.mxu3 %v9117_v57  ;;  %5560 = vmatpush.bf16.msrb.mxu1 %v8029_v5  ;;  %v8412_v40 = vld [vmem:[#allocation5 + $0x8a8] sm:$0xf]  ;;  %v7901_v50 = vor.u32 %v11087_v38, %v7900_v36  ;;  %v7774_v5 = vld [vmem:[#allocation5 + $0x3e8] sm:$0xf0] }
 0x269   :  { %v11215_v42 = vld [vmem:[#allocation5 + $0x8e4] sm:$0xf0]  ;;  %v7777_v17 = vor.u32 %v11047_v4, %v7774_v5  ;;  %v5345_v4 = vadd.f32 %v5344_v61, %v12247_v25  ;;  %v5357_v5 = vpop.f32.mrf.mxu1 }
 0x26a   :  { %5573 = vmatpush.bf16.msrb.mxu2 %v8541_v7  ;;  %v8924_v43 = vld [vmem:[#allocation5 + $0xca8] sm:$0xf]  ;;  %5548 = vmatpush.bf16.msrb.mxu0 %v7453_v24  ;;  %v8413_v51 = vor.u32 %v11215_v42, %v8412_v40  ;;  %v11031_v24 = vld [vmem:[#allocation5 + $0x32c] sm:$0xf] }
 0x26b   :  { %v11343_v45 = vld [vmem:[#allocation5 + $0xce4] sm:$0xf0]  ;;  %v7713_v36 = vor.u32 %v11031_v24, %v7710_v26 }
 0x26c   :  { %5586 = vmatpush.bf16.msrb.mxu3 %v9053_v11  ;;  %v7324_v47 = vld [vmem:[#allocation5 + $0x28] sm:$0xf]  ;;  %5561 = vmatpush.bf16.msrb.mxu1 %v7965_v27  ;;  %v8925_v54 = vor.u32 %v11343_v45, %v8924_v43  ;;  %v11159_v27 = vld [vmem:[#allocation5 + $0x72c] sm:$0xf] }
 0x26d   :  { %v10943_v49 = vld [vmem:[#allocation5 + $0x64] sm:$0xf0]  ;;  %v11015_v45 = vld [vmem:[#allocation5 + $0x2ac] sm:$0xf]  ;;  %v5370_v24 = vpop.f32.mrf.mxu2 }
 0x26e   :  { %5574 = vmatpush.bf16.msrb.mxu2 %v8477_v28  ;;  %v7836_v14 = vld [vmem:[#allocation5 + $0x428] sm:$0xf]  ;;  %5549 = vmatpush.bf16.msrb.mxu0 %v7389_v46  ;;  %v7325_v1 = vor.u32 %v10943_v49, %v7324_v47  ;;  %v8222_v28 = vld [vmem:[#allocation5 + $0x768] sm:$0xf0] }
 0x26f   :  { %v11071_v52 = vld [vmem:[#allocation5 + $0x464] sm:$0xf0]  ;;  %v8225_v42 = vor.u32 %v11159_v27, %v8222_v28  ;;  %v7646_v46 = vld [vmem:[#allocation5 + $0x2e8] sm:$0xf0] }
 0x270   :  { %v8348_v53 = vld [vmem:[#allocation5 + $0x828] sm:$0xf]  ;;  %5587 = vmatpush.bf16.msrb.mxu3 %v8989_v37  ;;  %5562 = vmatpush.bf16.msrb.mxu1 %v7901_v50  ;;  %v7837_v7 = vor.u32 %v11071_v52, %v7836_v14  ;;  %v11143_v47 = vld [vmem:[#allocation5 + $0x6ac] sm:$0xf]  ;;  %v7649_v14 = vor.u32 %v11015_v45, %v7646_v46  ;;  %v5346_v46 = vpop.f32.mrf.mxu0 }
 0x271   :  { %v11199_v62 = vld [vmem:[#allocation5 + $0x864] sm:$0xf0]  ;;  %v8158_v49 = vld [vmem:[#allocation5 + $0x6e8] sm:$0xf0] }
 0x272   :  { %v8860_v3 = vld [vmem:[#allocation5 + $0xc28] sm:$0xf]  ;;  %5575 = vmatpush.bf16.msrb.mxu2 %v8413_v51  ;;  %v8349_v8 = vor.u32 %v11199_v62, %v8348_v53  ;;  %5550 = vmatpush.bf16.msrb.mxu0 %v7325_v1  ;;  %v8161_v62 = vor.u32 %v11143_v47, %v8158_v49  ;;  %v9246_v46 = vld [vmem:[#allocation5 + $0xf68] sm:$0xf0] }
 0x273   :  { %v11327_v55 = vld [vmem:[#allocation5 + $0xc64] sm:$0xf0] }
 0x274   :  { %v9820_v57 = vld [vmem:[#allocation5 + $0x13a8] sm:$0xf]  ;;  %5588 = vmatpush.bf16.msrb.mxu3 %v8925_v54  ;;  %v8861_v11 = vor.u32 %v11327_v55, %v8860_v3  ;;  %5563 = vmatpush.bf16.msrb.mxu1 %v7837_v7  ;;  %v10999_v55 = vld [vmem:[#allocation5 + $0x22c] sm:$0xf] }
 0x275   :  { %v11567_v59 = vld [vmem:[#allocation5 + $0x13e4] sm:$0xf0]  ;;  %5551 = vmatmul.bf16.vlgmr.msrb.gmra.mxu0 %v12137_v33 }
 0x276   :  { %v10332_v60 = vld [vmem:[#allocation5 + $0x17a8] sm:$0xf]  ;;  %v9821_v13 = vor.u32 %v11567_v59, %v9820_v57  ;;  %5576 = vmatpush.bf16.msrb.mxu2 %v8349_v8  ;;  %v11127_v57 = vld [vmem:[#allocation5 + $0x62c] sm:$0xf] }
 0x277   :  { %v11695_v2 = vld [vmem:[#allocation5 + $0x17e4] sm:$0xf0]  ;;  %5564 = vmatmul.bf16.vlgmr.msrb.gmra.mxu1 %v12141_v41  ;;  %v8094_v59 = vld [vmem:[#allocation5 + $0x668] sm:$0xf0] }
 0x278   :  { %v10333_v16 = vor.u32 %v11695_v2, %v10332_v60  ;;  %v9756_v18 = vld [vmem:[#allocation5 + $0x1328] sm:$0xf]  ;;  %5589 = vmatpush.bf16.msrb.mxu3 %v8861_v11  ;;  %5595 = vmatpush.bf16.msra.mxu0 %v9821_v13  ;;  %v7585_v2 = vor.u32 %v10999_v55, %v7582_v56  ;;  %v8097_v10 = vor.u32 %v11127_v57, %v8094_v59  ;;  %v10983_v13 = vld [vmem:[#allocation5 + $0x1ac] sm:$0xf] }
 0x279   :  { %v11551_v19 = vld [vmem:[#allocation5 + $0x1364] sm:$0xf0]  ;;  %5577 = vmatmul.bf16.vlgmr.msrb.gmra.mxu2 %v12139_v34  ;;  %v7390_v55 = vld [vmem:[#allocation5 + $0xe8] sm:$0xf0] }
 0x27a   :  { %v10268_v20 = vld [vmem:[#allocation5 + $0x1728] sm:$0xf]  ;;  %v9757_v29 = vor.u32 %v11551_v19, %v9756_v18  ;;  %5608 = vmatpush.bf16.msra.mxu1 %v10333_v16  ;;  %5621 = vmatpush.bf16.msra.mxu2 %v7777_v17  ;;  %v7518_v16 = vld [vmem:[#allocation5 + $0x1e8] sm:$0xf0]  ;;  %v5358_v17 = vadd.f32 %v5357_v5, %v5345_v4 }
 0x27b   :  { %v11679_v23 = vld [vmem:[#allocation5 + $0x1764] sm:$0xf0]  ;;  %5590 = vmatmul.bf16.vlgmr.msrb.gmra.mxu3 %v12145_v44  ;;  %v11111_v18 = vld [vmem:[#allocation5 + $0x5ac] sm:$0xf] }
 0x27c   :  { %v10269_v31 = vor.u32 %v11679_v23, %v10268_v20  ;;  %v9692_v37 = vld [vmem:[#allocation5 + $0x12a8] sm:$0xf]  ;;  %5634 = vmatpush.bf16.msra.mxu3 %v8289_v21  ;;  %5596 = vmatpush.bf16.msra.mxu0 %v9757_v29  ;;  %v8030_v19 = vld [vmem:[#allocation5 + $0x5e8] sm:$0xf0]  ;;  %v7521_v23 = vor.u32 %v10983_v13, %v7518_v16  ;;  %v5371_v29 = vadd.f32 %v5370_v24, %v5358_v17 }
 0x27d   :  { %v11535_v38 = vld [vmem:[#allocation5 + $0x12e4] sm:$0xf0]  ;;  %v8033_v28 = vor.u32 %v11111_v18, %v8030_v19  ;;  %v11079_v56 = vld [vmem:[#allocation5 + $0x4ac] sm:$0xf] }
 0x27e   :  { %v10204_v40 = vld [vmem:[#allocation5 + $0x16a8] sm:$0xf]  ;;  %v9693_v50 = vor.u32 %v11535_v38, %v9692_v37  ;;  %5609 = vmatpush.bf16.msra.mxu1 %v10269_v31  ;;  %5622 = vmatpush.bf16.msra.mxu2 %v7713_v36  ;;  %v5383_v31 = vpop.f32.mrf.mxu3  ;;  %v10967_v37 = vld [vmem:[#allocation5 + $0x12c] sm:$0xf] }
 0x27f   :  { %v11663_v43 = vld [vmem:[#allocation5 + $0x16e4] sm:$0xf0]  ;;  %v7454_v38 = vld [vmem:[#allocation5 + $0x168] sm:$0xf0] }
 0x280   :  { %v10205_v51 = vor.u32 %v11663_v43, %v10204_v40  ;;  %v9628_v52 = vld [vmem:[#allocation5 + $0x1228] sm:$0xf]  ;;  %5635 = vmatpush.bf16.msra.mxu3 %v8225_v42  ;;  %5597 = vmatpush.bf16.msra.mxu0 %v9693_v50  ;;  %v11095_v40 = vld [vmem:[#allocation5 + $0x52c] sm:$0xf]  ;;  %v12254_v43 = vadd.f32 %v5383_v31, %v5371_v29  ;;  %v7457_v49 = vor.u32 %v10967_v37, %v7454_v38 }
 0x281   :  { %v11519_v53 = vld [vmem:[#allocation5 + $0x1264] sm:$0xf0]  ;;  %v7966_v42 = vld [vmem:[#allocation5 + $0x568] sm:$0xf0] }
 0x282   :  { %v10140_v54 = vld [vmem:[#allocation5 + $0x1628] sm:$0xf]  ;;  %v9629_v60 = vor.u32 %v11519_v53, %v9628_v52  ;;  %5610 = vmatpush.bf16.msra.mxu1 %v10205_v51  ;;  %5623 = vmatpush.bf16.msra.mxu2 %v7649_v14  ;;  %v5359_v52 = vpop.f32.mrf.mxu1  ;;  %v6030_v53 = vmax.f32 %v12204_v63, %v12254_v43  ;;  %v7902_v57 = vld [vmem:[#allocation5 + $0x4e8] sm:$0xf0]  ;;  %v10686_v43 = vld [vmem:[#allocation7 + $0x298] sm:$0xf0] }
 0x283   :  { %v11647_v3 = vld [vmem:[#allocation5 + $0x1664] sm:$0xf0]  ;;  %v7838_v13 = vld [vmem:[#allocation5 + $0x468] sm:$0xf0] }
 0x284   :  { %v10141_v1 = vor.u32 %v11647_v3, %v10140_v54  ;;  %v9564_v7 = vld [vmem:[#allocation5 + $0x11a8] sm:$0xf]  ;;  %5636 = vmatpush.bf16.msra.mxu3 %v8161_v62  ;;  %5598 = vmatpush.bf16.msra.mxu0 %v9629_v60  ;;  %v7969_v54 = vor.u32 %v11095_v40, %v7966_v42  ;;  %v10951_v3 = vld [vmem:[#allocation5 + $0xac] sm:$0xf] }
 0x285   :  { %v11503_v8 = vld [vmem:[#allocation5 + $0x11e4] sm:$0xf0]  ;;  %v11303_v17 = vld [vmem:[#allocation5 + $0xbac] sm:$0xf] }
 0x286   :  { %v10076_v9 = vld [vmem:[#allocation5 + $0x15a8] sm:$0xf]  ;;  %v9565_v20 = vor.u32 %v11503_v8, %v9564_v7  ;;  %5611 = vmatpush.bf16.msra.mxu1 %v10141_v1  ;;  %5624 = vmatpush.bf16.msra.mxu2 %v7585_v2  ;;  %v7393_v2 = vor.u32 %v10951_v3, %v7390_v55  ;;  %v10935_v7 = vld [vmem:[#allocation5 + $0x2c] sm:$0xf]  ;;  %v5372_v8 = vpop.f32.mrf.mxu2  ;;  %v5385_v16 = vpop.f32.mrf.mxu3 }
 0x287   :  { %v11631_v11 = vld [vmem:[#allocation5 + $0x15e4] sm:$0xf0]  ;;  %v8798_v18 = vld [vmem:[#allocation5 + $0xbe8] sm:$0xf0] }
 0x288   :  { %v10077_v21 = vor.u32 %v11631_v11, %v10076_v9  ;;  %v9500_v25 = vld [vmem:[#allocation5 + $0x1128] sm:$0xf]  ;;  %5637 = vmatpush.bf16.msra.mxu3 %v8097_v10  ;;  %5599 = vmatpush.bf16.msra.mxu0 %v9565_v20  ;;  %v7905_v9 = vor.u32 %v11079_v56, %v7902_v57  ;;  %v7326_v10 = vld [vmem:[#allocation5 + $0x68] sm:$0xf0]  ;;  %v8801_v31 = vor.u32 %v11303_v17, %v8798_v18 }
 0x289   :  { %v11487_v26 = vld [vmem:[#allocation5 + $0x1164] sm:$0xf0]  ;;  %v11063_v11 = vld [vmem:[#allocation5 + $0x42c] sm:$0xf] }
 0x28a   :  { %v10012_v27 = vld [vmem:[#allocation5 + $0x1528] sm:$0xf]  ;;  %v9501_v45 = vor.u32 %v11487_v26, %v9500_v25  ;;  %5612 = vmatpush.bf16.msra.mxu1 %v10077_v21  ;;  %5625 = vmatpush.bf16.msra.mxu2 %v7521_v23  ;;  %v11431_v19 = vld [vmem:[#allocation5 + $0xfac] sm:$0xf]  ;;  %v7329_v26 = vor.u32 %v10935_v7, %v7326_v10  ;;  %v7841_v29 = vor.u32 %v11063_v11, %v7838_v13 }
 0x28b   :  { %v11615_v36 = vld [vmem:[#allocation5 + $0x1564] sm:$0xf0]  ;;  %v9310_v21 = vld [vmem:[#allocation5 + $0xfe8] sm:$0xf0] }
 0x28c   :  { %v10013_v47 = vor.u32 %v11615_v36, %v10012_v27  ;;  %v9436_v50 = vld [vmem:[#allocation5 + $0x10a8] sm:$0xf]  ;;  %5638 = vmatpush.bf16.msra.mxu3 %v8033_v28  ;;  %5600 = vmatpush.bf16.msra.mxu0 %v9501_v45  ;;  %v11559_v23 = vld [vmem:[#allocation5 + $0x13ac] sm:$0xf]  ;;  %v9313_v36 = vor.u32 %v11431_v19, %v9310_v21  ;;  %v5396_v19 = vpop.f32.mrf.mxu0  ;;  %v5409_v21 = vpop.f32.mrf.mxu1 }
 0x28d   :  { %v11471_v51 = vld [vmem:[#allocation5 + $0x10e4] sm:$0xf0]  ;;  %v9822_v24 = vld [vmem:[#allocation5 + $0x13e8] sm:$0xf0] }
 0x28e   :  { %v9948_v14 = vld [vmem:[#allocation5 + $0x14a8] sm:$0xf]  ;;  %v9437_v59 = vor.u32 %v11471_v51, %v9436_v50  ;;  %5613 = vmatpush.bf16.msra.mxu1 %v10013_v47  ;;  %5626 = vmatpush.bf16.msra.mxu2 %v7457_v49  ;;  %v11687_v27 = vld [vmem:[#allocation5 + $0x17ac] sm:$0xf]  ;;  %v9825_v37 = vor.u32 %v11559_v23, %v9822_v24 }
 0x28f   :  { %v11599_v62 = vld [vmem:[#allocation5 + $0x14e4] sm:$0xf0]  ;;  %v10334_v28 = vld [vmem:[#allocation5 + $0x17e8] sm:$0xf0] }
 0x290   :  { %v9372_v60 = vld [vmem:[#allocation5 + $0x1028] sm:$0xf]  ;;  %v9949_v1 = vor.u32 %v11599_v62, %v9948_v14  ;;  %5639 = vmatpush.bf16.msra.mxu3 %v7969_v54  ;;  %5601 = vmatpush.bf16.msra.mxu0 %v9437_v59  ;;  %v11287_v38 = vld [vmem:[#allocation5 + $0xb2c] sm:$0xf]  ;;  %v10337_v45 = vor.u32 %v11687_v27, %v10334_v28  ;;  %v5410_v28 = vadd.f32 %v5409_v21, %v5396_v19 }
 0x291   :  { %v11455_v61 = vld [vmem:[#allocation5 + $0x1064] sm:$0xf0]  ;;  %v8734_v40 = vld [vmem:[#allocation5 + $0xb68] sm:$0xf0] }
 0x292   :  { %v9884_v4 = vld [vmem:[#allocation5 + $0x1428] sm:$0xf]  ;;  %v9373_v20 = vor.u32 %v11455_v61, %v9372_v60  ;;  %5614 = vmatpush.bf16.msra.mxu1 %v9949_v1  ;;  %5627 = vmatpush.bf16.msra.mxu2 %v7393_v2  ;;  %v11415_v42 = vld [vmem:[#allocation5 + $0xf2c] sm:$0xf]  ;;  %v8737_v14 = vor.u32 %v11287_v38, %v8734_v40 }
 0x293   :  { %v11583_v5 = vld [vmem:[#allocation5 + $0x1464] sm:$0xf0]  ;;  %v11543_v47 = vld [vmem:[#allocation5 + $0x132c] sm:$0xf]  ;;  %v9249_v52 = vor.u32 %v11415_v42, %v9246_v46 }
 0x294   :  { %v9885_v25 = vor.u32 %v11583_v5, %v9884_v4  ;;  %5640 = vmatpush.bf16.msra.mxu3 %v7905_v9  ;;  %5602 = vmatpush.bf16.msra.mxu0 %v9373_v20  ;;  %v9758_v49 = vld [vmem:[#allocation5 + $0x1368] sm:$0xf0] }
 0x295   :  { %v11671_v50 = vld [vmem:[#allocation5 + $0x172c] sm:$0xf]  ;;  %v9761_v54 = vor.u32 %v11543_v47, %v9758_v49 }
 0x296   :  { %5615 = vmatpush.bf16.msra.mxu1 %v9885_v25  ;;  %5628 = vmatpush.bf16.msra.mxu2 %v7329_v26  ;;  %v10270_v51 = vld [vmem:[#allocation5 + $0x1768] sm:$0xf0] }
 0x297   :  { %v11271_v62 = vld [vmem:[#allocation5 + $0xaac] sm:$0xf]  ;;  %v10273_v56 = vor.u32 %v11671_v50, %v10270_v51  ;;  %5603 = vmatmul.bf16.vlgmr.msra.gmra.mxu0 %v12149_v30 }
 0x298   :  { %5641 = vmatpush.bf16.msra.mxu3 %v7841_v29  ;;  %5647 = vmatpush.bf16.msrb.mxu0 %v8801_v31  ;;  %v8670_v3 = vld [vmem:[#allocation5 + $0xae8] sm:$0xf0] }
 0x299   :  { %v11399_v55 = vld [vmem:[#allocation5 + $0xeac] sm:$0xf]  ;;  %5616 = vmatmul.bf16.vlgmr.msra.gmra.mxu1 %v12151_v35  ;;  %5629 = vmatmul.bf16.vlgmr.msra.gmra.mxu2 %v12137_v33  ;;  %v8673_v2 = vor.u32 %v11271_v62, %v8670_v3  ;;  %v5422_v62 = vpop.f32.mrf.mxu2 }
 0x29a   :  { %5660 = vmatpush.bf16.msrb.mxu1 %v9313_v36  ;;  %5673 = vmatpush.bf16.msrb.mxu2 %v9825_v37  ;;  %v9182_v57 = vld [vmem:[#allocation5 + $0xee8] sm:$0xf0] }
 0x29b   :  { %v11527_v59 = vld [vmem:[#allocation5 + $0x12ac] sm:$0xf]  ;;  %5642 = vmatmul.bf16.vlgmr.msra.gmra.mxu3 %v12141_v41  ;;  %v9185_v4 = vor.u32 %v11399_v55, %v9182_v57  ;;  %v5398_v57 = vpop.f32.mrf.mxu0 }
 0x29c   :  { %5686 = vmatpush.bf16.msrb.mxu3 %v10337_v45  ;;  %v9694_v60 = vld [vmem:[#allocation5 + $0x12e8] sm:$0xf0]  ;;  %5648 = vmatpush.bf16.msrb.mxu0 %v8737_v14  ;;  %v11040_v57 = vld [vmem:[#allocation5 + $0x36c] sm:$0xf0] }
 0x29d   :  { %v11655_v61 = vld [vmem:[#allocation5 + $0x16ac] sm:$0xf]  ;;  %v9697_v5 = vor.u32 %v11527_v59, %v9694_v60  ;;  %v5435_v59 = vpop.f32.mrf.mxu3 }
 0x29e   :  { %v10206_v1 = vld [vmem:[#allocation5 + $0x16e8] sm:$0xf0]  ;;  %5661 = vmatpush.bf16.msrb.mxu1 %v9249_v52  ;;  %5674 = vmatpush.bf16.msrb.mxu2 %v9761_v54 }
 0x29f   :  { %v11255_v7 = vld [vmem:[#allocation5 + $0xa2c] sm:$0xf]  ;;  %v10209_v10 = vor.u32 %v11655_v61, %v10206_v1  ;;  %v5411_v61 = vpop.f32.mrf.mxu1 }
 0x2a0   :  { %v8606_v8 = vld [vmem:[#allocation5 + $0xa68] sm:$0xf0]  ;;  %5687 = vmatpush.bf16.msrb.mxu3 %v10273_v56  ;;  %5649 = vmatpush.bf16.msrb.mxu0 %v8673_v2  ;;  %v5423_v56 = vadd.f32 %v5422_v62, %v5410_v28  ;;  %v11168_v61 = vld [vmem:[#allocation5 + $0x76c] sm:$0xf0] }
 0x2a1   :  { %v11383_v9 = vld [vmem:[#allocation5 + $0xe2c] sm:$0xf]  ;;  %v8609_v20 = vor.u32 %v11255_v7, %v8606_v8 }
 0x2a2   :  { %v9118_v11 = vld [vmem:[#allocation5 + $0xe68] sm:$0xf0]  ;;  %5662 = vmatpush.bf16.msrb.mxu1 %v9185_v4  ;;  %5675 = vmatpush.bf16.msrb.mxu2 %v9697_v5  ;;  %v12262_v8 = vadd.f32 %v5435_v59, %v5423_v56  ;;  %v7716_v56 = vld [vmem:[#allocation5 + $0x330] sm:$0xf] }
 0x2a3   :  { %v11511_v13 = vld [vmem:[#allocation5 + $0x122c] sm:$0xf]  ;;  %v9121_v23 = vor.u32 %v11383_v9, %v9118_v11  ;;  %v8228_v59 = vld [vmem:[#allocation5 + $0x730] sm:$0xf] }
 0x2a4   :  { %v9630_v16 = vld [vmem:[#allocation5 + $0x1268] sm:$0xf0]  ;;  %5688 = vmatpush.bf16.msrb.mxu3 %v10209_v10  ;;  %5650 = vmatpush.bf16.msrb.mxu0 %v8609_v20 }
 0x2a5   :  { %v11639_v17 = vld [vmem:[#allocation5 + $0x162c] sm:$0xf]  ;;  %v9633_v24 = vor.u32 %v11511_v13, %v9630_v16 }
 0x2a6   :  { %v10142_v18 = vld [vmem:[#allocation5 + $0x1668] sm:$0xf0]  ;;  %5663 = vmatpush.bf16.msrb.mxu1 %v9121_v23 }
 0x2a7   :  { %v11239_v25 = vld [vmem:[#allocation5 + $0x9ac] sm:$0xf]  ;;  %v10145_v29 = vor.u32 %v11639_v17, %v10142_v18  ;;  %5676 = vmatpush.bf16.msrb.mxu2 %v9633_v24 }
 0x2a8   :  { %v8542_v26 = vld [vmem:[#allocation5 + $0x9e8] sm:$0xf0] }
 0x2a9   :  { %v11367_v27 = vld [vmem:[#allocation5 + $0xdac] sm:$0xf]  ;;  %v8545_v42 = vor.u32 %v11239_v25, %v8542_v26  ;;  %5689 = vmatpush.bf16.msrb.mxu3 %v10145_v29 }
 0x2aa   :  { %v9054_v31 = vld [vmem:[#allocation5 + $0xde8] sm:$0xf0] }
 0x2ab   :  { %v11495_v36 = vld [vmem:[#allocation5 + $0x11ac] sm:$0xf]  ;;  %v9057_v45 = vor.u32 %v11367_v27, %v9054_v31  ;;  %5651 = vmatpush.bf16.msrb.mxu0 %v8545_v42  ;;  %v5437_v42 = vpop.f32.mrf.mxu3 }
 0x2ac   :  { %v9566_v37 = vld [vmem:[#allocation5 + $0x11e8] sm:$0xf0]  ;;  %v11392_v42 = vld [vmem:[#allocation5 + $0xe6c] sm:$0xf0] }
 0x2ad   :  { %v11623_v38 = vld [vmem:[#allocation5 + $0x15ac] sm:$0xf]  ;;  %v9569_v46 = vor.u32 %v11495_v36, %v9566_v37  ;;  %5664 = vmatpush.bf16.msrb.mxu1 %v9057_v45  ;;  %v5424_v36 = vpop.f32.mrf.mxu2  ;;  %v7780_v37 = vld [vmem:[#allocation5 + $0x3b0] sm:$0xf] }
 0x2ae   :  { %v10078_v40 = vld [vmem:[#allocation5 + $0x15e8] sm:$0xf0]  ;;  %v11136_v36 = vld [vmem:[#allocation5 + $0x66c] sm:$0xf0] }
 0x2af   :  { %v11223_v47 = vld [vmem:[#allocation5 + $0x92c] sm:$0xf]  ;;  %v10081_v51 = vor.u32 %v11623_v38, %v10078_v40  ;;  %5677 = vmatpush.bf16.msrb.mxu2 %v9569_v46  ;;  %v11056_v38 = vld [vmem:[#allocation5 + $0x3ec] sm:$0xf0] }
 0x2b0   :  { %v8478_v49 = vld [vmem:[#allocation5 + $0x968] sm:$0xf0]  ;;  %v8292_v40 = vld [vmem:[#allocation5 + $0x7b0] sm:$0xf]  ;;  %v7781_v62 = vor.u32 %v11056_v38, %v7780_v37 }
 0x2b1   :  { %v11351_v50 = vld [vmem:[#allocation5 + $0xd2c] sm:$0xf]  ;;  %v8481_v60 = vor.u32 %v11223_v47, %v8478_v49  ;;  %5690 = vmatpush.bf16.msrb.mxu3 %v10081_v51  ;;  %v11184_v46 = vld [vmem:[#allocation5 + $0x7ec] sm:$0xf0] }
 0x2b2   :  { %v8990_v14 = vld [vmem:[#allocation5 + $0xd68] sm:$0xf0]  ;;  %v8804_v47 = vld [vmem:[#allocation5 + $0xbb0] sm:$0xf] }
 0x2b3   :  { %v11479_v52 = vld [vmem:[#allocation5 + $0x112c] sm:$0xf]  ;;  %v8993_v1 = vor.u32 %v11351_v50, %v8990_v14  ;;  %5652 = vmatpush.bf16.msrb.mxu0 %v8481_v60  ;;  %v11312_v49 = vld [vmem:[#allocation5 + $0xbec] sm:$0xf0] }
 0x2b4   :  { %v9502_v54 = vld [vmem:[#allocation5 + $0x1168] sm:$0xf0]  ;;  %v9316_v14 = vld [vmem:[#allocation5 + $0xfb0] sm:$0xf] }
 0x2b5   :  { %v11607_v3 = vld [vmem:[#allocation5 + $0x152c] sm:$0xf]  ;;  %v9505_v2 = vor.u32 %v11479_v52, %v9502_v54  ;;  %5665 = vmatpush.bf16.msrb.mxu1 %v8993_v1  ;;  %v11440_v52 = vld [vmem:[#allocation5 + $0xfec] sm:$0xf0] }
 0x2b6   :  { %v10014_v55 = vld [vmem:[#allocation5 + $0x1568] sm:$0xf0]  ;;  %v9317_v60 = vor.u32 %v11440_v52, %v9316_v14  ;;  %v8740_v1 = vld [vmem:[#allocation5 + $0xb30] sm:$0xf] }
 0x2b7   :  { %v11207_v4 = vld [vmem:[#allocation5 + $0x8ac] sm:$0xf]  ;;  %v10017_v9 = vor.u32 %v11607_v3, %v10014_v55  ;;  %5678 = vmatpush.bf16.msrb.mxu2 %v9505_v2  ;;  %v8293_v3 = vor.u32 %v11184_v46, %v8292_v40  ;;  %v8805_v55 = vor.u32 %v11312_v49, %v8804_v47  ;;  %v11296_v2 = vld [vmem:[#allocation5 + $0xb6c] sm:$0xf0]  ;;  %v5461_v49 = vpop.f32.mrf.mxu1 }
 0x2b8   :  { %v8414_v5 = vld [vmem:[#allocation5 + $0x8e8] sm:$0xf0]  ;;  %v8612_v37 = vld [vmem:[#allocation5 + $0xa30] sm:$0xf] }
 0x2b9   :  { %v11335_v7 = vld [vmem:[#allocation5 + $0xcac] sm:$0xf]  ;;  %v8417_v18 = vor.u32 %v11207_v4, %v8414_v5  ;;  %5691 = vmatpush.bf16.msrb.mxu3 %v10017_v9  ;;  %v9252_v4 = vld [vmem:[#allocation5 + $0xf30] sm:$0xf]  ;;  %v8229_v9 = vor.u32 %v11168_v61, %v8228_v59 }
 0x2ba   :  { %v8926_v10 = vld [vmem:[#allocation5 + $0xce8] sm:$0xf0]  ;;  %v11424_v5 = vld [vmem:[#allocation5 + $0xf6c] sm:$0xf0] }
 0x2bb   :  { %v11463_v11 = vld [vmem:[#allocation5 + $0x10ac] sm:$0xf]  ;;  %v8929_v21 = vor.u32 %v11335_v7, %v8926_v10  ;;  %5653 = vmatpush.bf16.msrb.mxu0 %v8417_v18  ;;  %v7717_v7 = vor.u32 %v11040_v57, %v7716_v56  ;;  %v8741_v10 = vor.u32 %v11296_v2, %v8740_v1  ;;  %v11152_v18 = vld [vmem:[#allocation5 + $0x6ec] sm:$0xf0] }
 0x2bc   :  { %v9438_v13 = vld [vmem:[#allocation5 + $0x10e8] sm:$0xf0]  ;;  %v11264_v38 = vld [vmem:[#allocation5 + $0xa6c] sm:$0xf0] }
 0x2bd   :  { %v11591_v16 = vld [vmem:[#allocation5 + $0x14ac] sm:$0xf]  ;;  %v9441_v23 = vor.u32 %v11463_v11, %v9438_v13  ;;  %5666 = vmatpush.bf16.msrb.mxu1 %v8929_v21  ;;  %v7652_v11 = vld [vmem:[#allocation5 + $0x2b0] sm:$0xf] }
 0x2be   :  { %v9950_v17 = vld [vmem:[#allocation5 + $0x14e8] sm:$0xf0]  ;;  %v11024_v13 = vld [vmem:[#allocation5 + $0x2ec] sm:$0xf0] }
 0x2bf   :  { %v11191_v19 = vld [vmem:[#allocation5 + $0x82c] sm:$0xf]  ;;  %v9953_v27 = vor.u32 %v11591_v16, %v9950_v17  ;;  %5679 = vmatpush.bf16.msrb.mxu2 %v9441_v23  ;;  %v8164_v16 = vld [vmem:[#allocation5 + $0x6b0] sm:$0xf]  ;;  %v9253_v17 = vor.u32 %v11424_v5, %v9252_v4 }
 0x2c0   :  { %v8350_v20 = vld [vmem:[#allocation5 + $0x868] sm:$0xf0]  ;;  %v9188_v21 = vld [vmem:[#allocation5 + $0xeb0] sm:$0xf] }
 0x2c1   :  { %v11319_v24 = vld [vmem:[#allocation5 + $0xc2c] sm:$0xf]  ;;  %v8353_v45 = vor.u32 %v11191_v19, %v8350_v20  ;;  %5692 = vmatpush.bf16.msrb.mxu3 %v9953_v27  ;;  %v8676_v19 = vld [vmem:[#allocation5 + $0xab0] sm:$0xf] }
 0x2c2   :  { %v8862_v25 = vld [vmem:[#allocation5 + $0xc68] sm:$0xf0]  ;;  %v11280_v20 = vld [vmem:[#allocation5 + $0xaec] sm:$0xf0] }
 0x2c3   :  { %v11447_v26 = vld [vmem:[#allocation5 + $0x102c] sm:$0xf]  ;;  %v8865_v50 = vor.u32 %v11319_v24, %v8862_v25  ;;  %5654 = vmatpush.bf16.msrb.mxu0 %v8353_v45  ;;  %v11408_v23 = vld [vmem:[#allocation5 + $0xeec] sm:$0xf0]  ;;  %v7653_v24 = vor.u32 %v11024_v13, %v7652_v11  ;;  %v8165_v25 = vor.u32 %v11152_v18, %v8164_v16  ;;  %v5448_v45 = vpop.f32.mrf.mxu0  ;;  %v5474_v13 = vpop.f32.mrf.mxu2 }
 0x2c4   :  { %v9374_v28 = vld [vmem:[#allocation5 + $0x1068] sm:$0xf0]  ;;  %v7588_v27 = vld [vmem:[#allocation5 + $0x230] sm:$0xf]  ;;  %v5449_v47 = vadd.f32 %v5448_v45, %v12262_v8  ;;  %v5487_v18 = vpop.f32.mrf.mxu3 }
 0x2c5   :  { %v11575_v29 = vld [vmem:[#allocation5 + $0x142c] sm:$0xf]  ;;  %v9377_v51 = vor.u32 %v11447_v26, %v9374_v28  ;;  %5667 = vmatpush.bf16.msrb.mxu1 %v8865_v50  ;;  %v8677_v26 = vor.u32 %v11280_v20, %v8676_v19  ;;  %v11008_v28 = vld [vmem:[#allocation5 + $0x26c] sm:$0xf0] }
 0x2c6   :  { %v9886_v31 = vld [vmem:[#allocation5 + $0x1468] sm:$0xf0]  ;;  %5655 = vmatmul.bf16.vlgmr.msrb.gmra.mxu0 %v12139_v34  ;;  %v9124_v40 = vld [vmem:[#allocation5 + $0xe30] sm:$0xf]  ;;  %v7589_v46 = vor.u32 %v11008_v28, %v7588_v27  ;;  %v12269_v57 = vadd.f32 %v5461_v49, %v5449_v47 }
 0x2c7   :  { %v9889_v54 = vor.u32 %v11575_v29, %v9886_v31  ;;  %5680 = vmatpush.bf16.msrb.mxu2 %v9377_v51  ;;  %5699 = vmatpush.bf16.msra.mxu0 %v7781_v62  ;;  %v8100_v29 = vld [vmem:[#allocation5 + $0x630] sm:$0xf]  ;;  %v9189_v31 = vor.u32 %v11408_v23, %v9188_v21  ;;  %v8613_v51 = vor.u32 %v11264_v38, %v8612_v37  ;;  %v5463_v23 = vpop.f32.mrf.mxu1  ;;  %v11779_v63 = vld [vmem:[#allocation7 + $0x28c] sm:$0xf] }
 0x2c8   :  { %5668 = vmatmul.bf16.vlgmr.msrb.gmra.mxu1 %v12145_v44  ;;  %v8101_v50 = vor.u32 %v11136_v36, %v8100_v29  ;;  %v7524_v14 = vld [vmem:[#allocation5 + $0x1b0] sm:$0xf]  ;;  %v9125_v62 = vor.u32 %v11392_v42, %v9124_v40  ;;  %v12271_v21 = vadd.f32 %v5487_v18, %v5474_v13 }
 0x2c9   :  { %5693 = vmatpush.bf16.msrb.mxu3 %v9889_v54  ;;  %5712 = vmatpush.bf16.msra.mxu1 %v8293_v3  ;;  %v10992_v52 = vld [vmem:[#allocation5 + $0x1ec] sm:$0xf0] }
 0x2ca   :  { %5681 = vmatmul.bf16.vlgmr.msrb.gmra.mxu2 %v12149_v30  ;;  %v8036_v54 = vld [vmem:[#allocation5 + $0x5b0] sm:$0xf]  ;;  %v7525_v61 = vor.u32 %v10992_v52, %v7524_v14 }
 0x2cb   :  { %5725 = vmatpush.bf16.msra.mxu2 %v8805_v55  ;;  %5700 = vmatpush.bf16.msra.mxu0 %v7717_v7  ;;  %v11120_v3 = vld [vmem:[#allocation5 + $0x5ec] sm:$0xf0]  ;;  %v5450_v19 = vpop.f32.mrf.mxu0 }
 0x2cc   :  { %5694 = vmatmul.bf16.vlgmr.msrb.gmra.mxu3 %v12151_v35  ;;  %v8548_v55 = vld [vmem:[#allocation5 + $0x9b0] sm:$0xf]  ;;  %v8037_v8 = vor.u32 %v11120_v3, %v8036_v54 }
 0x2cd   :  { %5738 = vmatpush.bf16.msra.mxu3 %v9317_v60  ;;  %5713 = vmatpush.bf16.msra.mxu1 %v8229_v9  ;;  %v11248_v56 = vld [vmem:[#allocation5 + $0x9ec] sm:$0xf0] }
 0x2ce   :  { %v9060_v59 = vld [vmem:[#allocation5 + $0xdb0] sm:$0xf]  ;;  %v8549_v1 = vor.u32 %v11248_v56, %v8548_v55  ;;  %v5476_v55 = vpop.f32.mrf.mxu2 }
 0x2cf   :  { %5726 = vmatpush.bf16.msra.mxu2 %v8741_v10  ;;  %5701 = vmatpush.bf16.msra.mxu0 %v7653_v24  ;;  %v11376_v60 = vld [vmem:[#allocation5 + $0xdec] sm:$0xf0] }
 0x2d0   :  { %v7460_v2 = vld [vmem:[#allocation5 + $0x130] sm:$0xf]  ;;  %v9061_v7 = vor.u32 %v11376_v60, %v9060_v59 }
 0x2d1   :  { %5739 = vmatpush.bf16.msra.mxu3 %v9253_v17  ;;  %5714 = vmatpush.bf16.msra.mxu1 %v8165_v25  ;;  %v10976_v4 = vld [vmem:[#allocation5 + $0x16c] sm:$0xf0] }
 0x2d2   :  { %v7972_v5 = vld [vmem:[#allocation5 + $0x530] sm:$0xf]  ;;  %v7461_v20 = vor.u32 %v10976_v4, %v7460_v2  ;;  %v11048_v2 = vld [vmem:[#allocation5 + $0x3b4] sm:$0xf] }
 0x2d3   :  { %5727 = vmatpush.bf16.msra.mxu2 %v8677_v26  ;;  %5702 = vmatpush.bf16.msra.mxu0 %v7589_v46  ;;  %v11104_v9 = vld [vmem:[#allocation5 + $0x56c] sm:$0xf0]  ;;  %v7782_v4 = vld [vmem:[#allocation5 + $0x3f0] sm:$0xf0] }
 0x2d4   :  { %v8484_v10 = vld [vmem:[#allocation5 + $0x930] sm:$0xf]  ;;  %v7973_v24 = vor.u32 %v11104_v9, %v7972_v5  ;;  %v11176_v9 = vld [vmem:[#allocation5 + $0x7b4] sm:$0xf] }
 0x2d5   :  { %5740 = vmatpush.bf16.msra.mxu3 %v9189_v31  ;;  %5715 = vmatpush.bf16.msra.mxu1 %v8101_v50  ;;  %v11232_v11 = vld [vmem:[#allocation5 + $0x96c] sm:$0xf0] }
 0x2d6   :  { %v8996_v16 = vld [vmem:[#allocation5 + $0xd30] sm:$0xf]  ;;  %v8485_v25 = vor.u32 %v11232_v11, %v8484_v10  ;;  %v8294_v10 = vld [vmem:[#allocation5 + $0x7f0] sm:$0xf0] }
 0x2d7   :  { %5728 = vmatpush.bf16.msra.mxu2 %v8613_v51  ;;  %v11360_v17 = vld [vmem:[#allocation5 + $0xd6c] sm:$0xf0]  ;;  %5703 = vmatpush.bf16.msra.mxu0 %v7525_v61  ;;  %v5489_v61 = vpop.f32.mrf.mxu3  ;;  %v8297_v23 = vor.u32 %v11176_v9, %v8294_v10 }
 0x2d8   :  { %v7396_v26 = vld [vmem:[#allocation5 + $0xb0] sm:$0xf]  ;;  %v8997_v29 = vor.u32 %v11360_v17, %v8996_v16  ;;  %v7785_v17 = vor.u32 %v11048_v2, %v7782_v4  ;;  %v11128_v61 = vld [vmem:[#allocation5 + $0x634] sm:$0xf]  ;;  %v5500_v2 = vpop.f32.mrf.mxu0 }
 0x2d9   :  { %5741 = vmatpush.bf16.msra.mxu3 %v9125_v62  ;;  %5716 = vmatpush.bf16.msra.mxu1 %v8037_v8  ;;  %v10960_v27 = vld [vmem:[#allocation5 + $0xec] sm:$0xf0] }
 0x2da   :  { %v7908_v28 = vld [vmem:[#allocation5 + $0x4b0] sm:$0xf]  ;;  %v7397_v42 = vor.u32 %v10960_v27, %v7396_v26  ;;  %v7718_v26 = vld [vmem:[#allocation5 + $0x370] sm:$0xf0] }
 0x2db   :  { %5729 = vmatpush.bf16.msra.mxu2 %v8549_v1  ;;  %v11088_v31 = vld [vmem:[#allocation5 + $0x4ec] sm:$0xf0]  ;;  %5704 = vmatpush.bf16.msra.mxu0 %v7461_v20  ;;  %v11160_v27 = vld [vmem:[#allocation5 + $0x734] sm:$0xf] }
 0x2dc   :  { %v8420_v36 = vld [vmem:[#allocation5 + $0x8b0] sm:$0xf]  ;;  %v7909_v47 = vor.u32 %v11088_v31, %v7908_v28  ;;  %v8230_v28 = vld [vmem:[#allocation5 + $0x770] sm:$0xf0] }
 0x2dd   :  { %5742 = vmatpush.bf16.msra.mxu3 %v9061_v7  ;;  %v11216_v37 = vld [vmem:[#allocation5 + $0x8ec] sm:$0xf0]  ;;  %5717 = vmatpush.bf16.msra.mxu1 %v7973_v24 }
 0x2de   :  { %v8932_v38 = vld [vmem:[#allocation5 + $0xcb0] sm:$0xf]  ;;  %v8421_v49 = vor.u32 %v11216_v37, %v8420_v36 }
 0x2df   :  { %v11344_v40 = vld [vmem:[#allocation5 + $0xcec] sm:$0xf0]  ;;  %5730 = vmatpush.bf16.msra.mxu2 %v8485_v25  ;;  %5705 = vmatpush.bf16.msra.mxu0 %v7397_v42  ;;  %v11032_v25 = vld [vmem:[#allocation5 + $0x334] sm:$0xf]  ;;  %v8233_v42 = vor.u32 %v11160_v27, %v8230_v28 }
 0x2e0   :  { %v7332_v45 = vld [vmem:[#allocation5 + $0x30] sm:$0xf]  ;;  %v8933_v52 = vor.u32 %v11344_v40, %v8932_v38  ;;  %v7721_v36 = vor.u32 %v11032_v25, %v7718_v26 }
 0x2e1   :  { %v10944_v46 = vld [vmem:[#allocation5 + $0x6c] sm:$0xf0]  ;;  %5743 = vmatpush.bf16.msra.mxu3 %v8997_v29  ;;  %5718 = vmatpush.bf16.msra.mxu1 %v7909_v47  ;;  %v7654_v47 = vld [vmem:[#allocation5 + $0x2f0] sm:$0xf0] }
 0x2e2   :  { %v7844_v50 = vld [vmem:[#allocation5 + $0x430] sm:$0xf]  ;;  %v7333_v8 = vor.u32 %v10944_v46, %v7332_v45  ;;  %v11016_v46 = vld [vmem:[#allocation5 + $0x2b4] sm:$0xf] }
 0x2e3   :  { %v11072_v51 = vld [vmem:[#allocation5 + $0x46c] sm:$0xf0]  ;;  %5731 = vmatpush.bf16.msra.mxu2 %v8421_v49  ;;  %v11144_v49 = vld [vmem:[#allocation5 + $0x6b4] sm:$0xf] }
 0x2e4   :  { %v8356_v14 = vld [vmem:[#allocation5 + $0x830] sm:$0xf]  ;;  %v7845_v5 = vor.u32 %v11072_v51, %v7844_v50  ;;  %5706 = vmatpush.bf16.msra.mxu0 %v7333_v8  ;;  %v8166_v50 = vld [vmem:[#allocation5 + $0x6f0] sm:$0xf0] }
 0x2e5   :  { %v11200_v54 = vld [vmem:[#allocation5 + $0x86c] sm:$0xf0]  ;;  %5744 = vmatpush.bf16.msra.mxu3 %v8933_v52  ;;  %v7657_v52 = vor.u32 %v11016_v46, %v7654_v47  ;;  %v8169_v55 = vor.u32 %v11144_v49, %v8166_v50  ;;  %v8102_v8 = vld [vmem:[#allocation5 + $0x670] sm:$0xf0] }
 0x2e6   :  { %v8868_v62 = vld [vmem:[#allocation5 + $0xc30] sm:$0xf]  ;;  %v8357_v7 = vor.u32 %v11200_v54, %v8356_v14  ;;  %5719 = vmatpush.bf16.msra.mxu1 %v7845_v5  ;;  %v11096_v46 = vld [vmem:[#allocation5 + $0x534] sm:$0xf] }
 0x2e7   :  { %v11328_v3 = vld [vmem:[#allocation5 + $0xc6c] sm:$0xf0]  ;;  %5707 = vmatmul.bf16.vlgmr.msra.gmra.mxu0 %v12137_v33  ;;  %v7974_v47 = vld [vmem:[#allocation5 + $0x570] sm:$0xf0] }
 0x2e8   :  { %v9828_v56 = vld [vmem:[#allocation5 + $0x13b0] sm:$0xf]  ;;  %v8869_v11 = vor.u32 %v11328_v3, %v8868_v62  ;;  %5732 = vmatpush.bf16.msra.mxu2 %v8357_v7 }
 0x2e9   :  { %v11568_v59 = vld [vmem:[#allocation5 + $0x13ec] sm:$0xf0]  ;;  %5720 = vmatmul.bf16.vlgmr.msra.gmra.mxu1 %v12141_v41 }
 0x2ea   :  { %v10340_v60 = vld [vmem:[#allocation5 + $0x17b0] sm:$0xf]  ;;  %v9829_v13 = vor.u32 %v11568_v59, %v9828_v56  ;;  %5745 = vmatpush.bf16.msra.mxu3 %v8869_v11  ;;  %v11000_v59 = vld [vmem:[#allocation5 + $0x234] sm:$0xf]  ;;  %v5501_v11 = vadd.f32 %v5500_v2, %v12271_v21 }
 0x2eb   :  { %v11696_v1 = vld [vmem:[#allocation5 + $0x17ec] sm:$0xf0]  ;;  %5733 = vmatmul.bf16.vlgmr.msra.gmra.mxu2 %v12139_v34 }
 0x2ec   :  { %v10341_v16 = vor.u32 %v11696_v1, %v10340_v60  ;;  %v9764_v18 = vld [vmem:[#allocation5 + $0x1330] sm:$0xf]  ;;  %5751 = vmatpush.bf16.msrb.mxu0 %v9829_v13  ;;  %5777 = vmatpush.bf16.msrb.mxu2 %v7785_v17  ;;  %v7590_v60 = vld [vmem:[#allocation5 + $0x270] sm:$0xf0]  ;;  %v5513_v13 = vpop.f32.mrf.mxu1 }
 0x2ed   :  { %v11552_v19 = vld [vmem:[#allocation5 + $0x136c] sm:$0xf0]  ;;  %5746 = vmatmul.bf16.vlgmr.msra.gmra.mxu3 %v12145_v44  ;;  %v7593_v5 = vor.u32 %v11000_v59, %v7590_v60  ;;  %v10952_v60 = vld [vmem:[#allocation5 + $0xb4] sm:$0xf] }
 0x2ee   :  { %v10276_v20 = vld [vmem:[#allocation5 + $0x1730] sm:$0xf]  ;;  %v9765_v29 = vor.u32 %v11552_v19, %v9764_v18  ;;  %5764 = vmatpush.bf16.msrb.mxu1 %v10341_v16  ;;  %5790 = vmatpush.bf16.msrb.mxu3 %v8297_v23  ;;  %v8105_v16 = vor.u32 %v11128_v61, %v8102_v8  ;;  %v10984_v18 = vld [vmem:[#allocation5 + $0x1b4] sm:$0xf] }
 0x2ef   :  { %v11680_v24 = vld [vmem:[#allocation5 + $0x176c] sm:$0xf0]  ;;  %v7526_v19 = vld [vmem:[#allocation5 + $0x1f0] sm:$0xf0] }
 0x2f0   :  { %v10277_v31 = vor.u32 %v11680_v24, %v10276_v20  ;;  %v9700_v37 = vld [vmem:[#allocation5 + $0x12b0] sm:$0xf]  ;;  %5752 = vmatpush.bf16.msrb.mxu0 %v9765_v29  ;;  %5778 = vmatpush.bf16.msrb.mxu2 %v7721_v36  ;;  %v11112_v20 = vld [vmem:[#allocation5 + $0x5b4] sm:$0xf]  ;;  %v5514_v24 = vadd.f32 %v5513_v13, %v5501_v11  ;;  %v7529_v27 = vor.u32 %v10984_v18, %v7526_v19  ;;  %v5526_v36 = vpop.f32.mrf.mxu2 }
 0x2f1   :  { %v11536_v38 = vld [vmem:[#allocation5 + $0x12ec] sm:$0xf0]  ;;  %v8038_v23 = vld [vmem:[#allocation5 + $0x5f0] sm:$0xf0] }
 0x2f2   :  { %v10212_v40 = vld [vmem:[#allocation5 + $0x16b0] sm:$0xf]  ;;  %v9701_v51 = vor.u32 %v11536_v38, %v9700_v37  ;;  %5765 = vmatpush.bf16.msrb.mxu1 %v10277_v31  ;;  %5791 = vmatpush.bf16.msrb.mxu3 %v8233_v42  ;;  %v8041_v21 = vor.u32 %v11112_v20, %v8038_v23  ;;  %v10968_v38 = vld [vmem:[#allocation5 + $0x134] sm:$0xf]  ;;  %v5527_v42 = vadd.f32 %v5526_v36, %v5514_v24 }
 0x2f3   :  { %v11664_v45 = vld [vmem:[#allocation5 + $0x16ec] sm:$0xf0]  ;;  %v7398_v61 = vld [vmem:[#allocation5 + $0xf0] sm:$0xf0] }
 0x2f4   :  { %v10213_v14 = vor.u32 %v11664_v45, %v10212_v40  ;;  %v9636_v54 = vld [vmem:[#allocation5 + $0x1230] sm:$0xf]  ;;  %5753 = vmatpush.bf16.msrb.mxu0 %v9701_v51  ;;  %5779 = vmatpush.bf16.msrb.mxu2 %v7657_v52  ;;  %v7462_v40 = vld [vmem:[#allocation5 + $0x170] sm:$0xf0]  ;;  %v5539_v45 = vpop.f32.mrf.mxu3  ;;  %v5502_v51 = vpop.f32.mrf.mxu0 }
 0x2f5   :  { %v11520_v62 = vld [vmem:[#allocation5 + $0x126c] sm:$0xf0]  ;;  %v12278_v50 = vadd.f32 %v5539_v45, %v5527_v42  ;;  %v7465_v52 = vor.u32 %v10968_v38, %v7462_v40  ;;  %v11080_v8 = vld [vmem:[#allocation5 + $0x4b4] sm:$0xf] }
 0x2f6   :  { %v10148_v3 = vld [vmem:[#allocation5 + $0x1630] sm:$0xf]  ;;  %v9637_v1 = vor.u32 %v11520_v62, %v9636_v54  ;;  %5766 = vmatpush.bf16.msrb.mxu1 %v10213_v14  ;;  %5792 = vmatpush.bf16.msrb.mxu3 %v8169_v55  ;;  %v5515_v55 = vpop.f32.mrf.mxu1  ;;  %v10936_v13 = vld [vmem:[#allocation5 + $0x34] sm:$0xf] }
 0x2f7   :  { %v11648_v56 = vld [vmem:[#allocation5 + $0x166c] sm:$0xf0]  ;;  %v7334_v18 = vld [vmem:[#allocation5 + $0x70] sm:$0xf0] }
 0x2f8   :  { %v10149_v4 = vor.u32 %v11648_v56, %v10148_v3  ;;  %v9572_v7 = vld [vmem:[#allocation5 + $0x11b0] sm:$0xf]  ;;  %5754 = vmatpush.bf16.msrb.mxu0 %v9637_v1  ;;  %5780 = vmatpush.bf16.msrb.mxu2 %v7593_v5  ;;  %v7977_v56 = vor.u32 %v11096_v46, %v7974_v47  ;;  %v7910_v1 = vld [vmem:[#allocation5 + $0x4f0] sm:$0xf0] }
 0x2f9   :  { %v11504_v9 = vld [vmem:[#allocation5 + $0x11ec] sm:$0xf0]  ;;  %v11064_v19 = vld [vmem:[#allocation5 + $0x434] sm:$0xf] }
 0x2fa   :  { %v10084_v10 = vld [vmem:[#allocation5 + $0x15b0] sm:$0xf]  ;;  %v9573_v25 = vor.u32 %v11504_v9, %v9572_v7  ;;  %5767 = vmatpush.bf16.msrb.mxu1 %v10149_v4  ;;  %5793 = vmatpush.bf16.msrb.mxu3 %v8105_v16  ;;  %v7401_v9 = vor.u32 %v10952_v60, %v7398_v61  ;;  %v5528_v16 = vpop.f32.mrf.mxu2  ;;  %v7846_v20 = vld [vmem:[#allocation5 + $0x470] sm:$0xf0] }
 0x2fb   :  { %v11632_v17 = vld [vmem:[#allocation5 + $0x15ec] sm:$0xf0]  ;;  %v11304_v24 = vld [vmem:[#allocation5 + $0xbb4] sm:$0xf]  ;;  %v7849_v40 = vor.u32 %v11064_v19, %v7846_v20 }
 0x2fc   :  { %v10085_v26 = vor.u32 %v11632_v17, %v10084_v10  ;;  %v9508_v28 = vld [vmem:[#allocation5 + $0x1130] sm:$0xf]  ;;  %5755 = vmatpush.bf16.msrb.mxu0 %v9573_v25  ;;  %5781 = vmatpush.bf16.msrb.mxu2 %v7529_v27  ;;  %v7913_v17 = vor.u32 %v11080_v8, %v7910_v1  ;;  %v5541_v23 = vpop.f32.mrf.mxu3  ;;  %v8806_v25 = vld [vmem:[#allocation5 + $0xbf0] sm:$0xf0] }
 0x2fd   :  { %v11488_v29 = vld [vmem:[#allocation5 + $0x116c] sm:$0xf0]  ;;  %v10342_v38 = vld [vmem:[#allocation5 + $0x17f0] sm:$0xf0]  ;;  %v8809_v42 = vor.u32 %v11304_v24, %v8806_v25 }
 0x2fe   :  { %v10020_v31 = vld [vmem:[#allocation5 + $0x1530] sm:$0xf]  ;;  %v9509_v49 = vor.u32 %v11488_v29, %v9508_v28  ;;  %5768 = vmatpush.bf16.msrb.mxu1 %v10085_v26  ;;  %5794 = vmatpush.bf16.msrb.mxu3 %v8041_v21  ;;  %v11432_v26 = vld [vmem:[#allocation5 + $0xfb4] sm:$0xf]  ;;  %v7337_v21 = vor.u32 %v10936_v13, %v7334_v18 }
 0x2ff   :  { %v11616_v37 = vld [vmem:[#allocation5 + $0x156c] sm:$0xf0]  ;;  %v9318_v28 = vld [vmem:[#allocation5 + $0xff0] sm:$0xf0] }
 0x300   :  { %v10021_v14 = vor.u32 %v11616_v37, %v10020_v31  ;;  %v9444_v54 = vld [vmem:[#allocation5 + $0x10b0] sm:$0xf]  ;;  %5756 = vmatpush.bf16.msrb.mxu0 %v9509_v49  ;;  %5782 = vmatpush.bf16.msrb.mxu2 %v7465_v52  ;;  %v11560_v29 = vld [vmem:[#allocation5 + $0x13b4] sm:$0xf]  ;;  %v9321_v45 = vor.u32 %v11432_v26, %v9318_v28  ;;  %v5552_v28 = vpop.f32.mrf.mxu0 }
 0x301   :  { %v11472_v62 = vld [vmem:[#allocation5 + $0x10ec] sm:$0xf0]  ;;  %v9830_v31 = vld [vmem:[#allocation5 + $0x13f0] sm:$0xf0] }
 0x302   :  { %v9956_v3 = vld [vmem:[#allocation5 + $0x14b0] sm:$0xf]  ;;  %v9445_v2 = vor.u32 %v11472_v62, %v9444_v54  ;;  %5769 = vmatpush.bf16.msrb.mxu1 %v10021_v14  ;;  %5795 = vmatpush.bf16.msrb.mxu3 %v7977_v56  ;;  %v11688_v37 = vld [vmem:[#allocation5 + $0x17b4] sm:$0xf]  ;;  %v9833_v46 = vor.u32 %v11560_v29, %v9830_v31  ;;  %v5565_v31 = vpop.f32.mrf.mxu1 }
 0x303   :  { %v11600_v59 = vld [vmem:[#allocation5 + $0x14ec] sm:$0xf0]  ;;  %v11288_v47 = vld [vmem:[#allocation5 + $0xb34] sm:$0xf]  ;;  %v10345_v14 = vor.u32 %v11688_v37, %v10342_v38 }
 0x304   :  { %v9380_v4 = vld [vmem:[#allocation5 + $0x1030] sm:$0xf]  ;;  %v9957_v7 = vor.u32 %v11600_v59, %v9956_v3  ;;  %5757 = vmatpush.bf16.msrb.mxu0 %v9445_v2  ;;  %5783 = vmatpush.bf16.msrb.mxu2 %v7401_v9  ;;  %v8742_v49 = vld [vmem:[#allocation5 + $0xb70] sm:$0xf0] }
 0x305   :  { %v11456_v5 = vld [vmem:[#allocation5 + $0x106c] sm:$0xf0]  ;;  %v11416_v51 = vld [vmem:[#allocation5 + $0xf34] sm:$0xf]  ;;  %v8745_v56 = vor.u32 %v11288_v47, %v8742_v49 }
 0x306   :  { %v9892_v10 = vld [vmem:[#allocation5 + $0x1430] sm:$0xf]  ;;  %v9381_v27 = vor.u32 %v11456_v5, %v9380_v4  ;;  %5770 = vmatpush.bf16.msrb.mxu1 %v9957_v7  ;;  %5796 = vmatpush.bf16.msrb.mxu3 %v7913_v17  ;;  %v9254_v52 = vld [vmem:[#allocation5 + $0xf70] sm:$0xf0] }
 0x307   :  { %v11584_v11 = vld [vmem:[#allocation5 + $0x146c] sm:$0xf0]  ;;  %v11544_v54 = vld [vmem:[#allocation5 + $0x1334] sm:$0xf]  ;;  %v9257_v59 = vor.u32 %v11416_v51, %v9254_v52 }
 0x308   :  { %v9893_v36 = vor.u32 %v11584_v11, %v9892_v10  ;;  %5758 = vmatpush.bf16.msrb.mxu0 %v9381_v27  ;;  %v9766_v62 = vld [vmem:[#allocation5 + $0x1370] sm:$0xf0]  ;;  %5784 = vmatpush.bf16.msrb.mxu2 %v7337_v21 }
 0x309   :  { %v11672_v3 = vld [vmem:[#allocation5 + $0x1734] sm:$0xf]  ;;  %v9769_v60 = vor.u32 %v11544_v54, %v9766_v62 }
 0x30a   :  { %5771 = vmatpush.bf16.msrb.mxu1 %v9893_v36  ;;  %v10278_v55 = vld [vmem:[#allocation5 + $0x1770] sm:$0xf0]  ;;  %5797 = vmatpush.bf16.msrb.mxu3 %v7849_v40 }
 0x30b   :  { %v11272_v61 = vld [vmem:[#allocation5 + $0xab4] sm:$0xf]  ;;  %5759 = vmatmul.bf16.vlgmr.msrb.gmra.mxu0 %v12149_v30  ;;  %v10281_v2 = vor.u32 %v11672_v3, %v10278_v55  ;;  %5785 = vmatmul.bf16.vlgmr.msrb.gmra.mxu2 %v12137_v33 }
 0x30c   :  { %5803 = vmatpush.bf16.msra.mxu0 %v8809_v42  ;;  %5829 = vmatpush.bf16.msra.mxu2 %v9833_v46  ;;  %v8678_v8 = vld [vmem:[#allocation5 + $0xaf0] sm:$0xf0]  ;;  %v5566_v42 = vadd.f32 %v5565_v31, %v5552_v28 }
 0x30d   :  { %v11400_v1 = vld [vmem:[#allocation5 + $0xeb4] sm:$0xf]  ;;  %5772 = vmatmul.bf16.vlgmr.msrb.gmra.mxu1 %v12151_v35  ;;  %v8681_v11 = vor.u32 %v11272_v61, %v8678_v8  ;;  %5798 = vmatmul.bf16.vlgmr.msrb.gmra.mxu3 %v12141_v41 }
 0x30e   :  { %5816 = vmatpush.bf16.msra.mxu1 %v9321_v45  ;;  %5842 = vmatpush.bf16.msra.mxu3 %v10345_v14  ;;  %v9190_v4 = vld [vmem:[#allocation5 + $0xef0] sm:$0xf0] }
 0x30f   :  { %v11528_v5 = vld [vmem:[#allocation5 + $0x12b4] sm:$0xf]  ;;  %v9193_v13 = vor.u32 %v11400_v1, %v9190_v4  ;;  %v5578_v1 = vpop.f32.mrf.mxu2 }
 0x310   :  { %v9702_v7 = vld [vmem:[#allocation5 + $0x12f0] sm:$0xf0]  ;;  %5804 = vmatpush.bf16.msra.mxu0 %v8745_v56  ;;  %5830 = vmatpush.bf16.msra.mxu2 %v9769_v60 }
 0x311   :  { %v11656_v9 = vld [vmem:[#allocation5 + $0x16b4] sm:$0xf]  ;;  %v9705_v16 = vor.u32 %v11528_v5, %v9702_v7  ;;  %v5579_v5 = vadd.f32 %v5578_v1, %v5566_v42  ;;  %v5554_v7 = vpop.f32.mrf.mxu0  ;;  %v11441_v1 = vld [vmem:[#allocation5 + $0xff4] sm:$0xf0] }
 0x312   :  { %v10214_v10 = vld [vmem:[#allocation5 + $0x16f0] sm:$0xf0]  ;;  %5817 = vmatpush.bf16.msra.mxu1 %v9257_v59  ;;  %5843 = vmatpush.bf16.msra.mxu3 %v10281_v2 }
 0x313   :  { %v11256_v17 = vld [vmem:[#allocation5 + $0xa34] sm:$0xf]  ;;  %v10217_v20 = vor.u32 %v11656_v9, %v10214_v10  ;;  %v5591_v9 = vpop.f32.mrf.mxu3 }
 0x314   :  { %v8614_v18 = vld [vmem:[#allocation5 + $0xa70] sm:$0xf0]  ;;  %5805 = vmatpush.bf16.msra.mxu0 %v8681_v11  ;;  %5831 = vmatpush.bf16.msra.mxu2 %v9705_v16  ;;  %v5567_v11 = vpop.f32.mrf.mxu1 }
 0x315   :  { %v11384_v19 = vld [vmem:[#allocation5 + $0xe34] sm:$0xf]  ;;  %v8617_v29 = vor.u32 %v11256_v17, %v8614_v18  ;;  %v8236_v11 = vld [vmem:[#allocation5 + $0x738] sm:$0xf] }
 0x316   :  { %v9126_v23 = vld [vmem:[#allocation5 + $0xe70] sm:$0xf0]  ;;  %5818 = vmatpush.bf16.msra.mxu1 %v9193_v13  ;;  %5844 = vmatpush.bf16.msra.mxu3 %v10217_v20  ;;  %v12284_v20 = vadd.f32 %v5591_v9, %v5579_v5  ;;  %v7724_v9 = vld [vmem:[#allocation5 + $0x338] sm:$0xf] }
 0x317   :  { %v11512_v24 = vld [vmem:[#allocation5 + $0x1234] sm:$0xf]  ;;  %v9129_v36 = vor.u32 %v11384_v19, %v9126_v23 }
 0x318   :  { %v9638_v25 = vld [vmem:[#allocation5 + $0x1270] sm:$0xf0]  ;;  %5806 = vmatpush.bf16.msra.mxu0 %v8617_v29 }
 0x319   :  { %v11640_v26 = vld [vmem:[#allocation5 + $0x1634] sm:$0xf]  ;;  %v9641_v21 = vor.u32 %v11512_v24, %v9638_v25 }
 0x31a   :  { %v10150_v27 = vld [vmem:[#allocation5 + $0x1670] sm:$0xf0]  ;;  %5819 = vmatpush.bf16.msra.mxu1 %v9129_v36 }
 0x31b   :  { %v11240_v37 = vld [vmem:[#allocation5 + $0x9b4] sm:$0xf]  ;;  %v10153_v45 = vor.u32 %v11640_v26, %v10150_v27  ;;  %5832 = vmatpush.bf16.msra.mxu2 %v9641_v21 }
 0x31c   :  { %v8550_v38 = vld [vmem:[#allocation5 + $0x9f0] sm:$0xf0] }
 0x31d   :  { %v11368_v40 = vld [vmem:[#allocation5 + $0xdb4] sm:$0xf]  ;;  %v8553_v52 = vor.u32 %v11240_v37, %v8550_v38  ;;  %5845 = vmatpush.bf16.msra.mxu3 %v10153_v45 }
 0x31e   :  { %v9062_v46 = vld [vmem:[#allocation5 + $0xdf0] sm:$0xf0] }
 0x31f   :  { %v11496_v47 = vld [vmem:[#allocation5 + $0x11b4] sm:$0xf]  ;;  %v9065_v54 = vor.u32 %v11368_v40, %v9062_v46  ;;  %5807 = vmatpush.bf16.msra.mxu0 %v8553_v52  ;;  %v11057_v52 = vld [vmem:[#allocation5 + $0x3f4] sm:$0xf0] }
 0x320   :  { %v9574_v49 = vld [vmem:[#allocation5 + $0x11f0] sm:$0xf0] }
 0x321   :  { %v11624_v51 = vld [vmem:[#allocation5 + $0x15b4] sm:$0xf]  ;;  %v9577_v62 = vor.u32 %v11496_v47, %v9574_v49  ;;  %5820 = vmatpush.bf16.msra.mxu1 %v9065_v54  ;;  %v8300_v54 = vld [vmem:[#allocation5 + $0x7b8] sm:$0xf] }
 0x322   :  { %v10086_v14 = vld [vmem:[#allocation5 + $0x15f0] sm:$0xf0] }
 0x323   :  { %v11224_v3 = vld [vmem:[#allocation5 + $0x934] sm:$0xf]  ;;  %v10089_v59 = vor.u32 %v11624_v51, %v10086_v14  ;;  %5833 = vmatpush.bf16.msra.mxu2 %v9577_v62  ;;  %v5580_v51 = vpop.f32.mrf.mxu2  ;;  %v7788_v14 = vld [vmem:[#allocation5 + $0x3b8] sm:$0xf]  ;;  %v5593_v62 = vpop.f32.mrf.mxu3 }
 0x324   :  { %v8486_v55 = vld [vmem:[#allocation5 + $0x970] sm:$0xf0]  ;;  %v8108_v51 = vld [vmem:[#allocation5 + $0x638] sm:$0xf] }
 0x325   :  { %v11352_v56 = vld [vmem:[#allocation5 + $0xd34] sm:$0xf]  ;;  %v8489_v10 = vor.u32 %v11224_v3, %v8486_v55  ;;  %5846 = vmatpush.bf16.msra.mxu3 %v10089_v59  ;;  %v11185_v55 = vld [vmem:[#allocation5 + $0x7f4] sm:$0xf0] }
 0x326   :  { %v8998_v60 = vld [vmem:[#allocation5 + $0xd70] sm:$0xf0]  ;;  %v11313_v59 = vld [vmem:[#allocation5 + $0xbf4] sm:$0xf0]  ;;  %v8301_v5 = vor.u32 %v11185_v55, %v8300_v54 }
 0x327   :  { %v11480_v61 = vld [vmem:[#allocation5 + $0x1134] sm:$0xf]  ;;  %v9001_v13 = vor.u32 %v11352_v56, %v8998_v60  ;;  %5808 = vmatpush.bf16.msra.mxu0 %v8489_v10  ;;  %v8812_v56 = vld [vmem:[#allocation5 + $0xbb8] sm:$0xf] }
 0x328   :  { %v9510_v8 = vld [vmem:[#allocation5 + $0x1170] sm:$0xf0]  ;;  %v8813_v7 = vor.u32 %v11313_v59, %v8812_v56  ;;  %v11041_v10 = vld [vmem:[#allocation5 + $0x374] sm:$0xf0]  ;;  %v5604_v56 = vpop.f32.mrf.mxu0 }
 0x329   :  { %v11608_v2 = vld [vmem:[#allocation5 + $0x1534] sm:$0xf]  ;;  %v9513_v16 = vor.u32 %v11480_v61, %v9510_v8  ;;  %5821 = vmatpush.bf16.msra.mxu1 %v9001_v13  ;;  %v9324_v8 = vld [vmem:[#allocation5 + $0xfb8] sm:$0xf] }
 0x32a   :  { %v10022_v4 = vld [vmem:[#allocation5 + $0x1570] sm:$0xf0]  ;;  %v9325_v13 = vor.u32 %v11441_v1, %v9324_v8  ;;  %v8620_v54 = vld [vmem:[#allocation5 + $0xa38] sm:$0xf] }
 0x32b   :  { %v11208_v17 = vld [vmem:[#allocation5 + $0x8b4] sm:$0xf]  ;;  %v10025_v23 = vor.u32 %v11608_v2, %v10022_v4  ;;  %5834 = vmatpush.bf16.msra.mxu2 %v9513_v16  ;;  %v7789_v4 = vor.u32 %v11057_v52, %v7788_v14  ;;  %v11169_v16 = vld [vmem:[#allocation5 + $0x774] sm:$0xf0] }
 0x32c   :  { %v8422_v18 = vld [vmem:[#allocation5 + $0x8f0] sm:$0xf0]  ;;  %v11137_v52 = vld [vmem:[#allocation5 + $0x674] sm:$0xf0] }
 0x32d   :  { %v11336_v19 = vld [vmem:[#allocation5 + $0xcb4] sm:$0xf]  ;;  %v8425_v29 = vor.u32 %v11208_v17, %v8422_v18  ;;  %5847 = vmatpush.bf16.msra.mxu3 %v10025_v23  ;;  %v8748_v17 = vld [vmem:[#allocation5 + $0xb38] sm:$0xf]  ;;  %v8109_v8 = vor.u32 %v11137_v52, %v8108_v51 }
 0x32e   :  { %v8934_v24 = vld [vmem:[#allocation5 + $0xcf0] sm:$0xf0]  ;;  %v11297_v18 = vld [vmem:[#allocation5 + $0xb74] sm:$0xf0] }
 0x32f   :  { %v11464_v25 = vld [vmem:[#allocation5 + $0x10b4] sm:$0xf]  ;;  %v8937_v21 = vor.u32 %v11336_v19, %v8934_v24  ;;  %5809 = vmatpush.bf16.msra.mxu0 %v8425_v29  ;;  %v9260_v19 = vld [vmem:[#allocation5 + $0xf38] sm:$0xf]  ;;  %v7725_v24 = vor.u32 %v11041_v10, %v7724_v9 }
 0x330   :  { %v9446_v26 = vld [vmem:[#allocation5 + $0x10f0] sm:$0xf0]  ;;  %v11425_v23 = vld [vmem:[#allocation5 + $0xf74] sm:$0xf0] }
 0x331   :  { %v11592_v27 = vld [vmem:[#allocation5 + $0x14b4] sm:$0xf]  ;;  %v9449_v37 = vor.u32 %v11464_v25, %v9446_v26  ;;  %5822 = vmatpush.bf16.msra.mxu1 %v8937_v21  ;;  %v8237_v25 = vor.u32 %v11169_v16, %v8236_v11  ;;  %v8749_v26 = vor.u32 %v11297_v18, %v8748_v17  ;;  %v8172_v29 = vld [vmem:[#allocation5 + $0x6b8] sm:$0xf] }
 0x332   :  { %v9958_v28 = vld [vmem:[#allocation5 + $0x14f0] sm:$0xf0]  ;;  %v8684_v21 = vld [vmem:[#allocation5 + $0xab8] sm:$0xf] }
 0x333   :  { %v11192_v31 = vld [vmem:[#allocation5 + $0x834] sm:$0xf]  ;;  %v9961_v45 = vor.u32 %v11592_v27, %v9958_v28  ;;  %5835 = vmatpush.bf16.msra.mxu2 %v9449_v37  ;;  %v7660_v27 = vld [vmem:[#allocation5 + $0x2b8] sm:$0xf] }
 0x334   :  { %v8358_v36 = vld [vmem:[#allocation5 + $0x870] sm:$0xf0]  ;;  %v11025_v28 = vld [vmem:[#allocation5 + $0x2f4] sm:$0xf0] }
 0x335   :  { %v11320_v38 = vld [vmem:[#allocation5 + $0xc34] sm:$0xf]  ;;  %v8361_v3 = vor.u32 %v11192_v31, %v8358_v36  ;;  %5848 = vmatpush.bf16.msra.mxu3 %v9961_v45  ;;  %v9261_v31 = vor.u32 %v11425_v23, %v9260_v19  ;;  %v11153_v36 = vld [vmem:[#allocation5 + $0x6f4] sm:$0xf0] }
 0x336   :  { %v8870_v40 = vld [vmem:[#allocation5 + $0xc70] sm:$0xf0]  ;;  %v11281_v37 = vld [vmem:[#allocation5 + $0xaf4] sm:$0xf0]  ;;  %v8173_v45 = vor.u32 %v11153_v36, %v8172_v29 }
 0x337   :  { %v11448_v42 = vld [vmem:[#allocation5 + $0x1034] sm:$0xf]  ;;  %v8873_v60 = vor.u32 %v11320_v38, %v8870_v40  ;;  %5810 = vmatpush.bf16.msra.mxu0 %v8361_v3  ;;  %v9196_v38 = vld [vmem:[#allocation5 + $0xeb8] sm:$0xf] }
 0x338   :  { %v9382_v46 = vld [vmem:[#allocation5 + $0x1070] sm:$0xf0]  ;;  %v11409_v40 = vld [vmem:[#allocation5 + $0xef4] sm:$0xf0] }
 0x339   :  { %v11576_v47 = vld [vmem:[#allocation5 + $0x1434] sm:$0xf]  ;;  %v9385_v61 = vor.u32 %v11448_v42, %v9382_v46  ;;  %5823 = vmatpush.bf16.msra.mxu1 %v8873_v60  ;;  %v7661_v42 = vor.u32 %v11025_v28, %v7660_v27  ;;  %v8685_v46 = vor.u32 %v11281_v37, %v8684_v21  ;;  %v9197_v14 = vor.u32 %v11409_v40, %v9196_v38  ;;  %v11265_v62 = vld [vmem:[#allocation5 + $0xa74] sm:$0xf0]  ;;  %v5643_v37 = vpop.f32.mrf.mxu3  ;;  %v5606_v38 = vpop.f32.mrf.mxu0 }
 0x33a   :  { %v9894_v49 = vld [vmem:[#allocation5 + $0x1470] sm:$0xf0]  ;;  %5811 = vmatmul.bf16.vlgmr.msra.gmra.mxu0 %v12139_v34  ;;  %v9132_v3 = vld [vmem:[#allocation5 + $0xe38] sm:$0xf]  ;;  %v5605_v60 = vadd.f32 %v5604_v56, %v12284_v20  ;;  %v8621_v1 = vor.u32 %v11265_v62, %v8620_v54 }
 0x33b   :  { %v9897_v2 = vor.u32 %v11576_v47, %v9894_v49  ;;  %5836 = vmatpush.bf16.msra.mxu2 %v9385_v61  ;;  %5855 = vmatpush.bf16.msrb.mxu0 %v7789_v4  ;;  %v7596_v47 = vld [vmem:[#allocation5 + $0x238] sm:$0xf]  ;;  %v5617_v61 = vpop.f32.mrf.mxu1 }
 0x33c   :  { %5824 = vmatmul.bf16.vlgmr.msra.gmra.mxu1 %v12145_v44  ;;  %v11009_v49 = vld [vmem:[#allocation5 + $0x274] sm:$0xf0] }
 0x33d   :  { %5849 = vmatpush.bf16.msra.mxu3 %v9897_v2  ;;  %5868 = vmatpush.bf16.msrb.mxu1 %v8301_v5  ;;  %v11393_v55 = vld [vmem:[#allocation5 + $0xe74] sm:$0xf0]  ;;  %v7597_v59 = vor.u32 %v11009_v49, %v7596_v47 }
 0x33e   :  { %5837 = vmatmul.bf16.vlgmr.msra.gmra.mxu2 %v12149_v30  ;;  %v7532_v2 = vld [vmem:[#allocation5 + $0x1b8] sm:$0xf] }
 0x33f   :  { %5881 = vmatpush.bf16.msrb.mxu2 %v8813_v7  ;;  %5856 = vmatpush.bf16.msrb.mxu0 %v7725_v24  ;;  %v10993_v4 = vld [vmem:[#allocation5 + $0x1f4] sm:$0xf0]  ;;  %v9133_v7 = vor.u32 %v11393_v55, %v9132_v3 }
 0x340   :  { %5850 = vmatmul.bf16.vlgmr.msra.gmra.mxu3 %v12151_v35  ;;  %v8044_v5 = vld [vmem:[#allocation5 + $0x5b8] sm:$0xf]  ;;  %v7533_v18 = vor.u32 %v10993_v4, %v7532_v2 }
 0x341   :  { %5894 = vmatpush.bf16.msrb.mxu3 %v9325_v13  ;;  %5869 = vmatpush.bf16.msrb.mxu1 %v8237_v25  ;;  %v11121_v9 = vld [vmem:[#allocation5 + $0x5f4] sm:$0xf0]  ;;  %v12291_v13 = vadd.f32 %v5617_v61, %v5605_v60 }
 0x342   :  { %v8556_v10 = vld [vmem:[#allocation5 + $0x9b8] sm:$0xf]  ;;  %v8045_v20 = vor.u32 %v11121_v9, %v8044_v5 }
 0x343   :  { %5882 = vmatpush.bf16.msrb.mxu2 %v8749_v26  ;;  %5857 = vmatpush.bf16.msrb.mxu0 %v7661_v42  ;;  %v11249_v11 = vld [vmem:[#allocation5 + $0x9f4] sm:$0xf0] }
 0x344   :  { %v9068_v16 = vld [vmem:[#allocation5 + $0xdb8] sm:$0xf]  ;;  %v8557_v19 = vor.u32 %v11249_v11, %v8556_v10 }
 0x345   :  { %5895 = vmatpush.bf16.msrb.mxu3 %v9261_v31  ;;  %5870 = vmatpush.bf16.msrb.mxu1 %v8173_v45  ;;  %v11377_v17 = vld [vmem:[#allocation5 + $0xdf4] sm:$0xf0]  ;;  %v5630_v31 = vpop.f32.mrf.mxu2  ;;  %v5619_v45 = vpop.f32.mrf.mxu1 }
 0x346   :  { %v7468_v23 = vld [vmem:[#allocation5 + $0x138] sm:$0xf]  ;;  %v9069_v26 = vor.u32 %v11377_v17, %v9068_v16  ;;  %v12293_v42 = vadd.f32 %v5643_v37, %v5630_v31  ;;  %v8302_v31 = vld [vmem:[#allocation5 + $0x7f8] sm:$0xf0] }
 0x347   :  { %5883 = vmatpush.bf16.msrb.mxu2 %v8685_v46  ;;  %5858 = vmatpush.bf16.msrb.mxu0 %v7597_v59  ;;  %v10977_v24 = vld [vmem:[#allocation5 + $0x174] sm:$0xf0] }
 0x348   :  { %v7980_v25 = vld [vmem:[#allocation5 + $0x538] sm:$0xf]  ;;  %v7469_v40 = vor.u32 %v10977_v24, %v7468_v23 }
 0x349   :  { %5896 = vmatpush.bf16.msrb.mxu3 %v9197_v14  ;;  %5871 = vmatpush.bf16.msrb.mxu1 %v8109_v8  ;;  %v11105_v27 = vld [vmem:[#allocation5 + $0x574] sm:$0xf0] }
 0x34a   :  { %v8492_v28 = vld [vmem:[#allocation5 + $0x938] sm:$0xf]  ;;  %v7981_v46 = vor.u32 %v11105_v27, %v7980_v25  ;;  %v11049_v25 = vld [vmem:[#allocation5 + $0x3bc] sm:$0xf] }
 0x34b   :  { %5884 = vmatpush.bf16.msrb.mxu2 %v8621_v1  ;;  %v11233_v29 = vld [vmem:[#allocation5 + $0x974] sm:$0xf0]  ;;  %5859 = vmatpush.bf16.msrb.mxu0 %v7533_v18 }
 0x34c   :  { %v9004_v36 = vld [vmem:[#allocation5 + $0xd38] sm:$0xf]  ;;  %v8493_v47 = vor.u32 %v11233_v29, %v8492_v28  ;;  %v11177_v29 = vld [vmem:[#allocation5 + $0x7bc] sm:$0xf] }
 0x34d   :  { %5897 = vmatpush.bf16.msrb.mxu3 %v9133_v7  ;;  %v11361_v21 = vld [vmem:[#allocation5 + $0xd74] sm:$0xf0]  ;;  %5872 = vmatpush.bf16.msrb.mxu1 %v8045_v20  ;;  %v5632_v16 = vpop.f32.mrf.mxu2 }
 0x34e   :  { %v7404_v49 = vld [vmem:[#allocation5 + $0xb8] sm:$0xf]  ;;  %v9005_v52 = vor.u32 %v11361_v21, %v9004_v36 }
 0x34f   :  { %5885 = vmatpush.bf16.msrb.mxu2 %v8557_v19  ;;  %v10961_v51 = vld [vmem:[#allocation5 + $0xf4] sm:$0xf0]  ;;  %5860 = vmatpush.bf16.msrb.mxu0 %v7469_v40  ;;  %v5645_v19 = vpop.f32.mrf.mxu3 }
 0x350   :  { %v7916_v14 = vld [vmem:[#allocation5 + $0x4b8] sm:$0xf]  ;;  %v7405_v59 = vor.u32 %v10961_v51, %v7404_v49  ;;  %v11033_v51 = vld [vmem:[#allocation5 + $0x33c] sm:$0xf] }
 0x351   :  { %5898 = vmatpush.bf16.msrb.mxu3 %v9069_v26  ;;  %v11089_v54 = vld [vmem:[#allocation5 + $0x4f4] sm:$0xf0]  ;;  %5873 = vmatpush.bf16.msrb.mxu1 %v7981_v46  ;;  %v7790_v26 = vld [vmem:[#allocation5 + $0x3f8] sm:$0xf0] }
 0x352   :  { %v8428_v62 = vld [vmem:[#allocation5 + $0x8b8] sm:$0xf]  ;;  %v7917_v8 = vor.u32 %v11089_v54, %v7916_v14  ;;  %v7793_v38 = vor.u32 %v11049_v25, %v7790_v26  ;;  %v7726_v14 = vld [vmem:[#allocation5 + $0x378] sm:$0xf0] }
 0x353   :  { %v11217_v3 = vld [vmem:[#allocation5 + $0x8f4] sm:$0xf0]  ;;  %5886 = vmatpush.bf16.msrb.mxu2 %v8493_v47  ;;  %5861 = vmatpush.bf16.msrb.mxu0 %v7405_v59  ;;  %v8305_v47 = vor.u32 %v11177_v29, %v8302_v31  ;;  %v8238_v54 = vld [vmem:[#allocation5 + $0x778] sm:$0xf0] }
 0x354   :  { %v8940_v55 = vld [vmem:[#allocation5 + $0xcb8] sm:$0xf]  ;;  %v8429_v1 = vor.u32 %v11217_v3, %v8428_v62  ;;  %v11001_v19 = vld [vmem:[#allocation5 + $0x23c] sm:$0xf] }
 0x355   :  { %v11345_v56 = vld [vmem:[#allocation5 + $0xcf4] sm:$0xf0]  ;;  %5899 = vmatpush.bf16.msrb.mxu3 %v9005_v52  ;;  %5874 = vmatpush.bf16.msrb.mxu1 %v7917_v8  ;;  %v11161_v52 = vld [vmem:[#allocation5 + $0x73c] sm:$0xf] }
 0x356   :  { %v7340_v60 = vld [vmem:[#allocation5 + $0x38] sm:$0xf]  ;;  %v8941_v7 = vor.u32 %v11345_v56, %v8940_v55  ;;  %v7729_v55 = vor.u32 %v11033_v51, %v7726_v14  ;;  %v8110_v25 = vld [vmem:[#allocation5 + $0x678] sm:$0xf0] }
 0x357   :  { %v10945_v61 = vld [vmem:[#allocation5 + $0x74] sm:$0xf0]  ;;  %5887 = vmatpush.bf16.msrb.mxu2 %v8429_v1  ;;  %v11017_v1 = vld [vmem:[#allocation5 + $0x2bc] sm:$0xf] }
 0x358   :  { %v7852_v2 = vld [vmem:[#allocation5 + $0x438] sm:$0xf]  ;;  %v7341_v23 = vor.u32 %v10945_v61, %v7340_v60  ;;  %v8241_v61 = vor.u32 %v11161_v52, %v8238_v54  ;;  %v8046_v51 = vld [vmem:[#allocation5 + $0x5f8] sm:$0xf0] }
 0x359   :  { %v11073_v4 = vld [vmem:[#allocation5 + $0x474] sm:$0xf0]  ;;  %5900 = vmatpush.bf16.msrb.mxu3 %v8941_v7 }
 0x35a   :  { %v8364_v5 = vld [vmem:[#allocation5 + $0x838] sm:$0xf]  ;;  %v7853_v27 = vor.u32 %v11073_v4, %v7852_v2  ;;  %5862 = vmatpush.bf16.msrb.mxu0 %v7341_v23  ;;  %v7662_v2 = vld [vmem:[#allocation5 + $0x2f8] sm:$0xf0] }
 0x35b   :  { %v11201_v9 = vld [vmem:[#allocation5 + $0x874] sm:$0xf0]  ;;  %v11145_v4 = vld [vmem:[#allocation5 + $0x6bc] sm:$0xf] }
 0x35c   :  { %v8876_v10 = vld [vmem:[#allocation5 + $0xc38] sm:$0xf]  ;;  %v8365_v28 = vor.u32 %v11201_v9, %v8364_v5  ;;  %5875 = vmatpush.bf16.msrb.mxu1 %v7853_v27  ;;  %v8174_v5 = vld [vmem:[#allocation5 + $0x6f8] sm:$0xf0]  ;;  %v5656_v27 = vpop.f32.mrf.mxu0 }
 0x35d   :  { %v11329_v11 = vld [vmem:[#allocation5 + $0xc74] sm:$0xf0]  ;;  %5863 = vmatmul.bf16.vlgmr.msrb.gmra.mxu0 %v12137_v33  ;;  %v7598_v23 = vld [vmem:[#allocation5 + $0x278] sm:$0xf0] }
 0x35e   :  { %v9836_v17 = vld [vmem:[#allocation5 + $0x13b8] sm:$0xf]  ;;  %v8877_v36 = vor.u32 %v11329_v11, %v8876_v10  ;;  %5888 = vmatpush.bf16.msrb.mxu2 %v8365_v28  ;;  %v7665_v10 = vor.u32 %v11017_v1, %v7662_v2  ;;  %v7601_v29 = vor.u32 %v11001_v19, %v7598_v23  ;;  %v5695_v2 = vpop.f32.mrf.mxu3 }
 0x35f   :  { %v11569_v18 = vld [vmem:[#allocation5 + $0x13f4] sm:$0xf0]  ;;  %5876 = vmatmul.bf16.vlgmr.msrb.gmra.mxu1 %v12141_v41 }
 0x360   :  { %v10348_v20 = vld [vmem:[#allocation5 + $0x17b8] sm:$0xf]  ;;  %v9837_v21 = vor.u32 %v11569_v18, %v9836_v17  ;;  %5901 = vmatpush.bf16.msrb.mxu3 %v8877_v36  ;;  %v8177_v18 = vor.u32 %v11145_v4, %v8174_v5  ;;  %v11097_v4 = vld [vmem:[#allocation5 + $0x53c] sm:$0xf] }
 0x361   :  { %v11697_v24 = vld [vmem:[#allocation5 + $0x17f4] sm:$0xf0]  ;;  %5889 = vmatmul.bf16.vlgmr.msrb.gmra.mxu2 %v12139_v34  ;;  %v7982_v5 = vld [vmem:[#allocation5 + $0x578] sm:$0xf0] }
 0x362   :  { %v10349_v37 = vor.u32 %v11697_v24, %v10348_v20  ;;  %v9772_v40 = vld [vmem:[#allocation5 + $0x1338] sm:$0xf]  ;;  %5907 = vmatpush.bf16.msra.mxu0 %v9837_v21  ;;  %5933 = vmatpush.bf16.msra.mxu2 %v7793_v38  ;;  %v11129_v24 = vld [vmem:[#allocation5 + $0x63c] sm:$0xf]  ;;  %v5669_v38 = vpop.f32.mrf.mxu1  ;;  %v7985_v23 = vor.u32 %v11097_v4, %v7982_v5 }
 0x363   :  { %v11553_v45 = vld [vmem:[#allocation5 + $0x1374] sm:$0xf0]  ;;  %5902 = vmatmul.bf16.vlgmr.msrb.gmra.mxu3 %v12145_v44 }
 0x364   :  { %v10284_v46 = vld [vmem:[#allocation5 + $0x1738] sm:$0xf]  ;;  %v9773_v62 = vor.u32 %v11553_v45, %v9772_v40  ;;  %5920 = vmatpush.bf16.msra.mxu1 %v10349_v37  ;;  %5946 = vmatpush.bf16.msra.mxu3 %v8305_v47  ;;  %v5657_v37 = vadd.f32 %v5656_v27, %v12293_v42  ;;  %v8113_v40 = vor.u32 %v11129_v24, %v8110_v25  ;;  %v7534_v47 = vld [vmem:[#allocation5 + $0x1f8] sm:$0xf0] }
 0x365   :  { %v11681_v49 = vld [vmem:[#allocation5 + $0x1774] sm:$0xf0]  ;;  %v10953_v25 = vld [vmem:[#allocation5 + $0xbc] sm:$0xf] }
 0x366   :  { %v10285_v3 = vor.u32 %v11681_v49, %v10284_v46  ;;  %v9708_v56 = vld [vmem:[#allocation5 + $0x12b8] sm:$0xf]  ;;  %5908 = vmatpush.bf16.msra.mxu0 %v9773_v62  ;;  %5934 = vmatpush.bf16.msra.mxu2 %v7729_v55  ;;  %v10985_v46 = vld [vmem:[#allocation5 + $0x1bc] sm:$0xf]  ;;  %v5670_v14 = vadd.f32 %v5669_v38, %v5657_v37 }
 0x367   :  { %v11537_v59 = vld [vmem:[#allocation5 + $0x12f4] sm:$0xf0]  ;;  %v11113_v49 = vld [vmem:[#allocation5 + $0x5bc] sm:$0xf]  ;;  %v7537_v62 = vor.u32 %v10985_v46, %v7534_v47 }
 0x368   :  { %v10220_v60 = vld [vmem:[#allocation5 + $0x16b8] sm:$0xf]  ;;  %v9709_v7 = vor.u32 %v11537_v59, %v9708_v56  ;;  %5921 = vmatpush.bf16.msra.mxu1 %v10285_v3  ;;  %5947 = vmatpush.bf16.msra.mxu3 %v8241_v61  ;;  %v5682_v59 = vpop.f32.mrf.mxu2  ;;  %v8049_v42 = vor.u32 %v11113_v49, %v8046_v51  ;;  %v10969_v61 = vld [vmem:[#allocation5 + $0x13c] sm:$0xf] }
 0x369   :  { %v11665_v8 = vld [vmem:[#allocation5 + $0x16f4] sm:$0xf0]  ;;  %v5683_v1 = vadd.f32 %v5682_v59, %v5670_v14  ;;  %v11081_v27 = vld [vmem:[#allocation5 + $0x4bc] sm:$0xf] }
 0x36a   :  { %v10221_v9 = vor.u32 %v11665_v8, %v10220_v60  ;;  %v9644_v11 = vld [vmem:[#allocation5 + $0x1238] sm:$0xf]  ;;  %5909 = vmatpush.bf16.msra.mxu0 %v9709_v7  ;;  %5935 = vmatpush.bf16.msra.mxu2 %v7665_v10  ;;  %v7470_v8 = vld [vmem:[#allocation5 + $0x178] sm:$0xf0]  ;;  %v5658_v10 = vpop.f32.mrf.mxu0  ;;  %v5671_v19 = vpop.f32.mrf.mxu1 }
 0x36b   :  { %v11521_v16 = vld [vmem:[#allocation5 + $0x1274] sm:$0xf0]  ;;  %v7342_v49 = vld [vmem:[#allocation5 + $0x78] sm:$0xf0] }
 0x36c   :  { %v10156_v17 = vld [vmem:[#allocation5 + $0x1638] sm:$0xf]  ;;  %v9645_v26 = vor.u32 %v11521_v16, %v9644_v11  ;;  %5922 = vmatpush.bf16.msra.mxu1 %v10221_v9  ;;  %5948 = vmatpush.bf16.msra.mxu3 %v8177_v18  ;;  %v12300_v9 = vadd.f32 %v5695_v2, %v5683_v1  ;;  %v7473_v16 = vor.u32 %v10969_v61, %v7470_v8  ;;  %v11065_v51 = vld [vmem:[#allocation5 + $0x43c] sm:$0xf] }
 0x36d   :  { %v11649_v20 = vld [vmem:[#allocation5 + $0x1674] sm:$0xf0]  ;;  %v7854_v14 = vld [vmem:[#allocation5 + $0x478] sm:$0xf0] }
 0x36e   :  { %v10157_v28 = vor.u32 %v11649_v20, %v10156_v17  ;;  %v9580_v31 = vld [vmem:[#allocation5 + $0x11b8] sm:$0xf]  ;;  %5910 = vmatpush.bf16.msra.mxu0 %v9645_v26  ;;  %5936 = vmatpush.bf16.msra.mxu2 %v7601_v29  ;;  %v7406_v26 = vld [vmem:[#allocation5 + $0xf8] sm:$0xf0]  ;;  %v7857_v2 = vor.u32 %v11065_v51, %v7854_v14 }
 0x36f   :  { %v11505_v36 = vld [vmem:[#allocation5 + $0x11f4] sm:$0xf0]  ;;  %v7409_v37 = vor.u32 %v10953_v25, %v7406_v26  ;;  %v11561_v59 = vld [vmem:[#allocation5 + $0x13bc] sm:$0xf] }
 0x370   :  { %v10092_v21 = vld [vmem:[#allocation5 + $0x15b8] sm:$0xf]  ;;  %v9581_v52 = vor.u32 %v11505_v36, %v9580_v31  ;;  %5923 = vmatpush.bf16.msra.mxu1 %v10157_v28  ;;  %5949 = vmatpush.bf16.msra.mxu3 %v8113_v40  ;;  %v7918_v28 = vld [vmem:[#allocation5 + $0x4f8] sm:$0xf0]  ;;  %v5684_v46 = vpop.f32.mrf.mxu2 }
 0x371   :  { %v11633_v45 = vld [vmem:[#allocation5 + $0x15f4] sm:$0xf0]  ;;  %v7921_v47 = vor.u32 %v11081_v27, %v7918_v28  ;;  %v11689_v8 = vld [vmem:[#allocation5 + $0x17bc] sm:$0xf] }
 0x372   :  { %v10093_v54 = vor.u32 %v11633_v45, %v10092_v21  ;;  %v9516_v3 = vld [vmem:[#allocation5 + $0x1138] sm:$0xf]  ;;  %5911 = vmatpush.bf16.msra.mxu0 %v9581_v52  ;;  %5937 = vmatpush.bf16.msra.mxu2 %v7537_v62  ;;  %v10937_v45 = vld [vmem:[#allocation5 + $0x3c] sm:$0xf]  ;;  %v5697_v52 = vpop.f32.mrf.mxu3 }
 0x373   :  { %v11489_v55 = vld [vmem:[#allocation5 + $0x1174] sm:$0xf0]  ;;  %v8814_v62 = vld [vmem:[#allocation5 + $0xbf8] sm:$0xf0]  ;;  %v7345_v61 = vor.u32 %v10937_v45, %v7342_v49 }
 0x374   :  { %v10028_v56 = vld [vmem:[#allocation5 + $0x1538] sm:$0xf]  ;;  %v9517_v7 = vor.u32 %v11489_v55, %v9516_v3  ;;  %5924 = vmatpush.bf16.msra.mxu1 %v10093_v54  ;;  %5950 = vmatpush.bf16.msra.mxu3 %v8049_v42  ;;  %v11305_v54 = vld [vmem:[#allocation5 + $0xbbc] sm:$0xf] }
 0x375   :  { %v11617_v60 = vld [vmem:[#allocation5 + $0x1574] sm:$0xf0]  ;;  %v11433_v3 = vld [vmem:[#allocation5 + $0xfbc] sm:$0xf]  ;;  %v8817_v4 = vor.u32 %v11305_v54, %v8814_v62 }
 0x376   :  { %v10029_v11 = vor.u32 %v11617_v60, %v10028_v56  ;;  %v9452_v17 = vld [vmem:[#allocation5 + $0x10b8] sm:$0xf]  ;;  %5912 = vmatpush.bf16.msra.mxu0 %v9517_v7  ;;  %5938 = vmatpush.bf16.msra.mxu2 %v7473_v16  ;;  %v9326_v56 = vld [vmem:[#allocation5 + $0xff8] sm:$0xf0] }
 0x377   :  { %v11473_v18 = vld [vmem:[#allocation5 + $0x10f4] sm:$0xf0]  ;;  %v9838_v42 = vld [vmem:[#allocation5 + $0x13f8] sm:$0xf0]  ;;  %v9329_v5 = vor.u32 %v11433_v3, %v9326_v56 }
 0x378   :  { %v9964_v20 = vld [vmem:[#allocation5 + $0x14b8] sm:$0xf]  ;;  %v9453_v29 = vor.u32 %v11473_v18, %v9452_v17  ;;  %5925 = vmatpush.bf16.msra.mxu1 %v10029_v11  ;;  %5951 = vmatpush.bf16.msra.mxu3 %v7985_v23  ;;  %v10350_v1 = vld [vmem:[#allocation5 + $0x17f8] sm:$0xf0]  ;;  %v9841_v7 = vor.u32 %v11561_v59, %v9838_v42  ;;  %v12306_v59 = vpop.f32.mrf.mxu0 }
 0x379   :  { %v11601_v24 = vld [vmem:[#allocation5 + $0x14f4] sm:$0xf0]  ;;  %v11289_v10 = vld [vmem:[#allocation5 + $0xb3c] sm:$0xf]  ;;  %v10353_v17 = vor.u32 %v11689_v8, %v10350_v1 }
 0x37a   :  { %v9388_v31 = vld [vmem:[#allocation5 + $0x1038] sm:$0xf]  ;;  %v9965_v21 = vor.u32 %v11601_v24, %v9964_v20  ;;  %5913 = vmatpush.bf16.msra.mxu0 %v9453_v29  ;;  %5939 = vmatpush.bf16.msra.mxu2 %v7409_v37  ;;  %v8750_v11 = vld [vmem:[#allocation5 + $0xb78] sm:$0xf0] }
 0x37b   :  { %v11457_v36 = vld [vmem:[#allocation5 + $0x1074] sm:$0xf0]  ;;  %v11417_v16 = vld [vmem:[#allocation5 + $0xf3c] sm:$0xf]  ;;  %v8753_v25 = vor.u32 %v11289_v10, %v8750_v11 }
 0x37c   :  { %v9900_v38 = vld [vmem:[#allocation5 + $0x1438] sm:$0xf]  ;;  %v9389_v55 = vor.u32 %v11457_v36, %v9388_v31  ;;  %5926 = vmatpush.bf16.msra.mxu1 %v9965_v21  ;;  %5952 = vmatpush.bf16.msra.mxu3 %v7921_v47  ;;  %v9262_v18 = vld [vmem:[#allocation5 + $0xf78] sm:$0xf0] }
 0x37d   :  { %v11585_v40 = vld [vmem:[#allocation5 + $0x1474] sm:$0xf0]  ;;  %v11545_v20 = vld [vmem:[#allocation5 + $0x133c] sm:$0xf]  ;;  %v9265_v26 = vor.u32 %v11417_v16, %v9262_v18 }
 0x37e   :  { %v9901_v60 = vor.u32 %v11585_v40, %v9900_v38  ;;  %5914 = vmatpush.bf16.msra.mxu0 %v9389_v55  ;;  %v9774_v19 = vld [vmem:[#allocation5 + $0x1378] sm:$0xf0]  ;;  %5940 = vmatpush.bf16.msra.mxu2 %v7345_v61 }
 0x37f   :  { %v11673_v23 = vld [vmem:[#allocation5 + $0x173c] sm:$0xf]  ;;  %v9777_v27 = vor.u32 %v11545_v20, %v9774_v19 }
 0x380   :  { %5927 = vmatpush.bf16.msra.mxu1 %v9901_v60  ;;  %v10286_v24 = vld [vmem:[#allocation5 + $0x1778] sm:$0xf0]  ;;  %5953 = vmatpush.bf16.msra.mxu3 %v7857_v2  ;;  %v12308_v60 = vpop.f32.mrf.mxu1 }
 0x381   :  { %v11273_v28 = vld [vmem:[#allocation5 + $0xabc] sm:$0xf]  ;;  %5915 = vmatmul.bf16.vlgmr.msra.gmra.mxu0 %v12149_v30  ;;  %v10289_v36 = vor.u32 %v11673_v23, %v10286_v24  ;;  %5941 = vmatmul.bf16.vlgmr.msra.gmra.mxu2 %v12137_v33 }
 0x382   :  { %5959 = vmatpush.bf16.msrb.mxu0 %v8817_v4  ;;  %5985 = vmatpush.bf16.msrb.mxu2 %v9841_v7  ;;  %v8686_v29 = vld [vmem:[#allocation5 + $0xaf8] sm:$0xf0] }
 0x383   :  { %v11401_v31 = vld [vmem:[#allocation5 + $0xebc] sm:$0xf]  ;;  %5928 = vmatmul.bf16.vlgmr.msra.gmra.mxu1 %v12151_v35  ;;  %v8689_v46 = vor.u32 %v11273_v28, %v8686_v29  ;;  %5954 = vmatmul.bf16.vlgmr.msra.gmra.mxu3 %v12141_v41  ;;  %v12310_v29 = vpop.f32.mrf.mxu2 }
 0x384   :  { %5972 = vmatpush.bf16.msrb.mxu1 %v9329_v5  ;;  %5998 = vmatpush.bf16.msrb.mxu3 %v10353_v17  ;;  %v9198_v21 = vld [vmem:[#allocation5 + $0xef8] sm:$0xf0] }
 0x385   :  { %v11529_v37 = vld [vmem:[#allocation5 + $0x12bc] sm:$0xf]  ;;  %v9201_v47 = vor.u32 %v11401_v31, %v9198_v21  ;;  %v5710_v21 = vpop.f32.mrf.mxu0 }
 0x386   :  { %v9710_v38 = vld [vmem:[#allocation5 + $0x12f8] sm:$0xf0]  ;;  %5960 = vmatpush.bf16.msrb.mxu0 %v8753_v25  ;;  %5986 = vmatpush.bf16.msrb.mxu2 %v9777_v27  ;;  %v11724_v21 = vld [vmem:[#allocation7 + $0xcc] sm:$0xf0] }
 0x387   :  { %v11657_v40 = vld [vmem:[#allocation5 + $0x16bc] sm:$0xf]  ;;  %v9713_v49 = vor.u32 %v11529_v37, %v9710_v38  ;;  %v12312_v37 = vpop.f32.mrf.mxu3 }
 0x388   :  { %v10222_v45 = vld [vmem:[#allocation5 + $0x16f8] sm:$0xf0]  ;;  %5973 = vmatpush.bf16.msrb.mxu1 %v9265_v26  ;;  %5999 = vmatpush.bf16.msrb.mxu3 %v10289_v36 }
 0x389   :  { %v11257_v51 = vld [vmem:[#allocation5 + $0xa3c] sm:$0xf]  ;;  %v10225_v54 = vor.u32 %v11657_v40, %v10222_v45  ;;  %v5723_v40 = vpop.f32.mrf.mxu1 }
 0x38a   :  { %v8622_v14 = vld [vmem:[#allocation5 + $0xa78] sm:$0xf0]  ;;  %5961 = vmatpush.bf16.msrb.mxu0 %v8689_v46  ;;  %5987 = vmatpush.bf16.msrb.mxu2 %v9713_v49  ;;  %v11756_v40 = vld [vmem:[#allocation7 + $0x1cc] sm:$0xf0] }
 0x38b   :  { %v11385_v52 = vld [vmem:[#allocation5 + $0xe3c] sm:$0xf]  ;;  %v8625_v42 = vor.u32 %v11257_v51, %v8622_v14 }
 0x38c   :  { %v9134_v62 = vld [vmem:[#allocation5 + $0xe78] sm:$0xf0]  ;;  %5974 = vmatpush.bf16.msrb.mxu1 %v9201_v47  ;;  %6000 = vmatpush.bf16.msrb.mxu3 %v10225_v54 }
 0x38d   :  { %v11513_v3 = vld [vmem:[#allocation5 + $0x123c] sm:$0xf]  ;;  %v9137_v41 = vor.u32 %v11385_v52, %v9134_v62 }
 0x38e   :  { %v9646_v55 = vld [vmem:[#allocation5 + $0x1278] sm:$0xf0]  ;;  %5962 = vmatpush.bf16.msrb.mxu0 %v8625_v42 }
 0x38f   :  { %v11641_v56 = vld [vmem:[#allocation5 + $0x163c] sm:$0xf]  ;;  %v9649_v61 = vor.u32 %v11513_v3, %v9646_v55 }
 0x390   :  { %v10158_v33 = vld [vmem:[#allocation5 + $0x1678] sm:$0xf0]  ;;  %5975 = vmatpush.bf16.msrb.mxu1 %v9137_v41 }
 0x391   :  { %v11241_v8 = vld [vmem:[#allocation5 + $0x9bc] sm:$0xf]  ;;  %v10161_v4 = vor.u32 %v11641_v56, %v10158_v33  ;;  %5988 = vmatpush.bf16.msrb.mxu2 %v9649_v61 }
 0x392   :  { %v8558_v1 = vld [vmem:[#allocation5 + $0x9f8] sm:$0xf0] }
 0x393   :  { %v11369_v2 = vld [vmem:[#allocation5 + $0xdbc] sm:$0xf]  ;;  %v8561_v17 = vor.u32 %v11241_v8, %v8558_v1  ;;  %6001 = vmatpush.bf16.msrb.mxu3 %v10161_v4 }
 0x394   :  { %v9070_v5 = vld [vmem:[#allocation5 + $0xdf8] sm:$0xf0] }
 0x395   :  { %v11497_v7 = vld [vmem:[#allocation5 + $0x11bc] sm:$0xf]  ;;  %v9073_v18 = vor.u32 %v11369_v2, %v9070_v5  ;;  %5963 = vmatpush.bf16.msrb.mxu0 %v8561_v17  ;;  %v11728_v17 = vld [vmem:[#allocation7 + $0xec] sm:$0xf0] }
 0x396   :  { %v9582_v10 = vld [vmem:[#allocation5 + $0x11f8] sm:$0xf0] }
 0x397   :  { %v11625_v11 = vld [vmem:[#allocation5 + $0x15bc] sm:$0xf]  ;;  %v9585_v20 = vor.u32 %v11497_v7, %v9582_v10  ;;  %5976 = vmatpush.bf16.msrb.mxu1 %v9073_v18  ;;  %v5736_v10 = vpop.f32.mrf.mxu2  ;;  %v5749_v18 = vpop.f32.mrf.mxu3 }
 0x398   :  { %v10094_v16 = vld [vmem:[#allocation5 + $0x15f8] sm:$0xf0]  ;;  %v10516_v10 = vld [vmem:[#allocation7 + $0x140] sm:$0xf] }
 0x399   :  { %v11225_v19 = vld [vmem:[#allocation5 + $0x93c] sm:$0xf]  ;;  %v10097_v25 = vor.u32 %v11625_v11, %v10094_v16  ;;  %5989 = vmatpush.bf16.msrb.mxu2 %v9585_v20  ;;  %v10468_v16 = vld [vmem:[#allocation7 + $0xe0] sm:$0xf] }
 0x39a   :  { %v8494_v23 = vld [vmem:[#allocation5 + $0x978] sm:$0xf0] }
 0x39b   :  { %v11353_v24 = vld [vmem:[#allocation5 + $0xd3c] sm:$0xf]  ;;  %v8497_v38 = vor.u32 %v11225_v19, %v8494_v23  ;;  %6002 = vmatpush.bf16.msrb.mxu3 %v10097_v25  ;;  %v10596_v19 = vld [vmem:[#allocation7 + $0x1e0] sm:$0xf]  ;;  %v11760_v23 = vld [vmem:[#allocation7 + $0x1ec] sm:$0xf0] }
 0x39c   :  { %v9006_v26 = vld [vmem:[#allocation5 + $0xd78] sm:$0xf0] }
 0x39d   :  { %v11481_v27 = vld [vmem:[#allocation5 + $0x113c] sm:$0xf]  ;;  %v9009_v45 = vor.u32 %v11353_v24, %v9006_v26  ;;  %5964 = vmatpush.bf16.msrb.mxu0 %v8497_v38  ;;  %v5722_v26 = vadd.f32 %v12308_v60, %v12306_v59  ;;  %v10580_v38 = vld [vmem:[#allocation7 + $0x1c0] sm:$0xf]  ;;  %v11720_v60 = vld [vmem:[#allocation7 + $0xac] sm:$0xf0] }
 0x39e   :  { %v9518_v28 = vld [vmem:[#allocation5 + $0x1178] sm:$0xf0]  ;;  %v10436_v59 = vld [vmem:[#allocation7 + $0xa0] sm:$0xf] }
 0x39f   :  { %v11609_v31 = vld [vmem:[#allocation5 + $0x153c] sm:$0xf]  ;;  %v9521_v46 = vor.u32 %v11481_v27, %v9518_v28  ;;  %5977 = vmatpush.bf16.msrb.mxu1 %v9009_v45  ;;  %v10469_v28 = vor.u32 %v11728_v17, %v10468_v16  ;;  %v12326_v16 = vpop.f32.mrf.mxu2  ;;  %v12328_v17 = vpop.f32.mrf.mxu3 }
 0x3a0   :  { %v10030_v36 = vld [vmem:[#allocation5 + $0x1578] sm:$0xf0] }
 0x3a1   :  { %v11209_v47 = vld [vmem:[#allocation5 + $0x8bc] sm:$0xf]  ;;  %v10033_v14 = vor.u32 %v11609_v31, %v10030_v36  ;;  %5990 = vmatpush.bf16.msrb.mxu2 %v9521_v46  ;;  %v10597_v31 = vor.u32 %v11760_v23, %v10596_v19  ;;  %v10452_v36 = vld [vmem:[#allocation7 + $0xc0] sm:$0xf]  ;;  %v5735_v46 = vadd.f32 %v12310_v29, %v5722_v26  ;;  %v11736_v26 = vld [vmem:[#allocation7 + $0x12c] sm:$0xf0] }
 0x3a2   :  { %v8430_v49 = vld [vmem:[#allocation5 + $0x8f8] sm:$0xf0]  ;;  %v10453_v45 = vor.u32 %v11724_v21, %v10452_v36  ;;  %v10372_v23 = vld [vmem:[#allocation7 + $0x20] sm:$0xf] }
 0x3a3   :  { %v11337_v51 = vld [vmem:[#allocation5 + $0xcbc] sm:$0xf]  ;;  %v8433_v56 = vor.u32 %v11209_v47, %v8430_v49  ;;  %6003 = vmatpush.bf16.msrb.mxu3 %v10033_v14  ;;  %v10581_v47 = vor.u32 %v11756_v40, %v10580_v38  ;;  %v10564_v49 = vld [vmem:[#allocation7 + $0x1a0] sm:$0xf]  ;;  %v10437_v14 = vor.u32 %v11720_v60, %v10436_v59  ;;  %v11732_v38 = vld [vmem:[#allocation7 + $0x10c] sm:$0xf0] }
 0x3a4   :  { %v8942_v52 = vld [vmem:[#allocation5 + $0xcf8] sm:$0xf0]  ;;  %v10484_v21 = vld [vmem:[#allocation7 + $0x100] sm:$0xf]  ;;  %v11726_v40 = vld [vmem:[#allocation7 + $0xe4] sm:$0xf] }
 0x3a5   :  { %v11465_v54 = vld [vmem:[#allocation5 + $0x10bc] sm:$0xf]  ;;  %v8945_v42 = vor.u32 %v11337_v51, %v8942_v52  ;;  %5965 = vmatpush.bf16.msrb.mxu0 %v8433_v56  ;;  %v11752_v51 = vld [vmem:[#allocation7 + $0x1ac] sm:$0xf0]  ;;  %v5748_v52 = vadd.f32 %v12312_v37, %v5735_v46  ;;  %v11758_v60 = vld [vmem:[#allocation7 + $0x1e4] sm:$0xf] }
 0x3a6   :  { %v9454_v62 = vld [vmem:[#allocation5 + $0x10f8] sm:$0xf0]  ;;  %v10565_v29 = vor.u32 %v11752_v51, %v10564_v49  ;;  %v11788_v59 = vld [vmem:[#allocation7 + $0x2cc] sm:$0xf0]  ;;  %v10598_v49 = vld [vmem:[#allocation7 + $0x1f0] sm:$0xf0] }
 0x3a7   :  { %v11593_v3 = vld [vmem:[#allocation5 + $0x14bc] sm:$0xf]  ;;  %v9457_v41 = vor.u32 %v11465_v54, %v9454_v62  ;;  %5978 = vmatpush.bf16.msrb.mxu1 %v8945_v42  ;;  %v10420_v54 = vld [vmem:[#allocation7 + $0x80] sm:$0xf]  ;;  %v11716_v62 = vld [vmem:[#allocation7 + $0x8c] sm:$0xf0]  ;;  %v5788_v46 = vpop.f32.mrf.mxu2  ;;  %v5801_v51 = vpop.f32.mrf.mxu3 }
 0x3a8   :  { %v9966_v55 = vld [vmem:[#allocation5 + $0x14f8] sm:$0xf0]  ;;  %v10404_v42 = vld [vmem:[#allocation7 + $0x60] sm:$0xf] }
 0x3a9   :  { %v11193_v33 = vld [vmem:[#allocation5 + $0x83c] sm:$0xf]  ;;  %v9969_v2 = vor.u32 %v11593_v3, %v9966_v55  ;;  %5991 = vmatpush.bf16.msrb.mxu2 %v9457_v41  ;;  %v11748_v3 = vld [vmem:[#allocation7 + $0x18c] sm:$0xf0]  ;;  %v5760_v55 = vpop.f32.mrf.mxu0 }
 0x3aa   :  { %v8366_v61 = vld [vmem:[#allocation5 + $0x878] sm:$0xf0]  ;;  %v5761_v56 = vadd.f32 %v5760_v55, %v5748_v52  ;;  %v11712_v41 = vld [vmem:[#allocation7 + $0x6c] sm:$0xf0]  ;;  %v10454_v55 = vld [vmem:[#allocation7 + $0xd0] sm:$0xf0] }
 0x3ab   :  { %v11321_v8 = vld [vmem:[#allocation5 + $0xc3c] sm:$0xf]  ;;  %v8369_v20 = vor.u32 %v11193_v33, %v8366_v61  ;;  %6004 = vmatpush.bf16.msrb.mxu3 %v9969_v2  ;;  %v5773_v33 = vpop.f32.mrf.mxu1  ;;  %v10532_v61 = vld [vmem:[#allocation7 + $0x160] sm:$0xf] }
 0x3ac   :  { %v8878_v1 = vld [vmem:[#allocation5 + $0xc78] sm:$0xf0] }
 0x3ad   :  { %v11449_v4 = vld [vmem:[#allocation5 + $0x103c] sm:$0xf]  ;;  %v8881_v24 = vor.u32 %v11321_v8, %v8878_v1  ;;  %5966 = vmatpush.bf16.msrb.mxu0 %v8369_v20  ;;  %v11744_v8 = vld [vmem:[#allocation7 + $0x16c] sm:$0xf0]  ;;  %v10405_v1 = vor.u32 %v11712_v41, %v10404_v42 }
 0x3ae   :  { %v9390_v5 = vld [vmem:[#allocation5 + $0x1078] sm:$0xf0]  ;;  %v10533_v2 = vor.u32 %v11744_v8, %v10532_v61  ;;  %v11718_v8 = vld [vmem:[#allocation7 + $0xa4] sm:$0xf] }
 0x3af   :  { %v11577_v7 = vld [vmem:[#allocation5 + $0x143c] sm:$0xf]  ;;  %v9393_v25 = vor.u32 %v11449_v4, %v9390_v5  ;;  %5979 = vmatpush.bf16.msrb.mxu1 %v8881_v24  ;;  %v10388_v4 = vld [vmem:[#allocation7 + $0x40] sm:$0xf]  ;;  %v11708_v5 = vld [vmem:[#allocation7 + $0x4c] sm:$0xf0] }
 0x3b0   :  { %v9902_v11 = vld [vmem:[#allocation5 + $0x1478] sm:$0xf0]  ;;  %5967 = vmatmul.bf16.vlgmr.msrb.gmra.mxu0 %v12139_v34  ;;  %v10548_v34 = vld [vmem:[#allocation7 + $0x180] sm:$0xf]  ;;  %v10389_v20 = vor.u32 %v11708_v5, %v10388_v4  ;;  %v11704_v24 = vld [vmem:[#allocation7 + $0x2c] sm:$0xf0] }
 0x3b1   :  { %v9905_v27 = vor.u32 %v11577_v7, %v9902_v11  ;;  %5992 = vmatpush.bf16.msrb.mxu2 %v9393_v25  ;;  %6841 = vmatpush.bf16.msra.mxu0 %v10469_v28  ;;  %v11740_v11 = vld [vmem:[#allocation7 + $0x14c] sm:$0xf0]  ;;  %v5762_v18 = vpop.f32.mrf.mxu0  ;;  %v10500_v25 = vld [vmem:[#allocation7 + $0x120] sm:$0xf]  ;;  %v10373_v0 = vor.u32 %v11704_v24, %v10372_v23  ;;  %v10550_v23 = vld [vmem:[#allocation7 + $0x190] sm:$0xf0] }
 0x3b2   :  { %5980 = vmatmul.bf16.vlgmr.msrb.gmra.mxu1 %v12145_v44  ;;  %v10421_v44 = vor.u32 %v11716_v62, %v10420_v54  ;;  %v11792_v28 = vld [vmem:[#allocation7 + $0x2ec] sm:$0xf0]  ;;  %v10501_v36 = vor.u32 %v11736_v26, %v10500_v25  ;;  %v10485_v54 = vor.u32 %v11732_v38, %v10484_v21  ;;  %v10676_v4 = vld [vmem:[#allocation7 + $0x280] sm:$0xf]  ;;  %v11714_v18 = vld [vmem:[#allocation7 + $0x84] sm:$0xf] }
 0x3b3   :  { %6005 = vmatpush.bf16.msrb.mxu3 %v9905_v27  ;;  %6854 = vmatpush.bf16.msra.mxu1 %v10597_v31  ;;  %v5775_v19 = vpop.f32.mrf.mxu1  ;;  %v10724_v27 = vld [vmem:[#allocation7 + $0x2e0] sm:$0xf]  ;;  %v11780_v5 = vld [vmem:[#allocation7 + $0x28c] sm:$0xf0]  ;;  %v10534_v38 = vld [vmem:[#allocation7 + $0x170] sm:$0xf0] }
 0x3b4   :  { %5993 = vmatmul.bf16.vlgmr.msrb.gmra.mxu2 %v12149_v30  ;;  %v10549_v30 = vor.u32 %v11748_v3, %v10548_v34  ;;  %v10725_v31 = vor.u32 %v11792_v28, %v10724_v27  ;;  %v10601_v34 = vor.u32 %v11758_v60, %v10598_v49  ;;  %v11722_v3 = vld [vmem:[#allocation7 + $0xc4] sm:$0xf]  ;;  %v10660_v24 = vld [vmem:[#allocation7 + $0x260] sm:$0xf]  ;;  %v11776_v25 = vld [vmem:[#allocation7 + $0x26c] sm:$0xf0] }
 0x3b5   :  { %6842 = vmatpush.bf16.msra.mxu0 %v10453_v45  ;;  %v10470_v45 = vld [vmem:[#allocation7 + $0xf0] sm:$0xf0]  ;;  %v11746_v19 = vld [vmem:[#allocation7 + $0x184] sm:$0xf]  ;;  %v10661_v26 = vor.u32 %v11776_v25, %v10660_v24  ;;  %v10476_v24 = vld [vmem:[#allocation7 + $0xe8] sm:$0xf] }
 0x3b6   :  { %6006 = vmatmul.bf16.vlgmr.msrb.gmra.mxu3 %v12151_v35  ;;  %v5774_v35 = vadd.f32 %v5773_v33, %v5761_v56  ;;  %6867 = vmatpush.bf16.msra.mxu2 %v10725_v31  ;;  %v10473_v62 = vor.u32 %v11726_v40, %v10470_v45  ;;  %v11754_v56 = vld [vmem:[#allocation7 + $0x1c4] sm:$0xf]  ;;  %v10692_v33 = vld [vmem:[#allocation7 + $0x2a0] sm:$0xf]  ;;  %v11772_v45 = vld [vmem:[#allocation7 + $0x24c] sm:$0xf0] }
 0x3b7   :  { %6855 = vmatpush.bf16.msra.mxu1 %v10581_v47  ;;  %v10708_v47 = vld [vmem:[#allocation7 + $0x2c0] sm:$0xf]  ;;  %v11742_v31 = vld [vmem:[#allocation7 + $0x164] sm:$0xf]  ;;  %v10390_v60 = vld [vmem:[#allocation7 + $0x50] sm:$0xf0] }
 0x3b8   :  { %v6041_v37 = vmax.f32 %v12269_v57, %v5774_v35  ;;  %v10517_v57 = vor.u32 %v11740_v11, %v10516_v10  ;;  %v10457_v35 = vor.u32 %v11722_v3, %v10454_v55  ;;  %v10644_v40 = vld [vmem:[#allocation7 + $0x240] sm:$0xf]  ;;  %v11738_v49 = vld [vmem:[#allocation7 + $0x144] sm:$0xf]  ;;  %v11729_v25 = vld [vmem:[#allocation7 + $0xf4] sm:$0xf0] }
 0x3b9   :  { %6843 = vmatpush.bf16.msra.mxu0 %v10437_v14  ;;  %v10709_v14 = vor.u32 %v11788_v59, %v10708_v47  ;;  %v5812_v28 = vpop.f32.mrf.mxu0  ;;  %v10645_v46 = vor.u32 %v11772_v45, %v10644_v40  ;;  %v10537_v47 = vor.u32 %v11742_v31, %v10534_v38  ;;  %v11706_v59 = vld [vmem:[#allocation7 + $0x44] sm:$0xf]  ;;  %v11824_v38 = vld [vmem:[#allocation7 + $0x3ec] sm:$0xf0]  ;;  %v10460_v45 = vld [vmem:[#allocation7 + $0xc8] sm:$0xf] }
 0x3ba   :  { %v6055_v7 = vmax.f32 %v6027_v6, %v6041_v37  ;;  %v11700_v6 = vld [vmem:[#allocation7 + $0xc] sm:$0xf0]  ;;  %v10438_v37 = vld [vmem:[#allocation7 + $0xb0] sm:$0xf0]  ;;  %v10393_v3 = vor.u32 %v11706_v59, %v10390_v60  ;;  %v11702_v55 = vld [vmem:[#allocation7 + $0x24] sm:$0xf] }
 0x3bb   :  { %6856 = vmatpush.bf16.msra.mxu1 %v10565_v29  ;;  %v10357_v52 = vor.u32 %v11700_v6, %v10356_v39  ;;  %6868 = vmatpush.bf16.msra.mxu2 %v10709_v14  ;;  %v10441_v10 = vor.u32 %v11718_v8, %v10438_v37  ;;  %v11710_v39 = vld [vmem:[#allocation7 + $0x64] sm:$0xf]  ;;  %v10406_v6 = vld [vmem:[#allocation7 + $0x70] sm:$0xf0]  ;;  %v5825_v21 = vpop.f32.mrf.mxu1  ;;  %v10612_v8 = vld [vmem:[#allocation7 + $0x200] sm:$0xf] }
 0x3bc   :  { %v6065_v29 = vmax.f32 %v6055_v7, 0.0  ;;  %v10677_v7 = vor.u32 %v11780_v5, %v10676_v4  ;;  %v10518_v14 = vld [vmem:[#allocation7 + $0x150] sm:$0xf0]  ;;  %v11764_v37 = vld [vmem:[#allocation7 + $0x20c] sm:$0xf0] }
 0x3bd   :  { %6844 = vmatpush.bf16.msra.mxu0 %v10421_v44  ;;  %v10582_v44 = vld [vmem:[#allocation7 + $0x1d0] sm:$0xf0]  ;;  %v10613_v4 = vor.u32 %v11764_v37, %v10612_v8  ;;  %v11782_v59 = vld [vmem:[#allocation7 + $0x2a4] sm:$0xf]  ;;  %v10428_v8 = vld [vmem:[#allocation7 + $0x88] sm:$0xf] }
 0x3be   :  { %v12330_v41 = vpack.c.bf16 %v6065_v29, %v6065_v29  ;;  %v10585_v61 = vor.u32 %v11754_v56, %v10582_v44  ;;  %v11768_v29 = vld [vmem:[#allocation7 + $0x22c] sm:$0xf0]  ;;  %v10521_v44 = vor.u32 %v11738_v49, %v10518_v14  ;;  %v10726_v5 = vld [vmem:[#allocation7 + $0x2f0] sm:$0xf0]  ;;  %v10836_v14 = vld [vmem:[#allocation7 + $0x3c0] sm:$0xf] }
 0x3bf   :  { %6857 = vmatpush.bf16.msra.mxu1 %v10549_v30  ;;  %v11784_v30 = vld [vmem:[#allocation7 + $0x2ac] sm:$0xf0]  ;;  %v10694_v60 = vld [vmem:[#allocation7 + $0x2b0] sm:$0xf0]  ;;  %v11717_v37 = vld [vmem:[#allocation7 + $0x94] sm:$0xf0] }
 0x3c0   :  { %v10693_v42 = vor.u32 %v11784_v30, %v10692_v33  ;;  %v10374_v33 = vld [vmem:[#allocation7 + $0x30] sm:$0xf0]  ;;  %v11734_v30 = vld [vmem:[#allocation7 + $0x124] sm:$0xf]  ;;  %v10697_v49 = vor.u32 %v11782_v59, %v10694_v60  ;;  %v10772_v60 = vld [vmem:[#allocation7 + $0x340] sm:$0xf] }
 0x3c1   :  { %6845 = vmatpush.bf16.msra.mxu0 %v10405_v1  ;;  %v11750_v1 = vld [vmem:[#allocation7 + $0x1a4] sm:$0xf]  ;;  %v5838_v51 = vpop.f32.mrf.mxu2 }
 0x3c2   :  { %6869 = vmatpush.bf16.msra.mxu2 %v10693_v42  ;;  %v10502_v42 = vld [vmem:[#allocation7 + $0x130] sm:$0xf0] }
 0x3c3   :  { %6858 = vmatpush.bf16.msra.mxu1 %v10533_v2  ;;  %v10566_v2 = vld [vmem:[#allocation7 + $0x1b0] sm:$0xf0] }
 0x3c4   :  { %v10569_v11 = vor.u32 %v11750_v1, %v10566_v2  ;;  %v11790_v1 = vld [vmem:[#allocation7 + $0x2e4] sm:$0xf] }
 0x3c5   :  { %6846 = vmatpush.bf16.msra.mxu0 %v10389_v20  ;;  %v10422_v20 = vld [vmem:[#allocation7 + $0x90] sm:$0xf0] }
 0x3c6   :  { %6870 = vmatpush.bf16.msra.mxu2 %v10677_v7  ;;  %v10425_v27 = vor.u32 %v11714_v18, %v10422_v20  ;;  %v10377_v7 = vor.u32 %v11702_v55, %v10374_v33  ;;  %v10729_v18 = vor.u32 %v11790_v1, %v10726_v5  ;;  %v11753_v55 = vld [vmem:[#allocation7 + $0x1b4] sm:$0xf0]  ;;  %v10556_v1 = vld [vmem:[#allocation7 + $0x188] sm:$0xf]  ;;  %v11774_v5 = vld [vmem:[#allocation7 + $0x264] sm:$0xf] }
 0x3c7   :  { %6859 = vmatpush.bf16.msra.mxu1 %v10517_v57  ;;  %v5800_v57 = vadd.f32 %v12328_v17, %v12326_v16  ;;  %v10409_v17 = vor.u32 %v11710_v39, %v10406_v6  ;;  %v11761_v39 = vld [vmem:[#allocation7 + $0x1f4] sm:$0xf0] }
 0x3c9   :  { %6847 = vmatpush.bf16.msra.mxu0 %v10373_v0  ;;  %v10553_v0 = vor.u32 %v11746_v19, %v10550_v23  ;;  %v10505_v19 = vor.u32 %v11734_v30, %v10502_v42  ;;  %v10486_v23 = vld [vmem:[#allocation7 + $0x110] sm:$0xf0]  ;;  %v10820_v42 = vld [vmem:[#allocation7 + $0x3a0] sm:$0xf] }
 0x3ca   :  { %6871 = vmatpush.bf16.msra.mxu2 %v10661_v26  ;;  %v5840_v26 = vpop.f32.mrf.mxu2 }
 0x3cb   :  { %6860 = vmatpush.bf16.msra.mxu1 %v10501_v36  ;;  %v5813_v36 = vadd.f32 %v5812_v28, %v5800_v57  ;;  %v11730_v57 = vld [vmem:[#allocation7 + $0x104] sm:$0xf] }
 0x3cc   :  { %v10489_v32 = vor.u32 %v11730_v57, %v10486_v23  ;;  %v10412_v57 = vld [vmem:[#allocation7 + $0x68] sm:$0xf]  ;;  %v11713_v23 = vld [vmem:[#allocation7 + $0x74] sm:$0xf0] }
 0x3cd   :  { %6848 = vmatpush.bf16.msra.mxu0 %v10357_v52  ;;  %v5826_v16 = vadd.f32 %v5825_v21, %v5813_v36  ;;  %v10628_v52 = vld [vmem:[#allocation7 + $0x220] sm:$0xf] }
 0x3ce   :  { %6872 = vmatpush.bf16.msra.mxu2 %v10645_v46  ;;  %v10852_v21 = vld [vmem:[#allocation7 + $0x3e0] sm:$0xf]  ;;  %v11725_v46 = vld [vmem:[#allocation7 + $0xd4] sm:$0xf0] }
 0x3cf   :  { %6861 = vmatpush.bf16.msra.mxu1 %v10485_v54  ;;  %v5839_v54 = vadd.f32 %v5838_v51, %v5826_v16  ;;  %v10588_v16 = vld [vmem:[#allocation7 + $0x1c8] sm:$0xf]  ;;  %v10461_v51 = vor.u32 %v11725_v46, %v10460_v45  ;;  %v11741_v45 = vld [vmem:[#allocation7 + $0x154] sm:$0xf0]  ;;  %v11766_v46 = vld [vmem:[#allocation7 + $0x224] sm:$0xf] }
 0x3d0   :  { %6849 = vmatmul.bf16.vlgmr.msra.gmra.mxu0 %v12330_v41 }
 0x3d1   :  { %6893 = vmatpush.bf16.msrb.mxu0 %v10473_v62  ;;  %v5851_v62 = vpop.f32.mrf.mxu3 }
 0x3d2   :  { %v5852_v56 = vadd.f32 %v5851_v62, %v5839_v54  ;;  %v10444_v54 = vld [vmem:[#allocation7 + $0xa8] sm:$0xf]  ;;  %v11721_v62 = vld [vmem:[#allocation7 + $0xb4] sm:$0xf0] }
 0x3d3   :  { %6906 = vmatpush.bf16.msrb.mxu1 %v10601_v34  ;;  %v10629_v34 = vor.u32 %v11768_v29, %v10628_v52  ;;  %v11820_v52 = vld [vmem:[#allocation7 + $0x3cc] sm:$0xf0]  ;;  %v10445_v30 = vor.u32 %v11721_v62, %v10444_v54 }
 0x3d4   :  { %v6042_v2 = vmax.f32 %v12278_v50, %v5852_v56  ;;  %v11786_v50 = vld [vmem:[#allocation7 + $0x2c4] sm:$0xf] }
 0x3d5   :  { %6894 = vmatpush.bf16.msrb.mxu0 %v10457_v35  ;;  %v5814_v35 = vpop.f32.mrf.mxu0  ;;  %6873 = vmatpush.bf16.msra.mxu2 %v10629_v34  ;;  %v10572_v34 = vld [vmem:[#allocation7 + $0x1a8] sm:$0xf]  ;;  %v11778_v56 = vld [vmem:[#allocation7 + $0x284] sm:$0xf] }
 0x3d6   :  { %v6056_v20 = vmax.f32 %v6028_v15, %v6042_v2  ;;  %v10477_v15 = vor.u32 %v11729_v25, %v10476_v24  ;;  %v11816_v35 = vld [vmem:[#allocation7 + $0x3ac] sm:$0xf0]  ;;  %v10540_v24 = vld [vmem:[#allocation7 + $0x168] sm:$0xf] }
 0x3d7   :  { %6907 = vmatpush.bf16.msrb.mxu1 %v10585_v61  ;;  %v5827_v61 = vpop.f32.mrf.mxu1  ;;  %v10821_v2 = vor.u32 %v11816_v35, %v10820_v42  ;;  %v10756_v42 = vld [vmem:[#allocation7 + $0x320] sm:$0xf]  ;;  %v11800_v35 = vld [vmem:[#allocation7 + $0x32c] sm:$0xf0] }
 0x3d8   :  { %v6066_v28 = vmax.f32 %v6056_v20, 0.0  ;;  %v10573_v61 = vor.u32 %v11753_v55, %v10572_v34  ;;  %v11812_v20 = vld [vmem:[#allocation7 + $0x38c] sm:$0xf0] }
 0x3d9   :  { %6895 = vmatpush.bf16.msrb.mxu0 %v10441_v10  ;;  %v11698_v10 = vld [vmem:[#allocation7 + $0x4] sm:$0xf]  ;;  %6874 = vmatpush.bf16.msra.mxu2 %v10613_v4  ;;  %v5853_v6 = vpop.f32.mrf.mxu3  ;;  %v11749_v4 = vld [vmem:[#allocation7 + $0x194] sm:$0xf0] }
 0x3da   :  { %v12339_v12 = vpack.c.bf16 %v6066_v28, %v6066_v28  ;;  %v11770_v28 = vld [vmem:[#allocation7 + $0x244] sm:$0xf]  ;;  %v10413_v6 = vor.u32 %v11713_v23, %v10412_v57  ;;  %v11796_v57 = vld [vmem:[#allocation7 + $0x30c] sm:$0xf0] }
 0x3db   :  { %6908 = vmatpush.bf16.msrb.mxu1 %v10569_v11  ;;  %v10358_v11 = vld [vmem:[#allocation7 + $0x10] sm:$0xf0] }
 0x3dc   :  { %v10361_v36 = vor.u32 %v11698_v10, %v10358_v11  ;;  %6862 = vmatmul.bf16.vlgmr.msra.gmra.mxu1 %v12339_v12  ;;  %v10429_v11 = vor.u32 %v11717_v37, %v10428_v8  ;;  %v10364_v8 = vld [vmem:[#allocation7 + $0x8] sm:$0xf]  ;;  %v11701_v37 = vld [vmem:[#allocation7 + $0x14] sm:$0xf0] }
 0x3dd   :  { %6896 = vmatpush.bf16.msrb.mxu0 %v10425_v27  ;;  %6919 = vmatpush.bf16.msrb.mxu2 %v10729_v18  ;;  %v10710_v27 = vld [vmem:[#allocation7 + $0x2d0] sm:$0xf0]  ;;  %v10804_v18 = vld [vmem:[#allocation7 + $0x380] sm:$0xf]  ;;  %v12343_v25 = vpop.f32.mrf.mxu0 }
 0x3de   :  { %v10713_v31 = vor.u32 %v11786_v50, %v10710_v27  ;;  %v10805_v26 = vor.u32 %v11812_v20, %v10804_v18  ;;  %v11745_v50 = vld [vmem:[#allocation7 + $0x174] sm:$0xf0]  ;;  %v10365_v18 = vor.u32 %v11701_v37, %v10364_v8  ;;  %v11743_v37 = vld [vmem:[#allocation7 + $0x16c] sm:$0xf] }
 0x3df   :  { %6909 = vmatpush.bf16.msrb.mxu1 %v10553_v0  ;;  %v10604_v0 = vld [vmem:[#allocation7 + $0x1e8] sm:$0xf]  ;;  %v12345_v27 = vpop.f32.mrf.mxu1 }
 0x3e0   :  { %v10605_v40 = vor.u32 %v11761_v39, %v10604_v0  ;;  %v10646_v0 = vld [vmem:[#allocation7 + $0x250] sm:$0xf0] }
 0x3e1   :  { %6897 = vmatpush.bf16.msrb.mxu0 %v10409_v17  ;;  %6920 = vmatpush.bf16.msrb.mxu2 %v10713_v31  ;;  %v10853_v17 = vor.u32 %v11824_v38, %v10852_v21  ;;  %v10649_v39 = vor.u32 %v11770_v28, %v10646_v0  ;;  %v10788_v31 = vld [vmem:[#allocation7 + $0x360] sm:$0xf]  ;;  %v11709_v21 = vld [vmem:[#allocation7 + $0x54] sm:$0xf0]  ;;  %v10524_v38 = vld [vmem:[#allocation7 + $0x148] sm:$0xf] }
 0x3e2   :  { %v11822_v28 = vld [vmem:[#allocation7 + $0x3e4] sm:$0xf]  ;;  %v10854_v0 = vld [vmem:[#allocation7 + $0x3f0] sm:$0xf0] }
 0x3e3   :  { %6910 = vmatpush.bf16.msrb.mxu1 %v10537_v47  ;;  %v11757_v47 = vld [vmem:[#allocation7 + $0x1d4] sm:$0xf0]  ;;  %6880 = vmatpush.bf16.msra.mxu3 %v10853_v17 }
 0x3e4   :  { %v10589_v29 = vor.u32 %v11757_v47, %v10588_v16  ;;  %v10630_v16 = vld [vmem:[#allocation7 + $0x230] sm:$0xf0]  ;;  %v12348_v59 = vpop.f32.mrf.mxu2 }
 0x3e5   :  { %6898 = vmatpush.bf16.msrb.mxu0 %v10393_v3  ;;  %6921 = vmatpush.bf16.msrb.mxu2 %v10697_v49  ;;  %v10837_v3 = vor.u32 %v11820_v52, %v10836_v14  ;;  %v10633_v17 = vor.u32 %v11766_v46, %v10630_v16  ;;  %v11804_v49 = vld [vmem:[#allocation7 + $0x34c] sm:$0xf0]  ;;  %v10380_v14 = vld [vmem:[#allocation7 + $0x28] sm:$0xf]  ;;  %v11705_v52 = vld [vmem:[#allocation7 + $0x34] sm:$0xf0]  ;;  %v5866_v54 = vpop.f32.mrf.mxu0 }
 0x3e6   :  { %v12350_v62 = vpop.f32.mrf.mxu3  ;;  %v10773_v34 = vor.u32 %v11804_v49, %v10772_v60  ;;  %v11719_v16 = vld [vmem:[#allocation7 + $0xac] sm:$0xf]  ;;  %v10574_v49 = vld [vmem:[#allocation7 + $0x1b8] sm:$0xf0] }
 0x3e7   :  { %6911 = vmatpush.bf16.msrb.mxu1 %v10521_v44  ;;  %v10678_v44 = vld [vmem:[#allocation7 + $0x290] sm:$0xf0]  ;;  %6881 = vmatpush.bf16.msra.mxu3 %v10837_v3  ;;  %v11737_v3 = vld [vmem:[#allocation7 + $0x134] sm:$0xf0]  ;;  %v5879_v55 = vpop.f32.mrf.mxu1  ;;  %v11751_v60 = vld [vmem:[#allocation7 + $0x1ac] sm:$0xf] }
 0x3e8   :  { %v10681_v33 = vor.u32 %v11778_v56, %v10678_v44  ;;  %v11762_v56 = vld [vmem:[#allocation7 + $0x204] sm:$0xf]  ;;  %v10614_v44 = vld [vmem:[#allocation7 + $0x210] sm:$0xf0]  ;;  %v10430_v54 = vld [vmem:[#allocation7 + $0x98] sm:$0xf0] }
 0x3e9   :  { %6899 = vmatpush.bf16.msrb.mxu0 %v10377_v7  ;;  %v10662_v7 = vld [vmem:[#allocation7 + $0x270] sm:$0xf0]  ;;  %v10558_v55 = vld [vmem:[#allocation7 + $0x198] sm:$0xf0] }
 0x3ea   :  { %6922 = vmatpush.bf16.msrb.mxu2 %v10681_v33  ;;  %v10665_v10 = vor.u32 %v11774_v5, %v10662_v7  ;;  %v10617_v33 = vor.u32 %v11762_v56, %v10614_v44  ;;  %v11727_v5 = vld [vmem:[#allocation7 + $0xec] sm:$0xf]  ;;  %v10478_v7 = vld [vmem:[#allocation7 + $0xf8] sm:$0xf0] }
 0x3eb   :  { %6912 = vmatpush.bf16.msrb.mxu1 %v10505_v19  ;;  %6882 = vmatpush.bf16.msra.mxu3 %v10821_v2  ;;  %v10557_v19 = vor.u32 %v11749_v4, %v10556_v1  ;;  %v10492_v1 = vld [vmem:[#allocation7 + $0x108] sm:$0xf]  ;;  %v10757_v2 = vor.u32 %v11800_v35, %v10756_v42  ;;  %v11733_v4 = vld [vmem:[#allocation7 + $0x114] sm:$0xf0]  ;;  %v11711_v42 = vld [vmem:[#allocation7 + $0x6c] sm:$0xf] }
 0x3ec   :  { %v5892_v20 = vpop.f32.mrf.mxu2  ;;  %v10493_v23 = vor.u32 %v11733_v4, %v10492_v1  ;;  %v10414_v35 = vld [vmem:[#allocation7 + $0x78] sm:$0xf0] }
 0x3ed   :  { %6900 = vmatpush.bf16.msrb.mxu0 %v10361_v36  ;;  %v11808_v36 = vld [vmem:[#allocation7 + $0x36c] sm:$0xf0]  ;;  %v10542_v1 = vld [vmem:[#allocation7 + $0x178] sm:$0xf0] }
 0x3ee   :  { %6923 = vmatpush.bf16.msrb.mxu2 %v10665_v10  ;;  %v11759_v10 = vld [vmem:[#allocation7 + $0x1ec] sm:$0xf]  ;;  %v10398_v20 = vld [vmem:[#allocation7 + $0x58] sm:$0xf0] }
 0x3ef   :  { %6913 = vmatpush.bf16.msrb.mxu1 %v10489_v32  ;;  %6883 = vmatpush.bf16.msra.mxu3 %v10805_v26  ;;  %v10541_v32 = vor.u32 %v11745_v50, %v10540_v24  ;;  %v10481_v24 = vor.u32 %v11727_v5, %v10478_v7  ;;  %v5905_v26 = vpop.f32.mrf.mxu3  ;;  %v10417_v5 = vor.u32 %v11711_v42, %v10414_v35  ;;  %v11806_v7 = vld [vmem:[#allocation7 + $0x364] sm:$0xf] }
 0x3f0   :  { %6901 = vmatmul.bf16.vlgmr.msrb.gmra.mxu0 %v12330_v41 }
 0x3f1   :  { %6945 = vmatpush.bf16.msra.mxu0 %v10477_v15  ;;  %v10396_v15 = vld [vmem:[#allocation7 + $0x48] sm:$0xf] }
 0x3f2   :  { %6924 = vmatpush.bf16.msrb.mxu2 %v10649_v39  ;;  %6914 = vmatmul.bf16.vlgmr.msrb.gmra.mxu1 %v12339_v12  ;;  %v10397_v47 = vor.u32 %v11709_v21, %v10396_v15  ;;  %v10590_v15 = vld [vmem:[#allocation7 + $0x1d8] sm:$0xf0]  ;;  %v5878_v21 = vadd.f32 %v12345_v27, %v12343_v25 }
 0x3f3   :  { %6958 = vmatpush.bf16.msra.mxu1 %v10605_v40  ;;  %v10789_v40 = vor.u32 %v11808_v36, %v10788_v31  ;;  %v10462_v31 = vld [vmem:[#allocation7 + $0xd8] sm:$0xf0]  ;;  %v10857_v36 = vor.u32 %v11822_v28, %v10854_v0  ;;  %v11802_v28 = vld [vmem:[#allocation7 + $0x344] sm:$0xf]  ;;  %v10774_v0 = vld [vmem:[#allocation7 + $0x350] sm:$0xf0] }
 0x3f4   :  { %v5891_v25 = vadd.f32 %v12348_v59, %v5878_v21  ;;  %v10777_v21 = vor.u32 %v11802_v28, %v10774_v0  ;;  %v10734_v28 = vld [vmem:[#allocation7 + $0x2f8] sm:$0xf0] }
 0x3f5   :  { %6946 = vmatpush.bf16.msra.mxu0 %v10461_v51  ;;  %6884 = vmatpush.bf16.msra.mxu3 %v10789_v40  ;;  %v10525_v51 = vor.u32 %v11741_v45, %v10524_v38  ;;  %v11818_v40 = vld [vmem:[#allocation7 + $0x3c4] sm:$0xf]  ;;  %v10838_v45 = vld [vmem:[#allocation7 + $0x3d0] sm:$0xf0] }
 0x3f6   :  { %6925 = vmatpush.bf16.msrb.mxu2 %v10633_v17  ;;  %v10446_v17 = vld [vmem:[#allocation7 + $0xb8] sm:$0xf0]  ;;  %v5904_v56 = vadd.f32 %v12350_v62, %v5891_v25  ;;  %v10790_v62 = vld [vmem:[#allocation7 + $0x370] sm:$0xf0]  ;;  %v11789_v25 = vld [vmem:[#allocation7 + $0x2d4] sm:$0xf0] }
 0x3f7   :  { %6959 = vmatpush.bf16.msra.mxu1 %v10589_v29  ;;  %v10508_v29 = vld [vmem:[#allocation7 + $0x128] sm:$0xf]  ;;  %v10449_v27 = vor.u32 %v11719_v16, %v10446_v17 }
 0x3f9   :  { %6947 = vmatpush.bf16.msra.mxu0 %v10445_v30  ;;  %6885 = vmatpush.bf16.msra.mxu3 %v10773_v34  ;;  %v10381_v30 = vor.u32 %v11705_v52, %v10380_v14  ;;  %v10822_v14 = vld [vmem:[#allocation7 + $0x3b0] sm:$0xf0]  ;;  %v10577_v52 = vor.u32 %v11751_v60, %v10574_v49  ;;  %v10716_v60 = vld [vmem:[#allocation7 + $0x2c8] sm:$0xf] }
 0x3fa   :  { %6926 = vmatpush.bf16.msrb.mxu2 %v10617_v33  ;;  %v11810_v33 = vld [vmem:[#allocation7 + $0x384] sm:$0xf] }
 0x3fb   :  { %6960 = vmatpush.bf16.msra.mxu1 %v10573_v61  ;;  %v10509_v61 = vor.u32 %v11737_v3, %v10508_v29  ;;  %v11715_v29 = vld [vmem:[#allocation7 + $0x8c] sm:$0xf] }
 0x3fc   :  { %v11747_v3 = vld [vmem:[#allocation7 + $0x18c] sm:$0xf]  ;;  %v10433_v44 = vor.u32 %v11715_v29, %v10430_v54  ;;  %v10494_v29 = vld [vmem:[#allocation7 + $0x118] sm:$0xf0]  ;;  %v10717_v54 = vor.u32 %v11789_v25, %v10716_v60 }
 0x3fd   :  { %6948 = vmatpush.bf16.msra.mxu0 %v10429_v11  ;;  %v10606_v11 = vld [vmem:[#allocation7 + $0x1f8] sm:$0xf0]  ;;  %6886 = vmatpush.bf16.msra.mxu3 %v10757_v2  ;;  %v10561_v59 = vor.u32 %v11747_v3, %v10558_v55  ;;  %v11794_v3 = vld [vmem:[#allocation7 + $0x304] sm:$0xf]  ;;  %v10742_v55 = vld [vmem:[#allocation7 + $0x310] sm:$0xf0] }
 0x3fe   :  { %v10609_v39 = vor.u32 %v11759_v10, %v10606_v11  ;;  %v5916_v8 = vpop.f32.mrf.mxu0  ;;  %v10545_v11 = vor.u32 %v11743_v37, %v10542_v1  ;;  %v10668_v1 = vld [vmem:[#allocation7 + $0x268] sm:$0xf]  ;;  %v10702_v60 = vld [vmem:[#allocation7 + $0x2b8] sm:$0xf0] }
 0x3ff   :  { %6961 = vmatpush.bf16.msra.mxu1 %v10557_v19  ;;  %v10740_v19 = vld [vmem:[#allocation7 + $0x300] sm:$0xf]  ;;  %v5917_v2 = vadd.f32 %v5916_v8, %v5904_v56  ;;  %v11781_v8 = vld [vmem:[#allocation7 + $0x294] sm:$0xf0] }
 0x400   :  { %v10741_v50 = vor.u32 %v11796_v57, %v10740_v19  ;;  %v5929_v4 = vpop.f32.mrf.mxu1  ;;  %v10793_v19 = vor.u32 %v11806_v7, %v10790_v62  ;;  %v11739_v57 = vld [vmem:[#allocation7 + $0x14c] sm:$0xf]  ;;  %v11773_v7 = vld [vmem:[#allocation7 + $0x254] sm:$0xf0] }
 0x401   :  { %6949 = vmatpush.bf16.msra.mxu0 %v10413_v6  ;;  %v11723_v6 = vld [vmem:[#allocation7 + $0xcc] sm:$0xf]  ;;  %v5930_v10 = vadd.f32 %v5929_v4, %v5917_v2  ;;  %v11777_v2 = vld [vmem:[#allocation7 + $0x274] sm:$0xf0] }
 0x402   :  { %6887 = vmatpush.bf16.msra.mxu3 %v10741_v50  ;;  %v10465_v38 = vor.u32 %v11723_v6, %v10462_v31  ;;  %v10732_v50 = vld [vmem:[#allocation7 + $0x2e8] sm:$0xf]  ;;  %v10669_v4 = vor.u32 %v11777_v2, %v10668_v1  ;;  %v10638_v1 = vld [vmem:[#allocation7 + $0x238] sm:$0xf0] }
 0x403   :  { %6962 = vmatpush.bf16.msra.mxu1 %v10541_v32  ;;  %v11755_v32 = vld [vmem:[#allocation7 + $0x1cc] sm:$0xf] }
 0x404   :  { %v10593_v46 = vor.u32 %v11755_v32, %v10590_v15  ;;  %v5942_v31 = vpop.f32.mrf.mxu2  ;;  %v11703_v32 = vld [vmem:[#allocation7 + $0x2c] sm:$0xf]  ;;  %v10382_v15 = vld [vmem:[#allocation7 + $0x38] sm:$0xf0] }
 0x405   :  { %6950 = vmatpush.bf16.msra.mxu0 %v10397_v47  ;;  %v10841_v47 = vor.u32 %v11818_v40, %v10838_v45  ;;  %v11735_v40 = vld [vmem:[#allocation7 + $0x12c] sm:$0xf] }
 0x406   :  { %6932 = vmatpush.bf16.msrb.mxu3 %v10857_v36  ;;  %v11793_v36 = vld [vmem:[#allocation7 + $0x2f4] sm:$0xf0]  ;;  %v5918_v45 = vpop.f32.mrf.mxu0 }
 0x407   :  { %6963 = vmatpush.bf16.msra.mxu1 %v10525_v51  ;;  %v11814_v51 = vld [vmem:[#allocation7 + $0x3a4] sm:$0xf]  ;;  %v10733_v17 = vor.u32 %v11793_v36, %v10732_v50  ;;  %v11791_v50 = vld [vmem:[#allocation7 + $0x2ec] sm:$0xf] }
 0x408   :  { %v10825_v34 = vor.u32 %v11814_v51, %v10822_v14  ;;  %v5931_v16 = vpop.f32.mrf.mxu1  ;;  %v10366_v51 = vld [vmem:[#allocation7 + $0x18] sm:$0xf0]  ;;  %v10761_v14 = vor.u32 %v11798_v48, %v10758_v58 }
 0x409   :  { %6951 = vmatpush.bf16.msra.mxu0 %v10381_v30  ;;  %v10806_v30 = vld [vmem:[#allocation7 + $0x390] sm:$0xf0]  ;;  %v11825_v16 = vld [vmem:[#allocation7 + $0x3f4] sm:$0xf0] }
 0x40a   :  { %6933 = vmatpush.bf16.msrb.mxu3 %v10841_v47  ;;  %v10385_v47 = vor.u32 %v11703_v32, %v10382_v15  ;;  %v10737_v15 = vor.u32 %v11791_v50, %v10734_v28 }
 0x40b   :  { %6964 = vmatpush.bf16.msra.mxu1 %v10509_v61  ;;  %v10809_v61 = vor.u32 %v11810_v33, %v10806_v30  ;;  %v10700_v33 = vld [vmem:[#allocation7 + $0x2a8] sm:$0xf]  ;;  %v11785_v30 = vld [vmem:[#allocation7 + $0x2b4] sm:$0xf0] }
 0x40c   :  { %v10701_v35 = vor.u32 %v11785_v30, %v10700_v33  ;;  %v11771_v33 = vld [vmem:[#allocation7 + $0x24c] sm:$0xf]  ;;  %v10654_v30 = vld [vmem:[#allocation7 + $0x258] sm:$0xf0] }
 0x40d   :  { %6952 = vmatpush.bf16.msra.mxu0 %v10365_v18  ;;  %v11707_v18 = vld [vmem:[#allocation7 + $0x4c] sm:$0xf] }
 0x40e   :  { %6934 = vmatpush.bf16.msrb.mxu3 %v10825_v34  ;;  %v10401_v26 = vor.u32 %v11707_v18, %v10398_v20 }
 0x40f   :  { %6965 = vmatpush.bf16.msra.mxu1 %v10493_v23  ;;  %v10526_v23 = vld [vmem:[#allocation7 + $0x158] sm:$0xf0] }
 0x410   :  { %6953 = vmatmul.bf16.vlgmr.msra.gmra.mxu0 %v12330_v41  ;;  %v10529_v6 = vor.u32 %v11739_v57, %v10526_v23  ;;  %v10620_v23 = vld [vmem:[#allocation7 + $0x208] sm:$0xf] }
 0x411   :  { %6997 = vmatpush.bf16.msrb.mxu0 %v10481_v24  ;;  %v6043_v24 = vmax.f32 %v12291_v13, %v5930_v10  ;;  %v10510_v13 = vld [vmem:[#allocation7 + $0x138] sm:$0xf0] }
 0x412   :  { %6966 = vmatmul.bf16.vlgmr.msra.gmra.mxu1 %v12339_v12  ;;  %6935 = vmatpush.bf16.msrb.mxu3 %v10809_v61  ;;  %v10513_v49 = vor.u32 %v11735_v40, %v10510_v13  ;;  %v10684_v61 = vld [vmem:[#allocation7 + $0x288] sm:$0xf] }
 0x413   :  { %7010 = vmatpush.bf16.msrb.mxu1 %v10609_v39  ;;  %v6057_v39 = vmax.f32 %v6029_v22, %v6043_v24  ;;  %v10685_v37 = vor.u32 %v11781_v8, %v10684_v61  ;;  %v11765_v24 = vld [vmem:[#allocation7 + $0x214] sm:$0xf0]  ;;  %v10796_v61 = vld [vmem:[#allocation7 + $0x368] sm:$0xf] }
 0x414   :  { %v10621_v36 = vor.u32 %v11765_v24, %v10620_v23  ;;  %v11809_v8 = vld [vmem:[#allocation7 + $0x374] sm:$0xf0]  ;;  %v11823_v24 = vld [vmem:[#allocation7 + $0x3ec] sm:$0xf] }
 0x415   :  { %6998 = vmatpush.bf16.msrb.mxu0 %v10465_v38  ;;  %v5955_v38 = vpop.f32.mrf.mxu3  ;;  %v10797_v2 = vor.u32 %v11809_v8, %v10796_v61  ;;  %v11797_v23 = vld [vmem:[#allocation7 + $0x314] sm:$0xf0] }
 0x416   :  { %6936 = vmatpush.bf16.msrb.mxu3 %v10793_v19  ;;  %v5956_v62 = vadd.f32 %v5955_v38, %v5942_v31  ;;  %v10636_v19 = vld [vmem:[#allocation7 + $0x228] sm:$0xf]  ;;  %v10718_v38 = vld [vmem:[#allocation7 + $0x2d8] sm:$0xf0] }
 0x417   :  { %7011 = vmatpush.bf16.msrb.mxu1 %v10593_v46  ;;  %v6067_v46 = vmax.f32 %v6057_v39, 0.0 }
 0x419   :  { %6999 = vmatpush.bf16.msrb.mxu0 %v10449_v27  ;;  %v12362_v22 = vpack.c.bf16 %v6067_v46, %v6067_v46  ;;  %v11699_v27 = vld [vmem:[#allocation7 + $0xc] sm:$0xf]  ;;  %v10860_v46 = vld [vmem:[#allocation7 + $0x3e8] sm:$0xf] }
 0x41a   :  { %6937 = vmatpush.bf16.msrb.mxu3 %v10777_v21  ;;  %v10369_v34 = vor.u32 %v11699_v27, %v10366_v51  ;;  %v11787_v21 = vld [vmem:[#allocation7 + $0x2cc] sm:$0xf]  ;;  %v10844_v27 = vld [vmem:[#allocation7 + $0x3c8] sm:$0xf]  ;;  %v11821_v51 = vld [vmem:[#allocation7 + $0x3d4] sm:$0xf0] }
 0x41b   :  { %7012 = vmatpush.bf16.msrb.mxu1 %v10577_v52  ;;  %v11731_v52 = vld [vmem:[#allocation7 + $0x10c] sm:$0xf]  ;;  %6875 = vmatmul.bf16.vlgmr.msra.gmra.mxu2 %v12362_v22  ;;  %v10721_v45 = vor.u32 %v11787_v21, %v10718_v38  ;;  %v10814_v38 = vld [vmem:[#allocation7 + $0x398] sm:$0xf0] }
 0x41c   :  { %6971 = vmatpush.bf16.msra.mxu2 %v10733_v17  ;;  %v10497_v56 = vor.u32 %v11731_v52, %v10494_v29  ;;  %v10828_v52 = vld [vmem:[#allocation7 + $0x3a8] sm:$0xf]  ;;  %v11817_v29 = vld [vmem:[#allocation7 + $0x3b4] sm:$0xf0]  ;;  %v11811_v21 = vld [vmem:[#allocation7 + $0x38c] sm:$0xf] }
 0x41d   :  { %7000 = vmatpush.bf16.msrb.mxu0 %v10433_v44  ;;  %v5944_v44 = vpop.f32.mrf.mxu2  ;;  %v5957_v42 = vpop.f32.mrf.mxu3 }
 0x41e   :  { %6938 = vmatpush.bf16.msrb.mxu3 %v10761_v14  ;;  %v10689_v14 = vor.u32 %v11779_v63, %v10686_v43  ;;  %v11813_v44 = vld [vmem:[#allocation7 + $0x394] sm:$0xf0]  ;;  %v11795_v63 = vld [vmem:[#allocation7 + $0x30c] sm:$0xf]  ;;  %v10750_v43 = vld [vmem:[#allocation7 + $0x318] sm:$0xf0] }
 0x41f   :  { %7013 = vmatpush.bf16.msrb.mxu1 %v10561_v59  ;;  %v10745_v59 = vor.u32 %v11794_v3, %v10742_v55  ;;  %v10829_v3 = vor.u32 %v11817_v29, %v10828_v52 }
 0x420   :  { %6972 = vmatpush.bf16.msra.mxu2 %v10717_v54  ;;  %v11775_v54 = vld [vmem:[#allocation7 + $0x26c] sm:$0xf] }
 0x421   :  { %7001 = vmatpush.bf16.msrb.mxu0 %v10417_v5  ;;  %v10652_v5 = vld [vmem:[#allocation7 + $0x248] sm:$0xf] }
 0x422   :  { %6939 = vmatpush.bf16.msrb.mxu3 %v10745_v59  ;;  %v10653_v18 = vor.u32 %v11773_v7, %v10652_v5  ;;  %v10780_v5 = vld [vmem:[#allocation7 + $0x348] sm:$0xf]  ;;  %v11805_v7 = vld [vmem:[#allocation7 + $0x354] sm:$0xf0] }
 0x423   :  { %7014 = vmatpush.bf16.msrb.mxu1 %v10545_v11 }
 0x424   :  { %6973 = vmatpush.bf16.msra.mxu2 %v10701_v35  ;;  %v10657_v35 = vor.u32 %v11771_v33, %v10654_v30 }
 0x425   :  { %7002 = vmatpush.bf16.msrb.mxu0 %v10401_v26 }
 0x427   :  { %7015 = vmatpush.bf16.msrb.mxu1 %v10529_v6 }
 0x428   :  { %6974 = vmatpush.bf16.msra.mxu2 %v10685_v37  ;;  %v11767_v37 = vld [vmem:[#allocation7 + $0x22c] sm:$0xf] }
 0x429   :  { %7003 = vmatpush.bf16.msrb.mxu0 %v10385_v47  ;;  %v11783_v47 = vld [vmem:[#allocation7 + $0x2ac] sm:$0xf] }
 0x42b   :  { %7016 = vmatpush.bf16.msrb.mxu1 %v10513_v49  ;;  %6927 = vmatmul.bf16.vlgmr.msrb.gmra.mxu2 %v12362_v22  ;;  %v10861_v49 = vor.u32 %v11825_v16, %v10860_v46  ;;  %v10798_v46 = vld [vmem:[#allocation7 + $0x378] sm:$0xf0] }
 0x42c   :  { %6975 = vmatpush.bf16.msra.mxu2 %v10669_v4  ;;  %v10641_v4 = vor.u32 %v11767_v37, %v10638_v1 }
 0x42d   :  { %7004 = vmatpush.bf16.msrb.mxu0 %v10369_v34  ;;  %v5968_v10 = vpop.f32.mrf.mxu0  ;;  %v10670_v34 = vld [vmem:[#allocation7 + $0x278] sm:$0xf0] }
 0x42e   :  { %v5969_v20 = vadd.f32 %v5968_v10, %v5956_v62  ;;  %v10673_v55 = vor.u32 %v11775_v54, %v10670_v34  ;;  %v11763_v62 = vld [vmem:[#allocation7 + $0x20c] sm:$0xf]  ;;  %v10622_v10 = vld [vmem:[#allocation7 + $0x218] sm:$0xf0] }
 0x42f   :  { %7017 = vmatpush.bf16.msrb.mxu1 %v10497_v56  ;;  %v5981_v11 = vpop.f32.mrf.mxu1  ;;  %v10812_v56 = vld [vmem:[#allocation7 + $0x388] sm:$0xf] }
 0x430   :  { %7005 = vmatmul.bf16.vlgmr.msrb.gmra.mxu0 %v12330_v41  ;;  %v11769_v41 = vld [vmem:[#allocation7 + $0x234] sm:$0xf0]  ;;  %6976 = vmatpush.bf16.msra.mxu2 %v10653_v18  ;;  %v10813_v59 = vor.u32 %v11813_v44, %v10812_v56 }
 0x431   :  { %v10637_v57 = vor.u32 %v11769_v41, %v10636_v19  ;;  %v10764_v19 = vld [vmem:[#allocation7 + $0x328] sm:$0xf]  ;;  %v11801_v41 = vld [vmem:[#allocation7 + $0x334] sm:$0xf0] }
 0x432   :  { %7018 = vmatmul.bf16.vlgmr.msrb.gmra.mxu1 %v12339_v12  ;;  %v5982_v12 = vadd.f32 %v5981_v11, %v5969_v20  ;;  %v10781_v11 = vor.u32 %v11805_v7, %v10780_v5  ;;  %v10625_v20 = vor.u32 %v11763_v62, %v10622_v10  ;;  %v11833_v7 = vld [vmem:[#allocation8 + $0x38] sm:$0xff]  ;;  %v11832_v62 = vld [vmem:[#allocation8 + $0x30] sm:$0xff]  ;;  %v11831_v10 = vld [vmem:[#allocation8 + $0x28] sm:$0xff] }
 0x433   :  { %7140 = vmatpush.bf16.msra.mxu0 %v11833_v7 }
 0x434   :  { %6977 = vmatpush.bf16.msra.mxu2 %v10637_v57  ;;  %v10765_v57 = vor.u32 %v11801_v41, %v10764_v19  ;;  %v11830_v19 = vld [vmem:[#allocation8 + $0x20] sm:$0xff] }
 0x435   :  { %v5970_v6 = vpop.f32.mrf.mxu0 }
 0x437   :  { %v5994_v26 = vpop.f32.mrf.mxu2  ;;  %v5983_v31 = vpop.f32.mrf.mxu1  ;;  %7141 = vmatpush.bf16.msra.mxu0 %v11832_v62 }
 0x438   :  { %v5995_v0 = vadd.f32 %v5994_v26, %v5982_v12  ;;  %6978 = vmatpush.bf16.msra.mxu2 %v10621_v36  ;;  %v10748_v12 = vld [vmem:[#allocation7 + $0x308] sm:$0xf]  ;;  %v10862_v26 = vld [vmem:[#allocation7 + $0x3f8] sm:$0xf0]  ;;  %v11815_v31 = vld [vmem:[#allocation7 + $0x3ac] sm:$0xf] }
 0x439   :  { %v6007_v39 = vpop.f32.mrf.mxu3  ;;  %v10749_v50 = vor.u32 %v11797_v23, %v10748_v12  ;;  %v10865_v28 = vor.u32 %v11823_v24, %v10862_v26  ;;  %v10830_v36 = vld [vmem:[#allocation7 + $0x3b8] sm:$0xf0] }
 0x43a   :  { %v6008_v32 = vadd.f32 %v6007_v39, %v5995_v0  ;;  %v11819_v0 = vld [vmem:[#allocation7 + $0x3cc] sm:$0xf]  ;;  %v10846_v39 = vld [vmem:[#allocation7 + $0x3d8] sm:$0xf0] }
 0x43b   :  { %6979 = vmatmul.bf16.vlgmr.msra.gmra.mxu2 %v12362_v22  ;;  %v10849_v6 = vor.u32 %v11819_v0, %v10846_v39  ;;  %7142 = vmatpush.bf16.msra.mxu0 %v11831_v10  ;;  %v11828_v39 = vld [vmem:[#allocation8 + $0x10] sm:$0xff] }
 0x43c   :  { %v6044_v40 = vmax.f32 %v12300_v9, %v6008_v32  ;;  %7023 = vmatpush.bf16.msrb.mxu2 %v10737_v15  ;;  %v10705_v9 = vor.u32 %v11783_v47, %v10702_v60  ;;  %v10833_v32 = vor.u32 %v11815_v31, %v10830_v36  ;;  %v11803_v47 = vld [vmem:[#allocation7 + $0x34c] sm:$0xf]  ;;  %v10782_v60 = vld [vmem:[#allocation7 + $0x358] sm:$0xf0]  ;;  %v11826_v36 = vld [vmem:[#allocation8] sm:$0xff] }
 0x43e   :  { %v6058_v13 = vmax.f32 %v6030_v53, %v6044_v40  ;;  %v10845_v53 = vor.u32 %v11821_v51, %v10844_v27 }
 0x43f   :  { %v5996_v17 = vpop.f32.mrf.mxu2  ;;  %7143 = vmatpush.bf16.msra.mxu0 %v11830_v19 }
 0x440   :  { %v6068_v48 = vmax.f32 %v6058_v13, 0.0  ;;  %7024 = vmatpush.bf16.msrb.mxu2 %v10721_v45  ;;  %v10817_v13 = vor.u32 %v11811_v21, %v10814_v38  ;;  %v11807_v45 = vld [vmem:[#allocation7 + $0x36c] sm:$0xf]  ;;  %v11838_v38 = vld [vmem:[#allocation11 + $0x20] sm:$0xff] }
 0x441   :  { %v6009_v58 = vpop.f32.mrf.mxu3  ;;  %v10801_v16 = vor.u32 %v11807_v45, %v10798_v46  ;;  %v11839_v21 = vld [vmem:[#allocation11 + $0x28] sm:$0xff] }
 0x442   :  { %v12373_v25 = vpack.c.bf16 %v6068_v48, %v6068_v48  ;;  %v10785_v48 = vor.u32 %v11803_v47, %v10782_v60  ;;  %v11836_v47 = vld [vmem:[#allocation11 + $0x10] sm:$0xff] }
 0x444   :  { %6888 = vmatmul.bf16.vlgmr.msra.gmra.mxu3 %v12373_v25  ;;  %7025 = vmatpush.bf16.msrb.mxu2 %v10705_v9  ;;  %v10766_v9 = vld [vmem:[#allocation7 + $0x338] sm:$0xf0] }
 0x445   :  { %6984 = vmatpush.bf16.msra.mxu3 %v10861_v49  ;;  %v11799_v49 = vld [vmem:[#allocation7 + $0x32c] sm:$0xf] }
 0x446   :  { %v10769_v27 = vor.u32 %v11799_v49, %v10766_v9 }
 0x448   :  { %7026 = vmatpush.bf16.msrb.mxu2 %v10689_v14  ;;  %v10753_v14 = vor.u32 %v11795_v63, %v10750_v43  ;;  %v11835_v63 = vld [vmem:[#allocation11 + $0x8] sm:$0xff]  ;;  %v11834_v43 = vld [vmem:[#allocation11] sm:$0xff] }
 0x449   :  { %6985 = vmatpush.bf16.msra.mxu3 %v10845_v53 }
 0x44c   :  { %7027 = vmatpush.bf16.msrb.mxu2 %v10673_v55 }
 0x44d   :  { %6986 = vmatpush.bf16.msra.mxu3 %v10829_v3  ;;  %v6850_v42 = vpop.f32.mrf.mxu0 }
 0x450   :  { %7028 = vmatpush.bf16.msrb.mxu2 %v10657_v35 }
 0x451   :  { %6987 = vmatpush.bf16.msra.mxu3 %v10813_v59 }
 0x454   :  { %6940 = vmatmul.bf16.vlgmr.msrb.gmra.mxu3 %v12373_v25  ;;  %7029 = vmatpush.bf16.msrb.mxu2 %v10641_v4 }
 0x455   :  { %6988 = vmatpush.bf16.msra.mxu3 %v10797_v2  ;;  %v6852_v18 = vpop.f32.mrf.mxu0 }
 0x458   :  { %7030 = vmatpush.bf16.msrb.mxu2 %v10625_v20 }
 0x459   :  { %6989 = vmatpush.bf16.msra.mxu3 %v10781_v11  ;;  %v6863_v15 = vpop.f32.mrf.mxu1 }
 0x45a   :  { %v6864_v40 = vadd.f32 %v6863_v15, %v6850_v42  ;;  %v11840_v15 = vld [vmem:[#allocation11 + $0x30] sm:$0xff] }
 0x45b   :  { %7031 = vmatmul.bf16.vlgmr.msrb.gmra.mxu2 %v12362_v22 }
 0x45d   :  { %6990 = vmatpush.bf16.msra.mxu3 %v10765_v57 }
 0x461   :  { %6991 = vmatpush.bf16.msra.mxu3 %v10749_v50  ;;  %v6865_v17 = vpop.f32.mrf.mxu1  ;;  %v11829_v50 = vld [vmem:[#allocation8 + $0x18] sm:$0xff] }
 0x462   :  { %7144 = vmatpush.bf16.msra.mxu0 %v11829_v50 }
 0x464   :  { %6992 = vmatmul.bf16.vlgmr.msra.gmra.mxu3 %v12373_v25 }
 0x465   :  { %7036 = vmatpush.bf16.msrb.mxu3 %v10865_v28 }
 0x466   :  { %7145 = vmatpush.bf16.msra.mxu0 %v11828_v39 }
 0x469   :  { %7037 = vmatpush.bf16.msrb.mxu3 %v10849_v6  ;;  %v11827_v6 = vld [vmem:[#allocation8 + $0x8] sm:$0xff] }
 0x46a   :  { %7146 = vmatpush.bf16.msra.mxu0 %v11827_v6 }
 0x46d   :  { %7038 = vmatpush.bf16.msrb.mxu3 %v10833_v32  ;;  %v6902_v22 = vpop.f32.mrf.mxu0  ;;  %v11841_v32 = vld [vmem:[#allocation11 + $0x38] sm:$0xff] }
 0x46e   :  { %7147 = vmatpush.bf16.msra.mxu0 %v11826_v36  ;;  %7223 = vmatpush.bf16.msra.mxu1 %v11841_v32 }
 0x46f   :  { %v6915_v51 = vpop.f32.mrf.mxu1 }
 0x470   :  { %v6916_v53 = vadd.f32 %v6915_v51, %v6902_v22  ;;  %v11837_v22 = vld [vmem:[#allocation11 + $0x18] sm:$0xff] }
 0x471   :  { %7039 = vmatpush.bf16.msrb.mxu3 %v10817_v13 }
 0x472   :  { %7224 = vmatpush.bf16.msra.mxu1 %v11840_v15 }
 0x475   :  { %7040 = vmatpush.bf16.msrb.mxu3 %v10801_v16  ;;  %v6904_v58 = vpop.f32.mrf.mxu0 }
 0x476   :  { %7225 = vmatpush.bf16.msra.mxu1 %v11839_v21 }
 0x477   :  { %v6917_v52 = vpop.f32.mrf.mxu1 }
 0x479   :  { %7041 = vmatpush.bf16.msrb.mxu3 %v10785_v48 }
 0x47a   :  { %7226 = vmatpush.bf16.msra.mxu1 %v11838_v38 }
 0x47d   :  { %7042 = vmatpush.bf16.msrb.mxu3 %v10769_v27 }
 0x47e   :  { %7227 = vmatpush.bf16.msra.mxu1 %v11837_v22 }
 0x481   :  { %7043 = vmatpush.bf16.msrb.mxu3 %v10753_v14 }
 0x482   :  { %7228 = vmatpush.bf16.msra.mxu1 %v11836_v47 }
 0x484   :  { %7044 = vmatmul.bf16.vlgmr.msrb.gmra.mxu3 %v12373_v25 }
 0x486   :  { %7229 = vmatpush.bf16.msra.mxu1 %v11835_v63 }
 0x48a   :  { %7230 = vmatpush.bf16.msra.mxu1 %v11834_v43 }
 0x48d   :  { %v6954_v29 = vpop.f32.mrf.mxu0 }
 0x48f   :  { %v6967_v54 = vpop.f32.mrf.mxu1 }
 0x490   :  { %v6968_v34 = vadd.f32 %v6967_v54, %v6954_v29 }
 0x495   :  { %v6956_v3 = vpop.f32.mrf.mxu0 }
 0x496   :  { %v11856_v3 = vld [vmem:[#allocation13] ss:$0 sm:$0xff] }
 0x497   :  { %v6969_v55 = vpop.f32.mrf.mxu1 }
 0x49e   :  { %v6876_v56 = vpop.f32.mrf.mxu2 }
 0x49f   :  { %v6877_v44 = vadd.f32 %v6876_v56, %v6864_v40 }
 0x4a6   :  { %v6878_v42 = vpop.f32.mrf.mxu2 }
 0x4ad   :  { %v7006_v33 = vpop.f32.mrf.mxu0 }
 0x4ae   :  { %v6928_v8 = vpop.f32.mrf.mxu2 }
 0x4af   :  { %v7019_v30 = vpop.f32.mrf.mxu1  ;;  %v6929_v37 = vadd.f32 %v6928_v8, %v6916_v53  ;;  %v11855_v53 = vld [vmem:[#allocation10] ss:$0 sm:$0xff] }
 0x4b0   :  { %v7020_v59 = vadd.f32 %v7019_v30, %v7006_v33 }
 0x4b5   :  { %v7008_v35 = vpop.f32.mrf.mxu0 }
 0x4b6   :  { %v6930_v1 = vpop.f32.mrf.mxu2 }
 0x4b7   :  { %v7021_v61 = vpop.f32.mrf.mxu1 }
 0x4be   :  { %v6980_v2 = vpop.f32.mrf.mxu2 }
 0x4bf   :  { %v6981_v40 = vadd.f32 %v6980_v2, %v6968_v34 }
 0x4c6   :  { %v6982_v5 = vpop.f32.mrf.mxu2 }
 0x4c7   :  { %v6889_v4 = vpop.f32.mrf.mxu3 }
 0x4c8   :  { %v6890_v18 = vadd.f32 %v6889_v4, %v6877_v44 }
 0x4cf   :  { %v6891_v25 = vpop.f32.mrf.mxu3 }
 0x4d7   :  { %v6941_v11 = vpop.f32.mrf.mxu3 }
 0x4d8   :  { %v6942_v20 = vadd.f32 %v6941_v11, %v6929_v37 }
 0x4da   :  { %v7049_v41 = vpack.c.bf16 %v6942_v20, %v6890_v18 }
 0x4dc   :  { %v7053_v57 = vrot.slane %v7049_v41, 4 }
 0x4de   :  { %v7055_v12 = vunpack.c.l.bf16 %v7053_v57  ;;  %v7032_v26 = vpop.f32.mrf.mxu2 }
 0x4df   :  { %v6943_v23 = vpop.f32.mrf.mxu3  ;;  %v7033_v13 = vadd.f32 %v7032_v26, %v7020_v59 }
 0x4e0   :  { %v7056_v24 = vmax.f32 %v6890_v18, %v7055_v12 }
 0x4e6   :  { %v7034_v0 = vpop.f32.mrf.mxu2 }
 0x4e7   :  { %v6993_v28 = vpop.f32.mrf.mxu3 }
 0x4e8   :  { %v6994_v46 = vadd.f32 %v6993_v28, %v6981_v40 }
 0x4ef   :  { %v6995_v31 = vpop.f32.mrf.mxu3 }
 0x507   :  { %v7045_v45 = vpop.f32.mrf.mxu3 }
 0x508   :  { %v7046_v16 = vadd.f32 %v7045_v45, %v7033_v13 }
 0x50a   :  { %v7050_v17 = vpack.c.bf16 %v7046_v16, %v6994_v46 }
 0x50c   :  { %v7060_v60 = vrot.slane %v7050_v17, 4 }
 0x50e   :  { %v7062_v48 = vunpack.c.l.bf16 %v7060_v60 }
 0x50f   :  { %v7047_v58 = vpop.f32.mrf.mxu3 }
 0x510   :  { %v7063_v49 = vmax.f32 %v6994_v46, %v7062_v48 }
 0x512   :  { %v7067_v9 = vmax.f32 %v7056_v24, %v7063_v49 }
 0x514   :  { %v7070_v27 = vmax.f32 %v7067_v9, 0.0 }
 0x516   :  { %v7071_v51 = vpack.c.bf16 %v7070_v27, %v7070_v27 }
 0x518   :  { %7148 = vmatmul.bf16.vlgmr.msra.gmra.mxu0 %v7071_v51 }
 0x595   :  { %v7149_v14 = vpop.f32.mrf.mxu0 }
 0x596   :  { %v7150_v52 = vadd.f32 %v11855_v53, %v7149_v14 }
 0x598   :  { %v7153_v29 = vmax.f32 %v7150_v52, 0.0 }
 0x59a   :  { %v7154_v54 = vpack.c.bf16 %v7153_v29, %v7153_v29 }
 0x59c   :  { %7231 = vmatmul.bf16.vlgmr.msra.gmra.mxu1 %v7154_v54 }
 0x59d   :  { %v7151_v34 = vpop.f32.mrf.mxu0 }
 0x619   :  { %v7232_v55 = vpop.f32.mrf.mxu1 }
 0x61a   :  { %v7233_v56 = vadd.f32 %v11856_v3, %v7232_v55 }
 0x61c   :  { %v7237_v44 = vsel %vm7236_vm0, %v7233_v56, -inf }
 0x61d   :  { %7238 = vmax.xlane.f32.xlu0 %v7237_v44 }
 0x621   :  { %v7234_v33 = vpop.f32.mrf.mxu1 }
 0x690   :  { %v7239_v30 = vpop.xlane.xlu0 %7238 }
 0x691   :  { %v7240_v59 = vsub.f32 %v7233_v56, %v7239_v30 }
 0x693   :  { %v7241_v42 = vmul.f32 1.442695, %v7240_v59 }
 0x695   :  { %11857 = vpow2.f32 %v7241_v42 }
 0x69b   :  { %v11858_v35 = vpop.eup %11857 }
 0x69c   :  { %v7243_v61 = vsel %vm7236_vm0, %v11858_v35, 0.0 }
 0x69d   :  { %7244 = vadd.xlane.f32.xlu0 %v7243_v61 }
 0x710   :  { %v7245_v8 = vpop.xlane.xlu0 %7244 }
 0x711   :  { %11859 = vrcp.f32 %v7245_v8  ;;  %v7257_v4 = vand.u32 2147483648, %v7245_v8  ;;  %v7255_v25 = vand.u32 2147483647, %v7245_v8  ;;  %vm7251_vm2 = vweird.f32 %v7245_v8 }
 0x713   :  { %v7258_v62 = vor.u32 1.1754944e-38, %v7257_v4  ;;  %vm7256_vm4 = vcmp.eq.f32.partialorder %v7255_v25, 8.507059e+37 }
 0x717   :  { %v11860_v37 = vpop.eup %11859 }
 0x718   :  { %v7247_v1 = vmul.f32 %v11860_v37, %v7245_v8  ;;  %vm7252_vm1 = vweird.f32 %v11860_v37 }
 0x719   :  { %vm7253_vm3 = vmor %vm7251_vm2, %vm7252_vm1 }
 0x71a   :  { %v7248_v2 = vsub.f32 1.0, %v7247_v1 }
 0x71c   :  { %v7249_v5 = vmul.f32 %v11860_v37, %v7248_v2 }
 0x71e   :  { %v7250_v7 = vadd.f32 %v11860_v37, %v7249_v5 }
 0x720   :  { %v7254_v10 = vsel %vm7253_vm3, %v11860_v37, %v7250_v7 }
 0x721   :  { %v7259_v11 = vsel %vm7256_vm4, %v7258_v62, %v7254_v10 }
 0x722   :  { %v7260_v18 = vmul.f32 %v11858_v35, %v7259_v11 }
 0x724   :  { %7261 = vst [vmem:[#allocation14] sm:$0x3] %v7260_v18 }
 0x725   :  { %7272 = dma.vmem_to_hbm [thread:$0]  %s7268_s6, 32, %s7270_s1, [#allocation4]  }
 0x726   :  { %12061 = dma.done.wait [#allocation4], 32  }
 0x727   :  { %12062 = vsyncadd [#allocation4], 4294967264 }
 0x728   :  { %7277 = vsyncpa [#allocation3], 1 }
 0x729   :  { %7278 = vsyncpa [#allocation6], 1 }
 0x72a   :  { %7279 = vsyncpa [#allocation9], 1 }
 0x72b   :  { %7280 = vsyncpa [#allocation12], 1 }
 0x72c   :  { %7281 = vsyncpa [#allocation4], 1 }

</bundles_post_ra>
